<compile_context>
chip_gen: v5e
topology: v5e:2x2
jax: 0.10.0
libtpu: 0.0.40
codegen_flags: <defaults>
</compile_context>

<pallas_src>
import numpy as np
import jax
import jax.numpy as jnp
from jax import lax
from jax.experimental import pallas as pl
from jax.experimental.pallas import tpu as pltpu

# ----- model dimensions (EfficientNet-B7 tail) -----
FEAT_C = 2560                   # channels of extract_features output
CA_RATIO = 16
CA_HIDDEN = FEAT_C // CA_RATIO  # 160
NUM_CLASSES = 200
SA_K = 7                        # SpatialAttention kernel size
SA_PAD = SA_K // 2


# ---------------------------------------------------------------------------
# Fused kernel: channel attention + spatial attention + global average pool
# ---------------------------------------------------------------------------
def _fused_attention_pool_kernel(x_ref, w1_ref, w2_ref, t_ref, out_ref):
    """One image per grid step.  Emits only the pooled (1, C) channel vector.

    x:(1,HW,C) bf16   w1:(C,Cr) bf16   w2:(Cr,C) bf16
    t:(2,HW,HW) f32 Toeplitz operator of the 7x7 conv   out:(1,1,C) f32
    """
    _, HW, C = x_ref.shape
    x = x_ref[0]                                        # (HW, C) bf16, stays bf16

    ones_row = jnp.ones((1, HW), jnp.bfloat16)          # f32-accumulating row sums on MXU
    ones_col = jnp.ones((C, 1), jnp.bfloat16)

    # ---- channel attention (ca_tail): shared MLP on [avg, max] over HW ----
    avg_c = jnp.dot(ones_row, x,
                    preferred_element_type=jnp.float32) * (1.0 / HW)       # (1, C)
    max_c = jnp.max(x, axis=0, keepdims=True).astype(jnp.float32)          # (1, C)
    s2 = jnp.concatenate([avg_c, max_c], axis=0)                           # (2, C)
    h = jnp.maximum(
        jnp.dot(s2.astype(jnp.bfloat16), w1_ref[...],
                preferred_element_type=jnp.float32), 0.0)                  # (2, Cr)
    m = jnp.dot(h.astype(jnp.bfloat16), w2_ref[...],
                preferred_element_type=jnp.float32)                        # (2, C)
    ca_b = jax.nn.sigmoid(m[0:1, :] + m[1:2, :]).astype(jnp.bfloat16)      # (1, C)

    # ---- spatial attention stats; y = ca*x is never materialized in f32 ----
    prod = x * ca_b                                     # (HW, C) bf16 (only full-map temp #1)
    mean_col = jnp.dot(prod, ones_col,
                       preferred_element_type=jnp.float32) * (1.0 / C)     # (HW,1) = mean_c(y)
    max_col = jnp.max(prod, axis=1, keepdims=True).astype(jnp.float32)     # (HW,1) = max_c(y)

    # 7x7 conv over the two stat maps as precomputed Toeplitz matvecs (MXU)
    conv = (jnp.dot(t_ref[0], mean_col, preferred_element_type=jnp.float32)
            + jnp.dot(t_ref[1], max_col, preferred_element_type=jnp.float32))   # (HW, 1)
    sa_b = jax.nn.sigmoid(conv).astype(jnp.bfloat16)                            # (HW, 1)

    # ---- pooled = mean_hw(sa * ca * x): sa-weighted row sum of prod on the MXU ----
    wprod = prod * sa_b                                 # (HW, C) bf16 (only full-map temp #2)
    pooled = jnp.dot(ones_row, wprod,
                     preferred_element_type=jnp.float32) * (1.0 / HW)      # (1, C)
    out_ref[0] = pooled.astype(out_ref.dtype)


# ---------------------------------------------------------------------------
# Precompute the 7x7 conv as a pair of (HW, HW) Toeplitz operators
# ---------------------------------------------------------------------------
def _build_sa_conv_operator(sa_w, H, W):
    """sa_w:(2,7,7) -> T:(2,HW,HW) f32 so that on flattened (h*W + w) maps
    conv_flat = T[0] @ mean_flat + T[1] @ max_flat reproduces
    Conv2d(2, 1, kernel_size=7, padding=3, bias=False)."""
    HW = H * W
    idx = np.arange(HW)
    ph, pw = idx // W, idx % W
    dh = ph[None, :] - ph[:, None] + SA_PAD          # [out, in] = in_h - out_h + 3
    dw = pw[None, :] - pw[:, None] + SA_PAD
    valid = (dh >= 0) & (dh < SA_K) & (dw >= 0) & (dw < SA_K)
    tap = np.clip(dh, 0, SA_K - 1) * SA_K + np.clip(dw, 0, SA_K - 1)        # (HW, HW)
    w_flat = sa_w.reshape(2, SA_K * SA_K)
    gathered = jnp.take(w_flat, jnp.asarray(tap.ravel()), axis=1).reshape(2, HW, HW)
    return jnp.where(jnp.asarray(valid)[None, :, :], gathered, 0.0).astype(jnp.float32)


# ---------------------------------------------------------------------------
# Wrapper
# ---------------------------------------------------------------------------
def efficientnet_attention_head(feat_nchw, params):
    """feat_nchw: (N, 2560, H, W) features from extract_features -> (N, num_classes)."""
    N, C, H, W = feat_nchw.shape
    HW = H * W

    # bf16 before the NCHW -> (N, HW, C) relayout: halves that HBM pass and the
    # kernel's input DMA; HW on the sublane axis avoids the W<16 padding waste.
    x = jnp.transpose(feat_nchw.astype(jnp.bfloat16), (0, 2, 3, 1)).reshape(N, HW, C)

    w1 = params["ca_w1"].astype(jnp.bfloat16)
    w2 = params["ca_w2"].astype(jnp.bfloat16)
    t_op = _build_sa_conv_operator(params["sa_w"], H, W)            # (2, HW, HW) f32

    # VMEM budget: double-buffered input block + constant weights + bf16 temps,
    # plus slack; capped well under v7x's 64 MiB per-TensorCore capacity.
    xblk_bytes = HW * C * 2
    const_bytes = (w1.size + w2.size) * 2 + t_op.size * 4
    vmem_limit = int(min(48 << 20,
                         max(16 << 20, 5 * xblk_bytes + 2 * const_bytes + (4 << 20))))

    pooled = pl.pallas_call(
        _fused_attention_pool_kernel,
        out_shape=jax.ShapeDtypeStruct((N, 1, C), jnp.float32),
        grid_spec=pltpu.PrefetchScalarGridSpec(
            num_scalar_prefetch=0, grid=(N,),
            in_specs=[
                pl.BlockSpec((1, HW, C), lambda n: (n, 0, 0)),
                pl.BlockSpec((C, CA_HIDDEN), lambda n: (0, 0)),
                pl.BlockSpec((CA_HIDDEN, C), lambda n: (0, 0)),
                pl.BlockSpec((2, HW, HW), lambda n: (0, 0, 0)),
            ],
            out_specs=pl.BlockSpec((1, 1, C), lambda n: (n, 0, 0))),
        compiler_params=pltpu.CompilerParams(
            dimension_semantics=("parallel",),      # v7x megacore splits the batch
            vmem_limit_bytes=vmem_limit),
    )(x, w1, w2, t_op)[:, 0, :]                     # (N, C) f32, lane-dense

    # Batched FC outside the kernel (M=N instead of N separate M=1 matvecs).
    # Dropout(p=0.5) is eval-mode identity.
    return jnp.dot(pooled, params["fc_w"],
                   precision=lax.Precision.HIGHEST) + params["fc_b"]


# ---------------------------------------------------------------------------
# Pure-JAX reference (for correctness check)
# ---------------------------------------------------------------------------
def reference(feat_nchw, params):
    x = feat_nchw.astype(jnp.float32)
    w1, w2 = params["ca_w1"], params["ca_w2"]
    hi = lax.Precision.HIGHEST

    avg = jnp.mean(x, axis=(2, 3))
    mx = jnp.max(x, axis=(2, 3))
    mlp = lambda v: jnp.dot(jnp.maximum(jnp.dot(v, w1, precision=hi), 0.0),
                            w2, precision=hi)
    ca = jax.nn.sigmoid(mlp(avg) + mlp(mx))
    y = x * ca[:, :, None, None]

    st = jnp.concatenate([jnp.mean(y, axis=1, keepdims=True),
                          jnp.max(y, axis=1, keepdims=True)], axis=1)
    conv = lax.conv_general_dilated(st, params["sa_w"][None],
                                    window_strides=(1, 1),
                                    padding=((SA_PAD, SA_PAD), (SA_PAD, SA_PAD)),
                                    precision=hi)
    sa = jax.nn.sigmoid(conv)
    z = y * sa

    pooled = jnp.mean(z, axis=(2, 3))
    return jnp.dot(pooled, params["fc_w"], precision=hi) + params["fc_b"]


# ---------------------------------------------------------------------------
if __name__ == "__main__":
    key = jax.random.PRNGKey(0)
    k1, k2, k3, k4, k5, kx = jax.random.split(key, 6)

    params = {
        # ChannelAttention(2560): fc1 / fc2 1x1 convs (bias=False), stored transposed
        "ca_w1": jax.random.normal(k1, (FEAT_C, CA_HIDDEN), jnp.float32)
                 * (1.0 / np.sqrt(FEAT_C)),
        "ca_w2": jax.random.normal(k2, (CA_HIDDEN, FEAT_C), jnp.float32)
                 * (1.0 / np.sqrt(CA_HIDDEN)),
        # SpatialAttention: Conv2d(2, 1, 7, padding=3, bias=False) weight[0]
        "sa_w": jax.random.normal(k3, (2, SA_K, SA_K), jnp.float32)
                * (1.0 / np.sqrt(2 * SA_K * SA_K)),
        # fc: Linear(2560, 200) stored as (in, out)
        "fc_w": jax.random.normal(k4, (FEAT_C, NUM_CLASSES), jnp.float32)
                * (1.0 / np.sqrt(FEAT_C)),
        "fc_b": jax.random.normal(k5, (NUM_CLASSES,), jnp.float32) * 0.01,
    }

    # Small synthetic feature map (stand-in for extract_features output), NCHW.
    N, H, W = 2, 8, 8
    feat = jax.random.normal(kx, (N, FEAT_C, H, W), jnp.float32)

    head = jax.jit(efficientnet_attention_head)
    out = jax.block_until_ready(head(feat, params))
    assert out.shape == (N, NUM_CLASSES)

    ref = jax.block_until_ready(reference(feat, params))
    # bf16 feature DMA + bf16 elementwise path => looser tolerance than pure f32.
    np.testing.assert_allclose(np.asarray(out), np.asarray(ref),
                               rtol=2e-2, atol=2e-2)

    print("KERNEL_OK")
</pallas_src>

<mosaic_0001>
module attributes {stable_mosaic.version = 11 : i64} {
  func.func @_fused_attention_pool_kernel(%arg0: i32, %arg1: memref<1x64x2560xbf16, #tpu.memory_space<vmem>>, %arg2: memref<2560x160xbf16, #tpu.memory_space<vmem>>, %arg3: memref<160x2560xbf16, #tpu.memory_space<vmem>>, %arg4: memref<2x64x64xf32, #tpu.memory_space<vmem>>, %arg5: memref<1x1x2560xf32, #tpu.memory_space<vmem>>) attributes {dimension_semantics = [#tpu.dimension_semantics<parallel>], iteration_bounds = array<i64: 2>, scalar_prefetch = 0 : i64, scratch_operands = 0 : i64, tpu.core_type = #tpu.core_type<tc>, window_params = [{transform_indices = @transform_0, window_bounds = array<i64: 1, 64, 2560>}, {pipeline_mode = #tpu.pipeline_mode<synchronous>, transform_indices = @transform_1, window_bounds = array<i64: 2560, 160>}, {pipeline_mode = #tpu.pipeline_mode<synchronous>, transform_indices = @transform_2, window_bounds = array<i64: 160, 2560>}, {pipeline_mode = #tpu.pipeline_mode<synchronous>, transform_indices = @transform_3, window_bounds = array<i64: 2, 64, 64>}, {transform_indices = @transform_4, window_bounds = array<i64: 1, 1, 2560>}]} {
    %c0 = arith.constant 0 : index
    %c0_0 = arith.constant 0 : index
    %c0_1 = arith.constant 0 : index
    %0 = vector.load %arg1[%c0, %c0_0, %c0_1] : memref<1x64x2560xbf16, #tpu.memory_space<vmem>>, vector<1x64x2560xbf16>
    %1 = vector.shape_cast %0 : vector<1x64x2560xbf16> to vector<64x2560xbf16>
    %cst = arith.constant 1.000000e+00 : bf16
    %2 = vector.broadcast %cst : bf16 to vector<1x64xbf16>
    %cst_2 = arith.constant 1.000000e+00 : bf16
    %3 = vector.broadcast %cst_2 : bf16 to vector<2560x1xbf16>
    %cst_3 = arith.constant dense<0.000000e+00> : vector<1x2560xf32>
    %4 = tpu.matmul %2, %1, %cst_3 {dimension_numbers = #tpu.dot_dimension_numbers<[1], [0], [0], [1], [0, 0, 1, 1], [], []>} : vector<1x64xbf16>, vector<64x2560xbf16>, vector<1x2560xf32> -> vector<1x2560xf32>
    %cst_4 = arith.constant 1.562500e-02 : f32
    %5 = vector.broadcast %cst_4 : f32 to vector<1x2560xf32>
    %6 = arith.mulf %4, %5 : vector<1x2560xf32>
    %cst_5 = arith.constant dense<0xFF80> : vector<2560xbf16>
    %7 = vector.multi_reduction <maximumf>, %1, %cst_5 [0] : vector<64x2560xbf16> to vector<2560xbf16>
    %8 = vector.shape_cast %7 : vector<2560xbf16> to vector<1x2560xbf16>
    %9 = arith.extf %8 : vector<1x2560xbf16> to vector<1x2560xf32>
    %10 = tpu.concatenate %6, %9 in 0 : vector<1x2560xf32>, vector<1x2560xf32> -> vector<2x2560xf32>
    %11 = arith.truncf %10 : vector<2x2560xf32> to vector<2x2560xbf16>
    %c0_6 = arith.constant 0 : index
    %c0_7 = arith.constant 0 : index
    %12 = vector.load %arg2[%c0_6, %c0_7] : memref<2560x160xbf16, #tpu.memory_space<vmem>>, vector<2560x160xbf16>
    %cst_8 = arith.constant dense<0.000000e+00> : vector<2x160xf32>
    %13 = tpu.matmul %11, %12, %cst_8 {dimension_numbers = #tpu.dot_dimension_numbers<[1], [0], [0], [1], [0, 0, 1, 1], [], []>} : vector<2x2560xbf16>, vector<2560x160xbf16>, vector<2x160xf32> -> vector<2x160xf32>
    %cst_9 = arith.constant 0.000000e+00 : f32
    %14 = vector.broadcast %cst_9 : f32 to vector<2x160xf32>
    %15 = arith.maximumf %13, %14 : vector<2x160xf32>
    %16 = arith.truncf %15 : vector<2x160xf32> to vector<2x160xbf16>
    %c0_10 = arith.constant 0 : index
    %c0_11 = arith.constant 0 : index
    %17 = vector.load %arg3[%c0_10, %c0_11] : memref<160x2560xbf16, #tpu.memory_space<vmem>>, vector<160x2560xbf16>
    %cst_12 = arith.constant dense<0.000000e+00> : vector<2x2560xf32>
    %18 = tpu.matmul %16, %17, %cst_12 {dimension_numbers = #tpu.dot_dimension_numbers<[1], [0], [0], [1], [0, 0, 1, 1], [], []>} : vector<2x160xbf16>, vector<160x2560xbf16>, vector<2x2560xf32> -> vector<2x2560xf32>
    %19 = vector.extract_strided_slice %18 {offsets = [0, 0], sizes = [1, 2560], strides = [1, 1]} : vector<2x2560xf32> to vector<1x2560xf32>
    %20 = vector.extract_strided_slice %18 {offsets = [1, 0], sizes = [1, 2560], strides = [1, 1]} : vector<2x2560xf32> to vector<1x2560xf32>
    %21 = arith.addf %19, %20 : vector<1x2560xf32>
    %22 = arith.negf %21 : vector<1x2560xf32>
    %23 = math.exp %22 : vector<1x2560xf32>
    %cst_13 = arith.constant 1.000000e+00 : f32
    %24 = vector.broadcast %cst_13 : f32 to vector<1x2560xf32>
    %25 = arith.addf %24, %23 : vector<1x2560xf32>
    %26 = arith.divf %24, %25 : vector<1x2560xf32>
    %27 = arith.truncf %26 : vector<1x2560xf32> to vector<1x2560xbf16>
    %28 = vector.broadcast %27 : vector<1x2560xbf16> to vector<64x2560xbf16>
    %29 = arith.mulf %1, %28 : vector<64x2560xbf16>
    %cst_14 = arith.constant dense<0.000000e+00> : vector<64x1xf32>
    %30 = tpu.matmul %29, %3, %cst_14 {dimension_numbers = #tpu.dot_dimension_numbers<[1], [0], [0], [1], [0, 0, 1, 1], [], []>} : vector<64x2560xbf16>, vector<2560x1xbf16>, vector<64x1xf32> -> vector<64x1xf32>
    %cst_15 = arith.constant 3.906250e-04 : f32
    %31 = vector.broadcast %cst_15 : f32 to vector<64x1xf32>
    %32 = arith.mulf %30, %31 : vector<64x1xf32>
    %cst_16 = arith.constant dense<0xFF80> : vector<64xbf16>
    %33 = vector.multi_reduction <maximumf>, %29, %cst_16 [1] : vector<64x2560xbf16> to vector<64xbf16>
    %34 = vector.shape_cast %33 : vector<64xbf16> to vector<64x1xbf16>
    %35 = arith.extf %34 : vector<64x1xbf16> to vector<64x1xf32>
    %c0_17 = arith.constant 0 : index
    %c0_18 = arith.constant 0 : index
    %c0_19 = arith.constant 0 : index
    %36 = vector.load %arg4[%c0_17, %c0_18, %c0_19] : memref<2x64x64xf32, #tpu.memory_space<vmem>>, vector<1x64x64xf32>
    %37 = vector.shape_cast %36 : vector<1x64x64xf32> to vector<64x64xf32>
    %cst_20 = arith.constant dense<0.000000e+00> : vector<64x1xf32>
    %38 = tpu.matmul %37, %32, %cst_20 {dimension_numbers = #tpu.dot_dimension_numbers<[1], [0], [0], [1], [0, 0, 1, 1], [], []>} : vector<64x64xf32>, vector<64x1xf32>, vector<64x1xf32> -> vector<64x1xf32>
    %c1 = arith.constant 1 : index
    %c0_21 = arith.constant 0 : index
    %c0_22 = arith.constant 0 : index
    %39 = vector.load %arg4[%c1, %c0_21, %c0_22] : memref<2x64x64xf32, #tpu.memory_space<vmem>>, vector<1x64x64xf32>
    %40 = vector.shape_cast %39 : vector<1x64x64xf32> to vector<64x64xf32>
    %cst_23 = arith.constant dense<0.000000e+00> : vector<64x1xf32>
    %41 = tpu.matmul %40, %35, %cst_23 {dimension_numbers = #tpu.dot_dimension_numbers<[1], [0], [0], [1], [0, 0, 1, 1], [], []>} : vector<64x64xf32>, vector<64x1xf32>, vector<64x1xf32> -> vector<64x1xf32>
    %42 = arith.addf %38, %41 : vector<64x1xf32>
    %43 = arith.negf %42 : vector<64x1xf32>
    %44 = math.exp %43 : vector<64x1xf32>
    %cst_24 = arith.constant 1.000000e+00 : f32
    %45 = vector.broadcast %cst_24 : f32 to vector<64x1xf32>
    %46 = arith.addf %45, %44 : vector<64x1xf32>
    %47 = arith.divf %45, %46 : vector<64x1xf32>
    %48 = arith.truncf %47 : vector<64x1xf32> to vector<64x1xbf16>
    %49 = vector.broadcast %48 : vector<64x1xbf16> to vector<64x2560xbf16>
    %50 = arith.mulf %29, %49 : vector<64x2560xbf16>
    %cst_25 = arith.constant dense<0.000000e+00> : vector<1x2560xf32>
    %51 = tpu.matmul %2, %50, %cst_25 {dimension_numbers = #tpu.dot_dimension_numbers<[1], [0], [0], [1], [0, 0, 1, 1], [], []>} : vector<1x64xbf16>, vector<64x2560xbf16>, vector<1x2560xf32> -> vector<1x2560xf32>
    %cst_26 = arith.constant 1.562500e-02 : f32
    %52 = vector.broadcast %cst_26 : f32 to vector<1x2560xf32>
    %53 = arith.mulf %51, %52 : vector<1x2560xf32>
    %c0_27 = arith.constant 0 : index
    %c0_28 = arith.constant 0 : index
    %c0_29 = arith.constant 0 : index
    %54 = vector.load %arg5[%c0_27, %c0_28, %c0_29] : memref<1x1x2560xf32, #tpu.memory_space<vmem>>, vector<1x1x2560xf32>
    %55 = vector.shape_cast %54 : vector<1x1x2560xf32> to vector<1x2560xf32>
    %56 = vector.shape_cast %53 : vector<1x2560xf32> to vector<1x1x2560xf32>
    tpu.vector_store %arg5[%c0_27, %c0_28, %c0_29], %56 {strides = array<i32>} : memref<1x1x2560xf32, #tpu.memory_space<vmem>>, vector<1x1x2560xf32>,
    return
  }
  func.func @transform_0(%arg0: i32) -> (i32, i32, i32) {
    %c0_i32 = arith.constant 0 : i32
    %c0_i32_0 = arith.constant 0 : i32
    %c0_i32_1 = arith.constant 0 : i32
    return %arg0, %c0_i32, %c0_i32_0 : i32, i32, i32
  }
  func.func @transform_1(%arg0: i32) -> (i32, i32) {
    %c0_i32 = arith.constant 0 : i32
    %c0_i32_0 = arith.constant 0 : i32
    %c0_i32_1 = arith.constant 0 : i32
    return %c0_i32, %c0_i32_0 : i32, i32
  }
  func.func @transform_2(%arg0: i32) -> (i32, i32) {
    %c0_i32 = arith.constant 0 : i32
    %c0_i32_0 = arith.constant 0 : i32
    %c0_i32_1 = arith.constant 0 : i32
    return %c0_i32, %c0_i32_0 : i32, i32
  }
  func.func @transform_3(%arg0: i32) -> (i32, i32, i32) {
    %c0_i32 = arith.constant 0 : i32
    %c0_i32_0 = arith.constant 0 : i32
    %c0_i32_1 = arith.constant 0 : i32
    %c0_i32_2 = arith.constant 0 : i32
    return %c0_i32, %c0_i32_0, %c0_i32_1 : i32, i32, i32
  }
  func.func @transform_4(%arg0: i32) -> (i32, i32, i32) {
    %c0_i32 = arith.constant 0 : i32
    %c0_i32_0 = arith.constant 0 : i32
    %c0_i32_1 = arith.constant 0 : i32
    return %arg0, %c0_i32, %c0_i32_0 : i32, i32, i32
  }
}

</mosaic_0001>

<bundles_post_ra>
// kernel: efficientnet_attention_head.1
= control target key start
LH: loop header
LB: loop body
LE: loop exit
PB: predicated region body
PF: predicated region fallthrough
CT: control target
= control target key end

     0   :  { %s12127_s15 = smov 0   ;;  %s20485_s0 = inlined_call_operand.vmem [shape: bf16[2,64,2560], index: 0, kind: input, shape index: {}]   ;;  %s20486_s1 = inlined_call_operand.vmem [shape: bf16[2560,160], index: 1, kind: input, shape index: {}]   ;;  %s20487_s2 = inlined_call_operand.vmem [shape: bf16[160,2560], index: 2, kind: input, shape index: {}]   ;;  %s20488_s3 = inlined_call_operand.vmem [shape: f32[2,64,64], index: 3, kind: input, shape index: {}]   ;;  %s20489_s4 = inlined_call_operand.vmem [shape: f32[2,1,2560], index: 4, kind: output, shape index: {}]  }
   0x1 LB: > { %s8843_s16 = sadd.s32 4294967295, %s12097_s15   ;;  %p8847_p0 = scmp.ge.s32.totalorder %s12097_s15, 1  ;;  %s12097_s15 = sphi %s12127_s15, %s14_s15  }
   0x2   : > { %p162_p1 = scmp.lt.s32.totalorder %s12097_s15, 3 }
   0x4   : > { %p163_p2 = pnand %p8847_p0, %p162_p1 }
   0x6   : > { %166 = sbr.rel (%p163_p2) target bundleno = 1977 (0x7b9), region = 36 }
   0xb   : > { %p187_p3 = scmp.lt.s32.totalorder %s8843_s16, 1  ;;  %vm678_vm0 = vcmask 523264   ;;  %vm1412_vm1 = vcmask 1040384   ;;  %vm5097_vm2 = vcmask 261120  }
   0xd   : > { %s21919_s16 = smov (!%p187_p3, %s8843_s16), 1 }
   0xe   : > { %s11963_s17 = smul.u32 640, %s21919_s16 }
   0xf   : > { %s11964_s23 = smul.u32 20, %s21919_s16 }
  0x10   : > { %s12141_s20 = scalar_lea.vmem %s20485_s0, %s11963_s17 }
  0x11   : > { %v9091_v0 = vld [vmem:[%s12141_s20 + $0x1e0] sm:$0xf]  ;;  %v11433_v1 = vld [vmem:[%s12141_s20 + $0x22c] sm:$0xf0]  ;;  %v11423_v2 = vld [vmem:[%s12141_s20 + $0x1e4] sm:$0xf]  ;;  %s20463_s26 = scalar_lea.vmem %s20489_s4, %s11964_s23 }
  0x12   : > { %v9092_v3 = vor.u32 %v11433_v1, %v9091_v0  ;;  %v9093_v4 = vld [vmem:[%s12141_s20 + $0x230] sm:$0xf0]  ;;  %v9099_v5 = vld [vmem:[%s12141_s20 + $0x1e8] sm:$0xf]  ;;  %v11434_v6 = vld [vmem:[%s12141_s20 + $0x234] sm:$0xf0] }
  0x13   : > { %v9096_v7 = vor.u32 %v11423_v2, %v9093_v4  ;;  %v9100_v8 = vor.u32 %v11434_v6, %v9099_v5  ;;  %v11424_v9 = vld [vmem:[%s12141_s20 + $0x1ec] sm:$0xf]  ;;  %v9101_v10 = vld [vmem:[%s12141_s20 + $0x238] sm:$0xf0]  ;;  %v9011_v11 = vld [vmem:[%s12141_s20 + $0x140] sm:$0xf] }
  0x14   : > { %686 = vmatpush.bf16.msra.mxu0 %v9092_v3  ;;  %v9104_v12 = vor.u32 %v11424_v9, %v9101_v10  ;;  %v11413_v13 = vld [vmem:[%s12141_s20 + $0x18c] sm:$0xf0]  ;;  %v11403_v14 = vld [vmem:[%s12141_s20 + $0x144] sm:$0xf]  ;;  %v9013_v15 = vld [vmem:[%s12141_s20 + $0x190] sm:$0xf0] }
  0x15   : > { %699 = vmatpush.bf16.msra.mxu1 %v9096_v7  ;;  %712 = vmatpush.bf16.msra.mxu2 %v9100_v8  ;;  %v9012_v16 = vor.u32 %v11413_v13, %v9011_v11  ;;  %v9016_v17 = vor.u32 %v11403_v14, %v9013_v15  ;;  %v9019_v18 = vld [vmem:[%s12141_s20 + $0x148] sm:$0xf]  ;;  %v11414_v19 = vld [vmem:[%s12141_s20 + $0x194] sm:$0xf0]  ;;  %v11404_v20 = vld [vmem:[%s12141_s20 + $0x14c] sm:$0xf] }
  0x16   : > { %725 = vmatpush.bf16.msra.mxu3 %v9104_v12  ;;  %v9020_v21 = vor.u32 %v11414_v19, %v9019_v18  ;;  %v9021_v22 = vld [vmem:[%s12141_s20 + $0x198] sm:$0xf0]  ;;  %v8931_v23 = vld [vmem:[%s12141_s20 + $0xa0] sm:$0xf]  ;;  %v11393_v24 = vld [vmem:[%s12141_s20 + $0xec] sm:$0xf0] }
  0x17   : > { %v9024_v25 = vor.u32 %v11404_v20, %v9021_v22  ;;  %v11383_v26 = vld [vmem:[%s12141_s20 + $0xa4] sm:$0xf]  ;;  %v8933_v27 = vld [vmem:[%s12141_s20 + $0xf0] sm:$0xf0]  ;;  %v8939_v28 = vld [vmem:[%s12141_s20 + $0xa8] sm:$0xf]  ;;  %v8932_v29 = vor.u32 %v11393_v24, %v8931_v23 }
  0x18   : > { %687 = vmatpush.bf16.msra.mxu0 %v9012_v16  ;;  %v11394_v30 = vld [vmem:[%s12141_s20 + $0xf4] sm:$0xf0]  ;;  %v11384_v31 = vld [vmem:[%s12141_s20 + $0xac] sm:$0xf]  ;;  %v8941_v32 = vld [vmem:[%s12141_s20 + $0xf8] sm:$0xf0]  ;;  %v8936_v33 = vor.u32 %v11383_v26, %v8933_v27 }
  0x19   : > { %700 = vmatpush.bf16.msra.mxu1 %v9016_v17  ;;  %713 = vmatpush.bf16.msra.mxu2 %v9020_v21  ;;  %v8940_v34 = vor.u32 %v11394_v30, %v8939_v28  ;;  %v8851_v35 = vld [vmem:[%s12141_s20] sm:$0xf]  ;;  %v11373_v36 = vld [vmem:[%s12141_s20 + $0x4c] sm:$0xf0]  ;;  %v11363_v37 = vld [vmem:[%s12141_s20 + $0x4] sm:$0xf]  ;;  %v8944_v38 = vor.u32 %v11384_v31, %v8941_v32 }
  0x1a   : > { %726 = vmatpush.bf16.msra.mxu3 %v9024_v25  ;;  %v8853_v39 = vld [vmem:[%s12141_s20 + $0x50] sm:$0xf0]  ;;  %v8859_v40 = vld [vmem:[%s12141_s20 + $0x8] sm:$0xf]  ;;  %v11374_v41 = vld [vmem:[%s12141_s20 + $0x54] sm:$0xf0]  ;;  %v8852_v45 = vor.u32 %v11373_v36, %v8851_v35 }
  0x1b   : > { %v11364_v42 = vld [vmem:[%s12141_s20 + $0xc] sm:$0xf]  ;;  %v8861_v43 = vld [vmem:[%s12141_s20 + $0x58] sm:$0xf0]  ;;  %v9107_v44 = vld [vmem:[%s12141_s20 + $0x1f0] sm:$0xf]  ;;  %v8856_v49 = vor.u32 %v11363_v37, %v8853_v39  ;;  %v8860_v50 = vor.u32 %v11374_v41, %v8859_v40 }
  0x1c   : > { %688 = vmatpush.bf16.msra.mxu0 %v8932_v29  ;;  %v11435_v46 = vld [vmem:[%s12141_s20 + $0x23c] sm:$0xf0]  ;;  %v9115_v47 = vld [vmem:[%s12141_s20 + $0x1f8] sm:$0xf]  ;;  %v11436_v48 = vld [vmem:[%s12141_s20 + $0x244] sm:$0xf0]  ;;  %v8864_v51 = vor.u32 %v11364_v42, %v8861_v43 }
  0x1d   : > { %701 = vmatpush.bf16.msra.mxu1 %v8936_v33  ;;  %714 = vmatpush.bf16.msra.mxu2 %v8940_v34  ;;  %v9108_v52 = vor.u32 %v11435_v46, %v9107_v44  ;;  %v11425_v53 = vld [vmem:[%s12141_s20 + $0x1f4] sm:$0xf]  ;;  %v9109_v54 = vld [vmem:[%s12141_s20 + $0x240] sm:$0xf0]  ;;  %v11426_v55 = vld [vmem:[%s12141_s20 + $0x1fc] sm:$0xf]  ;;  %v9116_v56 = vor.u32 %v11436_v48, %v9115_v47 }
  0x1e   : > { %727 = vmatpush.bf16.msra.mxu3 %v8944_v38  ;;  %v9117_v57 = vld [vmem:[%s12141_s20 + $0x248] sm:$0xf0]  ;;  %v9027_v58 = vld [vmem:[%s12141_s20 + $0x150] sm:$0xf]  ;;  %v11415_v59 = vld [vmem:[%s12141_s20 + $0x19c] sm:$0xf0]  ;;  %v9112_v62 = vor.u32 %v11425_v53, %v9109_v54 }
  0x1f   : > { %v9035_v60 = vld [vmem:[%s12141_s20 + $0x158] sm:$0xf]  ;;  %v11416_v61 = vld [vmem:[%s12141_s20 + $0x1a4] sm:$0xf0]  ;;  %v9120_v63 = vor.u32 %v11426_v55, %v9117_v57  ;;  %v9028_v0 = vor.u32 %v11415_v59, %v9027_v58  ;;  %v11405_v1 = vld [vmem:[%s12141_s20 + $0x154] sm:$0xf] }
  0x20   : > { %689 = vmatpush.bf16.msra.mxu0 %v8852_v45  ;;  %v9029_v2 = vld [vmem:[%s12141_s20 + $0x1a0] sm:$0xf0]  ;;  %v11406_v3 = vld [vmem:[%s12141_s20 + $0x15c] sm:$0xf]  ;;  %v20492_v4 = vmov 1065369472   ;;  %v9036_v5 = vor.u32 %v11416_v61, %v9035_v60 }
  0x21   : > { %702 = vmatpush.bf16.msra.mxu1 %v8856_v49  ;;  %715 = vmatpush.bf16.msra.mxu2 %v8860_v50  ;;  %v9037_v6 = vld [vmem:[%s12141_s20 + $0x1a8] sm:$0xf0]  ;;  %v8947_v7 = vld [vmem:[%s12141_s20 + $0xb0] sm:$0xf]  ;;  %v11395_v8 = vld [vmem:[%s12141_s20 + $0xfc] sm:$0xf0]  ;;  %v9032_v11 = vor.u32 %v11405_v1, %v9029_v2 }
  0x22   : > { %728 = vmatpush.bf16.msra.mxu3 %v8864_v51  ;;  %v8955_v9 = vld [vmem:[%s12141_s20 + $0xb8] sm:$0xf]  ;;  %v11396_v10 = vld [vmem:[%s12141_s20 + $0x104] sm:$0xf0]  ;;  %v11385_v12 = vld [vmem:[%s12141_s20 + $0xb4] sm:$0xf]  ;;  %v9040_v13 = vor.u32 %v11406_v3, %v9037_v6  ;;  %v8948_v14 = vor.u32 %v11395_v8, %v8947_v7 }
  0x23   : > { %9169 = vmatmul.msk.bf16.vlgmr.msra.gmra.mxu0 %vm678_vm0, %v20492_v4  ;;  %v8949_v15 = vld [vmem:[%s12141_s20 + $0x100] sm:$0xf0]  ;;  %v11386_v16 = vld [vmem:[%s12141_s20 + $0xbc] sm:$0xf]  ;;  %v8957_v17 = vld [vmem:[%s12141_s20 + $0x108] sm:$0xf0]  ;;  %v8956_v18 = vor.u32 %v11396_v10, %v8955_v9 }
  0x24   : > { %738 = vmatpush.bf16.msrb.mxu0 %v9108_v52  ;;  %9170 = vmatmul.msk.bf16.vlgmr.msra.gmra.mxu1 %vm678_vm0, %v20492_v4  ;;  %v8867_v19 = vld [vmem:[%s12141_s20 + $0x10] sm:$0xf]  ;;  %v11375_v20 = vld [vmem:[%s12141_s20 + $0x5c] sm:$0xf0]  ;;  %v8875_v21 = vld [vmem:[%s12141_s20 + $0x18] sm:$0xf]  ;;  %v8952_v25 = vor.u32 %v11385_v12, %v8949_v15  ;;  %v8960_v28 = vor.u32 %v11386_v16, %v8957_v17 }
  0x25   : > { %764 = vmatpush.bf16.msrb.mxu2 %v9116_v56  ;;  %9172 = vmatmul.msk.bf16.vlgmr.msra.gmra.mxu3 %vm678_vm0, %v20492_v4  ;;  %v11376_v22 = vld [vmem:[%s12141_s20 + $0x64] sm:$0xf0]  ;;  %v9123_v23 = vld [vmem:[%s12141_s20 + $0x200] sm:$0xf]  ;;  %v11437_v24 = vld [vmem:[%s12141_s20 + $0x24c] sm:$0xf0]  ;;  %v8868_v29 = vor.u32 %v11375_v20, %v8867_v19 }
  0x26   : > { %9171 = vmatmul.msk.bf16.vlgmr.msra.gmra.mxu2 %vm678_vm0, %v20492_v4  ;;  %751 = vmatpush.bf16.msrb.mxu1 %v9112_v62  ;;  %v9131_v26 = vld [vmem:[%s12141_s20 + $0x208] sm:$0xf]  ;;  %v11438_v27 = vld [vmem:[%s12141_s20 + $0x254] sm:$0xf0]  ;;  %v11365_v30 = vld [vmem:[%s12141_s20 + $0x14] sm:$0xf]  ;;  %v8876_v33 = vor.u32 %v11376_v22, %v8875_v21  ;;  %v9124_v35 = vor.u32 %v11437_v24, %v9123_v23 }
  0x27   : > { %777 = vmatpush.bf16.msrb.mxu3 %v9120_v63  ;;  %v8869_v31 = vld [vmem:[%s12141_s20 + $0x60] sm:$0xf0]  ;;  %v11366_v32 = vld [vmem:[%s12141_s20 + $0x1c] sm:$0xf]  ;;  %v8877_v34 = vld [vmem:[%s12141_s20 + $0x68] sm:$0xf0]  ;;  %v9132_v38 = vor.u32 %v11438_v27, %v9131_v26 }
  0x28   : > { %739 = vmatpush.bf16.msrb.mxu0 %v9028_v0  ;;  %v11427_v36 = vld [vmem:[%s12141_s20 + $0x204] sm:$0xf]  ;;  %v9125_v37 = vld [vmem:[%s12141_s20 + $0x250] sm:$0xf0]  ;;  %v11428_v39 = vld [vmem:[%s12141_s20 + $0x20c] sm:$0xf]  ;;  %v8872_v41 = vor.u32 %v11365_v30, %v8869_v31  ;;  %v8880_v42 = vor.u32 %v11366_v32, %v8877_v34 }
  0x29   : > { %765 = vmatpush.bf16.msrb.mxu2 %v9036_v5  ;;  %v9133_v40 = vld [vmem:[%s12141_s20 + $0x258] sm:$0xf0]  ;;  %v9128_v43 = vor.u32 %v11427_v36, %v9125_v37  ;;  %v9043_v44 = vld [vmem:[%s12141_s20 + $0x160] sm:$0xf]  ;;  %v11417_v45 = vld [vmem:[%s12141_s20 + $0x1ac] sm:$0xf0] }
  0x2a   : > { %752 = vmatpush.bf16.msrb.mxu1 %v9032_v11  ;;  %v9051_v46 = vld [vmem:[%s12141_s20 + $0x168] sm:$0xf]  ;;  %v9136_v47 = vor.u32 %v11428_v39, %v9133_v40  ;;  %v11418_v48 = vld [vmem:[%s12141_s20 + $0x1b4] sm:$0xf0]  ;;  %v11407_v49 = vld [vmem:[%s12141_s20 + $0x164] sm:$0xf]  ;;  %v9044_v53 = vor.u32 %v11417_v45, %v9043_v44 }
  0x2b   : > { %778 = vmatpush.bf16.msrb.mxu3 %v9040_v13  ;;  %v9045_v50 = vld [vmem:[%s12141_s20 + $0x1b0] sm:$0xf0]  ;;  %v11408_v51 = vld [vmem:[%s12141_s20 + $0x16c] sm:$0xf]  ;;  %v9053_v52 = vld [vmem:[%s12141_s20 + $0x1b8] sm:$0xf0]  ;;  %v9052_v54 = vor.u32 %v11418_v48, %v9051_v46 }
  0x2c   : > { %740 = vmatpush.bf16.msrb.mxu0 %v8948_v14  ;;  %v9048_v55 = vor.u32 %v11407_v49, %v9045_v50  ;;  %v8963_v56 = vld [vmem:[%s12141_s20 + $0xc0] sm:$0xf]  ;;  %v11397_v57 = vld [vmem:[%s12141_s20 + $0x10c] sm:$0xf0]  ;;  %v8971_v58 = vld [vmem:[%s12141_s20 + $0xc8] sm:$0xf]  ;;  %v9056_v59 = vor.u32 %v11408_v51, %v9053_v52 }
  0x2d   : > { %766 = vmatpush.bf16.msrb.mxu2 %v8956_v18  ;;  %v11398_v60 = vld [vmem:[%s12141_s20 + $0x114] sm:$0xf0]  ;;  %v11387_v61 = vld [vmem:[%s12141_s20 + $0xc4] sm:$0xf]  ;;  %v8965_v62 = vld [vmem:[%s12141_s20 + $0x110] sm:$0xf0]  ;;  %v8964_v1 = vor.u32 %v11397_v57, %v8963_v56 }
  0x2e   : > { %753 = vmatpush.bf16.msrb.mxu1 %v8952_v25  ;;  %v11388_v63 = vld [vmem:[%s12141_s20 + $0xcc] sm:$0xf]  ;;  %v8973_v0 = vld [vmem:[%s12141_s20 + $0x118] sm:$0xf0]  ;;  %v8883_v2 = vld [vmem:[%s12141_s20 + $0x20] sm:$0xf]  ;;  %v8972_v5 = vor.u32 %v11398_v60, %v8971_v58  ;;  %v8968_v6 = vor.u32 %v11387_v61, %v8965_v62 }
  0x2f   : > { %779 = vmatpush.bf16.msrb.mxu3 %v8960_v28  ;;  %v11377_v3 = vld [vmem:[%s12141_s20 + $0x6c] sm:$0xf0]  ;;  %v8891_v7 = vld [vmem:[%s12141_s20 + $0x28] sm:$0xf]  ;;  %v11378_v8 = vld [vmem:[%s12141_s20 + $0x74] sm:$0xf0]  ;;  %v8976_v10 = vor.u32 %v11388_v63, %v8973_v0 }
  0x30   : > { %741 = vmatpush.bf16.msrb.mxu0 %v8868_v29  ;;  %v11367_v9 = vld [vmem:[%s12141_s20 + $0x24] sm:$0xf]  ;;  %v8885_v11 = vld [vmem:[%s12141_s20 + $0x70] sm:$0xf0]  ;;  %v11368_v12 = vld [vmem:[%s12141_s20 + $0x2c] sm:$0xf]  ;;  %v8884_v17 = vor.u32 %v11377_v3, %v8883_v2  ;;  %v8892_v21 = vor.u32 %v11378_v8, %v8891_v7 }
  0x31   : > { %767 = vmatpush.bf16.msrb.mxu2 %v8876_v33  ;;  %v8893_v13 = vld [vmem:[%s12141_s20 + $0x78] sm:$0xf0]  ;;  %v9139_v14 = vld [vmem:[%s12141_s20 + $0x210] sm:$0xf]  ;;  %v11439_v15 = vld [vmem:[%s12141_s20 + $0x25c] sm:$0xf0]  ;;  %v8888_v22 = vor.u32 %v11367_v9, %v8885_v11 }
  0x32   : > { %754 = vmatpush.bf16.msrb.mxu1 %v8872_v41  ;;  %v9147_v16 = vld [vmem:[%s12141_s20 + $0x218] sm:$0xf]  ;;  %v11440_v18 = vld [vmem:[%s12141_s20 + $0x264] sm:$0xf0]  ;;  %v11429_v19 = vld [vmem:[%s12141_s20 + $0x214] sm:$0xf]  ;;  %v8896_v25 = vor.u32 %v11368_v12, %v8893_v13  ;;  %v9140_v26 = vor.u32 %v11439_v15, %v9139_v14 }
  0x33   : > { %780 = vmatpush.bf16.msrb.mxu3 %v8880_v42  ;;  %9173 = vmatmul.msk.bf16.vlgmr.msrb.gmra.mxu0 %vm678_vm0, %v20492_v4  ;;  %v9141_v20 = vld [vmem:[%s12141_s20 + $0x260] sm:$0xf0]  ;;  %v11430_v23 = vld [vmem:[%s12141_s20 + $0x21c] sm:$0xf]  ;;  %v9149_v24 = vld [vmem:[%s12141_s20 + $0x268] sm:$0xf0]  ;;  %v9148_v27 = vor.u32 %v11440_v18, %v9147_v16 }
  0x34   : > { %790 = vmatpush.bf16.msra.mxu0 %v9124_v35  ;;  %v9144_v28 = vor.u32 %v11429_v19, %v9141_v20  ;;  %v9152_v29 = vor.u32 %v11430_v23, %v9149_v24  ;;  %v9059_v30 = vld [vmem:[%s12141_s20 + $0x170] sm:$0xf]  ;;  %v11419_v31 = vld [vmem:[%s12141_s20 + $0x1bc] sm:$0xf0]  ;;  %v9067_v32 = vld [vmem:[%s12141_s20 + $0x178] sm:$0xf] }
  0x35   : > { %816 = vmatpush.bf16.msra.mxu2 %v9132_v38  ;;  %9174 = vmatmul.msk.bf16.vlgmr.msrb.gmra.mxu1 %vm678_vm0, %v20492_v4  ;;  %v11420_v33 = vld [vmem:[%s12141_s20 + $0x1c4] sm:$0xf0]  ;;  %v11409_v34 = vld [vmem:[%s12141_s20 + $0x174] sm:$0xf]  ;;  %v9061_v35 = vld [vmem:[%s12141_s20 + $0x1c0] sm:$0xf0]  ;;  %v9060_v38 = vor.u32 %v11419_v31, %v9059_v30 }
  0x36   : > { %803 = vmatpush.bf16.msra.mxu1 %v9128_v43  ;;  %9175 = vmatmul.msk.bf16.vlgmr.msrb.gmra.mxu2 %vm678_vm0, %v20492_v4  ;;  %v11410_v36 = vld [vmem:[%s12141_s20 + $0x17c] sm:$0xf]  ;;  %v9069_v37 = vld [vmem:[%s12141_s20 + $0x1c8] sm:$0xf0]  ;;  %v9068_v39 = vor.u32 %v11420_v33, %v9067_v32  ;;  %v9064_v40 = vor.u32 %v11409_v34, %v9061_v35  ;;  %v8979_v41 = vld [vmem:[%s12141_s20 + $0xd0] sm:$0xf] }
  0x37   : > { %829 = vmatpush.bf16.msra.mxu3 %v9136_v47  ;;  %v11399_v42 = vld [vmem:[%s12141_s20 + $0x11c] sm:$0xf0]  ;;  %v8987_v43 = vld [vmem:[%s12141_s20 + $0xd8] sm:$0xf]  ;;  %v9072_v44 = vor.u32 %v11410_v36, %v9069_v37  ;;  %v11400_v45 = vld [vmem:[%s12141_s20 + $0x124] sm:$0xf0] }
  0x38   : > { %9176 = vmatmul.msk.bf16.vlgmr.msrb.gmra.mxu3 %vm678_vm0, %v20492_v4  ;;  %791 = vmatpush.bf16.msra.mxu0 %v9044_v53  ;;  %v11389_v46 = vld [vmem:[%s12141_s20 + $0xd4] sm:$0xf]  ;;  %v8981_v47 = vld [vmem:[%s12141_s20 + $0x120] sm:$0xf0]  ;;  %v11390_v48 = vld [vmem:[%s12141_s20 + $0xdc] sm:$0xf]  ;;  %v8980_v50 = vor.u32 %v11399_v42, %v8979_v41  ;;  %v8988_v53 = vor.u32 %v11400_v45, %v8987_v43 }
  0x39   : > { %817 = vmatpush.bf16.msra.mxu2 %v9052_v54  ;;  %v8989_v49 = vld [vmem:[%s12141_s20 + $0x128] sm:$0xf0]  ;;  %v8899_v51 = vld [vmem:[%s12141_s20 + $0x30] sm:$0xf]  ;;  %v11379_v52 = vld [vmem:[%s12141_s20 + $0x7c] sm:$0xf0]  ;;  %v8984_v54 = vor.u32 %v11389_v46, %v8981_v47 }
  0x3a   : > { %804 = vmatpush.bf16.msra.mxu1 %v9048_v55  ;;  %v8907_v55 = vld [vmem:[%s12141_s20 + $0x38] sm:$0xf]  ;;  %v11380_v56 = vld [vmem:[%s12141_s20 + $0x84] sm:$0xf0]  ;;  %v11369_v57 = vld [vmem:[%s12141_s20 + $0x34] sm:$0xf]  ;;  %v8992_v58 = vor.u32 %v11390_v48, %v8989_v49 }
  0x3b   : > { %830 = vmatpush.bf16.msra.mxu3 %v9056_v59  ;;  %v8901_v59 = vld [vmem:[%s12141_s20 + $0x80] sm:$0xf0]  ;;  %v11370_v60 = vld [vmem:[%s12141_s20 + $0x3c] sm:$0xf]  ;;  %v8909_v61 = vld [vmem:[%s12141_s20 + $0x88] sm:$0xf0] }
  0x3c   : > { %792 = vmatpush.bf16.msra.mxu0 %v8964_v1  ;;  %v9155_v62 = vld [vmem:[%s12141_s20 + $0x220] sm:$0xf]  ;;  %v11441_v63 = vld [vmem:[%s12141_s20 + $0x26c] sm:$0xf0]  ;;  %v11431_v0 = vld [vmem:[%s12141_s20 + $0x224] sm:$0xf]  ;;  %v8900_v1 = vor.u32 %v11379_v52, %v8899_v51  ;;  %v8904_v7 = vor.u32 %v11369_v57, %v8901_v59 }
  0x3d   : > { %818 = vmatpush.bf16.msra.mxu2 %v8972_v5  ;;  %v9157_v2 = vld [vmem:[%s12141_s20 + $0x270] sm:$0xf0]  ;;  %v9163_v3 = vld [vmem:[%s12141_s20 + $0x228] sm:$0xf]  ;;  %v11442_v5 = vld [vmem:[%s12141_s20 + $0x274] sm:$0xf0]  ;;  %v9156_v11 = vor.u32 %v11441_v63, %v9155_v62 }
  0x3e   : > { %805 = vmatpush.bf16.msra.mxu1 %v8968_v6  ;;  %v8908_v6 = vor.u32 %v11380_v56, %v8907_v55  ;;  %v11432_v8 = vld [vmem:[%s12141_s20 + $0x22c] sm:$0xf]  ;;  %v9165_v9 = vld [vmem:[%s12141_s20 + $0x278] sm:$0xf0]  ;;  %v9160_v12 = vor.u32 %v11431_v0, %v9157_v2  ;;  %v9164_v13 = vor.u32 %v11442_v5, %v9163_v3  ;;  %v9075_v15 = vld [vmem:[%s12141_s20 + $0x180] sm:$0xf] }
  0x3f   : > { %831 = vmatpush.bf16.msra.mxu3 %v8976_v10  ;;  %v8912_v10 = vor.u32 %v11370_v60, %v8909_v61  ;;  %v9168_v14 = vor.u32 %v11432_v8, %v9165_v9  ;;  %v11421_v16 = vld [vmem:[%s12141_s20 + $0x1cc] sm:$0xf0]  ;;  %v9077_v18 = vld [vmem:[%s12141_s20 + $0x1d0] sm:$0xf0]  ;;  %v9083_v19 = vld [vmem:[%s12141_s20 + $0x188] sm:$0xf] }
  0x40   : > { %793 = vmatpush.bf16.msra.mxu0 %v8884_v17  ;;  %v11411_v17 = vld [vmem:[%s12141_s20 + $0x184] sm:$0xf]  ;;  %v11422_v20 = vld [vmem:[%s12141_s20 + $0x1d4] sm:$0xf0]  ;;  %v9076_v23 = vor.u32 %v11421_v16, %v9075_v15  ;;  %v9003_v31 = vld [vmem:[%s12141_s20 + $0xe8] sm:$0xf] }
  0x41   : > { %819 = vmatpush.bf16.msra.mxu2 %v8892_v21  ;;  %v11412_v21 = vld [vmem:[%s12141_s20 + $0x18c] sm:$0xf]  ;;  %v9080_v24 = vor.u32 %v11411_v17, %v9077_v18  ;;  %v11402_v32 = vld [vmem:[%s12141_s20 + $0x134] sm:$0xf0]  ;;  %v9005_v34 = vld [vmem:[%s12141_s20 + $0x138] sm:$0xf0] }
  0x42   : > { %806 = vmatpush.bf16.msra.mxu1 %v8888_v22  ;;  %v9085_v22 = vld [vmem:[%s12141_s20 + $0x1d8] sm:$0xf0]  ;;  %v11392_v33 = vld [vmem:[%s12141_s20 + $0xec] sm:$0xf]  ;;  %v8915_v36 = vld [vmem:[%s12141_s20 + $0x40] sm:$0xf]  ;;  %v9004_v42 = vor.u32 %v11402_v32, %v9003_v31 }
  0x43   : > { %832 = vmatpush.bf16.msra.mxu3 %v8896_v25  ;;  %9177 = vmatmul.msk.bf16.vlgmr.msra.gmra.mxu0 %vm678_vm0, %v20492_v4  ;;  %v8995_v25 = vld [vmem:[%s12141_s20 + $0xe0] sm:$0xf]  ;;  %v9088_v30 = vor.u32 %v11412_v21, %v9085_v22  ;;  %v11381_v37 = vld [vmem:[%s12141_s20 + $0x8c] sm:$0xf0]  ;;  %v11458_v43 = vld [vmem:[%s20486_s1 + $0x74] sm:$0xf0]  ;;  %v9008_v46 = vor.u32 %v11392_v33, %v9005_v34 }
  0x44   : > { %842 = vmatpush.bf16.msrb.mxu0 %v9140_v26  ;;  %v11401_v26 = vld [vmem:[%s12141_s20 + $0x12c] sm:$0xf0]  ;;  %v11474_v45 = vld [vmem:[%s20486_s1 + $0xf4] sm:$0xf0]  ;;  %v8923_v47 = vld [vmem:[%s12141_s20 + $0x48] sm:$0xf] }
  0x45   : > { %868 = vmatpush.bf16.msrb.mxu2 %v9148_v27  ;;  %9178 = vmatmul.msk.bf16.vlgmr.msra.gmra.mxu1 %vm678_vm0, %v20492_v4  ;;  %v11391_v27 = vld [vmem:[%s12141_s20 + $0xe4] sm:$0xf]  ;;  %v8996_v35 = vor.u32 %v11401_v26, %v8995_v25  ;;  %v9247_v41 = vld [vmem:[%s20486_s1 + $0x70] sm:$0xf]  ;;  %v11382_v48 = vld [vmem:[%s12141_s20 + $0x94] sm:$0xf0] }
  0x46   : > { %855 = vmatpush.bf16.msrb.mxu1 %v9144_v28  ;;  %9179 = vmatmul.msk.bf16.vlgmr.msra.gmra.mxu2 %vm678_vm0, %v20492_v4  ;;  %v9084_v28 = vor.u32 %v11422_v20, %v9083_v19  ;;  %v11372_v49 = vld [vmem:[%s12141_s20 + $0x4c] sm:$0xf]  ;;  %v8925_v51 = vld [vmem:[%s12141_s20 + $0x98] sm:$0xf0]  ;;  %v9375_v52 = vld [vmem:[%s20486_s1 + $0x170] sm:$0xf]  ;;  %v9248_v55 = vor.u32 %v11458_v43, %v9247_v41  ;;  %v8924_v61 = vor.u32 %v11382_v48, %v8923_v47 }
  0x47   : > { %881 = vmatpush.bf16.msrb.mxu3 %v9152_v29  ;;  %v8997_v29 = vld [vmem:[%s12141_s20 + $0x130] sm:$0xf0]  ;;  %v9439_v56 = vld [vmem:[%s20486_s1 + $0x1f0] sm:$0xf]  ;;  %v11506_v57 = vld [vmem:[%s20486_s1 + $0x1f4] sm:$0xf0]  ;;  %v8928_v0 = vor.u32 %v11372_v49, %v8925_v51 }
  0x48   : > { %9180 = vmatmul.msk.bf16.vlgmr.msra.gmra.mxu3 %vm678_vm0, %v20492_v4  ;;  %843 = vmatpush.bf16.msrb.mxu0 %v9060_v38  ;;  %v9000_v38 = vor.u32 %v11391_v27, %v8997_v29  ;;  %v9239_v59 = vld [vmem:[%s20486_s1 + $0x60] sm:$0xf]  ;;  %v11456_v60 = vld [vmem:[%s20486_s1 + $0x64] sm:$0xf0]  ;;  %v9440_v2 = vor.u32 %v11506_v57, %v9439_v56  ;;  %v9359_v18 = vld [vmem:[%s20486_s1 + $0x150] sm:$0xf] }
  0x49   : > { %869 = vmatpush.bf16.msrb.mxu2 %v9068_v39  ;;  %v11371_v39 = vld [vmem:[%s12141_s20 + $0x44] sm:$0xf]  ;;  %v9303_v62 = vld [vmem:[%s20486_s1 + $0xe0] sm:$0xf]  ;;  %v11472_v63 = vld [vmem:[%s20486_s1 + $0xe4] sm:$0xf0] }
  0x4a   : > { %856 = vmatpush.bf16.msrb.mxu1 %v9064_v40  ;;  %v8917_v40 = vld [vmem:[%s12141_s20 + $0x90] sm:$0xf0]  ;;  %v9367_v3 = vld [vmem:[%s20486_s1 + $0x160] sm:$0xf]  ;;  %v11488_v5 = vld [vmem:[%s20486_s1 + $0x164] sm:$0xf0]  ;;  %v9304_v9 = vor.u32 %v11472_v63, %v9303_v62 }
  0x4b   : > { %882 = vmatpush.bf16.msrb.mxu3 %v9072_v44  ;;  %v9311_v44 = vld [vmem:[%s20486_s1 + $0xf0] sm:$0xf]  ;;  %v11504_v8 = vld [vmem:[%s20486_s1 + $0x1e4] sm:$0xf0]  ;;  %v12398_v16 = vld [vmem:[%s20486_s1 + $0x40] sm:$0xf] }
  0x4c   : > { %844 = vmatpush.bf16.msrb.mxu0 %v8980_v50  ;;  %v8916_v50 = vor.u32 %v11381_v37, %v8915_v36  ;;  %v12403_v17 = vld [vmem:[%s20486_s1 + $0x44] sm:$0xf0]  ;;  %v11486_v19 = vld [vmem:[%s20486_s1 + $0x154] sm:$0xf0]  ;;  %v12414_v21 = vld [vmem:[%s20486_s1 + $0xc0] sm:$0xf] }
  0x4d   : > { %870 = vmatpush.bf16.msrb.mxu2 %v8988_v53  ;;  %v11490_v53 = vld [vmem:[%s20486_s1 + $0x174] sm:$0xf0]  ;;  %v12419_v22 = vld [vmem:[%s20486_s1 + $0xc4] sm:$0xf0]  ;;  %v12432_v26 = vld [vmem:[%s20486_s1 + $0x30] sm:$0xf]  ;;  %v9360_v32 = vor.u32 %v11486_v19, %v9359_v18  ;;  %v9224_v47 = vor.u32 %v12403_v17, %v12398_v16 }
  0x4e   : > { %857 = vmatpush.bf16.msrb.mxu1 %v8984_v54  ;;  %v8920_v54 = vor.u32 %v11371_v39, %v8917_v40  ;;  %v12437_v27 = vld [vmem:[%s20486_s1 + $0x34] sm:$0xf0]  ;;  %v12457_v31 = vld [vmem:[%s20486_s1 + $0x144] sm:$0xf0]  ;;  %v12464_v33 = vld [vmem:[%s20486_s1 + $0x1c0] sm:$0xf]  ;;  %v9288_v51 = vor.u32 %v12419_v22, %v12414_v21 }
  0x4f   : > { %883 = vmatpush.bf16.msrb.mxu3 %v8992_v58  ;;  %v9312_v58 = vor.u32 %v11474_v45, %v9311_v44  ;;  %v12447_v29 = vld [vmem:[%s20486_s1 + $0xb4] sm:$0xf0]  ;;  %v12469_v34 = vld [vmem:[%s20486_s1 + $0x1c4] sm:$0xf0]  ;;  %v12484_v37 = vld [vmem:[%s20486_s1 + $0xa0] sm:$0xf]  ;;  %v9216_v56 = vor.u32 %v12437_v27, %v12432_v26 }
  0x50   : > { %845 = vmatpush.bf16.msrb.mxu0 %v8900_v1  ;;  %v9376_v1 = vor.u32 %v11490_v53, %v9375_v52  ;;  %v12479_v36 = vld [vmem:[%s20486_s1 + $0x24] sm:$0xf0]  ;;  %v12494_v39 = vld [vmem:[%s20486_s1 + $0x130] sm:$0xf]  ;;  %v12499_v40 = vld [vmem:[%s20486_s1 + $0x134] sm:$0xf0] }
  0x51   : > { %871 = vmatpush.bf16.msrb.mxu2 %v8908_v6  ;;  %v9240_v6 = vor.u32 %v11456_v60, %v9239_v59  ;;  %v12511_v43 = vld [vmem:[%s20486_s1 + $0x1b4] sm:$0xf0]  ;;  %v12516_v44 = vld [vmem:[%s20486_s1 + $0x10] sm:$0xf]  ;;  %v12540_v49 = vld [vmem:[%s20486_s1 + $0x120] sm:$0xf] }
  0x52   : > { %858 = vmatpush.bf16.msrb.mxu1 %v8904_v7  ;;  %v9431_v7 = vld [vmem:[%s20486_s1 + $0x1e0] sm:$0xf]  ;;  %v12521_v45 = vld [vmem:[%s20486_s1 + $0x14] sm:$0xf0]  ;;  %v12557_v53 = vld [vmem:[%s20486_s1 + $0x1a4] sm:$0xf0] }
  0x53   : > { %884 = vmatpush.bf16.msrb.mxu3 %v8912_v10  ;;  %9181 = vmatmul.msk.bf16.vlgmr.msrb.gmra.mxu0 %vm678_vm0, %v20492_v4  ;;  %v9231_v10 = vld [vmem:[%s20486_s1 + $0x50] sm:$0xf]  ;;  %v9432_v15 = vor.u32 %v11504_v8, %v9431_v7  ;;  %v12535_v48 = vld [vmem:[%s20486_s1 + $0x94] sm:$0xf0]  ;;  %v12552_v52 = vld [vmem:[%s20486_s1 + $0x1a0] sm:$0xf] }
  0x54   : > { %894 = vmatpush.bf16.msra.mxu0 %v9156_v11  ;;  %v11454_v11 = vld [vmem:[%s20486_s1 + $0x54] sm:$0xf0]  ;;  %v12578_v59 = vld [vmem:[%s20486_s1 + $0x80] sm:$0xf]  ;;  %v12583_v60 = vld [vmem:[%s20486_s1 + $0x84] sm:$0xf0] }
  0x55   : > { %920 = vmatpush.bf16.msra.mxu2 %v9164_v13  ;;  %9182 = vmatmul.msk.bf16.vlgmr.msrb.gmra.mxu1 %vm678_vm0, %v20492_v4  ;;  %v11470_v13 = vld [vmem:[%s20486_s1 + $0xd4] sm:$0xf0]  ;;  %v9232_v20 = vor.u32 %v11454_v11, %v9231_v10  ;;  %v12598_v63 = vld [vmem:[%s20486_s1 + $0x2f0] sm:$0xf]  ;;  %v9200_v10 = vor.u32 %v12521_v45, %v12516_v44  ;;  %v12653_v17 = vld [vmem:[%s20486_s1 + $0x260] sm:$0xf] }
  0x56   : > { %907 = vmatpush.bf16.msra.mxu1 %v9160_v12  ;;  %9183 = vmatmul.msk.bf16.vlgmr.msrb.gmra.mxu2 %vm678_vm0, %v20492_v4  ;;  %v9295_v12 = vld [vmem:[%s20486_s1 + $0xd0] sm:$0xf]  ;;  %v12593_v62 = vld [vmem:[%s20486_s1 + $0x274] sm:$0xf0]  ;;  %v12658_v18 = vld [vmem:[%s20486_s1 + $0x264] sm:$0xf0] }
  0x57   : > { %933 = vmatpush.bf16.msra.mxu3 %v9168_v14  ;;  %v9368_v14 = vor.u32 %v11488_v5, %v9367_v3  ;;  %v9296_v25 = vor.u32 %v11470_v13, %v9295_v12  ;;  %v9344_v5 = vor.u32 %v12499_v40, %v12494_v39  ;;  %v12621_v7 = vld [vmem:[%s20486_s1 + $0x114] sm:$0xf0]  ;;  %v12626_v8 = vld [vmem:[%s20486_s1 + $0x190] sm:$0xf]  ;;  %v12637_v13 = vld [vmem:[%s12141_s20] sm:$0xff] }
  0x58   : > { %9184 = vmatmul.msk.bf16.vlgmr.msrb.gmra.mxu3 %vm678_vm0, %v20492_v4  ;;  %895 = vmatpush.bf16.msra.mxu0 %v9076_v23  ;;  %v9423_v23 = vld [vmem:[%s20486_s1 + $0x1d0] sm:$0xf]  ;;  %20952 = vst [vmem:[#allocation2_spill] sm:$0xff] %v12637_v13  ;;  %v12648_v16 = vld [vmem:[%s20486_s1 + $0x194] sm:$0xf0]  ;;  %v20491_v19 = vunpack.c.l.bf16 %v12637_v13  ;;  %v20495_v22 = vunpack.c.h.bf16 %v12637_v13 }
  0x59   : > { %921 = vmatpush.bf16.msra.mxu2 %v9084_v28  ;;  %v12442_v28 = vld [vmem:[%s20486_s1 + $0xb0] sm:$0xf]  ;;  %v12676_v26 = vld [vmem:[%s20486_s1 + $0x2e4] sm:$0xf0]  ;;  %v12681_v27 = vld [vmem:[%s20486_s1 + $0x100] sm:$0xf] }
  0x5a   : > { %908 = vmatpush.bf16.msra.mxu1 %v9080_v24  ;;  %v11502_v24 = vld [vmem:[%s20486_s1 + $0x1d4] sm:$0xf0]  ;;  %v9280_v57 = vor.u32 %v12447_v29, %v12442_v28  ;;  %v12704_v39 = vld [vmem:[%s20486_s1 + $0x184] sm:$0xf0] }
  0x5b   : > { %934 = vmatpush.bf16.msra.mxu3 %v9088_v30  ;;  %v12452_v30 = vld [vmem:[%s20486_s1 + $0x140] sm:$0xf]  ;;  %v9424_v41 = vor.u32 %v11502_v24, %v9423_v23  ;;  %v9400_v23 = vor.u32 %v12557_v53, %v12552_v52  ;;  %v12845_v53 = vld [vmem:[%s20486_s1 + $0x364] sm:$0xf0] }
  0x5c   : > { %896 = vmatpush.bf16.msra.mxu0 %v8996_v35  ;;  %v12474_v35 = vld [vmem:[%s20486_s1 + $0x20] sm:$0xf] }
  0x5d   : > { %922 = vmatpush.bf16.msra.mxu2 %v9004_v42  ;;  %v12506_v42 = vld [vmem:[%s20486_s1 + $0x1b0] sm:$0xf]  ;;  %v12840_v52 = vld [vmem:[%s20486_s1 + $0x360] sm:$0xf] }
  0x5e   : > { %909 = vmatpush.bf16.msra.mxu1 %v9000_v38  ;;  %v12489_v38 = vld [vmem:[%s20486_s1 + $0xa4] sm:$0xf0] }
  0x5f   : > { %935 = vmatpush.bf16.msra.mxu3 %v9008_v46  ;;  %v12526_v46 = vld [vmem:[%s20486_s1 + $0x90] sm:$0xf]  ;;  %v9272_v3 = vor.u32 %v12489_v38, %v12484_v37 }
  0x60   : > { %897 = vmatpush.bf16.msra.mxu0 %v8916_v50  ;;  %v12545_v50 = vld [vmem:[%s20486_s1 + $0x124] sm:$0xf0]  ;;  %v9264_v11 = vor.u32 %v12535_v48, %v12526_v46  ;;  %v12807_v38 = vld [vmem:[%s20486_s1 + $0x250] sm:$0xf] }
  0x61   : > { %923 = vmatpush.bf16.msra.mxu2 %v8924_v61  ;;  %v12588_v61 = vld [vmem:[%s20486_s1 + $0x270] sm:$0xf]  ;;  %v9336_v12 = vor.u32 %v12545_v50, %v12540_v49  ;;  %v12872_v48 = vld [vmem:[%s12141_s20 + $0x1e8] sm:$0xff] }
  0x62   : > { %910 = vmatpush.bf16.msra.mxu1 %v8920_v54  ;;  %v12562_v54 = vld [vmem:[%s20486_s1] sm:$0xf]  ;;  %20967 = vst [vmem:[#allocation16_spill] sm:$0xff] %v12872_v48 }
  0x63   : > { %936 = vmatpush.bf16.msra.mxu3 %v8928_v0  ;;  %9185 = vmatmul.msk.bf16.vlgmr.msra.gmra.mxu0 %vm678_vm0, %v20492_v4  ;;  %v12603_v0 = vld [vmem:[%s20486_s1 + $0x2f4] sm:$0xf0] }
  0x64   : > { %3373 = vmatpush.bf16.msrb.mxu0 %v9248_v55  ;;  %v12567_v55 = vld [vmem:[%s20486_s1 + $0x4] sm:$0xf0] }
  0x65   : > { %3399 = vmatpush.bf16.msrb.mxu2 %v9376_v1  ;;  %9186 = vmatmul.msk.bf16.vlgmr.msra.gmra.mxu1 %vm678_vm0, %v20492_v4  ;;  %v9416_v1 = vor.u32 %v12469_v34, %v12464_v33  ;;  %v12694_v33 = vld [vmem:[%s20486_s1 + $0x104] sm:$0xf0]  ;;  %v12699_v34 = vld [vmem:[%s20486_s1 + $0x180] sm:$0xf] }
  0x66   : > { %3386 = vmatpush.bf16.msrb.mxu1 %v9312_v58  ;;  %9187 = vmatmul.msk.bf16.vlgmr.msra.gmra.mxu2 %vm678_vm0, %v20492_v4  ;;  %v9352_v58 = vor.u32 %v12457_v31, %v12452_v30  ;;  %v12758_v31 = vld [vmem:[%s12141_s20 + $0x190] sm:$0xff]  ;;  %v12761_v30 = vld [vmem:[%s12141_s20 + $0x1e0] sm:$0xff] }
  0x67   : > { %3412 = vmatpush.bf16.msrb.mxu3 %v9440_v2  ;;  %v9208_v2 = vor.u32 %v12479_v36, %v12474_v35  ;;  %20959 = vst [vmem:[#allocation9_spill] sm:$0xff] %v12758_v31  ;;  %v12789_v35 = vld [vmem:[%s20486_s1 + $0x3f0] sm:$0xf]  ;;  %v12794_v36 = vld [vmem:[%s20486_s1 + $0x3f4] sm:$0xf0] }
  0x68   : > { %3374 = vmatpush.bf16.msrb.mxu0 %v9240_v6  ;;  %9188 = vmatmul.msk.bf16.vlgmr.msra.gmra.mxu3 %vm678_vm0, %v20492_v4  ;;  %v12616_v6 = vld [vmem:[%s20486_s1 + $0x110] sm:$0xf]  ;;  %20960 = vst [vmem:[#allocation10_spill] sm:$0xff] %v12761_v30 }
  0x69   : > { %3400 = vmatpush.bf16.msrb.mxu2 %v9368_v14  ;;  %v12640_v14 = vld [vmem:[%s12141_s20 + $0x50] sm:$0xff] }
  0x6a   : > { %3387 = vmatpush.bf16.msrb.mxu1 %v9304_v9  ;;  %v9408_v9 = vor.u32 %v12511_v43, %v12506_v42  ;;  %20953 = vst [vmem:[#allocation3_spill] sm:$0xff] %v12640_v14  ;;  %v20494_v28 = vunpack.c.h.bf16 %v12640_v14  ;;  %v12735_v43 = vld [vmem:[%s12141_s20 + $0x58] sm:$0xff]  ;;  %v12777_v42 = vld [vmem:[%s12141_s20 + $0xa8] sm:$0xff] }
  0x6b   : > { %3413 = vmatpush.bf16.msrb.mxu3 %v9432_v15  ;;  %v12643_v15 = vld [vmem:[%s12141_s20 + $0xa0] sm:$0xff]  ;;  %20958 = vst [vmem:[#allocation8_spill] sm:$0xff] %v12735_v43  ;;  %v20522_v37 = vunpack.c.l.bf16 %v12777_v42  ;;  %v20530_v50 = vunpack.c.h.bf16 %v12735_v43  ;;  %v20521_v45 = vunpack.c.h.bf16 %v12777_v42 }
  0x6c   : > { %3375 = vmatpush.bf16.msrb.mxu0 %v9232_v20  ;;  %20954 = vst [vmem:[#allocation4_spill] sm:$0xff] %v12643_v15  ;;  %v20490_v20 = vunpack.c.l.bf16 %v12640_v14  ;;  %v20496_v21 = vunpack.c.l.bf16 %v12643_v15  ;;  %v20497_v29 = vunpack.c.h.bf16 %v12643_v15  ;;  %v13597_v14 = vld [vmem:[%s12141_s20 + $0x200] sm:$0xff] }
  0x6d   : > { %3401 = vmatpush.bf16.msrb.mxu2 %v9360_v32  ;;  %v12755_v32 = vld [vmem:[%s20486_s1 + $0x374] sm:$0xf0]  ;;  %20962 = vst [vmem:[#allocation12_spill] sm:$0xff] %v12777_v42 }
  0x6e   : > { %3388 = vmatpush.bf16.msrb.mxu1 %v9296_v25  ;;  %v12671_v25 = vld [vmem:[%s20486_s1 + $0x2e0] sm:$0xf]  ;;  %v1122_v40 = vmax.f32 %v20491_v19, %v20490_v20  ;;  %21027 = vst [vmem:[#allocation42_spill] sm:$0xff] %v13597_v14 }
  0x6f   : > { %3414 = vmatpush.bf16.msrb.mxu3 %v9424_v41  ;;  %v12780_v41 = vld [vmem:[%s12141_s20 + $0xf8] sm:$0xff] }
  0x70   : > { %3376 = vmatpush.bf16.msrb.mxu0 %v9224_v47  ;;  %v12717_v47 = vld [vmem:[%s12141_s20 + $0xf0] sm:$0xff]  ;;  %v1123_v19 = vmax.f32 %v1122_v40, %v20496_v21  ;;  %20963 = vst [vmem:[#allocation13_spill] sm:$0xff] %v12780_v41 }
  0x71   : > { %3402 = vmatpush.bf16.msrb.mxu2 %v9352_v58  ;;  %20955 = vst [vmem:[#allocation5_spill] sm:$0xff] %v12717_v47  ;;  %v1135_v58 = vmax.f32 %v20495_v22, %v20494_v28  ;;  %v20498_v4 = vunpack.c.h.bf16 %v12717_v47  ;;  %v20523_v28 = vunpack.c.l.bf16 %v12758_v31 }
  0x72   : > { %3389 = vmatpush.bf16.msrb.mxu1 %v9288_v51  ;;  %v12720_v51 = vld [vmem:[%s12141_s20 + $0x140] sm:$0xff] }
  0x73   : > { %3415 = vmatpush.bf16.msrb.mxu3 %v9416_v1  ;;  %20956 = vst [vmem:[#allocation6_spill] sm:$0xff] %v12720_v51  ;;  %v12727_v1 = vld [vmem:[%s12141_s20 + $0x8] sm:$0xff]  ;;  %v20499_v20 = vunpack.c.l.bf16 %v12720_v51  ;;  %v20501_v22 = vunpack.c.h.bf16 %v12720_v51  ;;  %v1136_v40 = vmax.f32 %v1135_v58, %v20497_v29  ;;  %v12770_v29 = vld [vmem:[%s12141_s20 + $0x230] sm:$0xff] }
  0x74   : > { %3377 = vmatpush.bf16.msrb.mxu0 %v9216_v56  ;;  %20957 = vst [vmem:[#allocation7_spill] sm:$0xff] %v12727_v1  ;;  %v20500_v56 = vunpack.c.l.bf16 %v12717_v47  ;;  %v20532_v21 = vunpack.c.l.bf16 %v12727_v1  ;;  %v13554_v51 = vld [vmem:[%s20486_s1 + $0x4b0] sm:$0xf] }
  0x75   : > { %3403 = vmatpush.bf16.msrb.mxu2 %v9344_v5  ;;  %20961 = vst [vmem:[#allocation11_spill] sm:$0xff] %v12770_v29  ;;  %v20502_v5 = vunpack.c.h.bf16 %v12758_v31  ;;  %v1137_v24 = vmax.f32 %v1136_v40, %v20498_v4  ;;  %v20503_v4 = vunpack.c.h.bf16 %v12761_v30 }
  0x76   : > { %3390 = vmatpush.bf16.msrb.mxu1 %v9280_v57  ;;  %v12742_v57 = vld [vmem:[%s20486_s1 + $0x370] sm:$0xf]  ;;  %v1124_v58 = vmax.f32 %v1123_v19, %v20500_v56  ;;  %v20520_v56 = vunpack.c.l.bf16 %v12780_v41  ;;  %v20505_v19 = vunpack.c.h.bf16 %v12770_v29 }
  0x77   : > { %3416 = vmatpush.bf16.msrb.mxu3 %v9408_v9  ;;  %v20531_v9 = vunpack.c.l.bf16 %v12735_v43 }
  0x78   : > { %3378 = vmatpush.bf16.msrb.mxu0 %v9208_v2  ;;  %v20504_v2 = vunpack.c.l.bf16 %v12761_v30  ;;  %v1125_v40 = vmax.f32 %v1124_v58, %v20499_v20  ;;  %v1138_v58 = vmax.f32 %v1137_v24, %v20501_v22  ;;  %v12817_v20 = vld [vmem:[%s12141_s20 + $0x148] sm:$0xff]  ;;  %v20507_v24 = vunpack.c.l.bf16 %v12770_v29 }
  0x79   : > { %3404 = vmatpush.bf16.msrb.mxu2 %v9336_v12  ;;  %20964 = vst [vmem:[#allocation14_spill] sm:$0xff] %v12817_v20  ;;  %v1148_v49 = vmax.f32 %v20532_v21, %v20531_v9  ;;  %v9632_v12 = vor.u32 %v12755_v32, %v12742_v57  ;;  %v12850_v32 = vld [vmem:[%s12141_s20 + $0x198] sm:$0xff]  ;;  %v20506_v57 = vunpack.c.l.bf16 %v12817_v20  ;;  %v13230_v9 = vld [vmem:[%s12141_s20 + $0x68] sm:$0xff] }
  0x7a   : > { %3391 = vmatpush.bf16.msrb.mxu1 %v9272_v3  ;;  %v12812_v3 = vld [vmem:[%s20486_s1 + $0x254] sm:$0xf0]  ;;  %v1126_v22 = vmax.f32 %v1125_v40, %v20523_v28  ;;  %20965 = vst [vmem:[#allocation15_spill] sm:$0xff] %v12850_v32 }
  0x7b   : > { %3417 = vmatpush.bf16.msrb.mxu3 %v9400_v23  ;;  %v1139_v23 = vmax.f32 %v1138_v58, %v20502_v5  ;;  %v1149_v44 = vmax.f32 %v1148_v49, %v20522_v37  ;;  %v9488_v40 = vor.u32 %v12812_v3, %v12807_v38  ;;  %v20519_v5 = vunpack.c.h.bf16 %v12780_v41  ;;  %v13082_v3 = vld [vmem:[%s20486_s1 + $0x2a0] sm:$0xf]  ;;  %v13114_v28 = vld [vmem:[%s20486_s1 + $0x3b4] sm:$0xf0]  ;;  %20988 = vst [vmem:[#allocation27_spill] sm:$0xff] %v13230_v9 }
  0x7c   : > { %3379 = vmatpush.bf16.msrb.mxu0 %v9200_v10  ;;  %v9696_v10 = vor.u32 %v12794_v36, %v12789_v35  ;;  %v1127_v58 = vmax.f32 %v1126_v22, %v20504_v2  ;;  %v20966_v49 = vor.u32 %v12621_v7, %v12616_v6  ;;  %v20968_v22 = vunpack.c.h.bf16 %v12727_v1  ;;  %v12894_v2 = vld [vmem:[%s12141_s20 + $0x60] sm:$0xff]  ;;  %v13233_v21 = vld [vmem:[%s12141_s20 + $0xb8] sm:$0xff]  ;;  %v13578_v41 = vld [vmem:[%s20486_s1 + $0x544] sm:$0xf0] }
  0x7d   : > { %v1140_v46 = vmax.f32 %v1139_v23, %v20503_v4  ;;  %v1150_v35 = vmax.f32 %v1149_v44, %v20520_v56  ;;  %v20969_v6 = vor.u32 %v12648_v16, %v12626_v8  ;;  %v9624_v7 = vor.u32 %v12845_v53, %v12840_v52  ;;  %v12891_v44 = vld [vmem:[%s12141_s20 + $0x10] sm:$0xff]  ;;  %20971 = vst [vmem:[#allocation18_spill] sm:$0xff] %v12894_v2  ;;  %v12902_v8 = vld [vmem:[%s20486_s1 + $0x3e0] sm:$0xf]  ;;  %v11568_v16 = vld [vmem:[%s20486_s1 + $0x3e4] sm:$0xf0] }
  0x7e   : > { %3392 = vmatpush.bf16.msrb.mxu1 %v9264_v11  ;;  %3405 = vmatpush.bf16.msrb.mxu2 %v20966_v49  ;;  %v20508_v11 = vunpack.c.l.bf16 %v12850_v32  ;;  %v1161_v36 = vmax.f32 %v20968_v22, %v20530_v50  ;;  %v1128_v23 = vmax.f32 %v1127_v58, %v20507_v24  ;;  %v20511_v49 = vunpack.c.l.bf16 %v12872_v48  ;;  %20970 = vst [vmem:[#allocation17_spill] sm:$0xff] %v12891_v44  ;;  %v12910_v53 = vld [vmem:[%s12141_s20 + $0x238] sm:$0xff]  ;;  %v13607_v1 = vld [vmem:[%s12141_s20 + $0x250] sm:$0xff] }
  0x7f   : > { %3418 = vmatpush.bf16.msrb.mxu3 %v20969_v6  ;;  %v20513_v4 = vunpack.c.h.bf16 %v12817_v20  ;;  %v20972_v22 = vor.u32 %v12567_v55, %v12562_v54  ;;  %v1141_v52 = vmax.f32 %v1140_v46, %v20505_v19  ;;  %20973 = vst [vmem:[#allocation19_spill] sm:$0xff] %v12910_v53  ;;  %v1151_v58 = vmax.f32 %v1150_v35, %v20506_v57  ;;  %v12926_v46 = vld [vmem:[%s20486_s1 + $0x2d0] sm:$0xf] }
  0x80   : > { %v1162_v54 = vmax.f32 %v1161_v36, %v20521_v45  ;;  %v20510_v55 = vunpack.c.l.bf16 %v12891_v44  ;;  %v20974_v6 = vor.u32 %v12583_v60, %v12578_v59  ;;  %v1129_v19 = vrot.slane %v1128_v23, 4  ;;  %v12931_v57 = vld [vmem:[%s12141_s20 + $0xb0] sm:$0xff]  ;;  %20989 = vst [vmem:[#allocation28_spill] sm:$0xff] %v13233_v21 }
  0x81   : > { %3380 = vmatpush.bf16.msrb.mxu0 %v20972_v22  ;;  %v20975_v22 = vor.u32 %v12593_v62, %v12588_v61  ;;  %v20514_v35 = vunpack.c.l.bf16 %v12910_v53  ;;  %v20518_v36 = vunpack.c.h.bf16 %v12850_v32  ;;  %20976 = vst [vmem:[#allocation20_spill] sm:$0xff] %v12931_v57  ;;  %v20509_v24 = vunpack.c.l.bf16 %v12894_v2  ;;  %v11534_v61 = vld [vmem:[%s20486_s1 + $0x2d4] sm:$0xf0]  ;;  %v12946_v62 = vld [vmem:[%s20486_s1 + $0x240] sm:$0xf] }
  0x82   : > { %3393 = vmatpush.bf16.msrb.mxu1 %v20974_v6  ;;  %v20977_v59 = vor.u32 %v12603_v0, %v12598_v63  ;;  %v20978_v60 = vor.u32 %v12694_v33, %v12681_v27  ;;  %v1142_v6 = vrot.slane %v1141_v52, 4  ;;  %v1163_v63 = vmax.f32 %v1162_v54, %v20519_v5  ;;  %v13377_v32 = vld [vmem:[%s20486_s1 + $0x450] sm:$0xf] }
  0x83   : > { %v20512_v0 = vunpack.c.l.bf16 %v12931_v57  ;;  %v20979_v27 = vor.u32 %v12704_v39, %v12699_v34  ;;  %v9688_v33 = vor.u32 %v11568_v16, %v12902_v8  ;;  %v1130_v54 = vmax.f32 %v1128_v23, %v1129_v19  ;;  %v12978_v39 = vld [vmem:[%s20486_s1 + $0x2c4] sm:$0xf0]  ;;  %v9615_v19 = vld [vmem:[%s20486_s1 + $0x350] sm:$0xf] }
  0x84   : > { %3406 = vmatpush.bf16.msrb.mxu2 %v20978_v60  ;;  %v20516_v60 = vunpack.c.h.bf16 %v12872_v48  ;;  %v1174_v34 = vmax.f32 %v20510_v55, %v20509_v24  ;;  %v1143_v23 = vmax.f32 %v1141_v52, %v1142_v6  ;;  %v9552_v24 = vor.u32 %v11534_v61, %v12926_v46  ;;  %v9679_v55 = vld [vmem:[%s20486_s1 + $0x3d0] sm:$0xf]  ;;  %v11566_v52 = vld [vmem:[%s20486_s1 + $0x3d4] sm:$0xf0] }
  0x85   : > { %3425 = vmatpush.bf16.msra.mxu0 %v20975_v22  ;;  %v1152_v22 = vmax.f32 %v1151_v58, %v20508_v11  ;;  %3419 = vmatpush.bf16.msrb.mxu3 %v20979_v27  ;;  %v12965_v58 = vld [vmem:[%s20486_s1 + $0x2c0] sm:$0xf]  ;;  %v20981_v27 = vor.u32 %v12658_v18, %v12653_v17  ;;  %v1131_v6 = vrot.slane %v1130_v54, 2  ;;  %v20983_v18 = vor.u32 %v12676_v26, %v12671_v25  ;;  %v13013_v46 = vld [vmem:[%s20486_s1 + $0x230] sm:$0xf] }
  0x86   : > { %3438 = vmatpush.bf16.msra.mxu1 %v20977_v59  ;;  %v12960_v59 = vld [vmem:[%s20486_s1 + $0x244] sm:$0xf0]  ;;  %v12969_v11 = vld [vmem:[%s12141_s20 + $0x100] sm:$0xff]  ;;  %v1175_v17 = vmax.f32 %v1174_v34, %v20512_v0  ;;  %v13018_v61 = vld [vmem:[%s20486_s1 + $0x234] sm:$0xf0]  ;;  %v20527_v38 = vunpack.c.h.bf16 %v12894_v2 }
  0x87   : > { %20980 = vst [vmem:[#allocation21_spill] sm:$0xff] %v12969_v11  ;;  %v1153_v8 = vmax.f32 %v1152_v22, %v20511_v49  ;;  %v20515_v16 = vunpack.c.l.bf16 %v12969_v11  ;;  %v20525_v22 = vunpack.c.h.bf16 %v12910_v53  ;;  %v9480_v26 = vor.u32 %v12960_v59, %v12946_v62  ;;  %v13030_v0 = vld [vmem:[%s20486_s1 + $0x2b0] sm:$0xf] }
  0x88   : > { %3451 = vmatpush.bf16.msra.mxu2 %v9632_v12  ;;  %v11550_v12 = vld [vmem:[%s20486_s1 + $0x354] sm:$0xf0]  ;;  %v9544_v59 = vor.u32 %v12978_v39, %v12965_v58  ;;  %v13070_v58 = vld [vmem:[%s20486_s1 + $0x224] sm:$0xf0]  ;;  %v9472_v45 = vor.u32 %v13018_v61, %v13013_v46  ;;  %v13509_v20 = vld [vmem:[%s20486_s1 + $0x550] sm:$0xf] }
  0x89   : > { %3464 = vmatpush.bf16.msra.mxu3 %v9696_v10  ;;  %v1164_v10 = vmax.f32 %v1163_v63, %v20513_v4  ;;  %3426 = vmatpush.bf16.msra.mxu0 %v20981_v27  ;;  %v13003_v63 = vld [vmem:[%s12141_s20 + $0x150] sm:$0xff]  ;;  %v1144_v27 = vrot.slane %v1143_v23, 2  ;;  %v1154_v49 = vmax.f32 %v1153_v8, %v20514_v35  ;;  %v13035_v4 = vld [vmem:[%s20486_s1 + $0x2b4] sm:$0xf0]  ;;  %v9607_v8 = vld [vmem:[%s20486_s1 + $0x340] sm:$0xf]  ;;  %v1176_v62 = vmax.f32 %v1175_v17, %v20515_v16 }
  0x8a   : > { %20982 = vst [vmem:[#allocation22_spill] sm:$0xff] %v13003_v63  ;;  %3439 = vmatpush.bf16.msra.mxu1 %v20983_v18  ;;  %v20517_v25 = vunpack.c.l.bf16 %v13003_v63  ;;  %v9616_v18 = vor.u32 %v11550_v12, %v9615_v19  ;;  %v9680_v19 = vor.u32 %v11566_v52, %v9679_v55  ;;  %v11548_v12 = vld [vmem:[%s20486_s1 + $0x344] sm:$0xf0]  ;;  %v13065_v55 = vld [vmem:[%s20486_s1 + $0x220] sm:$0xf]  ;;  %v13073_v52 = vld [vmem:[%s12141_s20 + $0x1f0] sm:$0xff]  ;;  %v20528_v16 = vunpack.c.h.bf16 %v12891_v44 }
  0x8b   : > { %v1165_v34 = vmax.f32 %v1164_v10, %v20518_v36  ;;  %v9671_v10 = vld [vmem:[%s20486_s1 + $0x3c0] sm:$0xf]  ;;  %v11564_v35 = vld [vmem:[%s20486_s1 + $0x3c4] sm:$0xf0]  ;;  %v1155_v39 = vrot.slane %v1154_v49, 4  ;;  %20985 = vst [vmem:[#allocation24_spill] sm:$0xff] %v13073_v52  ;;  %v13104_v36 = vmax.f32 %v1143_v23, %v1144_v27  ;;  %v20526_v56 = vunpack.c.l.bf16 %v13073_v52 }
  0x8c   : > { %3452 = vmatpush.bf16.msra.mxu2 %v9624_v7  ;;  %v13041_v7 = vld [vmem:[%s12141_s20 + $0x1a0] sm:$0xff]  ;;  %v9608_v37 = vor.u32 %v11548_v12, %v9607_v8  ;;  %v13124_v23 = vld [vmem:[%s20486_s1 + $0x214] sm:$0xf0]  ;;  %v9536_v61 = vor.u32 %v13035_v4, %v13030_v0  ;;  %v9672_v27 = vor.u32 %v11564_v35, %v9671_v10  ;;  %v13152_v35 = vld [vmem:[%s20486_s1 + $0x324] sm:$0xf0] }
  0x8d   : > { %20984 = vst [vmem:[#allocation23_spill] sm:$0xff] %v13041_v7  ;;  %3465 = vmatpush.bf16.msra.mxu3 %v9688_v33  ;;  %v1166_v17 = vmax.f32 %v1165_v34, %v20516_v60  ;;  %v20524_v33 = vunpack.c.l.bf16 %v13041_v7  ;;  %3427 = vmatpush.bf16.msra.mxu0 %v9488_v40  ;;  %v1177_v34 = vmax.f32 %v1176_v62, %v20517_v25  ;;  %v13087_v40 = vld [vmem:[%s20486_s1 + $0x2a4] sm:$0xf0]  ;;  %v13092_v60 = vld [vmem:[%s20486_s1 + $0x330] sm:$0xf] }
  0x8e   : > { %3440 = vmatpush.bf16.msra.mxu1 %v9552_v24  ;;  %v13097_v62 = vld [vmem:[%s20486_s1 + $0x334] sm:$0xf0]  ;;  %v13102_v24 = vld [vmem:[%s20486_s1 + $0x3b0] sm:$0xf]  ;;  %v1132_v25 = vmax.f32 %v1130_v54, %v1131_v6  ;;  %v1156_v6 = vmax.f32 %v1154_v49, %v1155_v39  ;;  %v13141_v49 = vld [vmem:[%s12141_s20 + $0x240] sm:$0xff]  ;;  %v9464_v39 = vor.u32 %v13070_v58, %v13065_v55 }
  0x8f   : > { %v1167_v5 = vmax.f32 %v1166_v17, %v20525_v22  ;;  %v13119_v54 = vld [vmem:[%s20486_s1 + $0x210] sm:$0xf]  ;;  %v1178_v46 = vmax.f32 %v1177_v34, %v20524_v33  ;;  %v13138_v8 = vld [vmem:[%s20486_s1 + $0x294] sm:$0xf0]  ;;  %20986 = vst [vmem:[#allocation25_spill] sm:$0xff] %v13141_v49  ;;  %v20533_v17 = vunpack.c.h.bf16 %v12931_v57  ;;  %v1146_v33 = vrot.slane %v13104_v36, 1 }
  0x90   : > { %3453 = vmatpush.bf16.msra.mxu2 %v9616_v18  ;;  %v13133_v18 = vld [vmem:[%s20486_s1 + $0x290] sm:$0xf]  ;;  %v13147_v4 = vld [vmem:[%s20486_s1 + $0x320] sm:$0xf]  ;;  %v1157_v0 = vrot.slane %v1156_v6, 2  ;;  %v1133_v34 = vrot.slane %v1132_v25, 1  ;;  %v9600_v55 = vor.u32 %v13097_v62, %v13092_v60  ;;  %v9664_v58 = vor.u32 %v13114_v28, %v13102_v24 }
  0x91   : > { %3466 = vmatpush.bf16.msra.mxu3 %v9680_v19  ;;  %v1168_v12 = vrot.slane %v1167_v5, 4  ;;  %3428 = vmatpush.bf16.msra.mxu0 %v9480_v26  ;;  %v20529_v19 = vunpack.c.l.bf16 %v13141_v49  ;;  %v1179_v10 = vmax.f32 %v1178_v46, %v20526_v56  ;;  %v1187_v26 = vmax.f32 %v20528_v16, %v20527_v38  ;;  %v13167_v22 = vld [vmem:[%s20486_s1 + $0x3a0] sm:$0xf]  ;;  %v13172_v46 = vld [vmem:[%s20486_s1 + $0x3a4] sm:$0xf0]  ;;  %v13198_v28 = vld [vmem:[%s12141_s20 + $0x18] sm:$0xff] }
  0x92   : > { %3441 = vmatpush.bf16.msra.mxu1 %v9544_v59  ;;  %v9528_v59 = vor.u32 %v13087_v40, %v13082_v3  ;;  %v13183_v38 = vld [vmem:[%s20486_s1 + $0x200] sm:$0xf]  ;;  %v13188_v16 = vld [vmem:[%s20486_s1 + $0x204] sm:$0xf0]  ;;  %20987 = vst [vmem:[#allocation26_spill] sm:$0xff] %v13198_v28  ;;  %v9592_v40 = vor.u32 %v13152_v35, %v13147_v4  ;;  %v13235_v3 = vmax.f32 %v1132_v25, %v1133_v34 }
  0x93   : > { %v1169_v56 = vmax.f32 %v1167_v5, %v1168_v12  ;;  %v13193_v5 = vld [vmem:[%s20486_s1 + $0x280] sm:$0xf]  ;;  %v13209_v62 = vld [vmem:[%s20486_s1 + $0x284] sm:$0xf0]  ;;  %v13214_v24 = vld [vmem:[%s20486_s1 + $0x470] sm:$0xf]  ;;  %v20540_v12 = vunpack.c.h.bf16 %v12969_v11  ;;  %v1188_v50 = vmax.f32 %v1187_v26, %v20533_v17  ;;  %v20996_v11 = vor.u32 %v13124_v23, %v13119_v54 }
  0x94   : > { %3454 = vmatpush.bf16.msra.mxu2 %v9608_v37  ;;  %v1180_v37 = vmax.f32 %v1179_v10, %v20529_v19  ;;  %v1158_v10 = vmax.f32 %v1156_v6, %v1157_v0  ;;  %v13225_v35 = vld [vmem:[%s20486_s1 + $0x4f0] sm:$0xf]  ;;  %v13244_v0 = vld [vmem:[%s20486_s1 + $0x4f4] sm:$0xf0]  ;;  %v13292_v34 = vld [vmem:[%s20486_s1 + $0x4e4] sm:$0xf0]  ;;  %v20998_v23 = vor.u32 %v13138_v8, %v13133_v18  ;;  %v21000_v18 = vunpack.c.l.bf16 %v13233_v21 }
  0x95   : > { %3467 = vmatpush.bf16.msra.mxu3 %v9672_v27  ;;  %v13219_v27 = vld [vmem:[%s20486_s1 + $0x474] sm:$0xf0]  ;;  %3429 = vmatpush.bf16.msra.mxu0 %v9472_v45  ;;  %v1170_v4 = vrot.slane %v1169_v56, 2  ;;  %v9656_v45 = vor.u32 %v13172_v46, %v13167_v22  ;;  %v13249_v26 = vld [vmem:[%s20486_s1 + $0x310] sm:$0xf] }
  0x96   : > { %v1181_v19 = vrot.slane %v1180_v37, 4  ;;  %3442 = vmatpush.bf16.msra.mxu1 %v9536_v61  ;;  %v13254_v25 = vld [vmem:[%s20486_s1 + $0x314] sm:$0xf0]  ;;  %v13258_v61 = vmax.f32 %v13104_v36, %v1146_v33  ;;  %v13267_v17 = vld [vmem:[%s20486_s1 + $0x390] sm:$0xf]  ;;  %v1159_v22 = vrot.slane %v1158_v10, 1 }
  0x97   : > { %v13272_v6 = vld [vmem:[%s20486_s1 + $0x394] sm:$0xf0]  ;;  %v13277_v36 = vld [vmem:[%s20486_s1 + $0x460] sm:$0xf]  ;;  %v1171_v57 = vmax.f32 %v1169_v56, %v1170_v4  ;;  %v9584_v44 = vor.u32 %v13254_v25, %v13249_v26  ;;  %v20991_v4 = vunpack.c.h.bf16 %v13003_v63  ;;  %v20995_v25 = vunpack.c.l.bf16 %v13198_v28 }
  0x98   : > { %3455 = vmatpush.bf16.msra.mxu2 %v9600_v55  ;;  %v1182_v33 = vmax.f32 %v1180_v37, %v1181_v19  ;;  %v13282_v55 = vld [vmem:[%s20486_s1 + $0x464] sm:$0xf0]  ;;  %v13287_v46 = vld [vmem:[%s20486_s1 + $0x4e0] sm:$0xf]  ;;  %v1189_v19 = vmax.f32 %v1188_v50, %v20540_v12  ;;  %v13320_v26 = vld [vmem:[%s12141_s20 + $0x158] sm:$0xff]  ;;  %v13372_v53 = vmax.f32 %v1158_v10, %v1159_v22 }
  0x99   : > { %3468 = vmatpush.bf16.msra.mxu3 %v9664_v58  ;;  %3430 = vmatpush.bf16.msra.mxu0 %v9464_v39  ;;  %v13306_v60 = vld [vmem:[%s20486_s1 + $0x300] sm:$0xf]  ;;  %v13311_v50 = vld [vmem:[%s20486_s1 + $0x304] sm:$0xf0]  ;;  %20992 = vst [vmem:[#allocation30_spill] sm:$0xff] %v13320_v26  ;;  %v9648_v58 = vor.u32 %v13272_v6, %v13267_v17  ;;  %v1172_v48 = vrot.slane %v1171_v57, 1 }
  0x9a   : > { %v13314_v12 = vld [vmem:[%s12141_s20 + $0x108] sm:$0xff]  ;;  %3443 = vmatpush.bf16.msra.mxu1 %v9528_v59  ;;  %v1183_v56 = vrot.slane %v1182_v33, 2  ;;  %v1190_v2 = vmax.f32 %v1189_v19, %v20991_v4  ;;  %v13332_v39 = vld [vmem:[%s20486_s1 + $0x380] sm:$0xf]  ;;  %v13342_v17 = vld [vmem:[%s20486_s1 + $0x570] sm:$0xf]  ;;  %v9576_v6 = vor.u32 %v13311_v50, %v13306_v60  ;;  %v20994_v50 = vunpack.c.l.bf16 %v13230_v9 }
  0x9b   : > { %20990 = vst [vmem:[#allocation29_spill] sm:$0xff] %v13314_v12  ;;  %v13337_v19 = vld [vmem:[%s20486_s1 + $0x384] sm:$0xf0]  ;;  %v13350_v4 = vld [vmem:[%s20486_s1 + $0x574] sm:$0xf0] }
  0x9c   : > { %3456 = vmatpush.bf16.msra.mxu2 %v9592_v40  ;;  %v13355_v59 = vld [vmem:[%s20486_s1 + $0x5f0] sm:$0xf]  ;;  %v13360_v37 = vld [vmem:[%s20486_s1 + $0x5f4] sm:$0xf0]  ;;  %v1200_v63 = vmax.f32 %v20995_v25, %v20994_v50  ;;  %v13385_v25 = vld [vmem:[%s12141_s20 + $0x1a8] sm:$0xff]  ;;  %v20999_v50 = vunpack.c.h.bf16 %v13073_v52 }
  0x9d   : > { %3469 = vmatpush.bf16.msra.mxu3 %v9656_v45  ;;  %v20993_v45 = vunpack.c.h.bf16 %v13041_v7  ;;  %3431 = vmatpush.bf16.msra.mxu0 %v20996_v11  ;;  %20997 = vst [vmem:[#allocation31_spill] sm:$0xff] %v13385_v25  ;;  %v13395_v10 = vld [vmem:[%s20486_s1 + $0x4d0] sm:$0xf]  ;;  %v13400_v22 = vld [vmem:[%s20486_s1 + $0x4d4] sm:$0xf0]  ;;  %v13433_v11 = vld [vmem:[%s12141_s20 + $0x20] sm:$0xff] }
  0x9e   : > { %3444 = vmatpush.bf16.msra.mxu1 %v20998_v23  ;;  %v1201_v8 = vmax.f32 %v1200_v63, %v21000_v18  ;;  %v9640_v23 = vor.u32 %v13337_v19, %v13332_v39  ;;  %v21003_v39 = vunpack.c.h.bf16 %v13141_v49  ;;  %21005 = vst [vmem:[#allocation34_spill] sm:$0xff] %v13433_v11  ;;  %v13441_v63 = vmax.f32 %v1171_v57, %v1172_v48  ;;  %v13471_v49 = vld [vmem:[%s20486_s1 + $0x440] sm:$0xf]  ;;  %v13476_v57 = vld [vmem:[%s20486_s1 + $0x444] sm:$0xf0] }
  0x9f   : > { %v1191_v40 = vmax.f32 %v1190_v2, %v20993_v45  ;;  %v13382_v2 = vld [vmem:[%s20486_s1 + $0x454] sm:$0xf0]  ;;  %v1184_v45 = vmax.f32 %v1182_v33, %v1183_v56  ;;  %v21004_v33 = vunpack.c.l.bf16 %v13314_v12  ;;  %v21008_v48 = vunpack.c.h.bf16 %v13230_v9  ;;  %v13493_v7 = vld [vmem:[%s20486_s1 + $0x4c4] sm:$0xf0] }
  0xa0   : > { %3457 = vmatpush.bf16.msra.mxu2 %v9584_v44  ;;  %v13414_v56 = vld [vmem:[%s12141_s20 + $0x1f8] sm:$0xff]  ;;  %v13425_v44 = vld [vmem:[%s20486_s1 + $0x560] sm:$0xf]  ;;  %v21013_v18 = vunpack.c.h.bf16 %v13233_v21  ;;  %v13534_v21 = vld [vmem:[%s20486_s1 + $0x430] sm:$0xf]  ;;  %v691_v13 = vpop.f32.mrf.mxu0 }
  0xa1   : > { %v1192_v54 = vmax.f32 %v1191_v40, %v20999_v50  ;;  %21001 = vst [vmem:[#allocation32_spill] sm:$0xff] %v13414_v56  ;;  %v13417_v40 = vld [vmem:[%s12141_s20 + $0x248] sm:$0xff]  ;;  %3470 = vmatpush.bf16.msra.mxu3 %v9648_v58  ;;  %v1202_v60 = vmax.f32 %v1201_v8, %v21004_v33  ;;  %v13436_v50 = vld [vmem:[%s12141_s20 + $0x70] sm:$0xff]  ;;  %v21007_v58 = vor.u32 %v13188_v16, %v13183_v38  ;;  %v13453_v8 = vld [vmem:[%s20486_s1 + $0x5e0] sm:$0xf]  ;;  %v21009_v38 = vunpack.c.h.bf16 %v13198_v28 }
  0xa2   : > { %21002 = vst [vmem:[#allocation33_spill] sm:$0xff] %v13417_v40  ;;  %v13458_v16 = vld [vmem:[%s20486_s1 + $0x5e4] sm:$0xf0]  ;;  %v21014_v28 = vunpack.c.l.bf16 %v13385_v25  ;;  %v21018_v42 = vunpack.c.l.bf16 %v13414_v56 }
  0xa3   : > { %v1193_v19 = vmax.f32 %v1192_v54, %v21003_v39  ;;  %21006 = vst [vmem:[#allocation35_spill] sm:$0xff] %v13436_v50  ;;  %3432 = vmatpush.bf16.msra.mxu0 %v21007_v58  ;;  %v13448_v54 = vld [vmem:[%s20486_s1 + $0x564] sm:$0xf0]  ;;  %v1213_v33 = vmax.f32 %v21009_v38, %v21008_v48  ;;  %v21010_v39 = vor.u32 %v13209_v62, %v13193_v5  ;;  %v1185_v58 = vrot.slane %v1184_v45, 1  ;;  %v13483_v5 = vld [vmem:[%s12141_s20 + $0xc0] sm:$0xff] }
  0xa4   : > { %v21011_v48 = vunpack.c.l.bf16 %v13320_v26  ;;  %21012 = vst [vmem:[#allocation36_spill] sm:$0xff] %v13483_v5  ;;  %3458 = vmatpush.bf16.msra.mxu2 %v9576_v6  ;;  %v13529_v6 = vld [vmem:[%s20486_s1 + $0x5d4] sm:$0xf0] }
  0xa5   : > { %3445 = vmatpush.bf16.msra.mxu1 %v21010_v39  ;;  %v1194_v62 = vrot.slane %v1193_v19, 4  ;;  %v13488_v39 = vld [vmem:[%s20486_s1 + $0x4c0] sm:$0xf]  ;;  %v1214_v9 = vmax.f32 %v1213_v33, %v21013_v18  ;;  %3471 = vmatpush.bf16.msra.mxu3 %v9640_v23  ;;  %v13514_v18 = vld [vmem:[%s20486_s1 + $0x554] sm:$0xf0]  ;;  %21015 = vst [vmem:[#allocation37_spill] sm:$0xff] %v13534_v21  ;;  %v13545_v30 = vmax.f32 %v1184_v45, %v1185_v58 }
  0xa6   : > { %v1203_v38 = vmax.f32 %v1202_v60, %v21011_v48  ;;  %v13498_v60 = vld [vmem:[%s12141_s20 + $0x110] sm:$0xff]  ;;  %v13539_v33 = vld [vmem:[%s20486_s1 + $0x434] sm:$0xf0] }
  0xa7   : > { %v13519_v23 = vld [vmem:[%s20486_s1 + $0x5d0] sm:$0xf]  ;;  %21016 = vst [vmem:[#allocation38_spill] sm:$0xff] %v13539_v33  ;;  %v1195_v45 = vmax.f32 %v1193_v19, %v1194_v62  ;;  %v13566_v58 = vld [vmem:[%s20486_s1 + $0x4b4] sm:$0xf0]  ;;  %v21023_v62 = vunpack.c.l.bf16 %v13436_v50  ;;  %v21026_v19 = vunpack.c.h.bf16 %v13385_v25 }
  0xa8   : > { %v1204_v52 = vmax.f32 %v1203_v38, %v21014_v28  ;;  %v21017_v38 = vunpack.c.h.bf16 %v13314_v12  ;;  %v13558_v12 = vld [vmem:[%s12141_s20 + $0x160] sm:$0xff]  ;;  %v21024_v28 = vunpack.c.l.bf16 %v13433_v11 }
  0xa9   : > { %21019 = vst [vmem:[#allocation39_spill] sm:$0xff] %v13558_v12  ;;  %v1196_v25 = vrot.slane %v1195_v45, 2 }
  0xaa   : > { %v1215_v48 = vmax.f32 %v1214_v9, %v21017_v38  ;;  %v1205_v31 = vmax.f32 %v1204_v52, %v21018_v42  ;;  %v13561_v9 = vld [vmem:[%s12141_s20 + $0x1b0] sm:$0xff]  ;;  %v21021_v42 = vunpack.c.h.bf16 %v13320_v26  ;;  %v13573_v38 = vld [vmem:[%s20486_s1 + $0x540] sm:$0xf]  ;;  %v1226_v29 = vmax.f32 %v21024_v28, %v21023_v62 }
  0xab   : > { %21020 = vst [vmem:[#allocation40_spill] sm:$0xff] %v13561_v9  ;;  %v21025_v26 = vunpack.c.l.bf16 %v13417_v40  ;;  %v21028_v62 = vunpack.c.l.bf16 %v13483_v5  ;;  %v21029_v28 = vunpack.c.h.bf16 %v13414_v56  ;;  %v21040_v56 = vunpack.c.h.bf16 %v13433_v11 }
  0xac   : > { %v1216_v52 = vmax.f32 %v1215_v48, %v21021_v42  ;;  %21022 = vst [vmem:[#allocation41_spill] sm:$0xff] %v13573_v38  ;;  %v21043_v11 = vor.u32 %v13244_v0, %v13225_v35 }
  0xad   : > { %v1206_v43 = vmax.f32 %v1205_v31, %v21025_v26  ;;  %v1227_v48 = vmax.f32 %v1226_v29, %v21028_v62  ;;  %v21030_v29 = vunpack.c.l.bf16 %v13498_v60  ;;  %v13617_v31 = vld [vmem:[%s20486_s1 + $0x5c0] sm:$0xf] }
  0xae   : > { %v1217_v15 = vmax.f32 %v1216_v52, %v21026_v19  ;;  %v942_v52 = vmul.f32 0.015625, %v691_v13  ;;  %v704_v19 = vpop.f32.mrf.mxu1  ;;  %v13651_v13 = vld [vmem:[%s20486_s1 + $0x4a0] sm:$0xf] }
  0xaf   : > { %v1207_v42 = vrot.slane %v1206_v43, 4  ;;  %v1228_v62 = vmax.f32 %v1227_v48, %v21030_v29  ;;  %v943_v33 = vmul.f32 0.015625, %v704_v19  ;;  %v13629_v48 = vld [vmem:[%s20486_s1 + $0x5c4] sm:$0xf0]  ;;  %v13634_v19 = vld [vmem:[%s20486_s1 + $0x420] sm:$0xf] }
  0xb0   : > { %v1218_v21 = vmax.f32 %v1217_v15, %v21029_v28  ;;  %v1413_v47 = vsel %vm1412_vm1, %v942_v52, %v13235_v3  ;;  %v21031_v15 = vunpack.c.h.bf16 %v13417_v40  ;;  %21032 = vst [vmem:[#allocation43_spill] sm:$0xff] %v13634_v19  ;;  %v13639_v29 = vld [vmem:[%s20486_s1 + $0x424] sm:$0xf0]  ;;  %v21033_v52 = vunpack.c.l.bf16 %v13558_v12  ;;  %v13747_v19 = vld [vmem:[%s20486_s1 + $0x490] sm:$0xf] }
  0xb1   : > { %v1414_v26 = vsel %vm1412_vm1, %v943_v33, %v13258_v61  ;;  %v1208_v38 = vmax.f32 %v1206_v43, %v1207_v42  ;;  %21035 = vst [vmem:[#allocation45_spill] sm:$0xff] %v13651_v13  ;;  %v13656_v40 = vld [vmem:[%s20486_s1 + $0x4a4] sm:$0xf0]  ;;  %v21038_v43 = vunpack.c.l.bf16 %v13561_v9  ;;  %v21045_v42 = vunpack.c.l.bf16 %v13607_v1 }
  0xb2   : > { %v1219_v28 = vmax.f32 %v1218_v21, %v21031_v15  ;;  %v1229_v21 = vmax.f32 %v1228_v62, %v21033_v52  ;;  %v13644_v15 = vpack.c.bf16 %v1413_v47, %v1413_v47  ;;  %21036 = vst [vmem:[#allocation46_spill] sm:$0xff] %v13656_v40  ;;  %v13659_v62 = vpack.c.bf16 %v1414_v26, %v1414_v26  ;;  %v13684_v3 = vld [vmem:[%s12141_s20 + $0x28] sm:$0xff] }
  0xb3   : > { %v13661_v47 = vmax.f32 %v1195_v45, %v1196_v25  ;;  %v21039_v26 = vunpack.c.h.bf16 %v13436_v50  ;;  %v717_v45 = vpop.f32.mrf.mxu2  ;;  %v21042_v52 = vunpack.c.l.bf16 %v13597_v14  ;;  %v13687_v50 = vld [vmem:[%s12141_s20 + $0x78] sm:$0xff]  ;;  %v13714_v13 = vld [vmem:[%s12141_s20 + $0xc8] sm:$0xff]  ;;  %v21048_v40 = vor.u32 %v13282_v55, %v13277_v36  ;;  %v13765_v55 = vld [vmem:[%s20486_s1 + $0x520] sm:$0xf] }
  0xb4   : > { %21034 = vst [vmem:[#allocation44_spill] sm:$0xff] %v13644_v15  ;;  %v1220_v61 = vrot.slane %v1219_v28, 4  ;;  %v1230_v33 = vmax.f32 %v1229_v21, %v21038_v43  ;;  %3381 = vmatmul.bf16.vlgmr.msrb.gmra.mxu0 %v13644_v15  ;;  %3394 = vmatmul.bf16.vlgmr.msrb.gmra.mxu1 %v13659_v62  ;;  %v21041_v21 = vor.u32 %v13219_v27, %v13214_v24  ;;  %v693_v24 = vpop.f32.mrf.mxu0  ;;  %v1209_v27 = vrot.slane %v1208_v38, 2 }
  0xb5   : > { %21037 = vst [vmem:[#allocation47_spill] sm:$0xff] %v13659_v62  ;;  %v1239_v25 = vmax.f32 %v21040_v56, %v21039_v26  ;;  %v944_v56 = vmul.f32 0.015625, %v717_v45  ;;  %v730_v26 = vpop.f32.mrf.mxu3  ;;  %3490 = vmatpush.bf16.msrb.mxu1 %v21043_v11  ;;  %v1198_v0 = vrot.slane %v13661_v47, 1  ;;  %v13709_v24 = vld [vmem:[%s20486_s1 + $0x5b0] sm:$0xf] }
  0xb6   : > { %3477 = vmatpush.bf16.msrb.mxu0 %v21041_v21  ;;  %v1221_v43 = vmax.f32 %v1219_v28, %v1220_v61  ;;  %v1231_v15 = vmax.f32 %v1230_v33, %v21042_v52  ;;  %v13695_v28 = vld [vmem:[%s20486_s1 + $0x530] sm:$0xf]  ;;  %v13700_v61 = vld [vmem:[%s20486_s1 + $0x534] sm:$0xf0]  ;;  %v21044_v52 = vunpack.c.h.bf16 %v13483_v5  ;;  %v945_v21 = vmul.f32 0.015625, %v730_v26  ;;  %v706_v35 = vpop.f32.mrf.mxu1  ;;  %21046 = vst [vmem:[#allocation48_spill] sm:$0xff] %v13714_v13 }
  0xb7   : > { %v1415_v33 = vsel %vm1412_vm1, %v944_v56, %v13372_v53  ;;  %v13726_v26 = vld [vmem:[%s20486_s1 + $0x410] sm:$0xf]  ;;  %v13752_v53 = vld [vmem:[%s20486_s1 + $0x494] sm:$0xf0]  ;;  %v13760_v36 = vmax.f32 %v1208_v38, %v1209_v27 }
  0xb8   : > { %v1240_v45 = vmax.f32 %v1239_v25, %v21044_v52  ;;  %v1222_v11 = vrot.slane %v1221_v43, 2  ;;  %v1232_v62 = vmax.f32 %v1231_v15, %v21045_v42  ;;  %v13721_v25 = vld [vmem:[%s20486_s1 + $0x5b4] sm:$0xf0]  ;;  %v20615_v15 = vunpack.c.h.bf16 %v13561_v9 }
  0xb9   : > { %v13731_v52 = vld [vmem:[%s20486_s1 + $0x414] sm:$0xf0]  ;;  %v21047_v42 = vunpack.c.h.bf16 %v13498_v60  ;;  %v13737_v35 = vpack.c.bf16 %v1415_v33, %v1415_v33  ;;  %v1416_v5 = vsel %vm1412_vm1, %v945_v21, %v13441_v63  ;;  %v21049_v63 = vor.u32 %v13292_v34, %v13287_v46 }
  0xba   : > { %3478 = vmatpush.bf16.msrb.mxu0 %v21048_v40  ;;  %v13770_v40 = vld [vmem:[%s20486_s1 + $0x524] sm:$0xf0]  ;;  %v21050_v21 = vunpack.c.h.bf16 %v13558_v12  ;;  %v13775_v33 = vld [vmem:[%s12141_s20 + $0x118] sm:$0xff]  ;;  %v13779_v46 = vmax.f32 %v1221_v43, %v1222_v11  ;;  %v21052_v43 = vor.u32 %v13350_v4, %v13342_v17  ;;  %v21055_v4 = vor.u32 %v13382_v2, %v13377_v32 }
  0xbb   : > { %v1241_v56 = vmax.f32 %v1240_v45, %v21047_v42  ;;  %v1233_v45 = vrot.slane %v1232_v62, 4  ;;  %v13755_v42 = vpack.c.bf16 %v1416_v5, %v1416_v5  ;;  %3491 = vmatpush.bf16.msrb.mxu1 %v21049_v63  ;;  %21051 = vst [vmem:[#allocation49_spill] sm:$0xff] %v13775_v33  ;;  %3407 = vmatmul.bf16.vlgmr.msrb.gmra.mxu2 %v13737_v35  ;;  %v13788_v63 = vld [vmem:[%s20486_s1 + $0x5a0] sm:$0xf]  ;;  %v13808_v12 = vld [vmem:[%s12141_s20 + $0x168] sm:$0xff]  ;;  %v719_v17 = vpop.f32.mrf.mxu2  ;;  %v20619_v11 = vunpack.c.l.bf16 %v13775_v33 }
  0xbc   : > { %3503 = vmatpush.bf16.msrb.mxu2 %v21052_v43  ;;  %21053 = vst [vmem:[#allocation50_spill] sm:$0xff] %v13808_v12  ;;  %v1199_v32 = vmax.f32 %v13661_v47, %v1198_v0  ;;  %v1211_v2 = vrot.slane %v13760_v36, 1  ;;  %v13833_v17 = vld [vmem:[%s12141_s20 + $0x1b8] sm:$0xff]  ;;  %v21062_v47 = vor.u32 %v13448_v54, %v13425_v44  ;;  %v20622_v54 = vunpack.c.h.bf16 %v13687_v50 }
  0xbd   : > { %v1242_v5 = vmax.f32 %v1241_v56, %v21050_v21  ;;  %v13793_v56 = vld [vmem:[%s20486_s1 + $0x5a4] sm:$0xf0]  ;;  %3420 = vmatmul.bf16.vlgmr.msrb.gmra.mxu3 %v13755_v42  ;;  %v21054_v21 = vor.u32 %v13360_v37, %v13355_v59  ;;  %v1234_v43 = vmax.f32 %v1232_v62, %v1233_v45  ;;  %v732_v9 = vpop.f32.mrf.mxu3  ;;  %v21058_v37 = vor.u32 %v13400_v22, %v13395_v10  ;;  %v743_v59 = vpop.f32.mrf.mxu0 }
  0xbe   : > { %3479 = vmatpush.bf16.msrb.mxu0 %v21055_v4  ;;  %v21059_v45 = vunpack.c.h.bf16 %v13597_v14  ;;  %21060 = vst [vmem:[#allocation51_spill] sm:$0xff] %v13833_v17  ;;  %v756_v9 = vpop.f32.mrf.mxu1  ;;  %v1224_v4 = vrot.slane %v13779_v46, 1  ;;  %v20618_v10 = vunpack.c.l.bf16 %v13808_v12  ;;  %v21061_v22 = vunpack.c.l.bf16 %v13714_v13  ;;  %v14095_v14 = vld [vmem:[%s20486_s1 + $0x650] sm:$0xf] }
  0xbf   : > { %v1243_v34 = vmax.f32 %v1242_v5, %v20615_v15  ;;  %3516 = vmatpush.bf16.msrb.mxu3 %v21054_v21  ;;  %v21056_v5 = vunpack.c.l.bf16 %v13687_v50  ;;  %v21057_v15 = vunpack.c.l.bf16 %v13684_v3  ;;  %3492 = vmatpush.bf16.msrb.mxu1 %v21058_v37  ;;  %v947_v0 = vmul.f32 0.015625, %v756_v9 }
  0xc0   : > { %3504 = vmatpush.bf16.msrb.mxu2 %v21062_v47  ;;  %v21063_v37 = vunpack.c.h.bf16 %v13607_v1  ;;  %v21066_v9 = vor.u32 %v13476_v57, %v13471_v49  ;;  %v20621_v47 = vunpack.c.l.bf16 %v13833_v17  ;;  %v20620_v49 = vunpack.c.h.bf16 %v13714_v13 }
  0xc1   : > { %v1252_v38 = vmax.f32 %v21057_v15, %v21056_v5  ;;  %v1244_v21 = vmax.f32 %v1243_v34, %v21059_v45  ;;  %v946_v15 = vmul.f32 0.015625, %v743_v59  ;;  %v13847_v34 = vld [vmem:[%s20486_s1 + $0x400] sm:$0xf]  ;;  %v13852_v59 = vld [vmem:[%s20486_s1 + $0x404] sm:$0xf0]  ;;  %v1418_v44 = vsel %vm1412_vm1, %v947_v0, %v1199_v32 }
  0xc2   : > { %3480 = vmatpush.bf16.msrb.mxu0 %v21066_v9  ;;  %v13880_v57 = vpack.c.bf16 %v1418_v44, %v1418_v44  ;;  %v1212_v0 = vmax.f32 %v13760_v36, %v1211_v2  ;;  %v21069_v36 = vunpack.c.h.bf16 %v13684_v3 }
  0xc3   : > { %v1253_v5 = vmax.f32 %v1252_v38, %v21061_v22  ;;  %v1245_v62 = vmax.f32 %v1244_v21, %v21063_v37  ;;  %v13855_v38 = vld [vmem:[%s12141_s20 + $0x208] sm:$0xff]  ;;  %v1417_v45 = vsel %vm1412_vm1, %v946_v15, %v13545_v30  ;;  %v21065_v21 = vor.u32 %v13458_v16, %v13453_v8  ;;  %v13877_v16 = vld [vmem:[%s12141_s20 + $0x258] sm:$0xff]  ;;  %v769_v9 = vpop.f32.mrf.mxu2 }
  0xc4   : > { %21064 = vst [vmem:[#allocation52_spill] sm:$0xff] %v13855_v38  ;;  %v1235_v22 = vrot.slane %v1234_v43, 2  ;;  %v13870_v27 = vpack.c.bf16 %v1417_v45, %v1417_v45  ;;  %v21067_v30 = vor.u32 %v13493_v7, %v13488_v39  ;;  %v20623_v32 = vunpack.c.l.bf16 %v13855_v38  ;;  %v13900_v45 = vld [vmem:[%s20486_s1 + $0x484] sm:$0xf0]  ;;  %3446 = vmatmul.bf16.vlgmr.msra.gmra.mxu1 %v13880_v57 }
  0xc5   : > { %3517 = vmatpush.bf16.msrb.mxu3 %v21065_v21  ;;  %v1254_v37 = vmax.f32 %v1253_v5, %v20619_v11  ;;  %v1246_v8 = vrot.slane %v1245_v62, 4  ;;  %v13887_v5 = vld [vmem:[%s20486_s1 + $0x480] sm:$0xf]  ;;  %v21068_v39 = vor.u32 %v13514_v18, %v13509_v20  ;;  %v13905_v21 = vld [vmem:[%s20486_s1 + $0x670] sm:$0xf]  ;;  %v1265_v2 = vmax.f32 %v21069_v36, %v20622_v54 }
  0xc6   : > { %3493 = vmatpush.bf16.msrb.mxu1 %v21067_v30  ;;  %3433 = vmatmul.bf16.vlgmr.msra.gmra.mxu0 %v13870_v27  ;;  %v13910_v20 = vld [vmem:[%s20486_s1 + $0x674] sm:$0xf0]  ;;  %v20625_v11 = vunpack.c.l.bf16 %v13877_v16  ;;  %v948_v18 = vmul.f32 0.015625, %v769_v9  ;;  %v21074_v36 = vor.u32 %v13566_v58, %v13554_v51  ;;  %v13955_v58 = vld [vmem:[%s20486_s1 + $0x590] sm:$0xf]  ;;  %v758_v9 = vpop.f32.mrf.mxu1 }
  0xc7   : > { %v1255_v7 = vmax.f32 %v1254_v37, %v20618_v10  ;;  %3505 = vmatpush.bf16.msrb.mxu2 %v21068_v39  ;;  %v1247_v44 = vmax.f32 %v1245_v62, %v1246_v8  ;;  %v21070_v62 = vor.u32 %v13529_v6, %v13519_v23  ;;  %v21071_v37 = vld [vmem:[#allocation38_spill] sm:$0xff]  ;;  %v21072_v30 = vld [vmem:[#allocation37_spill] sm:$0xff]  ;;  %v1225_v39 = vmax.f32 %v13779_v46, %v1224_v4  ;;  %v745_v6 = vpop.f32.mrf.mxu0  ;;  %v782_v23 = vpop.f32.mrf.mxu3  ;;  %v13984_v54 = vld [vmem:[%s20486_s1 + $0x664] sm:$0xf0] }
  0xc8   : > { %v21073_v8 = vor.u32 %v21071_v37, %v21072_v30  ;;  %v13924_v10 = vmax.f32 %v1234_v43, %v1235_v22  ;;  %v13935_v37 = vld [vmem:[%s20486_s1 + $0x6f0] sm:$0xf]  ;;  %v13940_v46 = vld [vmem:[%s20486_s1 + $0x6f4] sm:$0xf0]  ;;  %v20624_v4 = vunpack.c.h.bf16 %v13808_v12  ;;  %v1266_v22 = vmax.f32 %v1265_v2, %v20620_v49  ;;  %v13975_v2 = vld [vmem:[%s20486_s1 + $0x660] sm:$0xf] }
  0xc9   : > { %3518 = vmatpush.bf16.msrb.mxu3 %v21070_v62  ;;  %v1256_v15 = vmax.f32 %v1255_v7, %v20621_v47  ;;  %v1248_v62 = vrot.slane %v1247_v44, 2  ;;  %v13945_v43 = vld [vmem:[%s20486_s1 + $0x510] sm:$0xf]  ;;  %v13950_v51 = vld [vmem:[%s20486_s1 + $0x514] sm:$0xf0]  ;;  %v949_v7 = vmul.f32 0.015625, %v782_v23  ;;  %v1419_v23 = vsel %vm1412_vm1, %v948_v18, %v1212_v0 }
  0xca   : > { %3481 = vmatpush.bf16.msrb.mxu0 %v21073_v8  ;;  %3494 = vmatpush.bf16.msrb.mxu1 %v21074_v36  ;;  %v13968_v36 = vld [vmem:[%s20486_s1 + $0x594] sm:$0xf0]  ;;  %v1237_v30 = vrot.slane %v13924_v10, 1  ;;  %v14073_v12 = vld [vmem:[%s20486_s1 + $0x7f0] sm:$0xf] }
  0xcb   : > { %v1257_v6 = vmax.f32 %v1256_v15, %v20623_v32  ;;  %v21075_v9 = vld [vmem:[#allocation41_spill] sm:$0xff]  ;;  %v1249_v47 = vmax.f32 %v1247_v44, %v1248_v62  ;;  %v13989_v15 = vld [vmem:[%s20486_s1 + $0x6e0] sm:$0xf]  ;;  %v13994_v32 = vld [vmem:[%s20486_s1 + $0x6e4] sm:$0xf0]  ;;  %v13999_v44 = vpack.c.bf16 %v1419_v23, %v1419_v23  ;;  %v1420_v18 = vsel %vm1412_vm1, %v949_v7, %v1225_v39 }
  0xcc   : > { %v21076_v49 = vor.u32 %v13578_v41, %v21075_v9  ;;  %v21077_v41 = vunpack.c.h.bf16 %v13775_v33  ;;  %v21078_v62 = vor.u32 %v13629_v48, %v13617_v31  ;;  %v21079_v9 = vld [vmem:[#allocation43_spill] sm:$0xff]  ;;  %v14021_v48 = vpack.c.bf16 %v1420_v18, %v1420_v18  ;;  %v21082_v39 = vld [vmem:[#allocation45_spill] sm:$0xff]  ;;  %v14177_v33 = vld [vmem:[%s20486_s1 + $0x6c0] sm:$0xf] }
  0xcd   : > { %v21080_v8 = vor.u32 %v13639_v29, %v21079_v9  ;;  %v1258_v0 = vmax.f32 %v1257_v6, %v20625_v11  ;;  %v14019_v31 = vld [vmem:[%s20486_s1 + $0x504] sm:$0xf0]  ;;  %v21081_v29 = vld [vmem:[#allocation46_spill] sm:$0xff]  ;;  %3459 = vmatmul.bf16.vlgmr.msra.gmra.mxu2 %v13999_v44  ;;  %v21085_v11 = vor.u32 %v13700_v61, %v13695_v28  ;;  %v21086_v6 = vunpack.c.h.bf16 %v13833_v17  ;;  %v14078_v28 = vld [vmem:[%s20486_s1 + $0x7f4] sm:$0xf0]  ;;  %v771_v9 = vpop.f32.mrf.mxu2 }
  0xce   : > { %3506 = vmatpush.bf16.msrb.mxu2 %v21076_v49  ;;  %v1267_v49 = vmax.f32 %v1266_v22, %v21077_v41  ;;  %3519 = vmatpush.bf16.msrb.mxu3 %v21078_v62  ;;  %v14014_v22 = vld [vmem:[%s20486_s1 + $0x500] sm:$0xf]  ;;  %v21083_v7 = vor.u32 %v21081_v29, %v21082_v39  ;;  %v14037_v18 = vld [vmem:[%s20486_s1 + $0x584] sm:$0xf0]  ;;  %v14049_v39 = vld [vmem:[%s20486_s1 + $0x770] sm:$0xf]  ;;  %v21092_v9 = vunpack.c.h.bf16 %v13855_v38 }
  0xcf   : > { %3482 = vmatpush.bf16.msrb.mxu0 %v21080_v8  ;;  %v1250_v8 = vrot.slane %v1249_v47, 1  ;;  %v14032_v41 = vld [vmem:[%s20486_s1 + $0x580] sm:$0xf]  ;;  %v1259_v29 = vrot.slane %v1258_v0, 4  ;;  %3472 = vmatmul.bf16.vlgmr.msra.gmra.mxu3 %v14021_v48  ;;  %v14122_v62 = vld [vmem:[%s20486_s1 + $0x6d4] sm:$0xf0] }
  0xd0   : > { %3495 = vmatpush.bf16.msrb.mxu1 %v21083_v7  ;;  %v1268_v23 = vmax.f32 %v1267_v49, %v20624_v4  ;;  %v14054_v7 = vld [vmem:[%s20486_s1 + $0x774] sm:$0xf0]  ;;  %v14057_v4 = vld [vmem:[%s12141_s20 + $0x30] sm:$0xff]  ;;  %v14081_v61 = vld [vmem:[%s12141_s20 + $0x80] sm:$0xff] }
  0xd1   : > { %21084 = vst [vmem:[#allocation38_spill] sm:$0xff] %v14057_v4  ;;  %v1260_v49 = vmax.f32 %v1258_v0, %v1259_v29  ;;  %v1251_v0 = vmax.f32 %v1249_v47, %v1250_v8  ;;  %v808_v47 = vpop.f32.mrf.mxu1  ;;  %v14157_v17 = vld [vmem:[%s20486_s1 + $0x640] sm:$0xf] }
  0xd2   : > { %3507 = vmatpush.bf16.msrb.mxu2 %v21085_v11  ;;  %v1269_v13 = vmax.f32 %v1268_v23, %v21086_v6  ;;  %21087 = vst [vmem:[#allocation37_spill] sm:$0xff] %v14081_v61  ;;  %v21088_v11 = vor.u32 %v13721_v25, %v13709_v24  ;;  %v21089_v6 = vor.u32 %v13731_v52, %v13726_v26  ;;  %v14100_v24 = vld [vmem:[%s20486_s1 + $0x654] sm:$0xf0]  ;;  %v14105_v25 = vld [vmem:[%s20486_s1 + $0x6d0] sm:$0xf] }
  0xd3   : > { %v1238_v23 = vmax.f32 %v13924_v10, %v1237_v30  ;;  %v14108_v26 = vld [vmem:[%s12141_s20 + $0xd0] sm:$0xff]  ;;  %v21091_v52 = vor.u32 %v13752_v53, %v13747_v19  ;;  %v784_v10 = vpop.f32.mrf.mxu3  ;;  %v795_v30 = vpop.f32.mrf.mxu0  ;;  %v14127_v19 = vld [vmem:[%s20486_s1 + $0x760] sm:$0xf]  ;;  %v1261_v8 = vrot.slane %v1260_v49, 2 }
  0xd4   : > { %3520 = vmatpush.bf16.msrb.mxu3 %v21088_v11  ;;  %3483 = vmatpush.bf16.msrb.mxu0 %v21089_v6  ;;  %21090 = vst [vmem:[#allocation41_spill] sm:$0xff] %v14108_v26  ;;  %v1270_v29 = vmax.f32 %v1269_v13, %v21092_v9  ;;  %v14132_v13 = vld [vmem:[%s20486_s1 + $0x764] sm:$0xf0]  ;;  %v950_v53 = vmul.f32 0.015625, %v795_v30  ;;  %v14139_v10 = vld [vmem:[%s20486_s1 + $0x7e0] sm:$0xf]  ;;  %v21093_v30 = vor.u32 %v13770_v40, %v13765_v55 }
  0xd5   : > { %3496 = vmatpush.bf16.msrb.mxu1 %v21091_v52  ;;  %v14144_v9 = vld [vmem:[%s20486_s1 + $0x7e4] sm:$0xf0]  ;;  %v951_v11 = vmul.f32 0.015625, %v808_v47  ;;  %v21094_v52 = vunpack.c.h.bf16 %v13877_v16  ;;  %v21096_v47 = vor.u32 %v13852_v59, %v13847_v34  ;;  %v14180_v55 = vld [vmem:[%s12141_s20 + $0x120] sm:$0xff]  ;;  %v21099_v34 = vor.u32 %v13910_v20, %v13905_v21 }
  0xd6   : > { %3508 = vmatpush.bf16.msrb.mxu2 %v21093_v30  ;;  %v14162_v6 = vld [vmem:[%s20486_s1 + $0x644] sm:$0xf0]  ;;  %v1421_v40 = vsel %vm1412_vm1, %v950_v53, %v1238_v23  ;;  %21097 = vst [vmem:[#allocation43_spill] sm:$0xff] %v14180_v55  ;;  %v14199_v53 = vld [vmem:[%s20486_s1 + $0x750] sm:$0xf]  ;;  %v14256_v21 = vld [vmem:[%s12141_s20 + $0x1c0] sm:$0xff] }
  0xd7   : > { %v1271_v38 = vmax.f32 %v1270_v29, %v21094_v52  ;;  %v21095_v29 = vor.u32 %v13793_v56, %v13788_v63  ;;  %v1262_v52 = vmax.f32 %v1260_v49, %v1261_v8  ;;  %v14182_v23 = vpack.c.bf16 %v1421_v40, %v1421_v40  ;;  %v14194_v49 = vld [vmem:[%s20486_s1 + $0x6c4] sm:$0xf0]  ;;  %v14214_v8 = vld [vmem:[%s20486_s1 + $0x754] sm:$0xf0] }
  0xd8   : > { %3484 = vmatpush.bf16.msrb.mxu0 %v21096_v47  ;;  %v1422_v63 = vsel %vm1412_vm1, %v951_v11, %v1251_v0  ;;  %v21098_v56 = vor.u32 %v13900_v45, %v13887_v5  ;;  %v21100_v5 = vor.u32 %v13940_v46, %v13935_v37  ;;  %v14219_v37 = vld [vmem:[%s20486_s1 + $0x7d0] sm:$0xf]  ;;  %v14301_v20 = vld [vmem:[%s12141_s20 + $0x88] sm:$0xff] }
  0xd9   : > { %3521 = vmatpush.bf16.msrb.mxu3 %v21095_v29  ;;  %v1272_v59 = vrot.slane %v1271_v38, 4  ;;  %v1263_v45 = vrot.slane %v1262_v52, 1  ;;  %v14222_v46 = vld [vmem:[%s12141_s20 + $0x170] sm:$0xff]  ;;  %v14224_v40 = vpack.c.bf16 %v1422_v63, %v1422_v63  ;;  %v21102_v29 = vor.u32 %v13950_v51, %v13945_v43  ;;  %v14243_v63 = vld [vmem:[%s20486_s1 + $0x634] sm:$0xf0]  ;;  %v810_v30 = vpop.f32.mrf.mxu1  ;;  %21113 = vst [vmem:[#allocation54_spill] sm:$0xff] %v14301_v20 }
  0xda   : > { %3497 = vmatpush.bf16.msrb.mxu1 %v21098_v56  ;;  %21101 = vst [vmem:[#allocation46_spill] sm:$0xff] %v14222_v46  ;;  %v14233_v56 = vld [vmem:[%s20486_s1 + $0x7d4] sm:$0xf0]  ;;  %v21103_v51 = vunpack.c.l.bf16 %v14081_v61 }
  0xdb   : > { %3509 = vmatpush.bf16.msrb.mxu2 %v21102_v29  ;;  %3485 = vmatmul.bf16.vlgmr.msrb.gmra.mxu0 %v14182_v23  ;;  %v1273_v47 = vmax.f32 %v1271_v38, %v1272_v59  ;;  %v21104_v38 = vunpack.c.l.bf16 %v14057_v4  ;;  %v821_v29 = vpop.f32.mrf.mxu2  ;;  %v1264_v11 = vmax.f32 %v1262_v52, %v1263_v45  ;;  %v14271_v52 = vld [vmem:[%s20486_s1 + $0x6b4] sm:$0xf0]  ;;  %v797_v45 = vpop.f32.mrf.mxu0 }
  0xdc   : > { %3529 = vmatpush.bf16.msra.mxu0 %v21099_v34  ;;  %v14238_v34 = vld [vmem:[%s20486_s1 + $0x630] sm:$0xf]  ;;  %v952_v0 = vmul.f32 0.015625, %v821_v29  ;;  %v21107_v29 = vunpack.c.l.bf16 %v14108_v26  ;;  %v14298_v30 = vld [vmem:[%s12141_s20 + $0x38] sm:$0xff] }
  0xdd   : > { %v1278_v59 = vmax.f32 %v21104_v38, %v21103_v51  ;;  %v21106_v51 = vor.u32 %v13984_v54, %v13975_v2  ;;  %v834_v38 = vpop.f32.mrf.mxu3  ;;  %v21108_v2 = vor.u32 %v13994_v32, %v13989_v15  ;;  %3498 = vmatmul.bf16.vlgmr.msrb.gmra.mxu1 %v14224_v40  ;;  %v21110_v15 = vor.u32 %v14019_v31, %v14014_v22 }
  0xde   : > { %3542 = vmatpush.bf16.msra.mxu1 %v21100_v5  ;;  %v21105_v5 = vor.u32 %v13968_v36, %v13955_v58  ;;  %v1274_v58 = vrot.slane %v1273_v47, 2  ;;  %v14266_v36 = vld [vmem:[%s20486_s1 + $0x6b0] sm:$0xf]  ;;  %21112 = vst [vmem:[#allocation53_spill] sm:$0xff] %v14298_v30  ;;  %v21116_v22 = vor.u32 %v14054_v7, %v14049_v39  ;;  %v21118_v39 = vunpack.c.h.bf16 %v14057_v4 }
  0xdf   : > { %v1279_v54 = vmax.f32 %v1278_v59, %v21107_v29  ;;  %v1423_v59 = vsel %vm1412_vm1, %v952_v0, %v1264_v11  ;;  %3510 = vmatpush.bf16.msrb.mxu2 %v21110_v15  ;;  %v20638_v29 = vunpack.c.l.bf16 %v14256_v21  ;;  %v21115_v0 = vor.u32 %v14037_v18, %v14032_v41  ;;  %v14319_v11 = vld [vmem:[%s20486_s1 + $0x740] sm:$0xf] }
  0xe0   : > { %3522 = vmatpush.bf16.msrb.mxu3 %v21105_v5  ;;  %3530 = vmatpush.bf16.msra.mxu0 %v21106_v51  ;;  %v14286_v5 = vld [vmem:[%s12141_s20 + $0x210] sm:$0xff]  ;;  %v1275_v32 = vmax.f32 %v1273_v47, %v1274_v58  ;;  %v14304_v51 = vld [vmem:[%s12141_s20 + $0xd8] sm:$0xff]  ;;  %v14306_v43 = vpack.c.bf16 %v1423_v59, %v1423_v59  ;;  %v14324_v47 = vld [vmem:[%s20486_s1 + $0x744] sm:$0xf0]  ;;  %v20639_v41 = vunpack.c.h.bf16 %v14180_v55  ;;  %v21117_v18 = vunpack.c.h.bf16 %v14081_v61 }
  0xe1   : > { %21109 = vst [vmem:[#allocation45_spill] sm:$0xff] %v14286_v5  ;;  %v14327_v58 = vld [vmem:[%s12141_s20 + $0x260] sm:$0xff]  ;;  %v21119_v15 = vor.u32 %v14078_v28, %v14073_v12  ;;  %v21121_v12 = vunpack.c.l.bf16 %v14222_v46 }
  0xe2   : > { %3543 = vmatpush.bf16.msra.mxu1 %v21108_v2  ;;  %v21111_v2 = vunpack.c.l.bf16 %v14180_v55  ;;  %21114 = vst [vmem:[#allocation55_spill] sm:$0xff] %v14304_v51  ;;  %v1291_v7 = vmax.f32 %v21118_v39, %v21117_v18  ;;  %v1276_v59 = vrot.slane %v1275_v32, 1  ;;  %3511 = vmatmul.bf16.vlgmr.msrb.gmra.mxu2 %v14306_v43  ;;  %v14365_v18 = vld [vmem:[%s20486_s1 + $0x624] sm:$0xf0]  ;;  %v21125_v39 = vor.u32 %v14132_v13, %v14127_v19  ;;  %v14451_v13 = vld [vmem:[%s20486_s1 + $0x7b4] sm:$0xf0] }
  0xe3   : > { %3555 = vmatpush.bf16.msra.mxu2 %v21116_v22  ;;  %v14348_v22 = vld [vmem:[%s20486_s1 + $0x7c4] sm:$0xf0]  ;;  %v21127_v19 = vor.u32 %v14162_v6, %v14157_v17  ;;  %v21128_v17 = vunpack.c.l.bf16 %v14286_v5  ;;  %v10351_v55 = vld [vmem:[%s20486_s1 + $0x910] sm:$0xf] }
  0xe4   : > { %v1280_v45 = vmax.f32 %v1279_v54, %v21111_v2  ;;  %3523 = vmatpush.bf16.msrb.mxu3 %v21115_v0  ;;  %v953_v54 = vmul.f32 0.015625, %v834_v38  ;;  %v21120_v2 = vor.u32 %v14100_v24, %v14095_v14  ;;  %v14343_v0 = vld [vmem:[%s20486_s1 + $0x7c0] sm:$0xf]  ;;  %v21122_v14 = vor.u32 %v14122_v62, %v14105_v25  ;;  %v14378_v38 = vld [vmem:[%s12141_s20 + $0x128] sm:$0xff] }
  0xe5   : > { %v14360_v24 = vld [vmem:[%s20486_s1 + $0x620] sm:$0xf]  ;;  %v20640_v62 = vunpack.c.l.bf16 %v14298_v30  ;;  %v20641_v25 = vunpack.c.l.bf16 %v14301_v20  ;;  %21124 = vst [vmem:[#allocation56_spill] sm:$0xff] %v14378_v38 }
  0xe6   : > { %3531 = vmatpush.bf16.msra.mxu0 %v21120_v2  ;;  %v1281_v28 = vmax.f32 %v1280_v45, %v21121_v12  ;;  %3544 = vmatpush.bf16.msra.mxu1 %v21122_v14  ;;  %v21123_v45 = vunpack.c.h.bf16 %v14108_v26  ;;  %v1277_v2 = vmax.f32 %v1275_v32, %v1276_v59  ;;  %v20642_v14 = vunpack.c.l.bf16 %v14327_v58  ;;  %v14836_v26 = vld [vmem:[%s12141_s20 + $0x180] sm:$0xff] }
  0xe7   : > { %3556 = vmatpush.bf16.msra.mxu2 %v21125_v39  ;;  %v20646_v32 = vunpack.c.h.bf16 %v14256_v21  ;;  %v20645_v12 = vunpack.c.l.bf16 %v14304_v51  ;;  %v14401_v39 = vld [vmem:[%s20486_s1 + $0x6a0] sm:$0xf]  ;;  %21157 = vst [vmem:[#allocation64_spill] sm:$0xff] %v14836_v26 }
  0xe8   : > { %3568 = vmatpush.bf16.msra.mxu3 %v21119_v15  ;;  %v1292_v15 = vmax.f32 %v1291_v7, %v21123_v45  ;;  %v1282_v31 = vmax.f32 %v1281_v28, %v20638_v29  ;;  %v823_v45 = vpop.f32.mrf.mxu2  ;;  %v1424_v28 = vsel %vm1412_vm1, %v953_v54, %v1277_v2  ;;  %v21126_v29 = vor.u32 %v14144_v9, %v14139_v10  ;;  %v14406_v54 = vld [vmem:[%s20486_s1 + $0x6a4] sm:$0xf0]  ;;  %v836_v10 = vpop.f32.mrf.mxu3  ;;  %v14457_v7 = vld [vmem:[%s12141_s20 + $0x218] sm:$0xff] }
  0xe9   : > { %v14408_v9 = vpop.f32.mrf.mxu0  ;;  %v14416_v2 = vpack.c.bf16 %v1424_v28, %v1424_v28  ;;  %v21130_v45 = vor.u32 %v14194_v49, %v14177_v33  ;;  %v14431_v10 = vpop.f32.mrf.mxu1  ;;  %v1304_v49 = vmax.f32 %v20640_v62, %v20641_v25  ;;  %21133 = vst [vmem:[#allocation59_spill] sm:$0xff] %v14457_v7  ;;  %v21134_v25 = vor.u32 %v14214_v8, %v14199_v53 }
  0xea   : > { %v1293_v59 = vmax.f32 %v1292_v15, %v20639_v41  ;;  %3532 = vmatpush.bf16.msra.mxu0 %v21127_v19  ;;  %v1283_v6 = vmax.f32 %v1282_v31, %v21128_v17  ;;  %v14414_v15 = vld [vmem:[%s12141_s20 + $0x178] sm:$0xff]  ;;  %v14424_v19 = vld [vmem:[%s20486_s1 + $0x730] sm:$0xf]  ;;  %v21131_v17 = vunpack.c.h.bf16 %v14222_v46  ;;  %v14436_v41 = vld [vmem:[%s12141_s20 + $0x1c8] sm:$0xff]  ;;  %v21135_v33 = vor.u32 %v14233_v56, %v14219_v37 }
  0xeb   : > { %21129 = vst [vmem:[#allocation57_spill] sm:$0xff] %v14414_v15  ;;  %3545 = vmatpush.bf16.msra.mxu1 %v21130_v45  ;;  %v14429_v31 = vld [vmem:[%s20486_s1 + $0x734] sm:$0xf0]  ;;  %v14446_v45 = vld [vmem:[%s20486_s1 + $0x7b0] sm:$0xf]  ;;  %3524 = vmatmul.bf16.vlgmr.msrb.gmra.mxu3 %v14416_v2  ;;  %v21136_v62 = vor.u32 %v14243_v63, %v14238_v34  ;;  %v10040_v4 = vor.u32 %v14406_v54, %v14401_v39  ;;  %v14507_v56 = vld [vmem:[%s12141_s20 + $0x268] sm:$0xff] }
  0xec   : > { %3569 = vmatpush.bf16.msra.mxu3 %v21126_v29  ;;  %v1294_v28 = vmax.f32 %v1293_v59, %v21131_v17  ;;  %21132 = vst [vmem:[#allocation58_spill] sm:$0xff] %v14436_v41  ;;  %v1284_v59 = vmax.f32 %v1283_v6, %v20642_v14  ;;  %3557 = vmatpush.bf16.msra.mxu2 %v21134_v25  ;;  %v14468_v29 = vld [vmem:[%s20486_s1 + $0x610] sm:$0xf]  ;;  %v14473_v6 = vld [vmem:[%s20486_s1 + $0x614] sm:$0xf0] }
  0xed   : > { %v14478_v14 = vld [vmem:[%s20486_s1 + $0x690] sm:$0xf]  ;;  %v1305_v25 = vmax.f32 %v1304_v49, %v20645_v12  ;;  %v14499_v49 = vld [vmem:[%s20486_s1 + $0x694] sm:$0xf0]  ;;  %v14504_v37 = vld [vmem:[%s20486_s1 + $0x720] sm:$0xf]  ;;  %v21137_v63 = vor.u32 %v14271_v52, %v14266_v36  ;;  %v21139_v36 = vunpack.c.l.bf16 %v14378_v38  ;;  %v10176_v17 = vor.u32 %v14451_v13, %v14446_v45 }
  0xee   : > { %v1295_v53 = vmax.f32 %v1294_v28, %v20646_v32  ;;  %3533 = vmatpush.bf16.msra.mxu0 %v21136_v62  ;;  %v10112_v28 = vor.u32 %v14429_v31, %v14424_v19  ;;  %v1285_v12 = vrot.slane %v1284_v59, 4  ;;  %v14516_v62 = vld [vmem:[%s20486_s1 + $0x724] sm:$0xf0]  ;;  %v14521_v39 = vld [vmem:[%s20486_s1 + $0x7a0] sm:$0xf]  ;;  %v21138_v19 = vunpack.c.h.bf16 %v14286_v5 }
  0xef   : > { %3546 = vmatpush.bf16.msra.mxu1 %v21137_v63  ;;  %v14526_v54 = vld [vmem:[%s20486_s1 + $0x7a4] sm:$0xf0]  ;;  %v1306_v52 = vmax.f32 %v1305_v25, %v21139_v36  ;;  %v21140_v63 = vunpack.c.h.bf16 %v14301_v20  ;;  %v21141_v32 = vunpack.c.h.bf16 %v14298_v30  ;;  %v9968_v8 = vor.u32 %v14473_v6, %v14468_v29  ;;  %v14570_v6 = vld [vmem:[%s20486_s1 + $0x870] sm:$0xf] }
  0xf0   : > { %3570 = vmatpush.bf16.msra.mxu3 %v21135_v33  ;;  %v1296_v31 = vmax.f32 %v1295_v53, %v21138_v19  ;;  %v1286_v61 = vmax.f32 %v1284_v59, %v1285_v12  ;;  %v14544_v53 = vld [vmem:[%s20486_s1 + $0x600] sm:$0xf]  ;;  %v14549_v25 = vld [vmem:[%s20486_s1 + $0x604] sm:$0xf0]  ;;  %v21142_v12 = vor.u32 %v14324_v47, %v14319_v11  ;;  %v21143_v29 = vunpack.c.h.bf16 %v14327_v58  ;;  %v14575_v19 = vld [vmem:[%s20486_s1 + $0x874] sm:$0xf0]  ;;  %v14577_v11 = vpop.f32.mrf.mxu2 }
  0xf1   : > { %v1317_v34 = vmax.f32 %v21141_v32, %v21140_v63  ;;  %v14554_v32 = vld [vmem:[%s20486_s1 + $0x680] sm:$0xf]  ;;  %v14565_v59 = vld [vmem:[%s20486_s1 + $0x684] sm:$0xf0]  ;;  %v21144_v47 = vunpack.c.l.bf16 %v14414_v15  ;;  %v21145_v63 = vunpack.c.h.bf16 %v14304_v51  ;;  %v21147_v13 = vor.u32 %v14365_v18, %v14360_v24  ;;  %v14605_v24 = vpop.f32.mrf.mxu3  ;;  %v849_v18 = vpop.f32.mrf.mxu0 }
  0xf2   : > { %3558 = vmatpush.bf16.msra.mxu2 %v21142_v12  ;;  %v1297_v45 = vmax.f32 %v1296_v31, %v21143_v29  ;;  %v21146_v29 = vor.u32 %v14348_v22, %v14343_v0  ;;  %v10032_v33 = vor.u32 %v14499_v49, %v14478_v14  ;;  %v1287_v30 = vrot.slane %v1286_v61, 2  ;;  %v14602_v0 = vld [vmem:[%s20486_s1 + $0x8f4] sm:$0xf0]  ;;  %v14610_v49 = vld [vmem:[%s20486_s1 + $0x710] sm:$0xf]  ;;  %v862_v18 = vpop.f32.mrf.mxu1 }
  0xf3   : > { %v1307_v31 = vmax.f32 %v1306_v52, %v21144_v47  ;;  %v1318_v12 = vmax.f32 %v1317_v34, %v21145_v63  ;;  %3534 = vmatpush.bf16.msra.mxu0 %v21147_v13  ;;  %v10104_v52 = vor.u32 %v14516_v62, %v14504_v37  ;;  %v14597_v47 = vld [vmem:[%s20486_s1 + $0x8f0] sm:$0xf]  ;;  %3547 = vmatpush.bf16.msra.mxu1 %v10040_v4  ;;  %v14615_v37 = vld [vmem:[%s20486_s1 + $0x714] sm:$0xf0]  ;;  %v21148_v62 = vunpack.c.l.bf16 %v14436_v41  ;;  %v14681_v18 = vld [vmem:[%s20486_s1 + $0x780] sm:$0xf] }
  0xf4   : > { %3571 = vmatpush.bf16.msra.mxu3 %v21146_v29  ;;  %v1298_v14 = vrot.slane %v1297_v45, 4  ;;  %v14620_v34 = vld [vmem:[%s20486_s1 + $0x790] sm:$0xf]  ;;  %v20656_v4 = vunpack.c.h.bf16 %v14436_v41  ;;  %v21149_v63 = vunpack.c.h.bf16 %v14378_v38  ;;  %v1288_v22 = vmax.f32 %v1286_v61, %v1287_v30  ;;  %v14646_v61 = vld [vmem:[%s20486_s1 + $0x864] sm:$0xf0] }
  0xf5   : > { %v1308_v13 = vmax.f32 %v1307_v31, %v21148_v62  ;;  %v10168_v36 = vor.u32 %v14526_v54, %v14521_v39  ;;  %v9960_v20 = vor.u32 %v14549_v25, %v14544_v53  ;;  %v10024_v51 = vor.u32 %v14565_v59, %v14554_v32  ;;  %v14636_v31 = vld [vmem:[%s20486_s1 + $0x794] sm:$0xf0]  ;;  %v14656_v59 = vld [vmem:[%s20486_s1 + $0x8e0] sm:$0xf]  ;;  %v14661_v62 = vld [vmem:[%s20486_s1 + $0x8e4] sm:$0xf0] }
  0xf6   : > { %v1319_v29 = vmax.f32 %v1318_v12, %v21149_v63  ;;  %v14641_v12 = vld [vmem:[%s20486_s1 + $0x860] sm:$0xf]  ;;  %3559 = vmatpush.bf16.msra.mxu2 %v10112_v28  ;;  %v1299_v30 = vmax.f32 %v1297_v45, %v1298_v14  ;;  %v21150_v39 = vunpack.c.l.bf16 %v14457_v7  ;;  %v20655_v53 = vunpack.c.h.bf16 %v14457_v7 }
  0xf7   : > { %v21151_v25 = vunpack.c.h.bf16 %v14414_v15  ;;  %v14666_v28 = vld [vmem:[%s20486_s1 + $0x700] sm:$0xf]  ;;  %3535 = vmatpush.bf16.msra.mxu0 %v9968_v8  ;;  %v954_v45 = vmul.f32 0.015625, %v14408_v9  ;;  %v1289_v14 = vrot.slane %v1288_v22, 1  ;;  %v10336_v63 = vor.u32 %v14602_v0, %v14597_v47  ;;  %3548 = vmatpush.bf16.msra.mxu1 %v10032_v33  ;;  %v14691_v47 = vld [vmem:[%s20486_s1 + $0x784] sm:$0xf0] }
  0xf8   : > { %v1309_v54 = vmax.f32 %v1308_v13, %v21150_v39  ;;  %3572 = vmatpush.bf16.msra.mxu3 %v10176_v17  ;;  %v10272_v13 = vor.u32 %v14575_v19, %v14570_v6  ;;  %v1300_v17 = vrot.slane %v1299_v30, 2  ;;  %v21152_v9 = vunpack.c.l.bf16 %v14507_v56  ;;  %v14696_v0 = vld [vmem:[%s20486_s1 + $0x970] sm:$0xf] }
  0xf9   : > { %v1320_v32 = vmax.f32 %v1319_v29, %v21151_v25  ;;  %v14676_v29 = vld [vmem:[%s20486_s1 + $0x704] sm:$0xf0]  ;;  %v20657_v6 = vunpack.c.h.bf16 %v14507_v56  ;;  %v1290_v33 = vmax.f32 %v1288_v22, %v1289_v14  ;;  %v10096_v39 = vor.u32 %v14615_v37, %v14610_v49  ;;  %v14717_v22 = vld [vmem:[%s20486_s1 + $0x9f4] sm:$0xf0]  ;;  %v14839_v15 = vld [vmem:[%s12141_s20 + $0x1d0] sm:$0xff] }
  0xfa   : > { %v1310_v8 = vmax.f32 %v1309_v54, %v21152_v9  ;;  %v10160_v54 = vor.u32 %v14636_v31, %v14620_v34  ;;  %v10264_v25 = vor.u32 %v14646_v61, %v14641_v12  ;;  %v14712_v9 = vld [vmem:[%s20486_s1 + $0x9f0] sm:$0xf]  ;;  %3560 = vmatpush.bf16.msra.mxu2 %v10104_v52  ;;  %v1301_v49 = vmax.f32 %v1299_v30, %v1300_v17  ;;  %v14731_v61 = vld [vmem:[%s20486_s1 + $0x854] sm:$0xf0]  ;;  %v875_v52 = vpop.f32.mrf.mxu2  ;;  %v14734_v30 = vld [vmem:[%s12141_s20 + $0x40] sm:$0xff] }
  0xfb   : > { %v1321_v19 = vmax.f32 %v1320_v32, %v20656_v4  ;;  %v14707_v32 = vld [vmem:[%s20486_s1 + $0x974] sm:$0xf0]  ;;  %v10328_v31 = vor.u32 %v14661_v62, %v14656_v59  ;;  %v14726_v12 = vld [vmem:[%s20486_s1 + $0x850] sm:$0xf]  ;;  %21153 = vst [vmem:[#allocation60_spill] sm:$0xff] %v14734_v30  ;;  %v1425_v14 = vsel %vm1412_vm1, %v954_v45, %v1290_v33  ;;  %v955_v17 = vmul.f32 0.015625, %v14431_v10  ;;  %3536 = vmatpush.bf16.msra.mxu0 %v9960_v20  ;;  %v14755_v20 = vpop.f32.mrf.mxu0 }
  0xfc   : > { %v1311_v37 = vrot.slane %v1310_v8, 4  ;;  %3573 = vmatpush.bf16.msra.mxu3 %v10168_v36  ;;  %v10088_v59 = vor.u32 %v14676_v29, %v14666_v28  ;;  %v10152_v62 = vor.u32 %v14691_v47, %v14681_v18  ;;  %v14750_v45 = vld [vmem:[%s20486_s1 + $0x8d4] sm:$0xf0]  ;;  %v888_v36 = vpop.f32.mrf.mxu3  ;;  %v14753_v10 = vld [vmem:[%s12141_s20 + $0x90] sm:$0xff]  ;;  %v14757_v33 = vpack.c.bf16 %v1425_v14, %v1425_v14  ;;  %3549 = vmatpush.bf16.msra.mxu1 %v10024_v51  ;;  %v14764_v47 = vld [vmem:[%s20486_s1 + $0x960] sm:$0xf]  ;;  %v14774_v14 = vpop.f32.mrf.mxu1 }
  0xfd   : > { %v1322_v34 = vmax.f32 %v1321_v19, %v20655_v53  ;;  %v14745_v19 = vld [vmem:[%s20486_s1 + $0x8d0] sm:$0xf]  ;;  %21154 = vst [vmem:[#allocation61_spill] sm:$0xff] %v14753_v10  ;;  %v1302_v28 = vrot.slane %v1301_v49, 1  ;;  %v14769_v52 = vld [vmem:[%s20486_s1 + $0x964] sm:$0xf0] }
  0xfe   : > { %v1312_v29 = vmax.f32 %v1310_v8, %v1311_v37  ;;  %v14772_v36 = vld [vmem:[%s12141_s20 + $0xe0] sm:$0xff]  ;;  %v14777_v51 = vmul.f32 0.015625, %v14577_v11  ;;  %v10464_v8 = vor.u32 %v14717_v22, %v14712_v9  ;;  %3561 = vmatpush.bf16.msra.mxu2 %v10096_v39  ;;  %3537 = vmatmul.bf16.vlgmr.msra.gmra.mxu0 %v14757_v33  ;;  %v14804_v22 = vld [vmem:[%s12141_s20 + $0x130] sm:$0xff]  ;;  %v10256_v39 = vor.u32 %v14731_v61, %v14726_v12 }
  0xff   : > { %3581 = vmatpush.bf16.msrb.mxu0 %v10272_v13  ;;  %v1323_v18 = vmax.f32 %v1322_v34, %v20657_v6  ;;  %21155 = vst [vmem:[#allocation62_spill] sm:$0xff] %v14772_v36  ;;  %v10400_v13 = vor.u32 %v14707_v32, %v14696_v0  ;;  %v14786_v37 = vld [vmem:[%s20486_s1 + $0x9e0] sm:$0xf]  ;;  %v14791_v34 = vld [vmem:[%s20486_s1 + $0x9e4] sm:$0xf0]  ;;  %v1303_v11 = vmax.f32 %v1301_v49, %v1302_v28  ;;  %v14796_v0 = vmul.f32 0.015625, %v14605_v24 }
 0x100   : > { %3594 = vmatpush.bf16.msrb.mxu1 %v10336_v63  ;;  %v1313_v53 = vrot.slane %v1312_v29, 2  ;;  %v14801_v9 = vld [vmem:[%s20486_s1 + $0x840] sm:$0xf]  ;;  %21156 = vst [vmem:[#allocation63_spill] sm:$0xff] %v14804_v22  ;;  %3574 = vmatpush.bf16.msra.mxu3 %v10160_v54  ;;  %v10320_v49 = vor.u32 %v14750_v45, %v14745_v19  ;;  %v14813_v24 = vld [vmem:[%s20486_s1 + $0x844] sm:$0xf0]  ;;  %v20666_v61 = vunpack.c.l.bf16 %v14772_v36  ;;  %v10392_v6 = vor.u32 %v14769_v52, %v14764_v47 }
 0x101   : > { %v1324_v32 = vrot.slane %v1323_v18, 4  ;;  %v14818_v28 = vld [vmem:[%s20486_s1 + $0x8c0] sm:$0xf]  ;;  %v14823_v54 = vld [vmem:[%s20486_s1 + $0x8c4] sm:$0xf0]  ;;  %v1426_v19 = vsel %vm1412_vm1, %v955_v17, %v1303_v11  ;;  %21158 = vst [vmem:[#allocation65_spill] sm:$0xff] %v14839_v15  ;;  %v21160_v47 = vunpack.c.l.bf16 %v14734_v30  ;;  %v10248_v11 = vor.u32 %v14813_v24, %v14801_v9 }
 0x102   : > { %v1314_v45 = vmax.f32 %v1312_v29, %v1313_v53  ;;  %v14833_v63 = vld [vmem:[%s20486_s1 + $0x950] sm:$0xf]  ;;  %v14841_v12 = vpack.c.bf16 %v1426_v19, %v1426_v19  ;;  %v10456_v53 = vor.u32 %v14791_v34, %v14786_v37  ;;  %v14858_v29 = vld [vmem:[%s20486_s1 + $0x9d4] sm:$0xf0]  ;;  %3562 = vmatpush.bf16.msra.mxu2 %v10088_v59  ;;  %v20671_v24 = vunpack.c.h.bf16 %v14734_v30 }
 0x103   : > { %v1325_v4 = vmax.f32 %v1323_v18, %v1324_v32  ;;  %3582 = vmatpush.bf16.msrb.mxu0 %v10264_v25  ;;  %v14848_v25 = vld [vmem:[%s20486_s1 + $0x954] sm:$0xf0]  ;;  %v14853_v17 = vld [vmem:[%s20486_s1 + $0x9d0] sm:$0xf]  ;;  %v21159_v18 = vunpack.c.l.bf16 %v14753_v10  ;;  %v901_v32 = vpop.f32.mrf.mxu0 }
 0x104   : > { %3595 = vmatpush.bf16.msrb.mxu1 %v10328_v31  ;;  %v1315_v37 = vrot.slane %v1314_v45, 1  ;;  %v14872_v19 = vld [vmem:[%s20486_s1 + $0x830] sm:$0xf]  ;;  %v14877_v31 = vld [vmem:[%s20486_s1 + $0x834] sm:$0xf0]  ;;  %3575 = vmatpush.bf16.msra.mxu3 %v10152_v62  ;;  %v10384_v62 = vor.u32 %v14848_v25, %v14833_v63 }
 0x105   : > { %v1330_v52 = vmax.f32 %v21160_v47, %v21159_v18  ;;  %v1326_v34 = vrot.slane %v1325_v4, 2  ;;  %3550 = vmatmul.bf16.vlgmr.msra.gmra.mxu1 %v14841_v12  ;;  %v20672_v18 = vunpack.c.h.bf16 %v14753_v10  ;;  %v14885_v47 = vpop.f32.mrf.mxu2  ;;  %v14892_v59 = vld [vmem:[%s20486_s1 + $0x8b0] sm:$0xf]  ;;  %v10240_v63 = vor.u32 %v14877_v31, %v14872_v19  ;;  %v14915_v25 = vld [vmem:[%s20486_s1 + $0x944] sm:$0xf0]  ;;  %v14958_v30 = vld [vmem:[%s12141_s20 + $0x98] sm:$0xff] }
 0x106   : > { %v1316_v46 = vmax.f32 %v1314_v45, %v1315_v37  ;;  %3607 = vmatpush.bf16.msrb.mxu2 %v10400_v13  ;;  %v914_v13 = vpop.f32.mrf.mxu1  ;;  %v14910_v45 = vld [vmem:[%s20486_s1 + $0x940] sm:$0xf]  ;;  %v14933_v32 = vld [vmem:[%s20486_s1 + $0x9c4] sm:$0xf0]  ;;  %v14936_v19 = vld [vmem:[%s12141_s20 + $0x270] sm:$0xff]  ;;  %21165 = vst [vmem:[#allocation68_spill] sm:$0xff] %v14958_v30 }
 0x107   : > { %v1331_v9 = vmax.f32 %v1330_v52, %v20666_v61  ;;  %v1327_v7 = vmax.f32 %v1325_v4, %v1326_v34  ;;  %v14897_v52 = vld [vmem:[%s20486_s1 + $0x8b4] sm:$0xf0]  ;;  %v14900_v61 = vld [vmem:[%s12141_s20 + $0x220] sm:$0xff]  ;;  %3583 = vmatpush.bf16.msrb.mxu0 %v10256_v39  ;;  %v21162_v39 = vunpack.c.l.bf16 %v14804_v22  ;;  %v21164_v4 = vunpack.c.l.bf16 %v14836_v26 }
 0x108   : > { %3620 = vmatpush.bf16.msrb.mxu3 %v10464_v8  ;;  %21161 = vst [vmem:[#allocation66_spill] sm:$0xff] %v14900_v61  ;;  %3596 = vmatpush.bf16.msrb.mxu1 %v10320_v49  ;;  %v10448_v8 = vor.u32 %v14858_v29, %v14853_v17  ;;  %v14921_v17 = vld [vmem:[%s12141_s20 + $0x48] sm:$0xff]  ;;  %v1427_v29 = vsel %vm1412_vm1, %v14777_v51, %v1316_v46  ;;  %v14928_v34 = vld [vmem:[%s20486_s1 + $0x9c0] sm:$0xf]  ;;  %v14943_v51 = vpop.f32.mrf.mxu3 }
 0x109   : > { %v1332_v49 = vmax.f32 %v1331_v9, %v21162_v39  ;;  %21163 = vst [vmem:[#allocation67_spill] sm:$0xff] %v14921_v17  ;;  %v1328_v31 = vrot.slane %v1327_v7, 1  ;;  %v1343_v46 = vmax.f32 %v20671_v24, %v20672_v18  ;;  %v14945_v13 = vpack.c.bf16 %v1427_v29, %v1427_v29  ;;  %v14952_v37 = vld [vmem:[%s20486_s1 + $0x820] sm:$0xf] }
 0x10a   : > { %v10304_v39 = vor.u32 %v14897_v52, %v14892_v59  ;;  %v20677_v9 = vunpack.c.l.bf16 %v14900_v61  ;;  %3608 = vmatpush.bf16.msrb.mxu2 %v10392_v6  ;;  %v10376_v29 = vor.u32 %v14915_v25, %v14910_v45  ;;  %v14965_v59 = vld [vmem:[%s20486_s1 + $0x824] sm:$0xf0]  ;;  %v14970_v52 = vld [vmem:[%s20486_s1 + $0x8a0] sm:$0xf]  ;;  %v14989_v25 = vld [vmem:[%s20486_s1 + $0x930] sm:$0xf]  ;;  %v21169_v18 = vor.u32 %v14823_v54, %v14818_v28 }
 0x10b   : > { %v1333_v10 = vmax.f32 %v1332_v49, %v21164_v4  ;;  %v1329_v24 = vmax.f32 %v1327_v7, %v1328_v31  ;;  %v21166_v49 = vunpack.c.h.bf16 %v14772_v36  ;;  %v14976_v6 = vld [vmem:[%s12141_s20 + $0xe8] sm:$0xff]  ;;  %3563 = vmatmul.bf16.vlgmr.msra.gmra.mxu2 %v14945_v13  ;;  %3584 = vmatpush.bf16.msrb.mxu0 %v10248_v11  ;;  %v14994_v31 = vld [vmem:[%s20486_s1 + $0x934] sm:$0xf0]  ;;  %v15008_v4 = vld [vmem:[%s20486_s1 + $0x9b0] sm:$0xf]  ;;  %v20680_v28 = vunpack.c.l.bf16 %v14958_v30 }
 0x10c   : > { %3621 = vmatpush.bf16.msrb.mxu3 %v10456_v53  ;;  %21167 = vst [vmem:[#allocation69_spill] sm:$0xff] %v14976_v6  ;;  %v10440_v53 = vor.u32 %v14933_v32, %v14928_v34  ;;  %v14984_v45 = vld [vmem:[%s20486_s1 + $0x8a4] sm:$0xf0]  ;;  %3597 = vmatpush.bf16.msrb.mxu1 %v21169_v18  ;;  %v15013_v11 = vld [vmem:[%s20486_s1 + $0x9b4] sm:$0xf0] }
 0x10d   : > { %v1344_v7 = vmax.f32 %v1343_v46, %v21166_v49  ;;  %v21168_v46 = vunpack.c.l.bf16 %v14839_v15  ;;  %v1428_v49 = vsel %vm1412_vm1, %v14796_v0, %v1329_v24  ;;  %v15019_v0 = vld [vmem:[%s12141_s20 + $0x138] sm:$0xff]  ;;  %v10232_v24 = vor.u32 %v14965_v59, %v14952_v37  ;;  %v927_v5 = vpop.f32.mrf.mxu2  ;;  %v15047_v59 = vld [vmem:[%s12141_s20 + $0x188] sm:$0xff] }
 0x10e   : > { %v15022_v54 = vpack.c.bf16 %v1428_v49, %v1428_v49  ;;  %3609 = vmatpush.bf16.msrb.mxu2 %v10384_v62  ;;  %v15036_v49 = vld [vmem:[%s20486_s1 + $0x810] sm:$0xf]  ;;  %v15041_v37 = vld [vmem:[%s20486_s1 + $0x814] sm:$0xf0]  ;;  %v21171_v62 = vunpack.c.h.bf16 %v14836_v26  ;;  %21172 = vst [vmem:[#allocation70_spill] sm:$0xff] %v15047_v59  ;;  %v15076_v5 = vld [vmem:[%s12141_s20 + $0x228] sm:$0xff] }
 0x10f   : > { %v1334_v34 = vmax.f32 %v1333_v10, %v21168_v46  ;;  %v20681_v10 = vunpack.c.h.bf16 %v14839_v15  ;;  %v21170_v46 = vunpack.c.h.bf16 %v14804_v22  ;;  %3585 = vmatpush.bf16.msrb.mxu0 %v10240_v63  ;;  %v15083_v63 = vld [vmem:[%s20486_s1 + $0x920] sm:$0xf]  ;;  %v21180_v22 = vunpack.c.h.bf16 %v14936_v19 }
 0x110   : > { %3622 = vmatpush.bf16.msrb.mxu3 %v10448_v8  ;;  %3598 = vmatpush.bf16.msrb.mxu1 %v10304_v39  ;;  %v15088_v39 = vld [vmem:[%s20486_s1 + $0x924] sm:$0xf0] }
 0x111   : > { %v1345_v32 = vmax.f32 %v1344_v7, %v21170_v46  ;;  %v1335_v18 = vmax.f32 %v1334_v34, %v20677_v9  ;;  %v10296_v7 = vor.u32 %v14984_v45, %v14970_v52  ;;  %v10368_v46 = vor.u32 %v14994_v31, %v14989_v25  ;;  %3576 = vmatmul.bf16.vlgmr.msra.gmra.mxu3 %v15022_v54  ;;  %v15055_v45 = vld [vmem:[%s20486_s1 + $0x890] sm:$0xf]  ;;  %v15060_v25 = vld [vmem:[%s20486_s1 + $0x894] sm:$0xf0] }
 0x112   : > { %v10432_v52 = vor.u32 %v15013_v11, %v15008_v4  ;;  %v21173_v31 = vunpack.c.l.bf16 %v14936_v19  ;;  %v21174_v4 = vunpack.c.l.bf16 %v14921_v17  ;;  %3610 = vmatpush.bf16.msrb.mxu2 %v10376_v29  ;;  %v10288_v36 = vor.u32 %v15060_v25, %v15055_v45  ;;  %v10215_v29 = vld [vmem:[%s20486_s1 + $0x800] sm:$0xf] }
 0x113   : > { %v1346_v8 = vmax.f32 %v1345_v32, %v21171_v62  ;;  %v15065_v32 = vld [vmem:[%s12141_s20 + $0x1d8] sm:$0xff]  ;;  %v10224_v62 = vor.u32 %v15041_v37, %v15036_v49  ;;  %3586 = vmatpush.bf16.msrb.mxu0 %v10232_v24  ;;  %v11700_v37 = vld [vmem:[%s20486_s1 + $0x804] sm:$0xf0]  ;;  %v15119_v45 = vld [vmem:[%s20486_s1 + $0x880] sm:$0xf]  ;;  %v21177_v25 = vunpack.c.l.bf16 %v15019_v0 }
 0x114   : > { %v1336_v34 = vmax.f32 %v1335_v18, %v21173_v31  ;;  %v1356_v11 = vmax.f32 %v21174_v4, %v20680_v28  ;;  %v940_v31 = vpop.f32.mrf.mxu3  ;;  %v15091_v4 = vld [vmem:[%s12141_s20 + $0x278] sm:$0xff]  ;;  %v21175_v28 = vunpack.c.l.bf16 %v14976_v6  ;;  %3623 = vmatpush.bf16.msrb.mxu3 %v10440_v53  ;;  %v10423_v18 = vld [vmem:[%s20486_s1 + $0x9a0] sm:$0xf]  ;;  %3599 = vmatpush.bf16.msrb.mxu1 %v10296_v7 }
 0x115   : > { %v1347_v9 = vmax.f32 %v1346_v8, %v20681_v10  ;;  %v11752_v8 = vld [vmem:[%s20486_s1 + $0x9a4] sm:$0xf0]  ;;  %v15134_v31 = vmul.f32 0.015625, %v14755_v20  ;;  %v11473_v20 = vld [vmem:[%s20486_s1 + $0xf4] sm:$0xf]  ;;  %v20708_v15 = vunpack.c.l.bf16 %v15091_v4 }
 0x116   : > { %v1337_v26 = vrot.slane %v1336_v34, 4  ;;  %v1357_v10 = vmax.f32 %v1356_v11, %v21175_v28  ;;  %v21176_v28 = vunpack.c.h.bf16 %v14900_v61  ;;  %v10360_v61 = vor.u32 %v15088_v39, %v15083_v63  ;;  %v9313_v63 = vld [vmem:[%s20486_s1 + $0xf8] sm:$0xf0]  ;;  %3611 = vmatpush.bf16.msrb.mxu2 %v10368_v46  ;;  %v10415_v46 = vld [vmem:[%s20486_s1 + $0x990] sm:$0xf] }
 0x117   : > { %3587 = vmatpush.bf16.msrb.mxu0 %v10224_v62  ;;  %v21184_v62 = vunpack.c.h.bf16 %v15019_v0 }
 0x118   : > { %v1348_v11 = vmax.f32 %v1347_v9, %v21176_v28  ;;  %v1338_v49 = vmax.f32 %v1336_v34, %v1337_v26  ;;  %v15124_v9 = vld [vmem:[%s20486_s1 + $0x884] sm:$0xf0]  ;;  %v1358_v28 = vmax.f32 %v1357_v10, %v21177_v25  ;;  %v21178_v26 = vunpack.c.h.bf16 %v14958_v30  ;;  %v11457_v10 = vld [vmem:[%s20486_s1 + $0x74] sm:$0xf]  ;;  %v9249_v25 = vld [vmem:[%s20486_s1 + $0x78] sm:$0xf0]  ;;  %3624 = vmatpush.bf16.msrb.mxu3 %v10432_v52  ;;  %3600 = vmatpush.bf16.msrb.mxu1 %v10288_v36 }
 0x119   : > { %v21179_v34 = vunpack.c.h.bf16 %v14921_v17  ;;  %v10216_v30 = vor.u32 %v11700_v37, %v10215_v29  ;;  %v11750_v52 = vld [vmem:[%s20486_s1 + $0x994] sm:$0xf0]  ;;  %v20706_v29 = vunpack.c.h.bf16 %v15065_v32  ;;  %v10280_v37 = vor.u32 %v15124_v9, %v15119_v45  ;;  %v9305_v9 = vld [vmem:[%s20486_s1 + $0xe8] sm:$0xf0] }
 0x11a   : > { %v1349_v38 = vmax.f32 %v1348_v11, %v21180_v22  ;;  %v1339_v7 = vrot.slane %v1338_v49, 2  ;;  %v21181_v22 = vunpack.c.l.bf16 %v15047_v59  ;;  %v20698_v11 = vunpack.c.h.bf16 %v15047_v59  ;;  %3612 = vmatpush.bf16.msrb.mxu2 %v10360_v61 }
 0x11b   : > { %v1369_v53 = vmax.f32 %v21179_v34, %v21178_v26  ;;  %v21182_v34 = vunpack.c.h.bf16 %v14976_v6  ;;  %v10424_v26 = vor.u32 %v11752_v8, %v10423_v18  ;;  %v21183_v18 = vunpack.c.l.bf16 %v15065_v32  ;;  %3588 = vmatpush.bf16.msrb.mxu0 %v10216_v30 }
 0x11c   : > { %v1359_v39 = vmax.f32 %v1358_v28, %v21181_v22  ;;  %v1350_v17 = vrot.slane %v1349_v38, 4  ;;  %v1340_v41 = vmax.f32 %v1338_v49, %v1339_v7  ;;  %v11734_v28 = vld [vmem:[%s20486_s1 + $0x914] sm:$0xf0]  ;;  %v9252_v7 = vor.u32 %v11457_v10, %v9249_v25  ;;  %v10343_v10 = vld [vmem:[%s20486_s1 + $0x900] sm:$0xf]  ;;  %3601 = vmatpush.bf16.msrb.mxu1 %v10280_v37 }
 0x11d   : > { %v1370_v24 = vmax.f32 %v1369_v53, %v21182_v34  ;;  %v9316_v22 = vor.u32 %v11473_v20, %v9313_v63  ;;  %v11455_v34 = vld [vmem:[%s20486_s1 + $0x64] sm:$0xf]  ;;  %3625 = vmatpush.bf16.msrb.mxu3 %v10424_v26  ;;  %v959_v25 = vmul.f32 0.015625, %v14774_v14  ;;  %v10352_v63 = vor.u32 %v11734_v28, %v10351_v55  ;;  %v11748_v55 = vld [vmem:[%s20486_s1 + $0x984] sm:$0xf0] }
 0x11e   : > { %v1360_v8 = vmax.f32 %v1359_v39, %v21183_v18  ;;  %v1351_v49 = vmax.f32 %v1349_v38, %v1350_v17  ;;  %v9241_v39 = vld [vmem:[%s20486_s1 + $0x68] sm:$0xf0]  ;;  %v11471_v18 = vld [vmem:[%s20486_s1 + $0xe4] sm:$0xf]  ;;  %v21185_v38 = vunpack.c.l.bf16 %v15076_v5  ;;  %v20699_v17 = vunpack.c.h.bf16 %v15076_v5  ;;  %v11489_v26 = vld [vmem:[%s20486_s1 + $0x174] sm:$0xf] }
 0x11f   : > { %v1371_v53 = vmax.f32 %v1370_v24, %v21184_v62  ;;  %v1341_v24 = vrot.slane %v1340_v41, 1  ;;  %v11732_v62 = vld [vmem:[%s20486_s1 + $0x904] sm:$0xf0]  ;;  %v20707_v61 = vunpack.c.h.bf16 %v15091_v4  ;;  %3633 = vmatpush.bf16.msra.mxu0 %v9252_v7  ;;  %v9244_v28 = vor.u32 %v11455_v34, %v9241_v39  ;;  %v9233_v34 = vld [vmem:[%s20486_s1 + $0x58] sm:$0xf0]  ;;  %3613 = vmatpush.bf16.msrb.mxu2 %v10352_v63 }
 0x120   : > { %v1361_v36 = vmax.f32 %v1360_v8, %v21185_v38  ;;  %v1352_v20 = vrot.slane %v1351_v49, 2  ;;  %v10416_v8 = vor.u32 %v11750_v52, %v10415_v46  ;;  %v11505_v46 = vld [vmem:[%s20486_s1 + $0x1f4] sm:$0xf]  ;;  %v9441_v52 = vld [vmem:[%s20486_s1 + $0x1f8] sm:$0xf0]  ;;  %3646 = vmatpush.bf16.msra.mxu1 %v9316_v22  ;;  %v9308_v7 = vor.u32 %v11471_v18, %v9305_v9 }
 0x121   : > { %v1372_v45 = vmax.f32 %v1371_v53, %v20698_v11  ;;  %v10407_v53 = vld [vmem:[%s20486_s1 + $0x980] sm:$0xf]  ;;  %v1342_v38 = vmax.f32 %v1340_v41, %v1341_v24  ;;  %v9377_v41 = vld [vmem:[%s20486_s1 + $0x178] sm:$0xf0]  ;;  %v11453_v24 = vld [vmem:[%s20486_s1 + $0x54] sm:$0xf] }
 0x122   : > { %v1362_v11 = vmax.f32 %v1361_v36, %v20708_v15  ;;  %v1353_v30 = vmax.f32 %v1351_v49, %v1352_v20  ;;  %v11469_v39 = vld [vmem:[%s20486_s1 + $0xd4] sm:$0xf]  ;;  %3626 = vmatpush.bf16.msrb.mxu3 %v10416_v8  ;;  %v10408_v22 = vor.u32 %v11748_v55, %v10407_v53  ;;  %v11487_v18 = vld [vmem:[%s20486_s1 + $0x164] sm:$0xf]  ;;  %v9369_v63 = vld [vmem:[%s20486_s1 + $0x168] sm:$0xf0]  ;;  %v9236_v55 = vor.u32 %v11453_v24, %v9233_v34 }
 0x123   : > { %v1373_v14 = vmax.f32 %v1372_v45, %v20706_v29  ;;  %v1429_v36 = vsel %vm1412_vm1, %v15134_v31, %v1342_v38  ;;  %v10344_v31 = vor.u32 %v11732_v62, %v10343_v10  ;;  %v9297_v38 = vld [vmem:[%s20486_s1 + $0xd8] sm:$0xf0]  ;;  %v11503_v10 = vld [vmem:[%s20486_s1 + $0x1e4] sm:$0xf]  ;;  %v9433_v8 = vld [vmem:[%s20486_s1 + $0x1e8] sm:$0xf0]  ;;  %3634 = vmatpush.bf16.msra.mxu0 %v9244_v28 }
 0x124   : > { %v1363_v49 = vrot.slane %v1362_v11, 4  ;;  %v15238_v45 = vpack.c.bf16 %v1429_v36, %v1429_v36  ;;  %v1354_v20 = vrot.slane %v1353_v30, 1  ;;  %v9444_v36 = vor.u32 %v11505_v46, %v9441_v52  ;;  %3647 = vmatpush.bf16.msra.mxu1 %v9308_v7  ;;  %v11467_v28 = vld [vmem:[%s20486_s1 + $0xc4] sm:$0xf]  ;;  %v9289_v7 = vld [vmem:[%s20486_s1 + $0xc8] sm:$0xf0] }
 0x125   : > { %v1374_v37 = vmax.f32 %v1373_v14, %v20699_v17  ;;  %v9380_v17 = vor.u32 %v11489_v26, %v9377_v41  ;;  %v9300_v26 = vor.u32 %v11469_v39, %v9297_v38  ;;  %3614 = vmatpush.bf16.msrb.mxu2 %v10344_v31  ;;  %v9372_v46 = vor.u32 %v11487_v18, %v9369_v63  ;;  %v11485_v34 = vld [vmem:[%s20486_s1 + $0x154] sm:$0xf]  ;;  %v9361_v39 = vld [vmem:[%s20486_s1 + $0x158] sm:$0xf0]  ;;  %v21253_v29 = vld [vmem:[#allocation11_spill] sm:$0xff] }
 0x126   : > { %v1364_v9 = vmax.f32 %v1362_v11, %v1363_v49  ;;  %v1355_v62 = vmax.f32 %v1353_v30, %v1354_v20  ;;  %3589 = vmatmul.bf16.vlgmr.msrb.gmra.mxu0 %v15238_v45  ;;  %3627 = vmatpush.bf16.msrb.mxu3 %v10408_v22  ;;  %v9436_v52 = vor.u32 %v11503_v10, %v9433_v8  ;;  %v11451_v49 = vld [vmem:[%s20486_s1 + $0x44] sm:$0xf]  ;;  %v9225_v30 = vld [vmem:[%s20486_s1 + $0x48] sm:$0xf0]  ;;  %v11501_v20 = vld [vmem:[%s20486_s1 + $0x1d4] sm:$0xf] }
 0x127   : > { %v1375_v14 = vmax.f32 %v1374_v37, %v20707_v61  ;;  %v960_v31 = vmul.f32 0.015625, %v14885_v47  ;;  %3635 = vmatpush.bf16.msra.mxu0 %v9236_v55  ;;  %v9228_v18 = vor.u32 %v11451_v49, %v9225_v30  ;;  %v9217_v63 = vld [vmem:[%s20486_s1 + $0x38] sm:$0xf0]  ;;  %v9353_v55 = vld [vmem:[%s20486_s1 + $0x148] sm:$0xf0]  ;;  %v21254_v61 = vunpack.c.l.bf16 %v21253_v29 }
 0x128   : > { %v1365_v11 = vrot.slane %v1364_v9, 2  ;;  %v1430_v41 = vsel %vm1412_vm1, %v959_v25, %v1355_v62  ;;  %3648 = vmatpush.bf16.msra.mxu1 %v9300_v26  ;;  %v11465_v62 = vld [vmem:[%s20486_s1 + $0xb4] sm:$0xf]  ;;  %v11499_v26 = vld [vmem:[%s20486_s1 + $0x1c4] sm:$0xf] }
 0x129   : > { %v1376_v53 = vrot.slane %v1375_v14, 4  ;;  %v15268_v24 = vpack.c.bf16 %v1430_v41, %v1430_v41  ;;  %3659 = vmatpush.bf16.msra.mxu2 %v9380_v17  ;;  %v9425_v17 = vld [vmem:[%s20486_s1 + $0x1d8] sm:$0xf0]  ;;  %v9417_v41 = vld [vmem:[%s20486_s1 + $0x1c8] sm:$0xf0] }
 0x12a   : > { %v1366_v37 = vmax.f32 %v1364_v9, %v1365_v11  ;;  %3672 = vmatpush.bf16.msra.mxu3 %v9444_v36  ;;  %v9292_v9 = vor.u32 %v11467_v28, %v9289_v7  ;;  %v11449_v36 = vld [vmem:[%s20486_s1 + $0x34] sm:$0xf]  ;;  %v9428_v47 = vor.u32 %v11501_v20, %v9425_v17  ;;  %v9281_v11 = vld [vmem:[%s20486_s1 + $0xb8] sm:$0xf0]  ;;  %v9209_v7 = vld [vmem:[%s20486_s1 + $0x28] sm:$0xf0] }
 0x12b   : > { %v1377_v25 = vmax.f32 %v1375_v14, %v1376_v53  ;;  %3602 = vmatmul.bf16.vlgmr.msrb.gmra.mxu1 %v15268_v24  ;;  %v9364_v14 = vor.u32 %v11485_v34, %v9361_v39  ;;  %v11483_v53 = vld [vmem:[%s20486_s1 + $0x144] sm:$0xf]  ;;  %3636 = vmatpush.bf16.msra.mxu0 %v9228_v18  ;;  %v9220_v30 = vor.u32 %v11449_v36, %v9217_v63  ;;  %v9273_v17 = vld [vmem:[%s20486_s1 + $0xa8] sm:$0xf0]  ;;  %v9409_v18 = vld [vmem:[%s20486_s1 + $0x1b8] sm:$0xf0] }
 0x12c   : > { %v1367_v22 = vrot.slane %v1366_v37, 1  ;;  %3649 = vmatpush.bf16.msra.mxu1 %v9292_v9  ;;  %v9356_v39 = vor.u32 %v11483_v53, %v9353_v55  ;;  %v11463_v20 = vld [vmem:[%s20486_s1 + $0xa4] sm:$0xf]  ;;  %v9265_v53 = vld [vmem:[%s20486_s1 + $0x98] sm:$0xf0] }
 0x12d   : > { %v1378_v38 = vrot.slane %v1377_v25, 2  ;;  %3660 = vmatpush.bf16.msra.mxu2 %v9372_v46  ;;  %v9276_v63 = vor.u32 %v11463_v20, %v9273_v17  ;;  %v11479_v55 = vld [vmem:[%s20486_s1 + $0x124] sm:$0xf]  ;;  %v9505_v20 = vld [vmem:[%s20486_s1 + $0x278] sm:$0xf0] }
 0x12e   : > { %v1368_v10 = vmax.f32 %v1366_v37, %v1367_v22  ;;  %3673 = vmatpush.bf16.msra.mxu3 %v9436_v52  ;;  %v961_v52 = vmul.f32 0.015625, %v14943_v51  ;;  %v9284_v37 = vor.u32 %v11465_v62, %v9281_v11  ;;  %v9420_v51 = vor.u32 %v11499_v26, %v9417_v41  ;;  %v9345_v22 = vld [vmem:[%s20486_s1 + $0x138] sm:$0xf0]  ;;  %v11461_v11 = vld [vmem:[%s20486_s1 + $0x94] sm:$0xf] }
 0x12f   : > { %v1379_v8 = vmax.f32 %v1377_v25, %v1378_v38  ;;  %v11447_v25 = vld [vmem:[%s20486_s1 + $0x24] sm:$0xf]  ;;  %v11497_v38 = vld [vmem:[%s20486_s1 + $0x1b4] sm:$0xf]  ;;  %3637 = vmatpush.bf16.msra.mxu0 %v9220_v30  ;;  %v9337_v26 = vld [vmem:[%s20486_s1 + $0x128] sm:$0xf0]  ;;  %v9268_v30 = vor.u32 %v11461_v11, %v9265_v53 }
 0x130   : > { %v1431_v46 = vsel %vm1412_vm1, %v960_v31, %v1368_v10  ;;  %v11481_v31 = vld [vmem:[%s20486_s1 + $0x134] sm:$0xf]  ;;  %3650 = vmatpush.bf16.msra.mxu1 %v9284_v37  ;;  %v9412_v62 = vor.u32 %v11497_v38, %v9409_v18  ;;  %v11495_v41 = vld [vmem:[%s20486_s1 + $0x1a4] sm:$0xf]  ;;  %v9193_v37 = vld [vmem:[%s20486_s1 + $0x8] sm:$0xf0] }
 0x131   : > { %v1380_v49 = vrot.slane %v1379_v8, 1  ;;  %v15313_v28 = vpack.c.bf16 %v1431_v46, %v1431_v46  ;;  %3661 = vmatpush.bf16.msra.mxu2 %v9364_v14  ;;  %v9212_v14 = vor.u32 %v11447_v25, %v9209_v7  ;;  %v11445_v10 = vld [vmem:[%s20486_s1 + $0x14] sm:$0xf]  ;;  %v9401_v46 = vld [vmem:[%s20486_s1 + $0x1a8] sm:$0xf0] }
 0x132   : > { %3674 = vmatpush.bf16.msra.mxu3 %v9428_v47  ;;  %v9348_v47 = vor.u32 %v11481_v31, %v9345_v22  ;;  %v11459_v25 = vld [vmem:[%s20486_s1 + $0x84] sm:$0xf]  ;;  %v9257_v7 = vld [vmem:[%s20486_s1 + $0x88] sm:$0xf0]  ;;  %v11537_v17 = vld [vmem:[%s20486_s1 + $0x2f4] sm:$0xf] }
 0x133   : > { %v1381_v34 = vmax.f32 %v1379_v8, %v1380_v49  ;;  %3615 = vmatmul.bf16.vlgmr.msrb.gmra.mxu2 %v15313_v28  ;;  %v9201_v8 = vld [vmem:[%s20486_s1 + $0x18] sm:$0xf0]  ;;  %3638 = vmatpush.bf16.msra.mxu0 %v9212_v14  ;;  %v11443_v49 = vld [vmem:[%s20486_s1 + $0x4] sm:$0xf]  ;;  %v11477_v22 = vld [vmem:[%s20486_s1 + $0x114] sm:$0xf] }
 0x134   : > { %3651 = vmatpush.bf16.msra.mxu1 %v9276_v63  ;;  %v9569_v31 = vld [vmem:[%s20486_s1 + $0x2f8] sm:$0xf0]  ;;  %v9196_v18 = vor.u32 %v11443_v49, %v9193_v37  ;;  %v9260_v63 = vor.u32 %v11459_v25, %v9257_v7  ;;  %v9497_v11 = vld [vmem:[%s20486_s1 + $0x268] sm:$0xf0]  ;;  %v11535_v53 = vld [vmem:[%s20486_s1 + $0x2e4] sm:$0xf] }
 0x135   : > { %v1432_v9 = vsel %vm1412_vm1, %v961_v52, %v1381_v34  ;;  %3662 = vmatpush.bf16.msra.mxu2 %v9356_v39  ;;  %v9204_v52 = vor.u32 %v11445_v10, %v9201_v8  ;;  %v9340_v34 = vor.u32 %v11479_v55, %v9337_v26  ;;  %v9404_v39 = vor.u32 %v11495_v41, %v9401_v46  ;;  %v9329_v38 = vld [vmem:[%s20486_s1 + $0x118] sm:$0xf0]  ;;  %v11519_v8 = vld [vmem:[%s20486_s1 + $0x264] sm:$0xf]  ;;  %v9561_v55 = vld [vmem:[%s20486_s1 + $0x2e8] sm:$0xf0] }
 0x136   : > { %v15341_v36 = vpack.c.bf16 %v1432_v9, %v1432_v9  ;;  %3675 = vmatpush.bf16.msra.mxu3 %v9420_v51  ;;  %v11521_v51 = vld [vmem:[%s20486_s1 + $0x274] sm:$0xf]  ;;  %v9393_v14 = vld [vmem:[%s20486_s1 + $0x198] sm:$0xf0]  ;;  %v11475_v41 = vld [vmem:[%s20486_s1 + $0x104] sm:$0xf]  ;;  %v9500_v25 = vor.u32 %v11519_v8, %v9497_v11 }
 0x137   : > { %3639 = vmatpush.bf16.msra.mxu0 %v9204_v52  ;;  %v11493_v9 = vld [vmem:[%s20486_s1 + $0x194] sm:$0xf]  ;;  %v9508_v10 = vor.u32 %v11521_v51, %v9505_v20  ;;  %v9321_v46 = vld [vmem:[%s20486_s1 + $0x108] sm:$0xf0]  ;;  %v11491_v52 = vld [vmem:[%s20486_s1 + $0x184] sm:$0xf] }
 0x138   : > { %3628 = vmatmul.bf16.vlgmr.msrb.gmra.mxu3 %v15341_v36  ;;  %3652 = vmatpush.bf16.msra.mxu1 %v9268_v30  ;;  %v9396_v26 = vor.u32 %v11493_v9, %v9393_v14  ;;  %v9385_v49 = vld [vmem:[%s20486_s1 + $0x188] sm:$0xf0]  ;;  %v11553_v30 = vld [vmem:[%s20486_s1 + $0x374] sm:$0xf]  ;;  %v9633_v37 = vld [vmem:[%s20486_s1 + $0x378] sm:$0xf0]  ;;  %v9324_v51 = vor.u32 %v11475_v41, %v9321_v46  ;;  %v3382_v41 = vpop.f32.mrf.mxu0 }
 0x139   : > { %3663 = vmatpush.bf16.msra.mxu2 %v9348_v47  ;;  %v9572_v47 = vor.u32 %v11537_v17, %v9569_v31  ;;  %v11569_v7 = vld [vmem:[%s20486_s1 + $0x3f4] sm:$0xf]  ;;  %v9489_v17 = vld [vmem:[%s20486_s1 + $0x258] sm:$0xf0]  ;;  %v21187_v14 = vld [vmem:[#allocation47_spill] sm:$0xff] }
 0x13a   : > { %3676 = vmatpush.bf16.msra.mxu3 %v9412_v62  ;;  %v9332_v62 = vor.u32 %v11477_v22, %v9329_v38  ;;  %v11517_v20 = vld [vmem:[%s20486_s1 + $0x254] sm:$0xf]  ;;  %v9388_v22 = vor.u32 %v11491_v52, %v9385_v49  ;;  %v9636_v38 = vor.u32 %v11553_v30, %v9633_v37  ;;  %v9553_v9 = vld [vmem:[%s20486_s1 + $0x2d8] sm:$0xf0]  ;;  %v9625_v8 = vld [vmem:[%s20486_s1 + $0x368] sm:$0xf0]  ;;  %v3395_v37 = vpop.f32.mrf.mxu1 }
 0x13b   : > { %3640 = vmatpush.bf16.msra.mxu0 %v9196_v18  ;;  %v21186_v31 = vld [vmem:[#allocation44_spill] sm:$0xff]  ;;  %v9689_v11 = vld [vmem:[%s20486_s1 + $0x3e8] sm:$0xf0]  ;;  %v11531_v52 = vld [vmem:[%s20486_s1 + $0x2c4] sm:$0xf] }
 0x13c   : > { %3653 = vmatpush.bf16.msra.mxu1 %v9260_v63  ;;  %v11533_v18 = vld [vmem:[%s20486_s1 + $0x2d4] sm:$0xf]  ;;  %v9545_v49 = vld [vmem:[%s20486_s1 + $0x2c8] sm:$0xf0] }
 0x13d   : > { %3664 = vmatpush.bf16.msra.mxu2 %v9340_v34  ;;  %v9697_v34 = vld [vmem:[%s20486_s1 + $0x3f8] sm:$0xf0] }
 0x13e   : > { %3677 = vmatpush.bf16.msra.mxu3 %v9404_v39  ;;  %v9564_v39 = vor.u32 %v11535_v53, %v9561_v55  ;;  %3641 = vmatmul.bf16.vlgmr.msra.gmra.mxu0 %v21186_v31  ;;  %v9700_v63 = vor.u32 %v11569_v7, %v9697_v34  ;;  %v9556_v53 = vor.u32 %v11533_v18, %v9553_v9  ;;  %v11515_v55 = vld [vmem:[%s20486_s1 + $0x244] sm:$0xf]  ;;  %v9617_v7 = vld [vmem:[%s20486_s1 + $0x358] sm:$0xf0]  ;;  %v11513_v31 = vld [vmem:[%s20486_s1 + $0x234] sm:$0xf] }
 0x13f   : > { %3685 = vmatpush.bf16.msrb.mxu0 %v9508_v10  ;;  %3654 = vmatmul.bf16.vlgmr.msra.gmra.mxu1 %v21187_v14  ;;  %v11551_v10 = vld [vmem:[%s20486_s1 + $0x364] sm:$0xf]  ;;  %v3396_v34 = vadd.f32 %v3395_v37, %v3382_v41  ;;  %v9609_v14 = vld [vmem:[%s20486_s1 + $0x348] sm:$0xf0] }
 0x140   : > { %3698 = vmatpush.bf16.msrb.mxu1 %v9572_v47  ;;  %v9492_v47 = vor.u32 %v11517_v20, %v9489_v17  ;;  %v9628_v46 = vor.u32 %v11551_v10, %v9625_v8  ;;  %v9681_v20 = vld [vmem:[%s20486_s1 + $0x3d8] sm:$0xf0]  ;;  %v9548_v17 = vor.u32 %v11531_v52, %v9545_v49  ;;  %v11547_v9 = vld [vmem:[%s20486_s1 + $0x344] sm:$0xf]  ;;  %v9673_v8 = vld [vmem:[%s20486_s1 + $0x3c8] sm:$0xf0] }
 0x141   : > { %3665 = vmatpush.bf16.msra.mxu2 %v9332_v62  ;;  %v11567_v62 = vld [vmem:[%s20486_s1 + $0x3e4] sm:$0xf]  ;;  %v9529_v41 = vld [vmem:[%s20486_s1 + $0x2a8] sm:$0xf0]  ;;  %v11545_v49 = vld [vmem:[%s20486_s1 + $0x334] sm:$0xf] }
 0x142   : > { %3678 = vmatpush.bf16.msra.mxu3 %v9396_v26  ;;  %v9481_v26 = vld [vmem:[%s20486_s1 + $0x248] sm:$0xf0]  ;;  %v9692_v30 = vor.u32 %v11567_v62, %v9689_v11  ;;  %v11563_v10 = vld [vmem:[%s20486_s1 + $0x3c4] sm:$0xf]  ;;  %v3397_v52 = vpop.f32.mrf.mxu1 }
 0x143   : > { %3686 = vmatpush.bf16.msrb.mxu0 %v9500_v25  ;;  %v11549_v25 = vld [vmem:[%s20486_s1 + $0x354] sm:$0xf]  ;;  %v11511_v62 = vld [vmem:[%s20486_s1 + $0x224] sm:$0xf]  ;;  %v9465_v11 = vld [vmem:[%s20486_s1 + $0x228] sm:$0xf0] }
 0x144   : > { %3699 = vmatpush.bf16.msrb.mxu1 %v9564_v39  ;;  %v9484_v39 = vor.u32 %v11515_v55, %v9481_v26  ;;  %v9612_v55 = vor.u32 %v11547_v9, %v9609_v14  ;;  %v11527_v26 = vld [vmem:[%s20486_s1 + $0x2a4] sm:$0xf]  ;;  %v9468_v37 = vor.u32 %v11511_v62, %v9465_v11  ;;  %v3421_v14 = vpop.f32.mrf.mxu3  ;;  %v9761_v52 = vld [vmem:[%s20486_s1 + $0x478] sm:$0xf0] }
 0x145   : > { %3666 = vmatpush.bf16.msra.mxu2 %v9324_v51  ;;  %v11565_v51 = vld [vmem:[%s20486_s1 + $0x3d4] sm:$0xf]  ;;  %v11523_v11 = vld [vmem:[%s20486_s1 + $0x284] sm:$0xf] }
 0x146   : > { %3679 = vmatpush.bf16.msra.mxu3 %v9388_v22  ;;  %v9620_v22 = vor.u32 %v11549_v25, %v9617_v7  ;;  %v9684_v18 = vor.u32 %v11565_v51, %v9681_v20  ;;  %v11561_v25 = vld [vmem:[%s20486_s1 + $0x3b4] sm:$0xf]  ;;  %v9665_v7 = vld [vmem:[%s20486_s1 + $0x3b8] sm:$0xf0] }
 0x147   : > { %3687 = vmatpush.bf16.msrb.mxu0 %v9492_v47  ;;  %v11509_v51 = vld [vmem:[%s20486_s1 + $0x214] sm:$0xf]  ;;  %v9457_v20 = vld [vmem:[%s20486_s1 + $0x218] sm:$0xf0] }
 0x148   : > { %3667 = vmatmul.bf16.vlgmr.msra.gmra.mxu2 %v13737_v35  ;;  %3700 = vmatpush.bf16.msrb.mxu1 %v9556_v53  ;;  %v9473_v35 = vld [vmem:[%s20486_s1 + $0x238] sm:$0xf0]  ;;  %v3384_v53 = vpop.f32.mrf.mxu0 }
 0x149   : > { %3711 = vmatpush.bf16.msrb.mxu2 %v9636_v38  ;;  %3680 = vmatmul.bf16.vlgmr.msra.gmra.mxu3 %v13755_v42  ;;  %v11529_v38 = vld [vmem:[%s20486_s1 + $0x2b4] sm:$0xf]  ;;  %v9537_v42 = vld [vmem:[%s20486_s1 + $0x2b8] sm:$0xf0]  ;;  %v9513_v53 = vld [vmem:[%s20486_s1 + $0x288] sm:$0xf0] }
 0x14a   : > { %3724 = vmatpush.bf16.msrb.mxu3 %v9700_v63  ;;  %v9476_v63 = vor.u32 %v11513_v31, %v9473_v35  ;;  %v9540_v47 = vor.u32 %v11529_v38, %v9537_v42  ;;  %v11525_v31 = vld [vmem:[%s20486_s1 + $0x294] sm:$0xf]  ;;  %v9521_v35 = vld [vmem:[%s20486_s1 + $0x298] sm:$0xf0]  ;;  %v9668_v38 = vor.u32 %v11561_v25, %v9665_v7  ;;  %v11543_v42 = vld [vmem:[%s20486_s1 + $0x324] sm:$0xf] }
 0x14b   : > { %3688 = vmatpush.bf16.msrb.mxu0 %v9484_v39  ;;  %v9532_v39 = vor.u32 %v11527_v26, %v9529_v41  ;;  %v9524_v62 = vor.u32 %v11525_v31, %v9521_v35  ;;  %v11541_v25 = vld [vmem:[%s20486_s1 + $0x314] sm:$0xf]  ;;  %v9585_v7 = vld [vmem:[%s20486_s1 + $0x318] sm:$0xf0]  ;;  %v3447_v31 = vpop.f32.mrf.mxu1  ;;  %v9516_v35 = vor.u32 %v11523_v11, %v9513_v53  ;;  %v11555_v11 = vld [vmem:[%s20486_s1 + $0x384] sm:$0xf] }
 0x14c   : > { %3701 = vmatpush.bf16.msrb.mxu1 %v9548_v17  ;;  %v3423_v53 = vpop.f32.mrf.mxu3 }
 0x14d   : > { %3712 = vmatpush.bf16.msrb.mxu2 %v9628_v46  ;;  %v9676_v46 = vor.u32 %v11563_v10, %v9673_v8  ;;  %v11559_v10 = vld [vmem:[%s20486_s1 + $0x3a4] sm:$0xf]  ;;  %v9657_v8 = vld [vmem:[%s20486_s1 + $0x3a8] sm:$0xf0] }
 0x14e   : > { %3725 = vmatpush.bf16.msrb.mxu3 %v9692_v30  ;;  %v9601_v30 = vld [vmem:[%s20486_s1 + $0x338] sm:$0xf0] }
 0x14f   : > { %3689 = vmatpush.bf16.msrb.mxu0 %v9476_v63  ;;  %v9604_v17 = vor.u32 %v11545_v49, %v9601_v30  ;;  %v9460_v63 = vor.u32 %v11509_v51, %v9457_v20  ;;  %v11601_v49 = vld [vmem:[%s20486_s1 + $0x4f4] sm:$0xf]  ;;  %v9660_v30 = vor.u32 %v11559_v10, %v9657_v8  ;;  %v9817_v10 = vld [vmem:[%s20486_s1 + $0x4e8] sm:$0xf0] }
 0x150   : > { %3702 = vmatpush.bf16.msrb.mxu1 %v9540_v47  ;;  %v11507_v47 = vld [vmem:[%s20486_s1 + $0x204] sm:$0xf]  ;;  %v3434_v26 = vpop.f32.mrf.mxu0  ;;  %v11557_v20 = vld [vmem:[%s20486_s1 + $0x394] sm:$0xf] }
 0x151   : > { %3713 = vmatpush.bf16.msrb.mxu2 %v9620_v22  ;;  %v3408_v22 = vpop.f32.mrf.mxu2 }
 0x152   : > { %3726 = vmatpush.bf16.msrb.mxu3 %v9684_v18  ;;  %v9593_v18 = vld [vmem:[%s20486_s1 + $0x328] sm:$0xf0]  ;;  %v3409_v9 = vadd.f32 %v3408_v22, %v3396_v34 }
 0x153   : > { %3690 = vmatpush.bf16.msrb.mxu0 %v9468_v37  ;;  %v9449_v34 = vld [vmem:[%s20486_s1 + $0x208] sm:$0xf0]  ;;  %v9596_v41 = vor.u32 %v11543_v42, %v9593_v18  ;;  %v9825_v37 = vld [vmem:[%s20486_s1 + $0x4f8] sm:$0xf0] }
 0x154   : > { %3703 = vmatpush.bf16.msrb.mxu1 %v9532_v39  ;;  %v9452_v51 = vor.u32 %v11507_v47, %v9449_v34  ;;  %v9828_v18 = vor.u32 %v11601_v49, %v9825_v37  ;;  %v9577_v34 = vld [vmem:[%s20486_s1 + $0x308] sm:$0xf0]  ;;  %v9953_v49 = vld [vmem:[%s20486_s1 + $0x5f8] sm:$0xf0]  ;;  %v3473_v53 = vpop.f32.mrf.mxu3 }
 0x155   : > { %3714 = vmatpush.bf16.msrb.mxu2 %v9612_v55  ;;  %v3422_v55 = vadd.f32 %v3421_v14, %v3409_v9  ;;  %v9588_v9 = vor.u32 %v11541_v25, %v9585_v7  ;;  %v9753_v14 = vld [vmem:[%s20486_s1 + $0x468] sm:$0xf0]  ;;  %v11581_v7 = vld [vmem:[%s20486_s1 + $0x454] sm:$0xf] }
 0x156   : > { %3727 = vmatpush.bf16.msrb.mxu3 %v9676_v46  ;;  %v11585_v46 = vld [vmem:[%s20486_s1 + $0x474] sm:$0xf] }
 0x157   : > { %3691 = vmatpush.bf16.msrb.mxu0 %v9460_v63  ;;  %v3435_v39 = vadd.f32 %v3434_v26, %v3422_v55  ;;  %v9764_v22 = vor.u32 %v11585_v46, %v9761_v52  ;;  %v11599_v63 = vld [vmem:[%s20486_s1 + $0x4e4] sm:$0xf]  ;;  %v9641_v55 = vld [vmem:[%s20486_s1 + $0x388] sm:$0xf0]  ;;  %v11617_v26 = vld [vmem:[%s20486_s1 + $0x574] sm:$0xf] }
 0x158   : > { %3704 = vmatpush.bf16.msrb.mxu1 %v9524_v62  ;;  %v11539_v62 = vld [vmem:[%s20486_s1 + $0x304] sm:$0xf]  ;;  %v11633_v52 = vld [vmem:[%s20486_s1 + $0x5f4] sm:$0xf]  ;;  %v9820_v37 = vor.u32 %v11599_v63, %v9817_v10  ;;  %v9737_v10 = vld [vmem:[%s20486_s1 + $0x448] sm:$0xf0] }
 0x159   : > { %3715 = vmatpush.bf16.msrb.mxu2 %v9604_v17  ;;  %v9649_v17 = vld [vmem:[%s20486_s1 + $0x398] sm:$0xf0]  ;;  %v3448_v42 = vadd.f32 %v3447_v31, %v3435_v39  ;;  %v3410_v8 = vpop.f32.mrf.mxu2  ;;  %v9580_v25 = vor.u32 %v11539_v62, %v9577_v34  ;;  %v11579_v63 = vld [vmem:[%s20486_s1 + $0x444] sm:$0xf]  ;;  %v9801_v34 = vld [vmem:[%s20486_s1 + $0x4c8] sm:$0xf0] }
 0x15a   : > { %3728 = vmatpush.bf16.msrb.mxu3 %v9668_v38  ;;  %v11583_v38 = vld [vmem:[%s20486_s1 + $0x464] sm:$0xf]  ;;  %v9652_v47 = vor.u32 %v11557_v20, %v9649_v17  ;;  %v9745_v39 = vld [vmem:[%s20486_s1 + $0x458] sm:$0xf0]  ;;  %v11597_v17 = vld [vmem:[%s20486_s1 + $0x4d4] sm:$0xf] }
 0x15b   : > { %3692 = vmatpush.bf16.msrb.mxu0 %v9452_v51  ;;  %v9756_v46 = vor.u32 %v11583_v38, %v9753_v14  ;;  %v9644_v51 = vor.u32 %v11555_v11, %v9641_v55  ;;  %v9809_v31 = vld [vmem:[%s20486_s1 + $0x4d8] sm:$0xf0]  ;;  %v3449_v38 = vpop.f32.mrf.mxu1  ;;  %v11595_v62 = vld [vmem:[%s20486_s1 + $0x4c4] sm:$0xf] }
 0x15c   : > { %3705 = vmatpush.bf16.msrb.mxu1 %v9516_v35  ;;  %v9956_v35 = vor.u32 %v11633_v52, %v9953_v49  ;;  %v9812_v14 = vor.u32 %v11597_v17, %v9809_v31  ;;  %v11629_v52 = vld [vmem:[%s20486_s1 + $0x5d4] sm:$0xf]  ;;  %v11611_v17 = vld [vmem:[%s20486_s1 + $0x544] sm:$0xf]  ;;  %v9865_v31 = vld [vmem:[%s20486_s1 + $0x548] sm:$0xf0] }
 0x15d   : > { %3716 = vmatpush.bf16.msrb.mxu2 %v9596_v41  ;;  %v9889_v41 = vld [vmem:[%s20486_s1 + $0x578] sm:$0xf0] }
 0x15e   : > { %3729 = vmatpush.bf16.msrb.mxu3 %v9660_v30  ;;  %v3436_v30 = vpop.f32.mrf.mxu0  ;;  %3693 = vmatmul.bf16.vlgmr.msrb.gmra.mxu0 %v13870_v27  ;;  %v9892_v20 = vor.u32 %v11617_v26, %v9889_v41  ;;  %v9881_v27 = vld [vmem:[%s20486_s1 + $0x568] sm:$0xf0]  ;;  %v11613_v26 = vld [vmem:[%s20486_s1 + $0x554] sm:$0xf]  ;;  %v9873_v41 = vld [vmem:[%s20486_s1 + $0x558] sm:$0xf0] }
 0x15f   : > { %3737 = vmatpush.bf16.msra.mxu0 %v9764_v22  ;;  %3706 = vmatmul.bf16.vlgmr.msrb.gmra.mxu1 %v13880_v57  ;;  %v11615_v22 = vld [vmem:[%s20486_s1 + $0x564] sm:$0xf]  ;;  %v9945_v57 = vld [vmem:[%s20486_s1 + $0x5e8] sm:$0xf0] }
 0x160   : > { %3750 = vmatpush.bf16.msra.mxu1 %v9828_v18  ;;  %v9748_v18 = vor.u32 %v11581_v7, %v9745_v39  ;;  %v9876_v7 = vor.u32 %v11613_v26, %v9873_v41  ;;  %v11593_v39 = vld [vmem:[%s20486_s1 + $0x4b4] sm:$0xf]  ;;  %v9921_v41 = vld [vmem:[%s20486_s1 + $0x5b8] sm:$0xf0] }
 0x161   : > { %3717 = vmatpush.bf16.msrb.mxu2 %v9588_v9  ;;  %v11631_v9 = vld [vmem:[%s20486_s1 + $0x5e4] sm:$0xf]  ;;  %v3460_v8 = vpop.f32.mrf.mxu2  ;;  %v11625_v26 = vld [vmem:[%s20486_s1 + $0x5b4] sm:$0xf] }
 0x162   : > { %3730 = vmatpush.bf16.msrb.mxu3 %v9652_v47  ;;  %v9884_v47 = vor.u32 %v11615_v22, %v9881_v27  ;;  %v3461_v11 = vadd.f32 %v3460_v8, %v3448_v42  ;;  %v9948_v55 = vor.u32 %v11631_v9, %v9945_v57  ;;  %v9937_v42 = vld [vmem:[%s20486_s1 + $0x5d8] sm:$0xf0]  ;;  %v11627_v22 = vld [vmem:[%s20486_s1 + $0x5c4] sm:$0xf]  ;;  %v9929_v27 = vld [vmem:[%s20486_s1 + $0x5c8] sm:$0xf0] }
 0x163   : > { %3738 = vmatpush.bf16.msra.mxu0 %v9756_v46  ;;  %v9740_v46 = vor.u32 %v11579_v63, %v9737_v10  ;;  %v3499_v38 = vpop.f32.mrf.mxu1  ;;  %v11575_v9 = vld [vmem:[%s20486_s1 + $0x424] sm:$0xf]  ;;  %v9721_v57 = vld [vmem:[%s20486_s1 + $0x428] sm:$0xf0]  ;;  %v9868_v10 = vor.u32 %v11611_v17, %v9865_v31 }
 0x164   : > { %3751 = vmatpush.bf16.msra.mxu1 %v9820_v37  ;;  %v3474_v49 = vadd.f32 %v3473_v53, %v3461_v11  ;;  %v9804_v37 = vor.u32 %v11595_v62, %v9801_v34  ;;  %v11591_v8 = vld [vmem:[%s20486_s1 + $0x4a4] sm:$0xf]  ;;  %v3475_v62 = vpop.f32.mrf.mxu3  ;;  %v9932_v34 = vor.u32 %v11627_v22, %v9929_v27  ;;  %v11609_v11 = vld [vmem:[%s20486_s1 + $0x534] sm:$0xf]  ;;  %v9857_v53 = vld [vmem:[%s20486_s1 + $0x538] sm:$0xf0] }
 0x165   : > { %3718 = vmatpush.bf16.msrb.mxu2 %v9580_v25  ;;  %v9729_v25 = vld [vmem:[%s20486_s1 + $0x438] sm:$0xf0]  ;;  %v11571_v17 = vld [vmem:[%s20486_s1 + $0x404] sm:$0xf]  ;;  %v9769_v27 = vld [vmem:[%s20486_s1 + $0x488] sm:$0xf0] }
 0x166   : > { %3731 = vmatpush.bf16.msrb.mxu3 %v9644_v51  ;;  %v3486_v30 = vpop.f32.mrf.mxu0  ;;  %v11587_v22 = vld [vmem:[%s20486_s1 + $0x484] sm:$0xf]  ;;  %v10081_v62 = vld [vmem:[%s20486_s1 + $0x6f8] sm:$0xf0] }
 0x167   : > { %3739 = vmatpush.bf16.msra.mxu0 %v9748_v18  ;;  %v3487_v51 = vadd.f32 %v3486_v30, %v3474_v49  ;;  %v9860_v30 = vor.u32 %v11609_v11, %v9857_v53  ;;  %v9841_v11 = vld [vmem:[%s20486_s1 + $0x518] sm:$0xf0] }
 0x168   : > { %3719 = vmatmul.bf16.vlgmr.msrb.gmra.mxu2 %v13999_v44  ;;  %3752 = vmatpush.bf16.msra.mxu1 %v9812_v14  ;;  %v11577_v44 = vld [vmem:[%s20486_s1 + $0x434] sm:$0xf] }
 0x169   : > { %3763 = vmatpush.bf16.msra.mxu2 %v9892_v20  ;;  %3732 = vmatmul.bf16.vlgmr.msrb.gmra.mxu3 %v14021_v48  ;;  %v9793_v48 = vld [vmem:[%s20486_s1 + $0x4b8] sm:$0xf0]  ;;  %v9940_v20 = vor.u32 %v11629_v52, %v9937_v42  ;;  %v3500_v14 = vadd.f32 %v3499_v38, %v3487_v51  ;;  %v3462_v63 = vpop.f32.mrf.mxu2  ;;  %v11573_v52 = vld [vmem:[%s20486_s1 + $0x414] sm:$0xf]  ;;  %v11623_v51 = vld [vmem:[%s20486_s1 + $0x5a4] sm:$0xf] }
 0x16a   : > { %3776 = vmatpush.bf16.msra.mxu3 %v9956_v35  ;;  %v9732_v35 = vor.u32 %v11577_v44, %v9729_v25  ;;  %v9796_v18 = vor.u32 %v11593_v39, %v9793_v48  ;;  %v9713_v42 = vld [vmem:[%s20486_s1 + $0x418] sm:$0xf0]  ;;  %v9924_v25 = vor.u32 %v11625_v26, %v9921_v41  ;;  %v9849_v39 = vld [vmem:[%s20486_s1 + $0x528] sm:$0xf0]  ;;  %v9772_v26 = vor.u32 %v11587_v22, %v9769_v27  ;;  %v11697_v22 = vld [vmem:[%s20486_s1 + $0x7f4] sm:$0xf] }
 0x16b   : > { %3740 = vmatpush.bf16.msra.mxu0 %v9740_v46  ;;  %v9777_v44 = vld [vmem:[%s20486_s1 + $0x498] sm:$0xf0]  ;;  %v9716_v48 = vor.u32 %v11573_v52, %v9713_v42  ;;  %v3501_v38 = vpop.f32.mrf.mxu1 }
 0x16c   : > { %3753 = vmatpush.bf16.msra.mxu1 %v9804_v37  ;;  %v11589_v37 = vld [vmem:[%s20486_s1 + $0x494] sm:$0xf]  ;;  %v10017_v63 = vld [vmem:[%s20486_s1 + $0x678] sm:$0xf0] }
 0x16d   : > { %3764 = vmatpush.bf16.msra.mxu2 %v9884_v47  ;;  %v9785_v47 = vld [vmem:[%s20486_s1 + $0x4a8] sm:$0xf0]  ;;  %v9780_v31 = vor.u32 %v11589_v37, %v9777_v44  ;;  %v10209_v27 = vld [vmem:[%s20486_s1 + $0x7f8] sm:$0xf0] }
 0x16e   : > { %3777 = vmatpush.bf16.msra.mxu3 %v9948_v55  ;;  %v9724_v55 = vor.u32 %v11575_v9, %v9721_v57  ;;  %v9788_v46 = vor.u32 %v11591_v8, %v9785_v47  ;;  %v3488_v49 = vpop.f32.mrf.mxu0  ;;  %v11649_v57 = vld [vmem:[%s20486_s1 + $0x674] sm:$0xf]  ;;  %v10073_v37 = vld [vmem:[%s20486_s1 + $0x6e8] sm:$0xf0] }
 0x16f   : > { %3741 = vmatpush.bf16.msra.mxu0 %v9732_v35  ;;  %v9705_v35 = vld [vmem:[%s20486_s1 + $0x408] sm:$0xf0]  ;;  %v10020_v41 = vor.u32 %v11649_v57, %v10017_v63  ;;  %v10001_v57 = vld [vmem:[%s20486_s1 + $0x658] sm:$0xf0] }
 0x170   : > { %3754 = vmatpush.bf16.msra.mxu1 %v9796_v18  ;;  %v9708_v53 = vor.u32 %v11571_v17, %v9705_v35  ;;  %v10009_v49 = vld [vmem:[%s20486_s1 + $0x668] sm:$0xf0]  ;;  %v10145_v17 = vld [vmem:[%s20486_s1 + $0x778] sm:$0xf0] }
 0x171   : > { %3765 = vmatpush.bf16.msra.mxu2 %v9876_v7  ;;  %v11607_v7 = vld [vmem:[%s20486_s1 + $0x524] sm:$0xf]  ;;  %v3512_v18 = vpop.f32.mrf.mxu2 }
 0x172   : > { %3778 = vmatpush.bf16.msra.mxu3 %v9940_v20  ;;  %v9913_v20 = vld [vmem:[%s20486_s1 + $0x5a8] sm:$0xf0]  ;;  %v9852_v9 = vor.u32 %v11607_v7, %v9849_v39  ;;  %v3513_v8 = vadd.f32 %v3512_v18, %v3500_v14  ;;  %v9905_v14 = vld [vmem:[%s20486_s1 + $0x598] sm:$0xf0]  ;;  %v11619_v39 = vld [vmem:[%s20486_s1 + $0x584] sm:$0xf] }
 0x173   : > { %3742 = vmatpush.bf16.msra.mxu0 %v9724_v55  ;;  %v9916_v47 = vor.u32 %v11623_v51, %v9913_v20  ;;  %v11621_v55 = vld [vmem:[%s20486_s1 + $0x594] sm:$0xf]  ;;  %v9833_v7 = vld [vmem:[%s20486_s1 + $0x508] sm:$0xf0] }
 0x174   : > { %3755 = vmatpush.bf16.msra.mxu1 %v9788_v46  ;;  %v11647_v46 = vld [vmem:[%s20486_s1 + $0x664] sm:$0xf]  ;;  %v9908_v44 = vor.u32 %v11621_v55, %v9905_v14  ;;  %v9897_v51 = vld [vmem:[%s20486_s1 + $0x588] sm:$0xf0]  ;;  %v11681_v20 = vld [vmem:[%s20486_s1 + $0x774] sm:$0xf] }
 0x175   : > { %3766 = vmatpush.bf16.msra.mxu2 %v9868_v10  ;;  %v11665_v10 = vld [vmem:[%s20486_s1 + $0x6f4] sm:$0xf]  ;;  %v10012_v35 = vor.u32 %v11647_v46, %v10009_v49  ;;  %v11695_v55 = vld [vmem:[%s20486_s1 + $0x7e4] sm:$0xf]  ;;  %v10201_v14 = vld [vmem:[%s20486_s1 + $0x7e8] sm:$0xf0] }
 0x176   : > { %3779 = vmatpush.bf16.msra.mxu3 %v9932_v34  ;;  %v11605_v34 = vld [vmem:[%s20486_s1 + $0x514] sm:$0xf]  ;;  %v10084_v52 = vor.u32 %v11665_v10, %v10081_v62  ;;  %v9900_v10 = vor.u32 %v11619_v39, %v9897_v51  ;;  %v10065_v62 = vld [vmem:[%s20486_s1 + $0x6d8] sm:$0xf0]  ;;  %v10204_v49 = vor.u32 %v11695_v55, %v10201_v14 }
 0x177   : > { %3743 = vmatpush.bf16.msra.mxu0 %v9716_v48  ;;  %v9844_v42 = vor.u32 %v11605_v34, %v9841_v11  ;;  %v3525_v48 = vpop.f32.mrf.mxu3  ;;  %v10212_v34 = vor.u32 %v11697_v22, %v10209_v27  ;;  %v11679_v11 = vld [vmem:[%s20486_s1 + $0x764] sm:$0xf]  ;;  %v10193_v39 = vld [vmem:[%s20486_s1 + $0x7d8] sm:$0xf0] }
 0x178   : > { %3756 = vmatpush.bf16.msra.mxu1 %v9780_v31  ;;  %v15826_v31 = vadd.f32 %v3525_v48, %v3513_v8  ;;  %v10148_v8 = vor.u32 %v11681_v20, %v10145_v17  ;;  %v9985_v20 = vld [vmem:[%s20486_s1 + $0x638] sm:$0xf0]  ;;  %v11675_v27 = vld [vmem:[%s20486_s1 + $0x744] sm:$0xf] }
 0x179   : > { %3767 = vmatpush.bf16.msra.mxu2 %v9860_v30  ;;  %v11663_v30 = vld [vmem:[%s20486_s1 + $0x6e4] sm:$0xf]  ;;  %v3514_v63 = vpop.f32.mrf.mxu2  ;;  %v10113_v55 = vld [vmem:[%s20486_s1 + $0x738] sm:$0xf0] }
 0x17a   : > { %3780 = vmatpush.bf16.msra.mxu3 %v9924_v25  ;;  %v11603_v25 = vld [vmem:[%s20486_s1 + $0x504] sm:$0xf]  ;;  %v10076_v38 = vor.u32 %v11663_v30, %v10073_v37  ;;  %v11677_v30 = vld [vmem:[%s20486_s1 + $0x754] sm:$0xf]  ;;  %v10129_v37 = vld [vmem:[%s20486_s1 + $0x758] sm:$0xf0] }
 0x17b   : > { %3744 = vmatpush.bf16.msra.mxu0 %v9708_v53  ;;  %v9836_v18 = vor.u32 %v11603_v25, %v9833_v7  ;;  %v11693_v7 = vld [vmem:[%s20486_s1 + $0x7d4] sm:$0xf]  ;;  %v15886_v48 = vpop.f32.mrf.mxu0  ;;  %v10132_v17 = vor.u32 %v11677_v30, %v10129_v37  ;;  %v10033_v37 = vld [vmem:[%s20486_s1 + $0x698] sm:$0xf0] }
 0x17c   : > { %3757 = vmatpush.bf16.msra.mxu1 %v9772_v26  ;;  %v11643_v26 = vld [vmem:[%s20486_s1 + $0x644] sm:$0xf]  ;;  %v10196_v22 = vor.u32 %v11693_v7, %v10193_v39  ;;  %v11653_v30 = vld [vmem:[%s20486_s1 + $0x694] sm:$0xf]  ;;  %v10105_v7 = vld [vmem:[%s20486_s1 + $0x728] sm:$0xf0] }
 0x17d   : > { %3768 = vmatpush.bf16.msra.mxu2 %v9852_v9  ;;  %v11645_v9 = vld [vmem:[%s20486_s1 + $0x654] sm:$0xf] }
 0x17e   : > { %3781 = vmatpush.bf16.msra.mxu3 %v9916_v47  ;;  %3745 = vmatmul.bf16.vlgmr.msra.gmra.mxu0 %v14182_v23  ;;  %v11661_v47 = vld [vmem:[%s20486_s1 + $0x6d4] sm:$0xf]  ;;  %v10137_v23 = vld [vmem:[%s20486_s1 + $0x768] sm:$0xf0]  ;;  %v10004_v53 = vor.u32 %v11645_v9, %v10001_v57  ;;  %v11691_v9 = vld [vmem:[%s20486_s1 + $0x7c4] sm:$0xf] }
 0x17f   : > { %3789 = vmatpush.bf16.msrb.mxu0 %v10020_v41  ;;  %3758 = vmatmul.bf16.vlgmr.msra.gmra.mxu1 %v14224_v40  ;;  %v10068_v40 = vor.u32 %v11661_v47, %v10065_v62  ;;  %v9993_v41 = vld [vmem:[%s20486_s1 + $0x648] sm:$0xf0]  ;;  %v10140_v46 = vor.u32 %v11679_v11, %v10137_v23 }
 0x180   : > { %3802 = vmatpush.bf16.msrb.mxu1 %v10084_v52  ;;  %v11659_v52 = vld [vmem:[%s20486_s1 + $0x6c4] sm:$0xf]  ;;  %v9996_v25 = vor.u32 %v11643_v26, %v9993_v41  ;;  %v10185_v57 = vld [vmem:[%s20486_s1 + $0x7c8] sm:$0xf0]  ;;  %v10177_v26 = vld [vmem:[%s20486_s1 + $0x7b8] sm:$0xf0] }
 0x181   : > { %3769 = vmatpush.bf16.msra.mxu2 %v9844_v42  ;;  %v10057_v42 = vld [vmem:[%s20486_s1 + $0x6c8] sm:$0xf0]  ;;  %v10188_v23 = vor.u32 %v11691_v9, %v10185_v57  ;;  %v11729_v9 = vld [vmem:[%s20486_s1 + $0x8f4] sm:$0xf] }
 0x182   : > { %3782 = vmatpush.bf16.msra.mxu3 %v9908_v44  ;;  %v3527_v44 = vpop.f32.mrf.mxu3  ;;  %v10060_v51 = vor.u32 %v11659_v52, %v10057_v42  ;;  %v15918_v47 = vpop.f32.mrf.mxu1  ;;  %v10041_v11 = vld [vmem:[%s20486_s1 + $0x6a8] sm:$0xf0]  ;;  %v9969_v52 = vld [vmem:[%s20486_s1 + $0x618] sm:$0xf0] }
 0x183   : > { %3790 = vmatpush.bf16.msrb.mxu0 %v10012_v35  ;;  %v11657_v35 = vld [vmem:[%s20486_s1 + $0x6b4] sm:$0xf]  ;;  %v3540_v42 = vpop.f32.mrf.mxu0 }
 0x184   : > { %3803 = vmatpush.bf16.msrb.mxu1 %v10076_v38  ;;  %v10121_v38 = vld [vmem:[%s20486_s1 + $0x748] sm:$0xf0] }
 0x185   : > { %3770 = vmatpush.bf16.msra.mxu2 %v9836_v18  ;;  %v10124_v62 = vor.u32 %v11675_v27, %v10121_v38  ;;  %v11713_v38 = vld [vmem:[%s20486_s1 + $0x874] sm:$0xf]  ;;  %v10329_v42 = vld [vmem:[%s20486_s1 + $0x8e8] sm:$0xf0] }
 0x186   : > { %3783 = vmatpush.bf16.msra.mxu3 %v9900_v10  ;;  %v11639_v10 = vld [vmem:[%s20486_s1 + $0x624] sm:$0xf] }
 0x187   : > { %3791 = vmatpush.bf16.msrb.mxu0 %v10004_v53  ;;  %v11673_v53 = vld [vmem:[%s20486_s1 + $0x734] sm:$0xf] }
 0x188   : > { %3771 = vmatmul.bf16.vlgmr.msra.gmra.mxu2 %v14306_v43  ;;  %3804 = vmatpush.bf16.msrb.mxu1 %v10068_v40  ;;  %v11641_v43 = vld [vmem:[%s20486_s1 + $0x634] sm:$0xf] }
 0x189   : > { %3815 = vmatpush.bf16.msrb.mxu2 %v10148_v8  ;;  %3784 = vmatmul.bf16.vlgmr.msra.gmra.mxu3 %v14416_v2  ;;  %v10049_v2 = vld [vmem:[%s20486_s1 + $0x6b8] sm:$0xf0]  ;;  %v9988_v18 = vor.u32 %v11641_v43, %v9985_v20  ;;  %v9977_v8 = vld [vmem:[%s20486_s1 + $0x628] sm:$0xf0]  ;;  %v11689_v40 = vld [vmem:[%s20486_s1 + $0x7b4] sm:$0xf] }
 0x18a   : > { %3828 = vmatpush.bf16.msrb.mxu3 %v10212_v34  ;;  %v10052_v63 = vor.u32 %v11657_v35, %v10049_v2  ;;  %v11655_v34 = vld [vmem:[%s20486_s1 + $0x6a4] sm:$0xf]  ;;  %v9980_v14 = vor.u32 %v11639_v10, %v9977_v8  ;;  %v10180_v44 = vor.u32 %v11689_v40, %v10177_v26  ;;  %v10169_v43 = vld [vmem:[%s20486_s1 + $0x7a8] sm:$0xf0]  ;;  %v3553_v57 = vpop.f32.mrf.mxu1  ;;  %v10337_v10 = vld [vmem:[%s20486_s1 + $0x8f8] sm:$0xf0] }
 0x18b   : > { %3792 = vmatpush.bf16.msrb.mxu0 %v9996_v25  ;;  %v10044_v41 = vor.u32 %v11655_v34, %v10041_v11  ;;  %v11671_v25 = vld [vmem:[%s20486_s1 + $0x724] sm:$0xf]  ;;  %v9961_v35 = vld [vmem:[%s20486_s1 + $0x608] sm:$0xf0]  ;;  %v11669_v8 = vld [vmem:[%s20486_s1 + $0x714] sm:$0xf]  ;;  %v10340_v26 = vor.u32 %v11729_v9, %v10337_v10 }
 0x18c   : > { %3805 = vmatpush.bf16.msrb.mxu1 %v10060_v51  ;;  %v11687_v51 = vld [vmem:[%s20486_s1 + $0x7a4] sm:$0xf]  ;;  %v10108_v27 = vor.u32 %v11671_v25, %v10105_v7  ;;  %v11685_v11 = vld [vmem:[%s20486_s1 + $0x794] sm:$0xf]  ;;  %v10153_v25 = vld [vmem:[%s20486_s1 + $0x788] sm:$0xf0] }
 0x18d   : > { %3816 = vmatpush.bf16.msrb.mxu2 %v10140_v46  ;;  %v11637_v46 = vld [vmem:[%s20486_s1 + $0x614] sm:$0xf]  ;;  %v11635_v20 = vld [vmem:[%s20486_s1 + $0x604] sm:$0xf]  ;;  %v10321_v57 = vld [vmem:[%s20486_s1 + $0x8d8] sm:$0xf0] }
 0x18e   : > { %3829 = vmatpush.bf16.msrb.mxu3 %v10204_v49  ;;  %v10116_v49 = vor.u32 %v11673_v53, %v10113_v55  ;;  %v9972_v39 = vor.u32 %v11637_v46, %v9969_v52  ;;  %v11651_v2 = vld [vmem:[%s20486_s1 + $0x684] sm:$0xf]  ;;  %v9964_v34 = vor.u32 %v11635_v20, %v9961_v35  ;;  %v16001_v40 = vpop.f32.mrf.mxu2  ;;  %v10265_v46 = vld [vmem:[%s20486_s1 + $0x868] sm:$0xf0]  ;;  %v11745_v7 = vld [vmem:[%s20486_s1 + $0x974] sm:$0xf] }
 0x18f   : > { %3793 = vmatpush.bf16.msrb.mxu0 %v9988_v18  ;;  %v10273_v18 = vld [vmem:[%s20486_s1 + $0x878] sm:$0xf0]  ;;  %v11727_v52 = vld [vmem:[%s20486_s1 + $0x8e4] sm:$0xf]  ;;  %v11725_v9 = vld [vmem:[%s20486_s1 + $0x8d4] sm:$0xf] }
 0x190   : > { %3806 = vmatpush.bf16.msrb.mxu1 %v10052_v63  ;;  %v10172_v63 = vor.u32 %v11687_v51, %v10169_v43  ;;  %v10276_v55 = vor.u32 %v11713_v38, %v10273_v18  ;;  %v11761_v43 = vld [vmem:[%s20486_s1 + $0x9f4] sm:$0xf]  ;;  %v10465_v20 = vld [vmem:[%s20486_s1 + $0x9f8] sm:$0xf0]  ;;  %v10332_v35 = vor.u32 %v11727_v52, %v10329_v42  ;;  %v11743_v10 = vld [vmem:[%s20486_s1 + $0x964] sm:$0xf] }
 0x191   : > { %3817 = vmatpush.bf16.msrb.mxu2 %v10132_v17  ;;  %v10036_v17 = vor.u32 %v11653_v30, %v10033_v37  ;;  %v11667_v30 = vld [vmem:[%s20486_s1 + $0x704] sm:$0xf]  ;;  %v10089_v37 = vld [vmem:[%s20486_s1 + $0x708] sm:$0xf0]  ;;  %v10385_v52 = vld [vmem:[%s20486_s1 + $0x958] sm:$0xf0] }
 0x192   : > { %3830 = vmatpush.bf16.msrb.mxu3 %v10196_v22  ;;  %v10025_v22 = vld [vmem:[%s20486_s1 + $0x688] sm:$0xf0] }
 0x193   : > { %3794 = vmatpush.bf16.msrb.mxu0 %v9980_v14  ;;  %v10028_v53 = vor.u32 %v11651_v2, %v10025_v22  ;;  %v11711_v14 = vld [vmem:[%s20486_s1 + $0x864] sm:$0xf]  ;;  %v10092_v2 = vor.u32 %v11667_v30, %v10089_v37  ;;  %v11709_v22 = vld [vmem:[%s20486_s1 + $0x854] sm:$0xf]  ;;  %v10449_v30 = vld [vmem:[%s20486_s1 + $0x9d8] sm:$0xf0] }
 0x194   : > { %3807 = vmatpush.bf16.msrb.mxu1 %v10044_v41  ;;  %v10268_v51 = vor.u32 %v11711_v14, %v10265_v46  ;;  %v11723_v14 = vld [vmem:[%s20486_s1 + $0x8c4] sm:$0xf]  ;;  %v11741_v46 = vld [vmem:[%s20486_s1 + $0x954] sm:$0xf] }
 0x195   : > { %3818 = vmatpush.bf16.msrb.mxu2 %v10124_v62  ;;  %v10097_v62 = vld [vmem:[%s20486_s1 + $0x718] sm:$0xf0] }
 0x196   : > { %3831 = vmatpush.bf16.msrb.mxu3 %v10188_v23  ;;  %v10161_v23 = vld [vmem:[%s20486_s1 + $0x798] sm:$0xf0]  ;;  %v10100_v41 = vor.u32 %v11669_v8, %v10097_v62  ;;  %v11759_v62 = vld [vmem:[%s20486_s1 + $0x9e4] sm:$0xf] }
 0x197   : > { %3795 = vmatpush.bf16.msrb.mxu0 %v9972_v39  ;;  %v10401_v39 = vld [vmem:[%s20486_s1 + $0x978] sm:$0xf0] }
 0x198   : > { %3808 = vmatpush.bf16.msrb.mxu1 %v10036_v17  ;;  %v16036_v17 = vpop.f32.mrf.mxu3  ;;  %v10404_v18 = vor.u32 %v11745_v7, %v10401_v39  ;;  %v10388_v7 = vor.u32 %v11741_v46, %v10385_v52  ;;  %v11721_v39 = vld [vmem:[%s20486_s1 + $0x8b4] sm:$0xf]  ;;  %v10289_v46 = vld [vmem:[%s20486_s1 + $0x898] sm:$0xf0] }
 0x199   : > { %3819 = vmatpush.bf16.msrb.mxu2 %v10116_v49  ;;  %v10164_v49 = vor.u32 %v11685_v11, %v10161_v23  ;;  %v11707_v11 = vld [vmem:[%s20486_s1 + $0x844] sm:$0xf]  ;;  %v10249_v23 = vld [vmem:[%s20486_s1 + $0x848] sm:$0xf0] }
 0x19a   : > { %3832 = vmatpush.bf16.msrb.mxu3 %v10180_v44  ;;  %v11683_v44 = vld [vmem:[%s20486_s1 + $0x784] sm:$0xf]  ;;  %v10252_v42 = vor.u32 %v11707_v11, %v10249_v23  ;;  %v10433_v11 = vld [vmem:[%s20486_s1 + $0x9b8] sm:$0xf0] }
 0x19b   : > { %3796 = vmatpush.bf16.msrb.mxu0 %v9964_v34  ;;  %v10156_v38 = vor.u32 %v11683_v44, %v10153_v25  ;;  %v10457_v34 = vld [vmem:[%s20486_s1 + $0x9e8] sm:$0xf0]  ;;  %v11705_v25 = vld [vmem:[%s20486_s1 + $0x834] sm:$0xf] }
 0x19c   : > { %3809 = vmatpush.bf16.msrb.mxu1 %v10028_v53  ;;  %v3566_v53 = vpop.f32.mrf.mxu2 }
 0x19d   : > { %3820 = vmatpush.bf16.msrb.mxu2 %v10108_v27  ;;  %v10257_v27 = vld [vmem:[%s20486_s1 + $0x858] sm:$0xf0] }
 0x19e   : > { %3833 = vmatpush.bf16.msrb.mxu3 %v10172_v63  ;;  %3797 = vmatmul.bf16.vlgmr.msrb.gmra.mxu0 %v14757_v33  ;;  %v10468_v63 = vor.u32 %v11761_v43, %v10465_v20  ;;  %v10393_v33 = vld [vmem:[%s20486_s1 + $0x968] sm:$0xf0]  ;;  %v10260_v8 = vor.u32 %v11709_v22, %v10257_v27  ;;  %v11739_v43 = vld [vmem:[%s20486_s1 + $0x944] sm:$0xf] }
 0x19f   : > { %3841 = vmatpush.bf16.msra.mxu0 %v10276_v55  ;;  %3810 = vmatmul.bf16.vlgmr.msrb.gmra.mxu1 %v14841_v12  ;;  %v10324_v12 = vor.u32 %v11725_v9, %v10321_v57  ;;  %v10396_v55 = vor.u32 %v11743_v10, %v10393_v33  ;;  %v10377_v20 = vld [vmem:[%s20486_s1 + $0x948] sm:$0xf0]  ;;  %v11755_v22 = vld [vmem:[%s20486_s1 + $0x9c4] sm:$0xf] }
 0x1a0   : > { %3854 = vmatpush.bf16.msra.mxu1 %v10340_v26  ;;  %v10313_v26 = vld [vmem:[%s20486_s1 + $0x8c8] sm:$0xf0]  ;;  %v3579_v44 = vpop.f32.mrf.mxu3  ;;  %v10380_v57 = vor.u32 %v11739_v43, %v10377_v20  ;;  %v11031_v20 = vld [vmem:[%s20487_s2 + $0x460] sm:$0xf] }
 0x1a1   : > { %3821 = vmatpush.bf16.msrb.mxu2 %v10100_v41  ;;  %v10460_v41 = vor.u32 %v11759_v62, %v10457_v34  ;;  %v10316_v37 = vor.u32 %v11723_v14, %v10313_v26  ;;  %v10441_v27 = vld [vmem:[%s20486_s1 + $0x9c8] sm:$0xf0]  ;;  %v10369_v62 = vld [vmem:[%s20486_s1 + $0x938] sm:$0xf0] }
 0x1a2   : > { %3834 = vmatpush.bf16.msrb.mxu3 %v10164_v49  ;;  %v11757_v49 = vld [vmem:[%s20486_s1 + $0x9d4] sm:$0xf]  ;;  %v10233_v9 = vld [vmem:[%s20486_s1 + $0x828] sm:$0xf0]  ;;  %v10444_v33 = vor.u32 %v11755_v22, %v10441_v27  ;;  %v10225_v14 = vld [vmem:[%s20486_s1 + $0x818] sm:$0xf0] }
 0x1a3   : > { %3842 = vmatpush.bf16.msra.mxu0 %v10268_v51  ;;  %v10452_v51 = vor.u32 %v11757_v49, %v10449_v30  ;;  %v10297_v10 = vld [vmem:[%s20486_s1 + $0x8a8] sm:$0xf0]  ;;  %v11733_v27 = vld [vmem:[%s20486_s1 + $0x914] sm:$0xf] }
 0x1a4   : > { %3855 = vmatpush.bf16.msra.mxu1 %v10332_v35  ;;  %v16108_v35 = vpop.f32.mrf.mxu0  ;;  %v10361_v49 = vld [vmem:[%s20486_s1 + $0x928] sm:$0xf0] }
 0x1a5   : > { %3822 = vmatpush.bf16.msrb.mxu2 %v10092_v2  ;;  %v10425_v44 = vld [vmem:[%s20486_s1 + $0x9a8] sm:$0xf0] }
 0x1a6   : > { %3835 = vmatpush.bf16.msrb.mxu3 %v10156_v38  ;;  %v10281_v43 = vld [vmem:[%s20486_s1 + $0x888] sm:$0xf0] }
 0x1a7   : > { %3843 = vmatpush.bf16.msra.mxu0 %v10260_v8  ;;  %v11737_v8 = vld [vmem:[%s20486_s1 + $0x934] sm:$0xf] }
 0x1a8   : > { %3823 = vmatmul.bf16.vlgmr.msrb.gmra.mxu2 %v14945_v13  ;;  %3856 = vmatpush.bf16.msra.mxu1 %v10324_v12  ;;  %v10241_v13 = vld [vmem:[%s20486_s1 + $0x838] sm:$0xf0]  ;;  %v11753_v12 = vld [vmem:[%s20486_s1 + $0x9b4] sm:$0xf]  ;;  %v16140_v23 = vpop.f32.mrf.mxu1  ;;  %v10372_v26 = vor.u32 %v11737_v8, %v10369_v62  ;;  %v10951_v62 = vld [vmem:[%s20487_s2 + $0x3c0] sm:$0xf] }
 0x1a9   : > { %3867 = vmatpush.bf16.msra.mxu2 %v10404_v18  ;;  %3836 = vmatmul.bf16.vlgmr.msrb.gmra.mxu3 %v15022_v54  ;;  %v10305_v54 = vld [vmem:[%s20486_s1 + $0x8b8] sm:$0xf0]  ;;  %v10244_v2 = vor.u32 %v11705_v25, %v10241_v13  ;;  %v11703_v18 = vld [vmem:[%s20486_s1 + $0x824] sm:$0xf]  ;;  %v10436_v52 = vor.u32 %v11753_v12, %v10433_v11 }
 0x1aa   : > { %3880 = vmatpush.bf16.msra.mxu3 %v10468_v63  ;;  %v10308_v38 = vor.u32 %v11721_v39, %v10305_v54  ;;  %v11719_v63 = vld [vmem:[%s20486_s1 + $0x8a4] sm:$0xf]  ;;  %v10236_v34 = vor.u32 %v11703_v18, %v10233_v9  ;;  %v10217_v39 = vld [vmem:[%s20486_s1 + $0x808] sm:$0xf0]  ;;  %v11749_v9 = vld [vmem:[%s20486_s1 + $0x994] sm:$0xf] }
 0x1ab   : > { %3844 = vmatpush.bf16.msra.mxu0 %v10252_v42  ;;  %v10300_v53 = vor.u32 %v11719_v63, %v10297_v10  ;;  %v11735_v42 = vld [vmem:[%s20486_s1 + $0x924] sm:$0xf] }
 0x1ac   : > { %3857 = vmatpush.bf16.msra.mxu1 %v10316_v37  ;;  %v11751_v37 = vld [vmem:[%s20486_s1 + $0x9a4] sm:$0xf]  ;;  %v3592_v25 = vpop.f32.mrf.mxu0 }
 0x1ad   : > { %3868 = vmatpush.bf16.msra.mxu2 %v10396_v55  ;;  %v11701_v55 = vld [vmem:[%s20486_s1 + $0x814] sm:$0xf]  ;;  %v11715_v54 = vld [vmem:[%s20486_s1 + $0x884] sm:$0xf]  ;;  %v10428_v22 = vor.u32 %v11751_v37, %v10425_v44 }
 0x1ae   : > { %3881 = vmatpush.bf16.msra.mxu3 %v10460_v41  ;;  %v11717_v41 = vld [vmem:[%s20486_s1 + $0x894] sm:$0xf]  ;;  %v10228_v30 = vor.u32 %v11701_v55, %v10225_v14  ;;  %v10284_v63 = vor.u32 %v11715_v54, %v10281_v43  ;;  %v11731_v11 = vld [vmem:[%s20486_s1 + $0x904] sm:$0xf]  ;;  %v3539_v14 = vadd.f32 %v15886_v48, %v15826_v31  ;;  %v10871_v31 = vld [vmem:[%s20487_s2 + $0x320] sm:$0xf] }
 0x1af   : > { %3845 = vmatpush.bf16.msra.mxu0 %v10244_v2  ;;  %v10292_v13 = vor.u32 %v11717_v41, %v10289_v46  ;;  %v11913_v2 = vld [vmem:[%s20487_s2 + $0x4ac] sm:$0xf0]  ;;  %v11747_v55 = vld [vmem:[%s20486_s1 + $0x984] sm:$0xf]  ;;  %v11033_v46 = vld [vmem:[%s20487_s2 + $0x4b0] sm:$0xf0] }
 0x1b0   : > { %3858 = vmatpush.bf16.msra.mxu1 %v10308_v38  ;;  %v10353_v38 = vld [vmem:[%s20486_s1 + $0x918] sm:$0xf0]  ;;  %v11032_v10 = vor.u32 %v11913_v2, %v11031_v20  ;;  %v11903_v41 = vld [vmem:[%s20487_s2 + $0x464] sm:$0xf]  ;;  %v11873_v48 = vld [vmem:[%s20487_s2 + $0x36c] sm:$0xf0]  ;;  %v3552_v44 = vadd.f32 %v15918_v47, %v3539_v14 }
 0x1b1   : > { %3869 = vmatpush.bf16.msra.mxu2 %v10388_v7  ;;  %v11699_v7 = vld [vmem:[%s20486_s1 + $0x804] sm:$0xf]  ;;  %v10356_v8 = vor.u32 %v11733_v27, %v10353_v38  ;;  %v11036_v37 = vor.u32 %v11903_v41, %v11033_v46  ;;  %v11833_v27 = vld [vmem:[%s20487_s2 + $0x22c] sm:$0xf0]  ;;  %v10633_v46 = vld [vmem:[%s20487_s2 + $0x190] sm:$0xf0] }
 0x1b2   : > { %3882 = vmatpush.bf16.msra.mxu3 %v10452_v51  ;;  %v10364_v51 = vor.u32 %v11735_v42, %v10361_v49  ;;  %v10220_v18 = vor.u32 %v11699_v7, %v10217_v39  ;;  %v11883_v25 = vld [vmem:[%s20487_s2 + $0x3c4] sm:$0xf]  ;;  %v10872_v7 = vor.u32 %v11873_v48, %v10871_v31  ;;  %v3565_v39 = vadd.f32 %v16001_v40, %v3552_v44  ;;  %v10873_v40 = vld [vmem:[%s20487_s2 + $0x370] sm:$0xf0]  ;;  %v11793_v14 = vld [vmem:[%s20487_s2 + $0xec] sm:$0xf0] }
 0x1b3   : > { %3846 = vmatpush.bf16.msra.mxu0 %v10236_v34  ;;  %v11893_v34 = vld [vmem:[%s20487_s2 + $0x40c] sm:$0xf0]  ;;  %v11803_v41 = vld [vmem:[%s20487_s2 + $0x144] sm:$0xf]  ;;  %v10471_v31 = vld [vmem:[%s20487_s2] sm:$0xf] }
 0x1b4   : > { %3859 = vmatpush.bf16.msra.mxu1 %v10300_v53  ;;  %v10345_v53 = vld [vmem:[%s20486_s1 + $0x908] sm:$0xf0]  ;;  %v3578_v20 = vadd.f32 %v16036_v17, %v3565_v39  ;;  %v11843_v17 = vld [vmem:[%s20487_s2 + $0x284] sm:$0xf]  ;;  %v11773_v48 = vld [vmem:[%s20487_s2 + $0x4c] sm:$0xf0] }
 0x1b5   : > { %3870 = vmatpush.bf16.msra.mxu2 %v10380_v57  ;;  %v10417_v57 = vld [vmem:[%s20486_s1 + $0x998] sm:$0xf0]  ;;  %v10348_v49 = vor.u32 %v11731_v11, %v10345_v53 }
 0x1b6   : > { %3883 = vmatpush.bf16.msra.mxu3 %v10444_v33  ;;  %v3605_v33 = vpop.f32.mrf.mxu1  ;;  %v10420_v12 = vor.u32 %v11749_v9, %v10417_v57  ;;  %v3616_v42 = vpop.f32.mrf.mxu2  ;;  %v11041_v44 = vld [vmem:[%s20487_s2 + $0x4b8] sm:$0xf0] }
 0x1b7   : > { %3847 = vmatpush.bf16.msra.mxu0 %v10228_v30  ;;  %v10631_v33 = vld [vmem:[%s20487_s2 + $0x140] sm:$0xf] }
 0x1b8   : > { %3860 = vmatpush.bf16.msra.mxu1 %v10292_v13  ;;  %v10953_v13 = vld [vmem:[%s20487_s2 + $0x410] sm:$0xf0] }
 0x1b9   : > { %3871 = vmatpush.bf16.msra.mxu2 %v10372_v26  ;;  %v10409_v26 = vld [vmem:[%s20486_s1 + $0x988] sm:$0xf0]  ;;  %v10956_v47 = vor.u32 %v11883_v25, %v10953_v13  ;;  %v11783_v13 = vld [vmem:[%s20487_s2 + $0xa4] sm:$0xf] }
 0x1ba   : > { %3884 = vmatpush.bf16.msra.mxu3 %v10436_v52  ;;  %v10952_v52 = vor.u32 %v11893_v34, %v10951_v62  ;;  %v10412_v30 = vor.u32 %v11747_v55, %v10409_v26  ;;  %v11823_v34 = vld [vmem:[%s20487_s2 + $0x1e4] sm:$0xf]  ;;  %v10551_v55 = vld [vmem:[%s20487_s2 + $0xa0] sm:$0xf] }
 0x1bb   : > { %3848 = vmatpush.bf16.msra.mxu0 %v10220_v18  ;;  %v3629_v54 = vpop.f32.mrf.mxu3  ;;  %v3591_v18 = vadd.f32 %v16108_v35, %v3578_v20  ;;  %v11813_v35 = vld [vmem:[%s20487_s2 + $0x18c] sm:$0xf0]  ;;  %v10961_v20 = vld [vmem:[%s20487_s2 + $0x418] sm:$0xf0] }
 0x1bc   : > { %3861 = vmatpush.bf16.msra.mxu1 %v10284_v63  ;;  %v10632_v11 = vor.u32 %v11813_v35, %v10631_v33  ;;  %v11824_v35 = vld [vmem:[%s20487_s2 + $0x1ec] sm:$0xf] }
 0x1bd   : > { %3872 = vmatpush.bf16.msra.mxu2 %v10364_v51  ;;  %v11863_v51 = vld [vmem:[%s20487_s2 + $0x324] sm:$0xf]  ;;  %v3604_v62 = vadd.f32 %v16140_v23, %v3591_v18 }
 0x1be   : > { %3885 = vmatpush.bf16.msra.mxu3 %v10428_v22  ;;  %3849 = vmatmul.bf16.vlgmr.msra.gmra.mxu0 %v15238_v45  ;;  %v10791_v45 = vld [vmem:[%s20487_s2 + $0x280] sm:$0xf]  ;;  %v3618_v2 = vpop.f32.mrf.mxu2  ;;  %v10876_v38 = vor.u32 %v11863_v51, %v10873_v40  ;;  %v3655_v9 = vpop.f32.mrf.mxu1 }
 0x1bf   : > { %5101 = vmatpush.bf16.msrb.mxu0 %v11032_v10  ;;  %3862 = vmatmul.bf16.vlgmr.msra.gmra.mxu1 %v15268_v24  ;;  %v11853_v24 = vld [vmem:[%s20487_s2 + $0x2cc] sm:$0xf0]  ;;  %v10711_v22 = vld [vmem:[%s20487_s2 + $0x1e0] sm:$0xf]  ;;  %v3617_v53 = vadd.f32 %v3616_v42, %v3604_v62  ;;  %v10552_v42 = vor.u32 %v11793_v14, %v10551_v55  ;;  %v11763_v2 = vld [vmem:[%s20487_s2 + $0x4] sm:$0xf] }
 0x1c0   : > { %v10792_v43 = vor.u32 %v11853_v24, %v10791_v45  ;;  %v10712_v57 = vor.u32 %v11833_v27, %v10711_v22  ;;  %v10472_v45 = vor.u32 %v11773_v48, %v10471_v31  ;;  %v10473_v22 = vld [vmem:[%s20487_s2 + $0x50] sm:$0xf0]  ;;  %v10641_v55 = vld [vmem:[%s20487_s2 + $0x198] sm:$0xf0] }
 0x1c1   : > { %3873 = vmatpush.bf16.msra.mxu2 %v10356_v8  ;;  %v10476_v18 = vor.u32 %v11763_v2, %v10473_v22  ;;  %v10481_v31 = vld [vmem:[%s20487_s2 + $0x58] sm:$0xf0] }
 0x1c2   : > { %3886 = vmatpush.bf16.msra.mxu3 %v10420_v12  ;;  %v10713_v12 = vld [vmem:[%s20487_s2 + $0x230] sm:$0xf0]  ;;  %v11201_v22 = vld [vmem:[%s20487_s2 + $0x5f8] sm:$0xf0] }
 0x1c3   : > { %5102 = vmatpush.bf16.msrb.mxu0 %v10952_v52  ;;  %v3631_v10 = vpop.f32.mrf.mxu3  ;;  %v10716_v23 = vor.u32 %v11823_v34, %v10713_v12 }
 0x1c4   : > { %v10801_v10 = vld [vmem:[%s20487_s2 + $0x2d8] sm:$0xf0] }
 0x1c5   : > { %3874 = vmatpush.bf16.msra.mxu2 %v10348_v49  ;;  %v3630_v49 = vadd.f32 %v3629_v54, %v3617_v53  ;;  %v11804_v53 = vld [vmem:[%s20487_s2 + $0x14c] sm:$0xf] }
 0x1c6   : > { %3887 = vmatpush.bf16.msra.mxu3 %v10412_v30  ;;  %v3657_v52 = vpop.f32.mrf.mxu1  ;;  %v10636_v30 = vor.u32 %v11803_v41, %v10633_v46  ;;  %v10561_v41 = vld [vmem:[%s20487_s2 + $0xf8] sm:$0xf0] }
 0x1c7   : > { %5103 = vmatpush.bf16.msrb.mxu0 %v10872_v7  ;;  %v10553_v7 = vld [vmem:[%s20487_s2 + $0xf0] sm:$0xf0]  ;;  %v3893_v24 = vmax.f32 %v3630_v49, 0.0  ;;  %v11764_v49 = vld [vmem:[%s20487_s2 + $0xc] sm:$0xf] }
 0x1c8   : > { %3875 = vmatmul.bf16.vlgmr.msra.gmra.mxu2 %v15313_v28  ;;  %v3642_v28 = vpop.f32.mrf.mxu0  ;;  %v10556_v40 = vor.u32 %v11783_v13, %v10553_v7 }
 0x1c9   : > { %5127 = vmatpush.bf16.msrb.mxu2 %v11036_v37  ;;  %3888 = vmatmul.bf16.vlgmr.msra.gmra.mxu3 %v15341_v36  ;;  %v10793_v36 = vld [vmem:[%s20487_s2 + $0x2d0] sm:$0xf0]  ;;  %v3656_v63 = vadd.f32 %v3655_v9, %v3642_v28  ;;  %v11904_v37 = vld [vmem:[%s20487_s2 + $0x46c] sm:$0xf]  ;;  %v16321_v27 = vpack.c.bf16 %v3893_v24, %v3893_v24 }
 0x1ca   : > { %v10796_v8 = vor.u32 %v11843_v17, %v10793_v36  ;;  %v11864_v28 = vld [vmem:[%s20487_s2 + $0x32c] sm:$0xf]  ;;  %v10881_v17 = vld [vmem:[%s20487_s2 + $0x378] sm:$0xf0] }
 0x1cb   : > { %5104 = vmatpush.bf16.msrb.mxu0 %v10792_v43  ;;  %v3668_v25 = vpop.f32.mrf.mxu2  ;;  %v11884_v43 = vld [vmem:[%s20487_s2 + $0x3cc] sm:$0xf] }
 0x1cc   : > { %v3669_v39 = vadd.f32 %v3668_v25, %v3656_v63  ;;  %v3681_v54 = vpop.f32.mrf.mxu3  ;;  %v11844_v63 = vld [vmem:[%s20487_s2 + $0x28c] sm:$0xf] }
 0x1cd   : > { %5128 = vmatpush.bf16.msrb.mxu2 %v10956_v47  ;;  %v11044_v47 = vor.u32 %v11904_v37, %v11041_v44  ;;  %v10804_v33 = vor.u32 %v11844_v63, %v10801_v10  ;;  %v10484_v44 = vor.u32 %v11764_v49, %v10481_v31  ;;  %v11111_v63 = vld [vmem:[%s20487_s2 + $0x500] sm:$0xf]  ;;  %v11933_v10 = vld [vmem:[%s20487_s2 + $0x54c] sm:$0xf0]  ;;  %v10959_v31 = vld [vmem:[%s20487_s2 + $0x3c8] sm:$0xf] }
 0x1ce   : > { %v3682_v51 = vadd.f32 %v3681_v54, %v3669_v39 }
 0x1cf   : > { %5105 = vmatpush.bf16.msrb.mxu0 %v10712_v57  ;;  %v10884_v57 = vor.u32 %v11864_v28, %v10881_v17 }
 0x1d0   : > { %v3644_v26 = vpop.f32.mrf.mxu0 }
 0x1d1   : > { %5129 = vmatpush.bf16.msrb.mxu2 %v10876_v38  ;;  %v10964_v38 = vor.u32 %v11884_v43, %v10961_v20  ;;  %v11784_v26 = vld [vmem:[%s20487_s2 + $0xac] sm:$0xf]  ;;  %v11953_v43 = vld [vmem:[%s20487_s2 + $0x5ec] sm:$0xf0] }
 0x1d2   : > { %v11944_v20 = vld [vmem:[%s20487_s2 + $0x5ac] sm:$0xf] }
 0x1d3   : > { %5106 = vmatpush.bf16.msrb.mxu0 %v10632_v11  ;;  %v3670_v36 = vpop.f32.mrf.mxu2  ;;  %v11204_v17 = vor.u32 %v11944_v20, %v11201_v22  ;;  %v10879_v20 = vld [vmem:[%s20487_s2 + $0x328] sm:$0xf]  ;;  %v11874_v22 = vld [vmem:[%s20487_s2 + $0x374] sm:$0xf0] }
 0x1d4   : > { %v3683_v9 = vpop.f32.mrf.mxu3 }
 0x1d5   : > { %5130 = vmatpush.bf16.msrb.mxu2 %v10796_v8  ;;  %v10721_v8 = vld [vmem:[%s20487_s2 + $0x238] sm:$0xf0] }
 0x1d6   : > { %v10724_v11 = vor.u32 %v11824_v35, %v10721_v8  ;;  %v11112_v8 = vor.u32 %v11933_v10, %v11111_v63  ;;  %v10880_v63 = vor.u32 %v11874_v22, %v10879_v20  ;;  %v11119_v20 = vld [vmem:[%s20487_s2 + $0x508] sm:$0xf] }
 0x1d7   : > { %5107 = vmatpush.bf16.msrb.mxu0 %v10552_v42  ;;  %v10564_v42 = vor.u32 %v11784_v26, %v10561_v41  ;;  %v11049_v41 = vld [vmem:[%s20487_s2 + $0x4c0] sm:$0xf0] }
 0x1d9   : > { %5131 = vmatpush.bf16.msrb.mxu2 %v10716_v23  ;;  %v10644_v23 = vor.u32 %v11804_v53, %v10641_v55  ;;  %v11039_v55 = vld [vmem:[%s20487_s2 + $0x468] sm:$0xf] }
 0x1db   : > { %5108 = vmatpush.bf16.msrb.mxu0 %v10472_v45  ;;  %v3694_v62 = vpop.f32.mrf.mxu0 }
 0x1dc   : > { %v3695_v34 = vadd.f32 %v3694_v62, %v3682_v51  ;;  %v3707_v12 = vpop.f32.mrf.mxu1  ;;  %v11121_v62 = vld [vmem:[%s20487_s2 + $0x558] sm:$0xf0] }
 0x1dd   : > { %5132 = vmatpush.bf16.msrb.mxu2 %v10636_v30 }
 0x1de   : > { %5109 = vmatmul.bf16.vlgmr.msrb.gmra.mxu0 %v16321_v27  ;;  %v3708_v14 = vadd.f32 %v3707_v12, %v3695_v34  ;;  %v11925_v34 = vld [vmem:[%s20487_s2 + $0x514] sm:$0xf]  ;;  %v11129_v12 = vld [vmem:[%s20487_s2 + $0x560] sm:$0xf0] }
 0x1df   : > { %5179 = vmatpush.bf16.msra.mxu0 %v11044_v47  ;;  %v11132_v53 = vor.u32 %v11925_v34, %v11129_v12 }
 0x1e1   : > { %5133 = vmatpush.bf16.msrb.mxu2 %v10556_v40  ;;  %v11191_v40 = vld [vmem:[%s20487_s2 + $0x5a0] sm:$0xf] }
 0x1e2   : > { %v11192_v2 = vor.u32 %v11953_v43, %v11191_v40  ;;  %v11943_v40 = vld [vmem:[%s20487_s2 + $0x5a4] sm:$0xf]  ;;  %v11193_v43 = vld [vmem:[%s20487_s2 + $0x5f0] sm:$0xf0] }
 0x1e3   : > { %5180 = vmatpush.bf16.msra.mxu0 %v10964_v38  ;;  %v3696_v46 = vpop.f32.mrf.mxu0  ;;  %v11945_v38 = vld [vmem:[%s20487_s2 + $0x5b4] sm:$0xf] }
 0x1e4   : > { %v3709_v52 = vpop.f32.mrf.mxu1  ;;  %5120 = vmatpush.bf16.msrb.mxu1 %v11192_v2  ;;  %v11906_v46 = vld [vmem:[%s20487_s2 + $0x47c] sm:$0xf]  ;;  %v11196_v2 = vor.u32 %v11943_v40, %v11193_v43  ;;  %v10737_v43 = vld [vmem:[%s20487_s2 + $0x248] sm:$0xf0] }
 0x1e5   : > { %5134 = vmatpush.bf16.msrb.mxu2 %v10476_v18  ;;  %v11209_v18 = vld [vmem:[%s20487_s2 + $0x600] sm:$0xf0]  ;;  %v11057_v52 = vld [vmem:[%s20487_s2 + $0x4c8] sm:$0xf0] }
 0x1e6   : > { %v11212_v36 = vor.u32 %v11945_v38, %v11209_v18  ;;  %v11060_v49 = vor.u32 %v11906_v46, %v11057_v52  ;;  %v11865_v38 = vld [vmem:[%s20487_s2 + $0x334] sm:$0xf]  ;;  %v10889_v18 = vld [vmem:[%s20487_s2 + $0x380] sm:$0xf0]  ;;  %5146 = vmatpush.bf16.msrb.mxu3 %v11196_v2  ;;  %v11846_v46 = vld [vmem:[%s20487_s2 + $0x29c] sm:$0xf] }
 0x1e7   : > { %5181 = vmatpush.bf16.msra.mxu0 %v10884_v57  ;;  %v10892_v10 = vor.u32 %v11865_v38, %v10889_v18  ;;  %v10817_v52 = vld [vmem:[%s20487_s2 + $0x2e8] sm:$0xf0]  ;;  %v11934_v2 = vld [vmem:[%s20487_s2 + $0x554] sm:$0xf0] }
 0x1e8   : > { %5135 = vmatmul.bf16.vlgmr.msrb.gmra.mxu2 %v16321_v27  ;;  %5121 = vmatpush.bf16.msrb.mxu1 %v11112_v8  ;;  %v11120_v18 = vor.u32 %v11934_v2, %v11119_v20 }
 0x1e9   : > { %5198 = vmatpush.bf16.msra.mxu2 %v11204_v17  ;;  %v11866_v17 = vld [vmem:[%s20487_s2 + $0x33c] sm:$0xf] }
 0x1eb   : > { %5182 = vmatpush.bf16.msra.mxu0 %v10804_v33  ;;  %v3720_v48 = vpop.f32.mrf.mxu2  ;;  %v11924_v33 = vld [vmem:[%s20487_s2 + $0x50c] sm:$0xf] }
 0x1ec   : > { %v3721_v30 = vadd.f32 %v3720_v48, %v3708_v14  ;;  %v3733_v37 = vpop.f32.mrf.mxu3  ;;  %v11914_v14 = vld [vmem:[%s20487_s2 + $0x4b4] sm:$0xf0] }
 0x1ed   : > { %v11040_v26 = vor.u32 %v11914_v14, %v11039_v55  ;;  %v11894_v48 = vld [vmem:[%s20487_s2 + $0x414] sm:$0xf0]  ;;  %v10809_v14 = vld [vmem:[%s20487_s2 + $0x2e0] sm:$0xf0] }
 0x1ee   : > { %v16361_v25 = vadd.f32 %v3733_v37, %v3721_v30  ;;  %v11885_v30 = vld [vmem:[%s20487_s2 + $0x3d4] sm:$0xf]  ;;  %v10960_v37 = vor.u32 %v11894_v48, %v10959_v31  ;;  %v11854_v55 = vld [vmem:[%s20487_s2 + $0x2d4] sm:$0xf0]  ;;  %v10719_v31 = vld [vmem:[%s20487_s2 + $0x1e8] sm:$0xf] }
 0x1ef   : > { %5183 = vmatpush.bf16.msra.mxu0 %v10724_v11  ;;  %v11124_v11 = vor.u32 %v11924_v33, %v11121_v62  ;;  %5153 = vmatpush.bf16.msra.mxu1 %v11040_v26  ;;  %v11834_v48 = vld [vmem:[%s20487_s2 + $0x234] sm:$0xf0] }
 0x1f1   : > { %5199 = vmatpush.bf16.msra.mxu2 %v11124_v11  ;;  %v11923_v11 = vld [vmem:[%s20487_s2 + $0x504] sm:$0xf] }
 0x1f3   : > { %5184 = vmatpush.bf16.msra.mxu0 %v10644_v23  ;;  %v3722_v13 = vpop.f32.mrf.mxu2  ;;  %v11905_v23 = vld [vmem:[%s20487_s2 + $0x474] sm:$0xf]  ;;  %5154 = vmatpush.bf16.msra.mxu1 %v10960_v37 }
 0x1f4   : > { %v3735_v7 = vpop.f32.mrf.mxu3  ;;  %v11886_v13 = vld [vmem:[%s20487_s2 + $0x3dc] sm:$0xf] }
 0x1f5   : > { %v10977_v7 = vld [vmem:[%s20487_s2 + $0x428] sm:$0xf0] }
 0x1f7   : > { %5185 = vmatpush.bf16.msra.mxu0 %v10564_v42  ;;  %v11052_v42 = vor.u32 %v11905_v23, %v11049_v41  ;;  %5155 = vmatpush.bf16.msra.mxu1 %v10880_v63  ;;  %v10649_v63 = vld [vmem:[%s20487_s2 + $0x1a0] sm:$0xf0] }
 0x1f9   : > { %5231 = vmatpush.bf16.msrb.mxu2 %v11052_v42  ;;  %v11199_v42 = vld [vmem:[%s20487_s2 + $0x5a8] sm:$0xf] }
 0x1fb   : > { %5186 = vmatpush.bf16.msra.mxu0 %v10484_v44  ;;  %v16364_v39 = vpop.f32.mrf.mxu0  ;;  %v10969_v44 = vld [vmem:[%s20487_s2 + $0x420] sm:$0xf0] }
 0x1fc   : > { %v16366_v54 = vpop.f32.mrf.mxu1  ;;  %v3747_v8 = vadd.f32 %v16364_v39, %v16361_v25  ;;  %v10799_v25 = vld [vmem:[%s20487_s2 + $0x288] sm:$0xf] }
 0x1fd   : > { %v10800_v26 = vor.u32 %v11854_v55, %v10799_v25  ;;  %v10569_v25 = vld [vmem:[%s20487_s2 + $0x100] sm:$0xf0]  ;;  %v10577_v55 = vld [vmem:[%s20487_s2 + $0x108] sm:$0xf0] }
 0x1fe   : > { %5187 = vmatmul.bf16.vlgmr.msra.gmra.mxu0 %v16321_v27  ;;  %v3760_v12 = vadd.f32 %v16366_v54, %v3747_v8  ;;  %v11845_v54 = vld [vmem:[%s20487_s2 + $0x294] sm:$0xf] }
 0x1ff   : > { %5250 = vmatpush.bf16.msrb.mxu0 %v11212_v36  ;;  %v10897_v36 = vld [vmem:[%s20487_s2 + $0x388] sm:$0xf0]  ;;  %v10812_v41 = vor.u32 %v11845_v54, %v10809_v14  ;;  %5156 = vmatpush.bf16.msra.mxu1 %v10800_v26  ;;  %v10479_v26 = vld [vmem:[%s20487_s2 + $0x8] sm:$0xf] }
 0x200   : > { %v10900_v33 = vor.u32 %v11866_v17, %v10897_v36  ;;  %v11814_v17 = vld [vmem:[%s20487_s2 + $0x194] sm:$0xf0]  ;;  %v11805_v36 = vld [vmem:[%s20487_s2 + $0x154] sm:$0xf] }
 0x201   : > { %v10652_v8 = vor.u32 %v11805_v36, %v10649_v63 }
 0x203   : > { %v3748_v45 = vpop.f32.mrf.mxu0  ;;  %5251 = vmatpush.bf16.msrb.mxu0 %v11132_v53  ;;  %v11113_v53 = vld [vmem:[%s20487_s2 + $0x550] sm:$0xf0] }
 0x204   : > { %v3761_v24 = vpop.f32.mrf.mxu1  ;;  %v10972_v45 = vor.u32 %v11885_v30, %v10969_v44  ;;  %v11116_v39 = vor.u32 %v11923_v11, %v11113_v53  ;;  %v10720_v44 = vor.u32 %v11834_v48, %v10719_v31  ;;  %v11794_v11 = vld [vmem:[%s20487_s2 + $0xf4] sm:$0xf0]  ;;  %v11785_v53 = vld [vmem:[%s20487_s2 + $0xb4] sm:$0xf]  ;;  %v11766_v31 = vld [vmem:[%s20487_s2 + $0x1c] sm:$0xf] }
 0x205   : > { %v10980_v24 = vor.u32 %v11886_v13, %v10977_v7  ;;  %v11825_v13 = vld [vmem:[%s20487_s2 + $0x1f4] sm:$0xf]  ;;  %v10729_v7 = vld [vmem:[%s20487_s2 + $0x240] sm:$0xf0]  ;;  %v10497_v48 = vld [vmem:[%s20487_s2 + $0x68] sm:$0xf0] }
 0x206   : > { %5232 = vmatpush.bf16.msrb.mxu2 %v10972_v45  ;;  %5147 = vmatpush.bf16.msrb.mxu3 %v11116_v39  ;;  %v11826_v45 = vld [vmem:[%s20487_s2 + $0x1fc] sm:$0xf]  ;;  %v10732_v40 = vor.u32 %v11825_v13, %v10729_v7 }
 0x207   : > { %5283 = vmatpush.bf16.msra.mxu0 %v11060_v49  ;;  %v10820_v49 = vor.u32 %v11846_v46, %v10817_v52  ;;  %v10740_v38 = vor.u32 %v11826_v45, %v10737_v43  ;;  %5157 = vmatpush.bf16.msra.mxu1 %v10720_v44  ;;  %v11786_v39 = vld [vmem:[%s20487_s2 + $0xbc] sm:$0xf]  ;;  %v11774_v52 = vld [vmem:[%s20487_s2 + $0x54] sm:$0xf0]  ;;  %v10500_v44 = vor.u32 %v11766_v31, %v10497_v48  ;;  %v10807_v31 = vld [vmem:[%s20487_s2 + $0x290] sm:$0xf] }
 0x208   : > { %v10580_v46 = vor.u32 %v11786_v39, %v10577_v55  ;;  %v11935_v39 = vld [vmem:[%s20487_s2 + $0x55c] sm:$0xf0]  ;;  %v11926_v55 = vld [vmem:[%s20487_s2 + $0x51c] sm:$0xf] }
 0x209   : > { %v11855_v48 = vld [vmem:[%s20487_s2 + $0x2dc] sm:$0xf0] }
 0x20a   : > { %5233 = vmatpush.bf16.msrb.mxu2 %v10892_v10  ;;  %v11806_v10 = vld [vmem:[%s20487_s2 + $0x15c] sm:$0xf] }
 0x20b   : > { %v16368_v47 = vpop.f32.mrf.mxu2  ;;  %5284 = vmatpush.bf16.msra.mxu0 %v10980_v24 }
 0x20c   : > { %v16370_v51 = vpop.f32.mrf.mxu3  ;;  %v3773_v23 = vadd.f32 %v16368_v47, %v3760_v12  ;;  %v11954_v47 = vld [vmem:[%s20487_s2 + $0x5f4] sm:$0xf0] }
 0x20d   : > { %v11200_v37 = vor.u32 %v11954_v47, %v11199_v42  ;;  %v11765_v42 = vld [vmem:[%s20487_s2 + $0x14] sm:$0xf] }
 0x20e   : > { %5234 = vmatpush.bf16.msrb.mxu2 %v10812_v41  ;;  %v3786_v22 = vadd.f32 %v16370_v51, %v3773_v23  ;;  %v10572_v23 = vor.u32 %v11785_v53, %v10569_v25  ;;  %v11127_v25 = vld [vmem:[%s20487_s2 + $0x510] sm:$0xf] }
 0x20f   : > { %5285 = vmatpush.bf16.msra.mxu0 %v10900_v33  ;;  %5172 = vmatpush.bf16.msra.mxu3 %v11200_v37  ;;  %v10657_v33 = vld [vmem:[%s20487_s2 + $0x1a8] sm:$0xf0] }
 0x210   : > { %v10660_v12 = vor.u32 %v11806_v10, %v10657_v33  ;;  %v10967_v33 = vld [vmem:[%s20487_s2 + $0x3d0] sm:$0xf] }
 0x212   : > { %5235 = vmatpush.bf16.msrb.mxu2 %v10732_v40 }
 0x213   : > { %v3774_v28 = vpop.f32.mrf.mxu2  ;;  %5286 = vmatpush.bf16.msra.mxu0 %v10820_v49  ;;  %5173 = vmatpush.bf16.msra.mxu3 %v11120_v18  ;;  %v11955_v18 = vld [vmem:[%s20487_s2 + $0x5fc] sm:$0xf0] }
 0x214   : > { %v3787_v9 = vpop.f32.mrf.mxu3 }
 0x216   : > { %5236 = vmatpush.bf16.msrb.mxu2 %v10652_v8  ;;  %v11895_v8 = vld [vmem:[%s20487_s2 + $0x41c] sm:$0xf0] }
 0x217   : > { %5287 = vmatpush.bf16.msra.mxu0 %v10740_v38  ;;  %v11915_v38 = vld [vmem:[%s20487_s2 + $0x4bc] sm:$0xf0] }
 0x21a   : > { %5237 = vmatpush.bf16.msrb.mxu2 %v10572_v23  ;;  %v11927_v23 = vld [vmem:[%s20487_s2 + $0x524] sm:$0xf] }
 0x21b   : > { %v16390_v57 = vpop.f32.mrf.mxu0  ;;  %5288 = vmatpush.bf16.msra.mxu0 %v10660_v12 }
 0x21c   : > { %v16401_v35 = vpop.f32.mrf.mxu1 }
 0x21f   : > { %5289 = vmatpush.bf16.msra.mxu0 %v10580_v46  ;;  %v10887_v46 = vld [vmem:[%s20487_s2 + $0x330] sm:$0xf] }
 0x223   : > { %v3800_v28 = vpop.f32.mrf.mxu0  ;;  %5290 = vmatpush.bf16.msra.mxu0 %v10500_v44  ;;  %v10727_v44 = vld [vmem:[%s20487_s2 + $0x1f0] sm:$0xf] }
 0x224   : > { %v3813_v9 = vpop.f32.mrf.mxu1  ;;  %v10639_v28 = vld [vmem:[%s20487_s2 + $0x148] sm:$0xf] }
 0x225   : > { %v3799_v9 = vadd.f32 %v16390_v57, %v3786_v22  ;;  %v10640_v51 = vor.u32 %v11814_v17, %v10639_v28  ;;  %v10559_v57 = vld [vmem:[%s20487_s2 + $0xa8] sm:$0xf]  ;;  %v11047_v22 = vld [vmem:[%s20487_s2 + $0x470] sm:$0xf]  ;;  %v11946_v28 = vld [vmem:[%s20487_s2 + $0x5bc] sm:$0xf] }
 0x226   : > { %v10560_v14 = vor.u32 %v11794_v11, %v10559_v57  ;;  %v11217_v17 = vld [vmem:[%s20487_s2 + $0x608] sm:$0xf0]  ;;  %v11048_v63 = vor.u32 %v11915_v38, %v11047_v22  ;;  %v10647_v22 = vld [vmem:[%s20487_s2 + $0x150] sm:$0xf]  ;;  %v11815_v38 = vld [vmem:[%s20487_s2 + $0x19c] sm:$0xf0] }
 0x227   : > { %v3812_v54 = vadd.f32 %v16401_v35, %v3799_v9  ;;  %5158 = vmatpush.bf16.msra.mxu1 %v10640_v51  ;;  %v10489_v35 = vld [vmem:[%s20487_s2 + $0x60] sm:$0xf0]  ;;  %v11225_v51 = vld [vmem:[%s20487_s2 + $0x610] sm:$0xf0]  ;;  %v11220_v11 = vor.u32 %v11946_v28, %v11217_v17  ;;  %v10975_v28 = vld [vmem:[%s20487_s2 + $0x3d8] sm:$0xf] }
 0x228   : > { %v10492_v37 = vor.u32 %v11765_v42, %v10489_v35  ;;  %v11947_v9 = vld [vmem:[%s20487_s2 + $0x5c4] sm:$0xf]  ;;  %v11128_v42 = vor.u32 %v11935_v39, %v11127_v25  ;;  %v11896_v17 = vld [vmem:[%s20487_s2 + $0x424] sm:$0xf0]  ;;  %v10895_v39 = vld [vmem:[%s20487_s2 + $0x338] sm:$0xf] }
 0x229   : > { %v11228_v53 = vor.u32 %v11947_v9, %v11225_v51  ;;  %v10985_v51 = vld [vmem:[%s20487_s2 + $0x430] sm:$0xf0] }
 0x22a   : > { %5238 = vmatpush.bf16.msrb.mxu2 %v10492_v37  ;;  %v10808_v37 = vor.u32 %v11855_v48, %v10807_v31 }
 0x22b   : > { %v16474_v62 = vpop.f32.mrf.mxu2  ;;  %5159 = vmatpush.bf16.msra.mxu1 %v10560_v14  ;;  %v11137_v14 = vld [vmem:[%s20487_s2 + $0x568] sm:$0xf0] }
 0x22c   : > { %v16476_v34 = vpop.f32.mrf.mxu3  ;;  %v3825_v49 = vadd.f32 %v16474_v62, %v3812_v54  ;;  %v11140_v35 = vor.u32 %v11926_v55, %v11137_v14  ;;  %v11876_v55 = vld [vmem:[%s20487_s2 + $0x384] sm:$0xf0] }
 0x22e   : > { %v3838_v13 = vadd.f32 %v16476_v34, %v3825_v49  ;;  %v11207_v34 = vld [vmem:[%s20487_s2 + $0x5b0] sm:$0xf] }
 0x22f   : > { %v11208_v12 = vor.u32 %v11955_v18, %v11207_v34 }
 0x233   : > { %v3826_v30 = vpop.f32.mrf.mxu2 }
 0x234   : > { %v3839_v24 = vpop.f32.mrf.mxu3  ;;  %v10480_v30 = vor.u32 %v11774_v52, %v10479_v26  ;;  %v11145_v26 = vld [vmem:[%s20487_s2 + $0x570] sm:$0xf0]  ;;  %v11875_v52 = vld [vmem:[%s20487_s2 + $0x37c] sm:$0xf0] }
 0x235   : > { %v11148_v49 = vor.u32 %v11927_v23, %v11145_v26  ;;  %v10905_v23 = vld [vmem:[%s20487_s2 + $0x390] sm:$0xf0]  ;;  %v11868_v26 = vld [vmem:[%s20487_s2 + $0x34c] sm:$0xf] }
 0x236   : > { %5160 = vmatpush.bf16.msra.mxu1 %v10480_v30 }
 0x23b   : > { %v3850_v41 = vpop.f32.mrf.mxu0 }
 0x23c   : > { %v3863_v47 = vpop.f32.mrf.mxu1  ;;  %v3851_v7 = vadd.f32 %v3850_v41, %v3838_v13  ;;  %v10968_v41 = vor.u32 %v11895_v8, %v10967_v33  ;;  %v11835_v13 = vld [vmem:[%s20487_s2 + $0x23c] sm:$0xf0]  ;;  %v10993_v33 = vld [vmem:[%s20487_s2 + $0x438] sm:$0xf0]  ;;  %v10648_v8 = vor.u32 %v11815_v38, %v10647_v22  ;;  %v10735_v22 = vld [vmem:[%s20487_s2 + $0x1f8] sm:$0xf] }
 0x23d   : > { %v11836_v38 = vld [vmem:[%s20487_s2 + $0x244] sm:$0xf0] }
 0x23e   : > { %v3864_v24 = vadd.f32 %v3863_v47, %v3851_v7  ;;  %v10888_v47 = vor.u32 %v11875_v52, %v10887_v46  ;;  %v11055_v7 = vld [vmem:[%s20487_s2 + $0x478] sm:$0xf]  ;;  %v10487_v52 = vld [vmem:[%s20487_s2 + $0x10] sm:$0xf] }
 0x243   : > { %v3852_v62 = vpop.f32.mrf.mxu0 }
 0x244   : > { %v3865_v45 = vpop.f32.mrf.mxu1  ;;  %v11916_v62 = vld [vmem:[%s20487_s2 + $0x4c4] sm:$0xf0] }
 0x245   : > { %v11907_v45 = vld [vmem:[%s20487_s2 + $0x484] sm:$0xf] }
 0x24b   : > { %v3876_v40 = vpop.f32.mrf.mxu2 }
 0x24c   : > { %v3877_v43 = vadd.f32 %v3876_v40, %v3864_v24  ;;  %v3889_v20 = vpop.f32.mrf.mxu3  ;;  %v11065_v24 = vld [vmem:[%s20487_s2 + $0x4d0] sm:$0xf0]  ;;  %v11908_v40 = vld [vmem:[%s20487_s2 + $0x48c] sm:$0xf] }
 0x24d   : > { %v11068_v34 = vor.u32 %v11907_v45, %v11065_v24  ;;  %v10833_v45 = vld [vmem:[%s20487_s2 + $0x2f8] sm:$0xf0] }
 0x24e   : > { %v3890_v2 = vadd.f32 %v3889_v20, %v3877_v43  ;;  %v11073_v43 = vld [vmem:[%s20487_s2 + $0x4d8] sm:$0xf0]  ;;  %v10728_v20 = vor.u32 %v11835_v13, %v10727_v44  ;;  %v11215_v44 = vld [vmem:[%s20487_s2 + $0x5b8] sm:$0xf]  ;;  %v11956_v13 = vld [vmem:[%s20487_s2 + $0x604] sm:$0xf0] }
 0x24f   : > { %v11076_v18 = vor.u32 %v11908_v40, %v11073_v43  ;;  %v11216_v43 = vor.u32 %v11956_v13, %v11215_v44  ;;  %v10593_v44 = vld [vmem:[%s20487_s2 + $0x118] sm:$0xf0] }
 0x250   : > { %v3894_v36 = vmax.f32 %v3890_v2, 0.0  ;;  %v11056_v2 = vor.u32 %v11916_v62, %v11055_v7  ;;  %v10825_v7 = vld [vmem:[%s20487_s2 + $0x2f0] sm:$0xf0]  ;;  %v11848_v62 = vld [vmem:[%s20487_s2 + $0x2ac] sm:$0xf] }
 0x252   : > { %v16617_v10 = vpack.c.bf16 %v3894_v36, %v3894_v36  ;;  %v11887_v36 = vld [vmem:[%s20487_s2 + $0x3e4] sm:$0xf] }
 0x253   : > { %v3878_v57 = vpop.f32.mrf.mxu2 }
 0x254   : > { %v3891_v54 = vpop.f32.mrf.mxu3  ;;  %11269 = vmatmul.msk.bf16.vlgmr.msrb.gmra.mxu1 %vm5097_vm2, %v16617_v10  ;;  %11270 = vmatmul.msk.bf16.vlgmr.msrb.gmra.mxu3 %vm5097_vm2, %v16617_v10  ;;  %v10567_v57 = vld [vmem:[%s20487_s2 + $0xb0] sm:$0xf] }
 0x255   : > { %11272 = vmatmul.msk.bf16.vlgmr.msra.gmra.mxu2 %vm5097_vm2, %v16617_v10  ;;  %5205 = vmatpush.bf16.msrb.mxu3 %v11048_v63  ;;  %v11888_v63 = vld [vmem:[%s20487_s2 + $0x3ec] sm:$0xf]  ;;  %v11867_v54 = vld [vmem:[%s20487_s2 + $0x344] sm:$0xf] }
 0x256   : > { %11274 = vmatmul.msk.bf16.vlgmr.msrb.gmra.mxu0 %vm5097_vm2, %v16617_v10  ;;  %5224 = vmatpush.bf16.msrb.mxu1 %v11208_v12  ;;  %v10976_v12 = vor.u32 %v11896_v17, %v10975_v28  ;;  %v10996_v25 = vor.u32 %v11888_v63, %v10993_v33  ;;  %v10908_v31 = vor.u32 %v11867_v54, %v10905_v23  ;;  %v10745_v28 = vld [vmem:[%s20487_s2 + $0x250] sm:$0xf0]  ;;  %v11828_v17 = vld [vmem:[%s20487_s2 + $0x20c] sm:$0xf]  ;;  %v11063_v33 = vld [vmem:[%s20487_s2 + $0x480] sm:$0xf] }
 0x257   : > { %5302 = vmatpush.bf16.msra.mxu2 %v11220_v11  ;;  %5354 = vmatpush.bf16.msrb.mxu0 %v11228_v53  ;;  %v11795_v11 = vld [vmem:[%s20487_s2 + $0xfc] sm:$0xf0]  ;;  %v10988_v53 = vor.u32 %v11887_v36, %v10985_v51  ;;  %v10753_v36 = vld [vmem:[%s20487_s2 + $0x258] sm:$0xf0]  ;;  %v11936_v51 = vld [vmem:[%s20487_s2 + $0x564] sm:$0xf0]  ;;  %v10736_v63 = vor.u32 %v11836_v38, %v10735_v22 }
 0x258   : > { %v10568_v46 = vor.u32 %v11795_v11, %v10567_v57  ;;  %v10756_v57 = vor.u32 %v11828_v17, %v10753_v36  ;;  %v10655_v11 = vld [vmem:[%s20487_s2 + $0x158] sm:$0xf]  ;;  %v11808_v54 = vld [vmem:[%s20487_s2 + $0x16c] sm:$0xf]  ;;  %v10673_v23 = vld [vmem:[%s20487_s2 + $0x1b8] sm:$0xf0] }
 0x259   : > { %5206 = vmatpush.bf16.msrb.mxu3 %v10968_v41  ;;  %v10913_v41 = vld [vmem:[%s20487_s2 + $0x398] sm:$0xf0]  ;;  %v11767_v22 = vld [vmem:[%s20487_s2 + $0x24] sm:$0xf]  ;;  %v10505_v38 = vld [vmem:[%s20487_s2 + $0x70] sm:$0xf0] }
 0x25a   : > { %5225 = vmatpush.bf16.msrb.mxu1 %v11128_v42  ;;  %v10896_v42 = vor.u32 %v11876_v55, %v10895_v39  ;;  %v10916_v48 = vor.u32 %v11868_v26, %v10913_v41  ;;  %v10665_v55 = vld [vmem:[%s20487_s2 + $0x1b0] sm:$0xf0]  ;;  %v11957_v17 = vld [vmem:[%s20487_s2 + $0x60c] sm:$0xf0] }
 0x25b   : > { %5303 = vmatpush.bf16.msra.mxu2 %v11140_v35  ;;  %5355 = vmatpush.bf16.msrb.mxu0 %v11148_v49  ;;  %v16663_v30 = vpop.f32.mrf.mxu0  ;;  %v11775_v35 = vld [vmem:[%s20487_s2 + $0x5c] sm:$0xf0]  ;;  %v10815_v49 = vld [vmem:[%s20487_s2 + $0x298] sm:$0xf] }
 0x25c   : > { %v10488_v24 = vor.u32 %v11775_v35, %v10487_v52  ;;  %v11897_v52 = vld [vmem:[%s20487_s2 + $0x42c] sm:$0xf0]  ;;  %v10676_v35 = vor.u32 %v11808_v54, %v10673_v23  ;;  %v11928_v23 = vld [vmem:[%s20487_s2 + $0x52c] sm:$0xf] }
 0x25d   : > { %5207 = vmatpush.bf16.msrb.mxu3 %v10888_v47  ;;  %v11856_v47 = vld [vmem:[%s20487_s2 + $0x2e4] sm:$0xf0]  ;;  %v11937_v54 = vld [vmem:[%s20487_s2 + $0x56c] sm:$0xf0] }
 0x25e   : > { %v10816_v40 = vor.u32 %v11856_v47, %v10815_v49  ;;  %v10575_v49 = vld [vmem:[%s20487_s2 + $0xb8] sm:$0xf]  ;;  %v11796_v47 = vld [vmem:[%s20487_s2 + $0x104] sm:$0xf0] }
 0x261   : > { %5208 = vmatpush.bf16.msrb.mxu3 %v10808_v37  ;;  %v11847_v37 = vld [vmem:[%s20487_s2 + $0x2a4] sm:$0xf] }
 0x263   : > { %v5112_v9 = vpop.f32.mrf.mxu0 }
 0x264   : > { %5161 = vmatmul.bf16.vlgmr.msra.gmra.mxu1 %v16321_v27  ;;  %11271 = vmatmul.msk.bf16.vlgmr.msra.gmra.mxu3 %vm5097_vm2, %v16617_v10  ;;  %v11135_v9 = vld [vmem:[%s20487_s2 + $0x518] sm:$0xf] }
 0x265   : > { %5209 = vmatpush.bf16.msrb.mxu3 %v10728_v20  ;;  %5239 = vmatmul.bf16.vlgmr.msrb.gmra.mxu2 %v16321_v27  ;;  %v10828_v20 = vor.u32 %v11847_v37, %v10825_v7  ;;  %v11136_v39 = vor.u32 %v11936_v51, %v11135_v9  ;;  %v11788_v37 = vld [vmem:[%s20487_s2 + $0xcc] sm:$0xf]  ;;  %v11233_v51 = vld [vmem:[%s20487_s2 + $0x618] sm:$0xf0] }
 0x266   : > { %5257 = vmatpush.bf16.msra.mxu1 %v11056_v2  ;;  %5291 = vmatmul.bf16.vlgmr.msra.gmra.mxu0 %v16321_v27  ;;  %v10836_v2 = vor.u32 %v11848_v62, %v10833_v45  ;;  %v10903_v62 = vld [vmem:[%s20487_s2 + $0x340] sm:$0xf]  ;;  %v10576_v45 = vor.u32 %v11796_v47, %v10575_v49  ;;  %v11948_v9 = vld [vmem:[%s20487_s2 + $0x5cc] sm:$0xf]  ;;  %v11837_v47 = vld [vmem:[%s20487_s2 + $0x24c] sm:$0xf0] }
 0x267   : > { %5335 = vmatpush.bf16.msrb.mxu2 %v11068_v34  ;;  %5387 = vmatpush.bf16.msra.mxu0 %v11076_v18  ;;  %v11827_v34 = vld [vmem:[%s20487_s2 + $0x204] sm:$0xf]  ;;  %v10743_v49 = vld [vmem:[%s20487_s2 + $0x200] sm:$0xf] }
 0x269   : > { %5210 = vmatpush.bf16.msrb.mxu3 %v10648_v8  ;;  %v11917_v8 = vld [vmem:[%s20487_s2 + $0x4cc] sm:$0xf0] }
 0x26a   : > { %5258 = vmatpush.bf16.msra.mxu1 %v10976_v12  ;;  %v10748_v12 = vor.u32 %v11827_v34, %v10745_v28  ;;  %v11064_v26 = vor.u32 %v11917_v8, %v11063_v33  ;;  %v11768_v34 = vld [vmem:[%s20487_s2 + $0x2c] sm:$0xf]  ;;  %v11223_v28 = vld [vmem:[%s20487_s2 + $0x5c0] sm:$0xf]  ;;  %v11241_v8 = vld [vmem:[%s20487_s2 + $0x620] sm:$0xf0] }
 0x26b   : > { %v16733_v14 = vpop.f32.mrf.mxu2  ;;  %5336 = vmatpush.bf16.msrb.mxu2 %v10988_v53  ;;  %5388 = vmatpush.bf16.msra.mxu0 %v10996_v25  ;;  %v11816_v53 = vld [vmem:[%s20487_s2 + $0x1a4] sm:$0xf0]  ;;  %v11807_v25 = vld [vmem:[%s20487_s2 + $0x164] sm:$0xf] }
 0x26c   : > { %v10656_v41 = vor.u32 %v11816_v53, %v10655_v11  ;;  %v10508_v11 = vor.u32 %v11767_v22, %v10505_v38  ;;  %v10663_v22 = vld [vmem:[%s20487_s2 + $0x160] sm:$0xf]  ;;  %v11817_v38 = vld [vmem:[%s20487_s2 + $0x1ac] sm:$0xf0] }
 0x26d   : > { %5211 = vmatpush.bf16.msrb.mxu3 %v10568_v46  ;;  %v10983_v46 = vld [vmem:[%s20487_s2 + $0x3e0] sm:$0xf] }
 0x26e   : > { %5259 = vmatpush.bf16.msra.mxu1 %v10896_v42  ;;  %v10668_v42 = vor.u32 %v11807_v25, %v10665_v55  ;;  %v10984_v7 = vor.u32 %v11897_v52, %v10983_v46  ;;  %v11224_v25 = vor.u32 %v11957_v17, %v11223_v28  ;;  %v11143_v55 = vld [vmem:[%s20487_s2 + $0x520] sm:$0xf]  ;;  %v11153_v52 = vld [vmem:[%s20487_s2 + $0x578] sm:$0xf0]  ;;  %v11898_v28 = vld [vmem:[%s20487_s2 + $0x434] sm:$0xf0] }
 0x26f   : > { %5337 = vmatpush.bf16.msrb.mxu2 %v10908_v31  ;;  %5389 = vmatpush.bf16.msra.mxu0 %v10916_v48  ;;  %v11787_v31 = vld [vmem:[%s20487_s2 + $0xc4] sm:$0xf]  ;;  %v10585_v48 = vld [vmem:[%s20487_s2 + $0x110] sm:$0xf0] }
 0x270   : > { %v11889_v17 = vld [vmem:[%s20487_s2 + $0x3f4] sm:$0xf] }
 0x271   : > { %5212 = vmatpush.bf16.msrb.mxu3 %v10488_v24  ;;  %v11877_v24 = vld [vmem:[%s20487_s2 + $0x38c] sm:$0xf0] }
 0x272   : > { %5260 = vmatpush.bf16.msra.mxu1 %v10816_v40  ;;  %v10495_v40 = vld [vmem:[%s20487_s2 + $0x18] sm:$0xf]  ;;  %v10904_v36 = vor.u32 %v11877_v24, %v10903_v62  ;;  %v11156_v62 = vor.u32 %v11928_v23, %v11153_v52  ;;  %v11089_v24 = vld [vmem:[%s20487_s2 + $0x4e8] sm:$0xf0] }
 0x273   : > { %v5138_v18 = vpop.f32.mrf.mxu2  ;;  %5338 = vmatpush.bf16.msrb.mxu2 %v10828_v20  ;;  %5390 = vmatpush.bf16.msra.mxu0 %v10836_v2  ;;  %v10588_v20 = vor.u32 %v11787_v31, %v10585_v48  ;;  %v10596_v2 = vor.u32 %v11788_v37, %v10593_v44  ;;  %v11071_v31 = vld [vmem:[%s20487_s2 + $0x488] sm:$0xf]  ;;  %v11918_v48 = vld [vmem:[%s20487_s2 + $0x4d4] sm:$0xf0]  ;;  %v11909_v37 = vld [vmem:[%s20487_s2 + $0x494] sm:$0xf] }
 0x274   : > { %5213 = vmatmul.bf16.vlgmr.msrb.gmra.mxu3 %v16321_v27  ;;  %11273 = vmatmul.msk.bf16.vlgmr.msrb.gmra.mxu1 %vm5097_vm2, %v16617_v10  ;;  %v10513_v18 = vld [vmem:[%s20487_s2 + $0x78] sm:$0xf0]  ;;  %v11081_v44 = vld [vmem:[%s20487_s2 + $0x4e0] sm:$0xf0]  ;;  %v10929_v23 = vld [vmem:[%s20487_s2 + $0x3a8] sm:$0xf0] }
 0x275   : > { %5276 = vmatpush.bf16.msra.mxu3 %v11216_v43  ;;  %11276 = vmatmul.msk.bf16.vlgmr.msra.gmra.mxu2 %vm5097_vm2, %v16617_v10  ;;  %v11776_v43 = vld [vmem:[%s20487_s2 + $0x64] sm:$0xf0]  ;;  %v10516_v53 = vor.u32 %v11768_v34, %v10513_v18 }
 0x276   : > { %5261 = vmatpush.bf16.msra.mxu1 %v10736_v63  ;;  %11278 = vmatmul.msk.bf16.vlgmr.msrb.gmra.mxu0 %vm5097_vm2, %v16617_v10  ;;  %v11949_v63 = vld [vmem:[%s20487_s2 + $0x5d4] sm:$0xf]  ;;  %v10496_v33 = vor.u32 %v11776_v43, %v10495_v40  ;;  %v10744_v43 = vor.u32 %v11837_v47, %v10743_v49  ;;  %v10991_v34 = vld [vmem:[%s20487_s2 + $0x3e8] sm:$0xf]  ;;  %v11858_v49 = vld [vmem:[%s20487_s2 + $0x2f4] sm:$0xf0] }
 0x277   : > { %5339 = vmatpush.bf16.msrb.mxu2 %v10748_v12  ;;  %5391 = vmatpush.bf16.msra.mxu0 %v10756_v57  ;;  %v10823_v12 = vld [vmem:[%s20487_s2 + $0x2a0] sm:$0xf]  ;;  %v11857_v57 = vld [vmem:[%s20487_s2 + $0x2ec] sm:$0xf0] }
 0x278   : > { %v10824_v46 = vor.u32 %v11857_v57, %v10823_v12  ;;  %v10583_v12 = vld [vmem:[%s20487_s2 + $0xc0] sm:$0xf]  ;;  %v11797_v57 = vld [vmem:[%s20487_s2 + $0x10c] sm:$0xf0] }
 0x279   : > { %5277 = vmatpush.bf16.msra.mxu3 %v11136_v39  ;;  %v11236_v39 = vor.u32 %v11948_v9, %v11233_v51  ;;  %v11890_v9 = vld [vmem:[%s20487_s2 + $0x3fc] sm:$0xf]  ;;  %v11009_v51 = vld [vmem:[%s20487_s2 + $0x448] sm:$0xf0] }
 0x27a   : > { %5262 = vmatpush.bf16.msra.mxu1 %v10656_v41  ;;  %v11244_v41 = vor.u32 %v11949_v63, %v11241_v8  ;;  %v10664_v63 = vor.u32 %v11817_v38, %v10663_v22  ;;  %v11829_v38 = vld [vmem:[%s20487_s2 + $0x214] sm:$0xf] }
 0x27b   : > { %v16853_v13 = vpop.f32.mrf.mxu0  ;;  %5340 = vmatpush.bf16.msrb.mxu2 %v10668_v42  ;;  %5392 = vmatpush.bf16.msra.mxu0 %v10676_v35  ;;  %v11929_v42 = vld [vmem:[%s20487_s2 + $0x534] sm:$0xf]  ;;  %v11161_v35 = vld [vmem:[%s20487_s2 + $0x580] sm:$0xf0] }
 0x27c   : > { %v11164_v40 = vor.u32 %v11929_v42, %v11161_v35  ;;  %v11777_v42 = vld [vmem:[%s20487_s2 + $0x6c] sm:$0xf0]  ;;  %v10831_v35 = vld [vmem:[%s20487_s2 + $0x2a8] sm:$0xf] }
 0x27d   : > { %5309 = vmatpush.bf16.msrb.mxu3 %v11064_v26 }
 0x27e   : > { %5263 = vmatpush.bf16.msra.mxu1 %v10576_v45  ;;  %v11910_v45 = vld [vmem:[%s20487_s2 + $0x49c] sm:$0xf] }
 0x27f   : > { %5341 = vmatpush.bf16.msrb.mxu2 %v10588_v20  ;;  %5393 = vmatpush.bf16.msra.mxu0 %v10596_v2  ;;  %v11072_v20 = vor.u32 %v11918_v48, %v11071_v31  ;;  %v11084_v2 = vor.u32 %v11909_v37, %v11081_v44  ;;  %v11092_v18 = vor.u32 %v11910_v45, %v11089_v24  ;;  %v11849_v31 = vld [vmem:[%s20487_s2 + $0x2b4] sm:$0xf]  ;;  %v10841_v48 = vld [vmem:[%s20487_s2 + $0x300] sm:$0xf0]  ;;  %v11850_v37 = vld [vmem:[%s20487_s2 + $0x2bc] sm:$0xf] }
 0x280   : > { %v10849_v44 = vld [vmem:[%s20487_s2 + $0x308] sm:$0xf0]  ;;  %v10832_v24 = vor.u32 %v11858_v49, %v10831_v35  ;;  %v11798_v35 = vld [vmem:[%s20487_s2 + $0x114] sm:$0xf0]  ;;  %v11789_v49 = vld [vmem:[%s20487_s2 + $0xd4] sm:$0xf] }
 0x281   : > { %5310 = vmatpush.bf16.msrb.mxu3 %v10984_v7  ;;  %v11144_v7 = vor.u32 %v11937_v54, %v11143_v55  ;;  %v10921_v55 = vld [vmem:[%s20487_s2 + $0x3a0] sm:$0xf0]  ;;  %v11870_v54 = vld [vmem:[%s20487_s2 + $0x35c] sm:$0xf] }
 0x282   : > { %5264 = vmatpush.bf16.msra.mxu1 %v10496_v33  ;;  %v10992_v33 = vor.u32 %v11898_v28, %v10991_v34  ;;  %v10932_v47 = vor.u32 %v11870_v54, %v10929_v23  ;;  %v10761_v34 = vld [vmem:[%s20487_s2 + $0x260] sm:$0xf0]  ;;  %v10769_v28 = vld [vmem:[%s20487_s2 + $0x268] sm:$0xf0]  ;;  %v10999_v23 = vld [vmem:[%s20487_s2 + $0x3f0] sm:$0xf] }
 0x283   : > { %v5190_v26 = vpop.f32.mrf.mxu0  ;;  %5342 = vmatpush.bf16.msrb.mxu2 %v10508_v11  ;;  %5394 = vmatpush.bf16.msra.mxu0 %v10516_v53  ;;  %v10911_v11 = vld [vmem:[%s20487_s2 + $0x348] sm:$0xf]  ;;  %v11012_v53 = vor.u32 %v11890_v9, %v11009_v51  ;;  %v11079_v9 = vld [vmem:[%s20487_s2 + $0x490] sm:$0xf]  ;;  %v11919_v51 = vld [vmem:[%s20487_s2 + $0x4dc] sm:$0xf0] }
 0x284   : > { %11275 = vmatmul.msk.bf16.vlgmr.msra.gmra.mxu3 %vm5097_vm2, %v16617_v10  ;;  %v10584_v26 = vor.u32 %v11797_v57, %v10583_v12  ;;  %v10689_v54 = vld [vmem:[%s20487_s2 + $0x1c8] sm:$0xf0] }
 0x285   : > { %5311 = vmatpush.bf16.msrb.mxu3 %v10904_v36  ;;  %5265 = vmatmul.bf16.vlgmr.msra.gmra.mxu1 %v16321_v27  ;;  %v11001_v36 = vld [vmem:[%s20487_s2 + $0x440] sm:$0xf0] }
 0x286   : > { %5328 = vmatpush.bf16.msrb.mxu1 %v11224_v25  ;;  %5343 = vmatmul.bf16.vlgmr.msrb.gmra.mxu2 %v16321_v27  ;;  %v11004_v8 = vor.u32 %v11889_v17, %v11001_v36  ;;  %v11878_v25 = vld [vmem:[%s20487_s2 + $0x394] sm:$0xf0]  ;;  %v11151_v17 = vld [vmem:[%s20487_s2 + $0x528] sm:$0xf] }
 0x287   : > { %5406 = vmatpush.bf16.msra.mxu2 %v11236_v39  ;;  %5458 = vmatpush.bf16.msrb.mxu0 %v11244_v41  ;;  %v11869_v39 = vld [vmem:[%s20487_s2 + $0x354] sm:$0xf]  ;;  %v10503_v41 = vld [vmem:[%s20487_s2 + $0x20] sm:$0xf]  ;;  %v11938_v36 = vld [vmem:[%s20487_s2 + $0x574] sm:$0xf0] }
 0x288   : > { %5395 = vmatmul.bf16.vlgmr.msra.gmra.mxu0 %v16321_v27  ;;  %v10924_v52 = vor.u32 %v11869_v39, %v10921_v55  ;;  %v10504_v45 = vor.u32 %v11777_v42, %v10503_v41  ;;  %v11152_v57 = vor.u32 %v11938_v36, %v11151_v17  ;;  %v11080_v39 = vor.u32 %v11919_v51, %v11079_v9  ;;  %v11810_v55 = vld [vmem:[%s20487_s2 + $0x17c] sm:$0xf]  ;;  %v11249_v36 = vld [vmem:[%s20487_s2 + $0x628] sm:$0xf0]  ;;  %v11951_v9 = vld [vmem:[%s20487_s2 + $0x5e4] sm:$0xf] }
 0x289   : > { %5312 = vmatpush.bf16.msrb.mxu3 %v10824_v46  ;;  %v10912_v46 = vor.u32 %v11878_v25, %v10911_v11  ;;  %v11818_v11 = vld [vmem:[%s20487_s2 + $0x1b4] sm:$0xf0]  ;;  %v10681_v25 = vld [vmem:[%s20487_s2 + $0x1c0] sm:$0xf0]  ;;  %v10692_v42 = vor.u32 %v11810_v55, %v10689_v54  ;;  %v11950_v17 = vld [vmem:[%s20487_s2 + $0x5dc] sm:$0xf] }
 0x28a   : > { %5329 = vmatpush.bf16.msrb.mxu1 %v11144_v7  ;;  %v11231_v7 = vld [vmem:[%s20487_s2 + $0x5c8] sm:$0xf]  ;;  %v11257_v51 = vld [vmem:[%s20487_s2 + $0x630] sm:$0xf0]  ;;  %v11930_v54 = vld [vmem:[%s20487_s2 + $0x53c] sm:$0xf] }
 0x28b   : > { %5407 = vmatpush.bf16.msra.mxu2 %v11156_v62  ;;  %5459 = vmatpush.bf16.msrb.mxu0 %v11164_v40  ;;  %v11958_v62 = vld [vmem:[%s20487_s2 + $0x614] sm:$0xf0]  ;;  %v10844_v40 = vor.u32 %v11849_v31, %v10841_v48  ;;  %v11790_v48 = vld [vmem:[%s20487_s2 + $0xdc] sm:$0xf]  ;;  %v11260_v55 = vor.u32 %v11951_v9, %v11257_v51  ;;  %v10599_v51 = vld [vmem:[%s20487_s2 + $0xd0] sm:$0xf] }
 0x28c   : > { %v11232_v22 = vor.u32 %v11958_v62, %v11231_v7  ;;  %v11879_v7 = vld [vmem:[%s20487_s2 + $0x39c] sm:$0xf0] }
 0x28d   : > { %5313 = vmatpush.bf16.msrb.mxu3 %v10744_v43  ;;  %v10751_v43 = vld [vmem:[%s20487_s2 + $0x208] sm:$0xf] }
 0x28e   : > { %5361 = vmatpush.bf16.msra.mxu1 %v11072_v20  ;;  %v11838_v20 = vld [vmem:[%s20487_s2 + $0x254] sm:$0xf0] }
 0x28f   : > { %5439 = vmatpush.bf16.msrb.mxu2 %v11084_v2  ;;  %5491 = vmatpush.bf16.msra.mxu0 %v11092_v18  ;;  %v10852_v2 = vor.u32 %v11850_v37, %v10849_v44  ;;  %v11830_v18 = vld [vmem:[%s20487_s2 + $0x21c] sm:$0xf]  ;;  %v10609_v37 = vld [vmem:[%s20487_s2 + $0x128] sm:$0xf0]  ;;  %v10919_v44 = vld [vmem:[%s20487_s2 + $0x350] sm:$0xf] }
 0x290   : > { %v10772_v12 = vor.u32 %v11830_v18, %v10769_v28  ;;  %v11239_v18 = vld [vmem:[%s20487_s2 + $0x5d0] sm:$0xf]  ;;  %v11959_v28 = vld [vmem:[%s20487_s2 + $0x61c] sm:$0xf0] }
 0x291   : > { %5314 = vmatpush.bf16.msrb.mxu3 %v10664_v63  ;;  %v10752_v63 = vor.u32 %v11838_v20, %v10751_v43  ;;  %v11769_v43 = vld [vmem:[%s20487_s2 + $0x34] sm:$0xf]  ;;  %v10612_v20 = vor.u32 %v11790_v48, %v10609_v37  ;;  %v11912_v37 = vld [vmem:[%s20487_s2 + $0x4ac] sm:$0xf] }
 0x292   : > { %5362 = vmatpush.bf16.msra.mxu1 %v10992_v33  ;;  %v10764_v33 = vor.u32 %v11829_v38, %v10761_v34  ;;  %v10529_v38 = vld [vmem:[%s20487_s2 + $0x88] sm:$0xf0]  ;;  %v10920_v34 = vor.u32 %v11879_v7, %v10919_v44  ;;  %v11097_v48 = vld [vmem:[%s20487_s2 + $0x4f0] sm:$0xf0]  ;;  %v11105_v44 = vld [vmem:[%s20487_s2 + $0x4f8] sm:$0xf0] }
 0x293   : > { %5440 = vmatpush.bf16.msrb.mxu2 %v11004_v8  ;;  %5492 = vmatpush.bf16.msra.mxu0 %v11012_v53  ;;  %v10671_v8 = vld [vmem:[%s20487_s2 + $0x168] sm:$0xf]  ;;  %v11809_v53 = vld [vmem:[%s20487_s2 + $0x174] sm:$0xf] }
 0x294   : > { %v10672_v41 = vor.u32 %v11818_v11, %v10671_v8  ;;  %v10839_v8 = vld [vmem:[%s20487_s2 + $0x2b0] sm:$0xf]  ;;  %v11240_v11 = vor.u32 %v11959_v28, %v11239_v18  ;;  %v11017_v18 = vld [vmem:[%s20487_s2 + $0x450] sm:$0xf0]  ;;  %v11892_v28 = vld [vmem:[%s20487_s2 + $0x40c] sm:$0xf] }
 0x295   : > { %5315 = vmatpush.bf16.msrb.mxu3 %v10584_v26  ;;  %11277 = vmatmul.msk.bf16.vlgmr.msrb.gmra.mxu1 %vm5097_vm2, %v16617_v10  ;;  %v11899_v26 = vld [vmem:[%s20487_s2 + $0x43c] sm:$0xf0] }
 0x296   : > { %5363 = vmatpush.bf16.msra.mxu1 %v10912_v46  ;;  %11280 = vmatmul.msk.bf16.vlgmr.msra.gmra.mxu2 %vm5097_vm2, %v16617_v10  ;;  %v10684_v46 = vor.u32 %v11809_v53, %v10681_v25  ;;  %v11000_v31 = vor.u32 %v11899_v26, %v10999_v23  ;;  %v11159_v53 = vld [vmem:[%s20487_s2 + $0x530] sm:$0xf]  ;;  %v11939_v25 = vld [vmem:[%s20487_s2 + $0x57c] sm:$0xf0]  ;;  %v11169_v23 = vld [vmem:[%s20487_s2 + $0x588] sm:$0xf0] }
 0x297   : > { %5441 = vmatpush.bf16.msrb.mxu2 %v10924_v52  ;;  %5493 = vmatpush.bf16.msra.mxu0 %v10932_v47  ;;  %v10591_v52 = vld [vmem:[%s20487_s2 + $0xc8] sm:$0xf]  ;;  %v10601_v47 = vld [vmem:[%s20487_s2 + $0x120] sm:$0xf0]  ;;  %v11172_v7 = vor.u32 %v11930_v54, %v11169_v23  ;;  %v10519_v23 = vld [vmem:[%s20487_s2 + $0x30] sm:$0xf] }
 0x298   : > { %11282 = vmatmul.msk.bf16.vlgmr.msrb.gmra.mxu0 %vm5097_vm2, %v16617_v10  ;;  %v10592_v62 = vor.u32 %v11798_v35, %v10591_v52  ;;  %v11931_v26 = vld [vmem:[%s20487_s2 + $0x544] sm:$0xf]  ;;  %v10759_v52 = vld [vmem:[%s20487_s2 + $0x210] sm:$0xf]  ;;  %v11087_v35 = vld [vmem:[%s20487_s2 + $0x498] sm:$0xf] }
 0x299   : > { %5316 = vmatpush.bf16.msrb.mxu3 %v10504_v45  ;;  %v10604_v45 = vor.u32 %v11789_v49, %v10601_v47  ;;  %v11920_v49 = vld [vmem:[%s20487_s2 + $0x4e4] sm:$0xf0]  ;;  %v11911_v47 = vld [vmem:[%s20487_s2 + $0x4a4] sm:$0xf] }
 0x29a   : > { %5364 = vmatpush.bf16.msra.mxu1 %v10832_v24  ;;  %v10511_v24 = vld [vmem:[%s20487_s2 + $0x28] sm:$0xf] }
 0x29b   : > { %5442 = vmatpush.bf16.msrb.mxu2 %v10844_v40  ;;  %5494 = vmatpush.bf16.msra.mxu0 %v10852_v2  ;;  %v11778_v40 = vld [vmem:[%s20487_s2 + $0x74] sm:$0xf0]  ;;  %v10521_v2 = vld [vmem:[%s20487_s2 + $0x80] sm:$0xf0] }
 0x29c   : > { %5317 = vmatmul.bf16.vlgmr.msrb.gmra.mxu3 %v16321_v27 }
 0x29d   : > { %5380 = vmatpush.bf16.msra.mxu3 %v11232_v22  ;;  %v11770_v22 = vld [vmem:[%s20487_s2 + $0x3c] sm:$0xf] }
 0x29e   : > { %5365 = vmatpush.bf16.msra.mxu1 %v10752_v63  ;;  %v10512_v63 = vor.u32 %v11778_v40, %v10511_v24  ;;  %v11088_v24 = vor.u32 %v11920_v49, %v11087_v35  ;;  %v10679_v40 = vld [vmem:[%s20487_s2 + $0x170] sm:$0xf]  ;;  %v11851_v35 = vld [vmem:[%s20487_s2 + $0x2c4] sm:$0xf]  ;;  %v10857_v49 = vld [vmem:[%s20487_s2 + $0x310] sm:$0xf0] }
 0x29f   : > { %5443 = vmatpush.bf16.msrb.mxu2 %v10764_v33  ;;  %5495 = vmatpush.bf16.msra.mxu0 %v10772_v12  ;;  %v10524_v33 = vor.u32 %v11769_v43, %v10521_v2  ;;  %v11859_v12 = vld [vmem:[%s20487_s2 + $0x2fc] sm:$0xf0]  ;;  %v11108_v2 = vor.u32 %v11912_v37, %v11105_v44  ;;  %v11960_v37 = vld [vmem:[%s20487_s2 + $0x624] sm:$0xf0] }
 0x2a0   : > { %v11819_v43 = vld [vmem:[%s20487_s2 + $0x1bc] sm:$0xf0] }
 0x2a1   : > { %5381 = vmatpush.bf16.msra.mxu3 %v11152_v57  ;;  %v10532_v57 = vor.u32 %v11770_v22, %v10529_v38  ;;  %v11007_v22 = vld [vmem:[%s20487_s2 + $0x3f8] sm:$0xf]  ;;  %v11900_v38 = vld [vmem:[%s20487_s2 + $0x444] sm:$0xf0] }
 0x2a2   : > { %5366 = vmatpush.bf16.msra.mxu1 %v10672_v41  ;;  %v10840_v41 = vor.u32 %v11859_v12, %v10839_v8  ;;  %v11008_v9 = vor.u32 %v11900_v38, %v11007_v22  ;;  %v10927_v12 = vld [vmem:[%s20487_s2 + $0x358] sm:$0xf]  ;;  %v11832_v22 = vld [vmem:[%s20487_s2 + $0x22c] sm:$0xf]  ;;  %v10785_v38 = vld [vmem:[%s20487_s2 + $0x278] sm:$0xf0] }
 0x2a3   : > { %5444 = vmatpush.bf16.msrb.mxu2 %v10684_v46  ;;  %5496 = vmatpush.bf16.msra.mxu0 %v10692_v42  ;;  %v11177_v46 = vld [vmem:[%s20487_s2 + $0x590] sm:$0xf0]  ;;  %v11839_v42 = vld [vmem:[%s20487_s2 + $0x25c] sm:$0xf0] }
 0x2a5   : > { %5413 = vmatpush.bf16.msrb.mxu3 %v11080_v39  ;;  %v11252_v39 = vor.u32 %v11950_v17, %v11249_v36  ;;  %v11025_v17 = vld [vmem:[%s20487_s2 + $0x458] sm:$0xf0]  ;;  %v10680_v36 = vor.u32 %v11819_v43, %v10679_v40  ;;  %v11840_v40 = vld [vmem:[%s20487_s2 + $0x264] sm:$0xf0]  ;;  %v11831_v43 = vld [vmem:[%s20487_s2 + $0x224] sm:$0xf] }
 0x2a6   : > { %5367 = vmatpush.bf16.msra.mxu1 %v10592_v62  ;;  %v11180_v62 = vor.u32 %v11931_v26, %v11177_v46  ;;  %v11028_v8 = vor.u32 %v11892_v28, %v11025_v17  ;;  %v11779_v26 = vld [vmem:[%s20487_s2 + $0x7c] sm:$0xf0] }
 0x2a7   : > { %5445 = vmatpush.bf16.msrb.mxu2 %v10604_v45  ;;  %5497 = vmatpush.bf16.msra.mxu0 %v10612_v20  ;;  %v10760_v45 = vor.u32 %v11839_v42, %v10759_v52  ;;  %v11100_v20 = vor.u32 %v11911_v47, %v11097_v48  ;;  %v10847_v52 = vld [vmem:[%s20487_s2 + $0x2b8] sm:$0xf]  ;;  %v11860_v42 = vld [vmem:[%s20487_s2 + $0x304] sm:$0xf0]  ;;  %v11852_v47 = vld [vmem:[%s20487_s2 + $0x2cc] sm:$0xf]  ;;  %v10520_v44 = vor.u32 %v11779_v26, %v10519_v23 }
 0x2a8   : > { %v11247_v48 = vld [vmem:[%s20487_s2 + $0x5d8] sm:$0xf]  ;;  %v11095_v17 = vld [vmem:[%s20487_s2 + $0x4a0] sm:$0xf] }
 0x2a9   : > { %5414 = vmatpush.bf16.msrb.mxu3 %v11000_v31  ;;  %v11160_v31 = vor.u32 %v11939_v25, %v11159_v53  ;;  %v10937_v53 = vld [vmem:[%s20487_s2 + $0x3b0] sm:$0xf0]  ;;  %v11872_v25 = vld [vmem:[%s20487_s2 + $0x36c] sm:$0xf] }
 0x2aa   : > { %5368 = vmatpush.bf16.msra.mxu1 %v10512_v63  ;;  %v11799_v63 = vld [vmem:[%s20487_s2 + $0x11c] sm:$0xf0] }
 0x2ab   : > { %5446 = vmatpush.bf16.msrb.mxu2 %v10524_v33  ;;  %5498 = vmatpush.bf16.msra.mxu0 %v10532_v57  ;;  %v11880_v57 = vld [vmem:[%s20487_s2 + $0x3a4] sm:$0xf0] }
 0x2ac   : > { %11279 = vmatmul.msk.bf16.vlgmr.msra.gmra.mxu3 %vm5097_vm2, %v16617_v10  ;;  %v10928_v54 = vor.u32 %v11880_v57, %v10927_v12  ;;  %v10697_v57 = vld [vmem:[%s20487_s2 + $0x1d0] sm:$0xf0] }
 0x2ad   : > { %5415 = vmatpush.bf16.msrb.mxu3 %v10920_v34  ;;  %5369 = vmatmul.bf16.vlgmr.msra.gmra.mxu1 %v16321_v27  ;;  %v11891_v34 = vld [vmem:[%s20487_s2 + $0x404] sm:$0xf] }
 0x2ae   : > { %5432 = vmatpush.bf16.msrb.mxu1 %v11240_v11  ;;  %5447 = vmatmul.bf16.vlgmr.msrb.gmra.mxu2 %v16321_v27  ;;  %v11020_v33 = vor.u32 %v11891_v34, %v11017_v18  ;;  %v11871_v11 = vld [vmem:[%s20487_s2 + $0x364] sm:$0xf]  ;;  %v11167_v34 = vld [vmem:[%s20487_s2 + $0x538] sm:$0xf]  ;;  %v11940_v18 = vld [vmem:[%s20487_s2 + $0x584] sm:$0xf0] }
 0x2af   : > { %5510 = vmatpush.bf16.msra.mxu2 %v11252_v39  ;;  %5562 = vmatpush.bf16.msrb.mxu0 %v11260_v55  ;;  %v10945_v39 = vld [vmem:[%s20487_s2 + $0x3b8] sm:$0xf0]  ;;  %v10600_v55 = vor.u32 %v11799_v63, %v10599_v51  ;;  %v10788_v51 = vor.u32 %v11832_v22, %v10785_v38  ;;  %v10687_v63 = vld [vmem:[%s20487_s2 + $0x178] sm:$0xf]  ;;  %v11168_v12 = vor.u32 %v11940_v18, %v11167_v34  ;;  %v11961_v38 = vld [vmem:[%s20487_s2 + $0x62c] sm:$0xf0] }
 0x2b0   : > { %5499 = vmatmul.bf16.vlgmr.msra.gmra.mxu0 %v16321_v27  ;;  %v10948_v46 = vor.u32 %v11872_v25, %v10945_v39  ;;  %v11952_v34 = vld [vmem:[%s20487_s2 + $0x5ec] sm:$0xf]  ;;  %v11265_v18 = vld [vmem:[%s20487_s2 + $0x638] sm:$0xf0] }
 0x2b1   : > { %5416 = vmatpush.bf16.msrb.mxu3 %v10840_v41  ;;  %v10940_v41 = vor.u32 %v11871_v11, %v10937_v53  ;;  %v11812_v11 = vld [vmem:[%s20487_s2 + $0x18c] sm:$0xf]  ;;  %v10705_v53 = vld [vmem:[%s20487_s2 + $0x1d8] sm:$0xf0] }
 0x2b2   : > { %5433 = vmatpush.bf16.msrb.mxu1 %v11160_v31  ;;  %v10865_v31 = vld [vmem:[%s20487_s2 + $0x318] sm:$0xf0]  ;;  %v10708_v26 = vor.u32 %v11812_v11, %v10705_v53  ;;  %v10775_v11 = vld [vmem:[%s20487_s2 + $0x220] sm:$0xf]  ;;  %v11932_v53 = vld [vmem:[%s20487_s2 + $0x54c] sm:$0xf] }
 0x2b3   : > { %5511 = vmatpush.bf16.msra.mxu2 %v11172_v7  ;;  %5563 = vmatpush.bf16.msrb.mxu0 %v11180_v62  ;;  %v10848_v7 = vor.u32 %v11860_v42, %v10847_v52  ;;  %v10860_v62 = vor.u32 %v11851_v35, %v10857_v49  ;;  %v11791_v52 = vld [vmem:[%s20487_s2 + $0xe4] sm:$0xf]  ;;  %v10617_v42 = vld [vmem:[%s20487_s2 + $0x130] sm:$0xf0]  ;;  %v11792_v35 = vld [vmem:[%s20487_s2 + $0xec] sm:$0xf] }
 0x2b4   : > { %v10625_v49 = vld [vmem:[%s20487_s2 + $0x138] sm:$0xf0] }
 0x2b5   : > { %5417 = vmatpush.bf16.msrb.mxu3 %v10760_v45  ;;  %v10868_v45 = vor.u32 %v11852_v47, %v10865_v31 }
 0x2b6   : > { %5465 = vmatpush.bf16.msra.mxu1 %v11088_v24  ;;  %v10767_v24 = vld [vmem:[%s20487_s2 + $0x218] sm:$0xf] }
 0x2b7   : > { %5543 = vmatpush.bf16.msrb.mxu2 %v11100_v20  ;;  %5595 = vmatpush.bf16.msra.mxu0 %v11108_v2  ;;  %v11248_v20 = vor.u32 %v11960_v37, %v11247_v48  ;;  %v10777_v2 = vld [vmem:[%s20487_s2 + $0x270] sm:$0xf0]  ;;  %v10768_v28 = vor.u32 %v11840_v40, %v10767_v24  ;;  %v10935_v48 = vld [vmem:[%s20487_s2 + $0x360] sm:$0xf]  ;;  %v11881_v37 = vld [vmem:[%s20487_s2 + $0x3ac] sm:$0xf0] }
 0x2b8   : > { %v11771_v24 = vld [vmem:[%s20487_s2 + $0x44] sm:$0xf]  ;;  %v10537_v40 = vld [vmem:[%s20487_s2 + $0x90] sm:$0xf0]  ;;  %v10936_v22 = vor.u32 %v11881_v37, %v10935_v48  ;;  %v10615_v48 = vld [vmem:[%s20487_s2 + $0xe0] sm:$0xf] }
 0x2b9   : > { %5418 = vmatpush.bf16.msrb.mxu3 %v10680_v36  ;;  %v11921_v36 = vld [vmem:[%s20487_s2 + $0x4ec] sm:$0xf0] }
 0x2ba   : > { %5466 = vmatpush.bf16.msra.mxu1 %v11008_v9  ;;  %v10780_v9 = vor.u32 %v11831_v43, %v10777_v2  ;;  %v11096_v25 = vor.u32 %v11921_v36, %v11095_v17  ;;  %v11772_v43 = vld [vmem:[%s20487_s2 + $0x4c] sm:$0xf]  ;;  %v11255_v2 = vld [vmem:[%s20487_s2 + $0x5e0] sm:$0xf]  ;;  %v11861_v36 = vld [vmem:[%s20487_s2 + $0x30c] sm:$0xf0] }
 0x2bb   : > { %5544 = vmatpush.bf16.msrb.mxu2 %v11020_v33  ;;  %5596 = vmatpush.bf16.msra.mxu0 %v11028_v8  ;;  %v11820_v33 = vld [vmem:[%s20487_s2 + $0x1c4] sm:$0xf0]  ;;  %v11811_v8 = vld [vmem:[%s20487_s2 + $0x184] sm:$0xf]  ;;  %v10855_v17 = vld [vmem:[%s20487_s2 + $0x2c0] sm:$0xf] }
 0x2bc   : > { %v10688_v39 = vor.u32 %v11820_v33, %v10687_v63  ;;  %v10700_v23 = vor.u32 %v11811_v8, %v10697_v57  ;;  %v11256_v63 = vor.u32 %v11961_v38, %v11255_v2  ;;  %v11175_v33 = vld [vmem:[%s20487_s2 + $0x540] sm:$0xf]  ;;  %v11941_v8 = vld [vmem:[%s20487_s2 + $0x58c] sm:$0xf0]  ;;  %v10856_v57 = vor.u32 %v11861_v36, %v10855_v17  ;;  %v11263_v17 = vld [vmem:[%s20487_s2 + $0x5e8] sm:$0xf] }
 0x2bd   : > { %5419 = vmatpush.bf16.msrb.mxu3 %v10600_v55  ;;  %11281 = vmatmul.msk.bf16.vlgmr.msrb.gmra.mxu1 %vm5097_vm2, %v16617_v10  ;;  %v11015_v55 = vld [vmem:[%s20487_s2 + $0x400] sm:$0xf]  ;;  %v11781_v38 = vld [vmem:[%s20487_s2 + $0x8c] sm:$0xf0]  ;;  %v11962_v36 = vld [vmem:[%s20487_s2 + $0x634] sm:$0xf0] }
 0x2be   : > { %5467 = vmatpush.bf16.msra.mxu1 %v10928_v54  ;;  %11284 = vmatmul.msk.bf16.vlgmr.msra.gmra.mxu2 %vm5097_vm2, %v16617_v10  ;;  %v11901_v54 = vld [vmem:[%s20487_s2 + $0x44c] sm:$0xf0] }
 0x2bf   : > { %5545 = vmatpush.bf16.msrb.mxu2 %v10940_v41  ;;  %5597 = vmatpush.bf16.msra.mxu0 %v10948_v46  ;;  %v10607_v41 = vld [vmem:[%s20487_s2 + $0xd8] sm:$0xf]  ;;  %v11800_v46 = vld [vmem:[%s20487_s2 + $0x124] sm:$0xf0]  ;;  %v11016_v47 = vor.u32 %v11901_v54, %v11015_v55 }
 0x2c0   : > { %11286 = vmatmul.msk.bf16.vlgmr.msrb.gmra.mxu0 %vm5097_vm2, %v16617_v10  ;;  %v10608_v31 = vor.u32 %v11800_v46, %v10607_v41  ;;  %v11103_v55 = vld [vmem:[%s20487_s2 + $0x4a8] sm:$0xf]  ;;  %v11922_v54 = vld [vmem:[%s20487_s2 + $0x4f4] sm:$0xf0] }
 0x2c1   : > { %5420 = vmatpush.bf16.msrb.mxu3 %v10520_v44  ;;  %v10527_v44 = vld [vmem:[%s20487_s2 + $0x38] sm:$0xf]  ;;  %v11104_v46 = vor.u32 %v11922_v54, %v11103_v55 }
 0x2c2   : > { %5468 = vmatpush.bf16.msra.mxu1 %v10848_v7  ;;  %v10620_v7 = vor.u32 %v11791_v52, %v10617_v42  ;;  %v10695_v52 = vld [vmem:[%s20487_s2 + $0x180] sm:$0xf]  ;;  %v11821_v42 = vld [vmem:[%s20487_s2 + $0x1cc] sm:$0xf0]  ;;  %v11942_v54 = vld [vmem:[%s20487_s2 + $0x594] sm:$0xf0] }
 0x2c3   : > { %5546 = vmatpush.bf16.msrb.mxu2 %v10860_v62  ;;  %5598 = vmatpush.bf16.msra.mxu0 %v10868_v45  ;;  %v10628_v62 = vor.u32 %v11792_v35, %v10625_v49  ;;  %v11780_v45 = vld [vmem:[%s20487_s2 + $0x84] sm:$0xf0]  ;;  %v11902_v49 = vld [vmem:[%s20487_s2 + $0x454] sm:$0xf0] }
 0x2c4   : > { %5421 = vmatmul.bf16.vlgmr.msrb.gmra.mxu3 %v16321_v27  ;;  %v11023_v35 = vld [vmem:[%s20487_s2 + $0x408] sm:$0xf] }
 0x2c5   : > { %5484 = vmatpush.bf16.msra.mxu3 %v11248_v20  ;;  %v10545_v20 = vld [vmem:[%s20487_s2 + $0x98] sm:$0xf0] }
 0x2c6   : > { %5469 = vmatpush.bf16.msra.mxu1 %v10768_v28  ;;  %v10528_v28 = vor.u32 %v11780_v45, %v10527_v44  ;;  %v11801_v44 = vld [vmem:[%s20487_s2 + $0x12c] sm:$0xf0]  ;;  %v21188_v45 = vmov 1065369472  }
 0x2c7   : > { %5547 = vmatpush.bf16.msrb.mxu2 %v10780_v9  ;;  %5599 = vmatpush.bf16.msra.mxu0 %v10788_v51  ;;  %v10540_v9 = vor.u32 %v11771_v24, %v10537_v40  ;;  %v10548_v51 = vor.u32 %v11772_v43, %v10545_v20  ;;  %v10616_v20 = vor.u32 %v11801_v44, %v10615_v48 }
 0x2c9   : > { %5485 = vmatpush.bf16.msra.mxu3 %v11168_v12  ;;  %v11268_v12 = vor.u32 %v11952_v34, %v11265_v18  ;;  %v10863_v34 = vld [vmem:[%s20487_s2 + $0x2c8] sm:$0xf] }
 0x2ca   : > { %5470 = vmatpush.bf16.msra.mxu1 %v10688_v39  ;;  %v11841_v39 = vld [vmem:[%s20487_s2 + $0x26c] sm:$0xf0] }
 0x2cb   : > { %5548 = vmatpush.bf16.msrb.mxu2 %v10700_v23  ;;  %5600 = vmatpush.bf16.msra.mxu0 %v10708_v26  ;;  %v11176_v23 = vor.u32 %v11941_v8, %v11175_v33  ;;  %v10776_v41 = vor.u32 %v11841_v39, %v10775_v11  ;;  %v10783_v11 = vld [vmem:[%s20487_s2 + $0x228] sm:$0xf]  ;;  %v11264_v39 = vor.u32 %v11962_v36, %v11263_v17 }
 0x2cd   : > { %5517 = vmatpush.bf16.msrb.mxu3 %v11096_v25  ;;  %v11185_v25 = vld [vmem:[%s20487_s2 + $0x598] sm:$0xf0] }
 0x2ce   : > { %5471 = vmatpush.bf16.msra.mxu1 %v10608_v31  ;;  %v11188_v26 = vor.u32 %v11932_v53, %v11185_v25  ;;  %v11024_v31 = vor.u32 %v11902_v49, %v11023_v35  ;;  %v11842_v53 = vld [vmem:[%s20487_s2 + $0x274] sm:$0xf0] }
 0x2cf   : > { %5549 = vmatpush.bf16.msrb.mxu2 %v10620_v7  ;;  %5601 = vmatpush.bf16.msra.mxu0 %v10628_v62  ;;  %v10943_v7 = vld [vmem:[%s20487_s2 + $0x368] sm:$0xf]  ;;  %v11882_v62 = vld [vmem:[%s20487_s2 + $0x3b4] sm:$0xf0] }
 0x2d0   : > { %v10944_v2 = vor.u32 %v11882_v62, %v10943_v7  ;;  %v10623_v62 = vld [vmem:[%s20487_s2 + $0xe8] sm:$0xf] }
 0x2d1   : > { %5518 = vmatpush.bf16.msrb.mxu3 %v11016_v47  ;;  %v10696_v47 = vor.u32 %v11821_v42, %v10695_v52  ;;  %v5123_v37 = vpop.f32.mrf.mxu1  ;;  %v11822_v52 = vld [vmem:[%s20487_s2 + $0x1d4] sm:$0xf0] }
 0x2d2   : > { %5472 = vmatpush.bf16.msra.mxu1 %v10528_v28  ;;  %v5124_v24 = vadd.f32 %v5123_v37, %v16663_v30  ;;  %v11862_v30 = vld [vmem:[%s20487_s2 + $0x314] sm:$0xf0] }
 0x2d3   : > { %5550 = vmatpush.bf16.msrb.mxu2 %v10540_v9  ;;  %5602 = vmatpush.bf16.msra.mxu0 %v10548_v51  ;;  %v17457_v40 = vpop.f32.mrf.mxu0 }
 0x2d4   : > { %11283 = vmatmul.msk.bf16.vlgmr.msra.gmra.mxu3 %vm5097_vm2, %v16617_v10  ;;  %v5641_v43 = vrot.slane %v5124_v24, 1 }
 0x2d5   : > { %5519 = vmatpush.bf16.msrb.mxu3 %v10936_v22  ;;  %5473 = vmatmul.bf16.vlgmr.msra.gmra.mxu1 %v16321_v27  ;;  %v10535_v22 = vld [vmem:[%s20487_s2 + $0x40] sm:$0xf] }
 0x2d6   : > { %5536 = vmatpush.bf16.msrb.mxu1 %v11256_v63  ;;  %5551 = vmatmul.bf16.vlgmr.msrb.gmra.mxu2 %v16321_v27  ;;  %v5681_v18 = vadd.f32 %v5641_v43, %v5124_v24  ;;  %v10536_v51 = vor.u32 %v11781_v38, %v10535_v22  ;;  %v10864_v63 = vor.u32 %v11862_v30, %v10863_v34  ;;  %v11802_v24 = vld [vmem:[%s20487_s2 + $0x134] sm:$0xf0] }
 0x2d7   : > { %5614 = vmatpush.bf16.msra.mxu2 %v11268_v12  ;;  %5603 = vmatmul.bf16.vlgmr.msra.gmra.mxu0 %v16321_v27  ;;  %v5149_v28 = vpop.f32.mrf.mxu3  ;;  %v11782_v22 = vld [vmem:[%s20487_s2 + $0x94] sm:$0xf0] }
 0x2d8   : > { %6968 = vmatpush.bf16.msrb.mxu0 %v21188_v45  ;;  %v11289_v9 = vmul.f32 -1.442695, %v5681_v18  ;;  %v5150_v33 = vadd.f32 %v5149_v28, %v16733_v14  ;;  %v5201_v8 = vpop.f32.mrf.mxu2 }
 0x2d9   : > { %5520 = vmatpush.bf16.msrb.mxu3 %v10856_v57  ;;  %v5202_v12 = vadd.f32 %v5201_v8, %v16853_v13  ;;  %v5125_v57 = vpop.f32.mrf.mxu1  ;;  %v11183_v13 = vld [vmem:[%s20487_s2 + $0x548] sm:$0xf] }
 0x2da   : > { %5537 = vmatpush.bf16.msrb.mxu1 %v11176_v23  ;;  %11979 = vpow2.f32 %v11289_v9  ;;  %v5642_v25 = vrot.slane %v5150_v33, 1  ;;  %v11184_v35 = vor.u32 %v11942_v54, %v11183_v13 }
 0x2db   : > { %5615 = vmatpush.bf16.msra.mxu2 %v11188_v26  ;;  %v5644_v14 = vrot.slane %v5202_v12, 1  ;;  %v5255_v55 = vpop.f32.mrf.mxu0  ;;  %v10784_v26 = vor.u32 %v11842_v53, %v10783_v11 }
 0x2dc   : > { %6969 = vmatpush.bf16.msrb.mxu0 %v21188_v45  ;;  %v5682_v23 = vadd.f32 %v5642_v25, %v5150_v33 }
 0x2dd   : > { %5521 = vmatpush.bf16.msrb.mxu3 %v10776_v41  ;;  %v5684_v41 = vadd.f32 %v5644_v14, %v5202_v12 }
 0x2de   : > { %5569 = vmatpush.bf16.msra.mxu1 %v11104_v46  ;;  %v10703_v46 = vld [vmem:[%s20487_s2 + $0x188] sm:$0xf]  ;;  %v11290_v42 = vmul.f32 -1.442695, %v5682_v23 }
 0x2df   : > { %6939 = vmatpush.bf16.msrb.mxu2 %v21188_v45  ;;  %v11292_v49 = vmul.f32 -1.442695, %v5684_v41  ;;  %v10704_v48 = vor.u32 %v11822_v52, %v10703_v46 }
 0x2e0   : > { %6970 = vmatpush.bf16.msrb.mxu0 %v21188_v45  ;;  %11981 = vpow2.f32 %v11290_v42  ;;  %v5203_v37 = vpop.f32.mrf.mxu2 }
 0x2e1   : > { %5522 = vmatpush.bf16.msrb.mxu3 %v10696_v47  ;;  %v5151_v47 = vpop.f32.mrf.mxu3  ;;  %11983 = vpow2.f32 %v11292_v49  ;;  %v5162_v7 = vpop.f32.mrf.mxu1 }
 0x2e2   : > { %5570 = vmatpush.bf16.msra.mxu1 %v11024_v31  ;;  %v11980_v31 = vpop.eup %11979 }
 0x2e3   : > { %6940 = vmatpush.bf16.msrb.mxu2 %v21188_v45  ;;  %v17508_v44 = vadd.f32 1.0, %v11980_v31  ;;  %v17518_v43 = vpop.f32.mrf.mxu0 }
 0x2e4   : > { %6971 = vmatpush.bf16.msrb.mxu0 %v21188_v45 }
 0x2e5   : > { %5523 = vmatpush.bf16.msrb.mxu3 %v10616_v20  ;;  %11285 = vmatmul.msk.bf16.vlgmr.msrb.gmra.mxu1 %vm5097_vm2, %v16617_v10  ;;  %11985 = vrcp.f32 %v17508_v44  ;;  %v10624_v20 = vor.u32 %v11802_v24, %v10623_v62  ;;  %vm5786_vm4 = vweird.f32 %v17508_v44  ;;  %v5790_v52 = vand.u32 2147483647, %v17508_v44 }
 0x2e6   : > { %5571 = vmatpush.bf16.msra.mxu1 %v10944_v2  ;;  %11288 = vmatmul.msk.bf16.vlgmr.msra.gmra.mxu2 %vm5097_vm2, %v16617_v10  ;;  %v10543_v2 = vld [vmem:[%s20487_s2 + $0x48] sm:$0xf]  ;;  %v11982_v38 = vpop.eup %11981 }
 0x2e7   : > { %6941 = vmatpush.bf16.msrb.mxu2 %v21188_v45  ;;  %v11984_v34 = vpop.eup %11983  ;;  %v17529_v30 = vadd.f32 1.0, %v11982_v38  ;;  %v10544_v17 = vor.u32 %v11782_v22, %v10543_v2  ;;  %vm5791_vm8 = vcmp.eq.f32.partialorder %v5790_v52, 8.507059e+37 }
 0x2e8   : > { %6972 = vmatpush.bf16.msrb.mxu0 %v21188_v45  ;;  %v17533_v28 = vadd.f32 1.0, %v11984_v34  ;;  %v5240_v9 = vpop.f32.mrf.mxu2 }
 0x2e9   : > { %5524 = vmatpush.bf16.msrb.mxu3 %v10536_v51  ;;  %v5175_v18 = vpop.f32.mrf.mxu3  ;;  %11987 = vrcp.f32 %v17529_v30  ;;  %v5254_v11 = vadd.f32 %v17457_v40, %v5240_v9  ;;  %v5807_v42 = vand.u32 2147483648, %v17529_v30  ;;  %vm5801_vm7 = vweird.f32 %v17529_v30 }
 0x2ea   : > { %5572 = vmatpush.bf16.msra.mxu1 %v10864_v63  ;;  %v5176_v36 = vadd.f32 %v5175_v18, %v5162_v7  ;;  %v5164_v63 = vpop.f32.mrf.mxu1  ;;  %11989 = vrcp.f32 %v17533_v28  ;;  %vm5831_vm12 = vweird.f32 %v17533_v28 }
 0x2eb   : > { %6942 = vmatpush.bf16.msrb.mxu2 %v21188_v45  ;;  %v17535_v51 = vpop.eup %11985  ;;  %v5294_v8 = vpop.f32.mrf.mxu0  ;;  %v5808_v24 = vor.u32 1.1754944e-38, %v5807_v42 }
 0x2ec   : > { %5525 = vmatmul.bf16.vlgmr.msrb.gmra.mxu3 %v16321_v27  ;;  %6973 = vmatpush.bf16.msrb.mxu0 %v21188_v45  ;;  %v5782_v33 = vmul.f32 %v17535_v51, %v17508_v44  ;;  %v5643_v57 = vrot.slane %v5176_v36, 1  ;;  %vm5787_vm3 = vweird.f32 %v17535_v51 }
 0x2ed   : > { %5588 = vmatpush.bf16.msra.mxu3 %v11264_v39  ;;  %v5646_v39 = vrot.slane %v5254_v11, 1  ;;  %vm17569_vm5 = vmor %vm5786_vm4, %vm5787_vm3 }
 0x2ee   : > { %5573 = vmatpush.bf16.msra.mxu1 %v10784_v26  ;;  %v5783_v12 = vsub.f32 1.0, %v5782_v33  ;;  %v5683_v25 = vadd.f32 %v5643_v57, %v5176_v36 }
 0x2ef   : > { %6943 = vmatpush.bf16.msrb.mxu2 %v21188_v45  ;;  %v11988_v14 = vpop.eup %11987  ;;  %v5686_v26 = vadd.f32 %v5646_v39, %v5254_v11 }
 0x2f0   : > { %6974 = vmatpush.bf16.msrb.mxu0 %v21188_v45  ;;  %v5784_v53 = vmul.f32 %v17535_v51, %v5783_v12  ;;  %v5797_v13 = vmul.f32 %v11988_v14, %v17529_v30  ;;  %v11291_v54 = vmul.f32 -1.442695, %v5683_v25  ;;  %v5242_v23 = vpop.f32.mrf.mxu2  ;;  %vm5802_vm6 = vweird.f32 %v11988_v14 }
 0x2f1   : > { %5589 = vmatpush.bf16.msra.mxu3 %v11184_v35  ;;  %v5177_v55 = vpop.f32.mrf.mxu3  ;;  %v11294_v35 = vmul.f32 -1.442695, %v5686_v26  ;;  %vm5803_vm9 = vmor %vm5801_vm7, %vm5802_vm6 }
 0x2f2   : > { %5574 = vmatpush.bf16.msra.mxu1 %v10704_v48  ;;  %v5785_v40 = vadd.f32 %v17535_v51, %v5784_v53  ;;  %v5227_v41 = vpop.f32.mrf.mxu1  ;;  %v5798_v46 = vsub.f32 1.0, %v5797_v13  ;;  %11991 = vpow2.f32 %v11291_v54  ;;  %v5805_v48 = vand.u32 2147483647, %v17529_v30 }
 0x2f3   : > { %6944 = vmatpush.bf16.msrb.mxu2 %v21188_v45  ;;  %v17565_v49 = vpop.f32.mrf.mxu0  ;;  %11993 = vpow2.f32 %v11294_v35 }
 0x2f4   : > { %6975 = vmatpush.bf16.msrb.mxu0 %v21188_v45  ;;  %v5799_v31 = vmul.f32 %v11988_v14, %v5798_v46  ;;  %v5789_v37 = vsel %vm17569_vm5, %v17535_v51, %v5785_v40  ;;  %vm5806_vm10 = vcmp.eq.f32.partialorder %v5805_v48, 8.507059e+37  ;;  %v5837_v48 = vand.u32 2147483648, %v17533_v28 }
 0x2f5   : > { %6881 = vmatpush.bf16.msrb.mxu3 %v21188_v45 }
 0x2f6   : > { %5575 = vmatpush.bf16.msra.mxu1 %v10624_v20  ;;  %v5800_v62 = vadd.f32 %v11988_v14, %v5799_v31 }
 0x2f7   : > { %6945 = vmatpush.bf16.msrb.mxu2 %v21188_v45 }
 0x2f8   : > { %7084 = vmatpush.bf16.msra.mxu0 %v21188_v45  ;;  %v5804_v38 = vsel %vm5803_vm9, %v11988_v14, %v5800_v62  ;;  %v5305_v18 = vpop.f32.mrf.mxu2 }
 0x2f9   : > { %6882 = vmatpush.bf16.msrb.mxu3 %v21188_v45  ;;  %v5214_v20 = vpop.f32.mrf.mxu3  ;;  %v5306_v30 = vadd.f32 %v5305_v18, %v17518_v43 }
 0x2fa   : > { %5576 = vmatpush.bf16.msra.mxu1 %v10544_v17  ;;  %v5228_v34 = vadd.f32 %v5227_v41, %v5214_v20  ;;  %v5809_v17 = vsel %vm5806_vm10, %v5808_v24, %v5804_v38  ;;  %v5229_v51 = vpop.f32.mrf.mxu1  ;;  %v5835_v41 = vand.u32 2147483647, %v17533_v28 }
 0x2fb   : > { %6946 = vmatpush.bf16.msrb.mxu2 %v21188_v45  ;;  %v5359_v12 = vpop.f32.mrf.mxu0  ;;  %v5648_v39 = vrot.slane %v5306_v30, 1 }
 0x2fc   : > { %11287 = vmatmul.msk.bf16.vlgmr.msra.gmra.mxu3 %vm5097_vm2, %v16617_v10  ;;  %v5792_v10 = vand.u32 2147483648, %v17508_v44  ;;  %7085 = vmatpush.bf16.msra.mxu0 %v21188_v45  ;;  %v5645_v33 = vrot.slane %v5228_v34, 1  ;;  %vm17628_vm14 = vcmp.eq.f32.partialorder %v5835_v41, 8.507059e+37 }
 0x2fd   : > { %6883 = vmatpush.bf16.msrb.mxu3 %v21188_v45  ;;  %5577 = vmatmul.bf16.vlgmr.msra.gmra.mxu1 %v16321_v27  ;;  %v17558_v27 = vpop.eup %11989  ;;  %v5688_v54 = vadd.f32 %v5648_v39, %v5306_v30  ;;  %v21195_v30 = vld [vmem:[#allocation2_spill] sm:$0xff] }
 0x2fe   : > { %6910 = vmatpush.bf16.msrb.mxu1 %v21188_v45  ;;  %v5827_v44 = vmul.f32 %v17558_v27, %v17533_v28  ;;  %v5793_v7 = vor.u32 1.1754944e-38, %v5792_v10  ;;  %v11992_v2 = vpop.eup %11991  ;;  %v5685_v25 = vadd.f32 %v5645_v33, %v5228_v34  ;;  %vm5832_vm11 = vweird.f32 %v17558_v27 }
 0x2ff   : > { %7055 = vmatpush.bf16.msra.mxu2 %v21188_v45  ;;  %v17585_v9 = vadd.f32 1.0, %v11992_v2  ;;  %v11994_v8 = vpop.eup %11993  ;;  %v11296_v42 = vmul.f32 -1.442695, %v5688_v54  ;;  %vm17619_vm13 = vmor %vm5831_vm12, %vm5832_vm11  ;;  %v21196_v51 = vunpack.c.l.bf16 %v21195_v30  ;;  %v21197_v33 = vunpack.c.h.bf16 %v21195_v30 }
 0x300   : > { %v5794_v22 = vsel %vm5791_vm8, %v5793_v7, %v5789_v37  ;;  %v5828_v36 = vsub.f32 1.0, %v5827_v44  ;;  %7086 = vmatpush.bf16.msra.mxu0 %v21188_v45  ;;  %v17592_v53 = vadd.f32 1.0, %v11994_v8  ;;  %v11293_v13 = vmul.f32 -1.442695, %v5685_v25  ;;  %v5307_v10 = vpop.f32.mrf.mxu2 }
 0x301   : > { %6884 = vmatpush.bf16.msrb.mxu3 %v21188_v45  ;;  %v6081_v63 = vpack.c.bf16 %v5809_v17, %v5794_v22  ;;  %11995 = vrcp.f32 %v17585_v9  ;;  %v5216_v23 = vpop.f32.mrf.mxu3  ;;  %v5822_v38 = vand.u32 2147483648, %v17585_v9  ;;  %v5820_v18 = vand.u32 2147483647, %v17585_v9 }
 0x302   : > { %6911 = vmatpush.bf16.msrb.mxu1 %v21188_v45  ;;  %v5829_v43 = vmul.f32 %v17558_v27, %v5828_v36  ;;  %11997 = vrcp.f32 %v17592_v53  ;;  %v5266_v37 = vpop.f32.mrf.mxu1  ;;  %v5838_v36 = vor.u32 1.1754944e-38, %v5837_v48  ;;  %vm5816_vm2 = vweird.f32 %v17585_v9 }
 0x303   : > { %7056 = vmatpush.bf16.msra.mxu2 %v21188_v45  ;;  %v6101_v57 = vunpack.c.l.b16 %v6081_v63  ;;  %v6102_v11 = vunpack.c.h.b16 %v6081_v63  ;;  %11999 = vpow2.f32 %v11293_v13  ;;  %v5823_v13 = vor.u32 1.1754944e-38, %v5822_v38 }
 0x304   : > { %7087 = vmatpush.bf16.msra.mxu0 %v21188_v45  ;;  %v5830_v52 = vadd.f32 %v17558_v27, %v5829_v43  ;;  %12001 = vpow2.f32 %v11296_v42  ;;  %vm5821_vm4 = vcmp.eq.f32.partialorder %v5820_v18, 8.507059e+37  ;;  %v5865_v10 = vand.u32 2147483647, %v17592_v53 }
 0x305   : > { %6885 = vmatpush.bf16.msrb.mxu3 %v21188_v45  ;;  %v6121_v14 = vpack.c.b16 %v6101_v57, %v6101_v57  ;;  %v6122_v55 = vpack.c.b16 %v6102_v11, %v6102_v11  ;;  %v17623_v2 = vpop.f32.mrf.mxu0  ;;  %v21198_v11 = vld [vmem:[#allocation3_spill] sm:$0xff]  ;;  %vm5861_vm5 = vweird.f32 %v17592_v53 }
 0x306   : > { %6912 = vmatpush.bf16.msrb.mxu1 %v21188_v45  ;;  %v5834_v28 = vsel %vm17619_vm13, %v17558_v27, %v5830_v52  ;;  %v21199_v25 = vunpack.c.l.bf16 %v21198_v11  ;;  %v21200_v39 = vunpack.c.h.bf16 %v21198_v11  ;;  %vm17681_vm6 = vcmp.eq.f32.partialorder %v5865_v10, 8.507059e+37 }
 0x307   : > { %7057 = vmatpush.bf16.msra.mxu2 %v21188_v45  ;;  %v6142_v40 = vpack.i.b16 %v6121_v14, %v6121_v14  ;;  %v6146_v26 = vpack.i.b16 %v6122_v55, %v6122_v55  ;;  %v11996_v46 = vpop.eup %11995  ;;  %v5839_v55 = vsel %vm17628_vm14, %v5838_v36, %v5834_v28 }
 0x308   : > { %v5812_v31 = vmul.f32 %v11996_v46, %v17585_v9  ;;  %7088 = vmatpush.bf16.msra.mxu0 %v21188_v45  ;;  %v17611_v44 = vpop.eup %11997  ;;  %vm5817_vm15 = vweird.f32 %v11996_v46 }
 0x309   : > { %6886 = vmatpush.bf16.msrb.mxu3 %v21188_v45  ;;  %v6144_v35 = vperm.slane %v6142_v40, 0  ;;  %v6148_v47 = vperm.slane %v6146_v26, 0  ;;  %v5857_v17 = vmul.f32 %v17611_v44, %v17592_v53  ;;  %v12000_v27 = vpop.eup %11999  ;;  %vm5818_vm3 = vmor %vm5816_vm2, %vm5817_vm15  ;;  %v5279_v54 = vpop.f32.mrf.mxu3  ;;  %vm5862_vm7 = vweird.f32 %v17611_v44 }
 0x30a   : > { %6913 = vmatpush.bf16.msrb.mxu1 %v21188_v45  ;;  %v5813_v20 = vsub.f32 1.0, %v5812_v31  ;;  %v17647_v57 = vadd.f32 1.0, %v12000_v27  ;;  %v12002_v14 = vpop.eup %12001  ;;  %v5344_v26 = vpop.f32.mrf.mxu2  ;;  %vm17705_vm9 = vmor %vm5861_vm5, %vm5862_vm7 }
 0x30b   : > { %7058 = vmatpush.bf16.msra.mxu2 %v21188_v45  ;;  %v17613_v7 = vunpack.c.l.bf16 %v6144_v35  ;;  %v17615_v62 = vunpack.c.l.bf16 %v6148_v47  ;;  %v5858_v40 = vsub.f32 1.0, %v5857_v17  ;;  %v17663_v52 = vadd.f32 1.0, %v12002_v14  ;;  %v5268_v42 = vpop.f32.mrf.mxu1 }
 0x30c   : > { %v5814_v34 = vmul.f32 %v11996_v46, %v5813_v20  ;;  %7089 = vmatpush.bf16.msra.mxu0 %v21188_v45  ;;  %12003 = vrcp.f32 %v17647_v57  ;;  %v5280_v47 = vadd.f32 %v5279_v54, %v5266_v37  ;;  %v5358_v31 = vadd.f32 %v17565_v49, %v5344_v26 }
 0x30d   : > { %6887 = vmatpush.bf16.msrb.mxu3 %v21188_v45  ;;  %v6241_v63 = vmul.f32 %v17613_v7, %v21196_v51  ;;  %v6242_v8 = vmul.f32 %v17615_v62, %v21197_v33  ;;  %v6261_v43 = vmul.f32 %v17613_v7, %v21199_v25  ;;  %v6262_v9 = vmul.f32 %v17615_v62, %v21200_v39  ;;  %v5398_v48 = vpop.f32.mrf.mxu0 }
 0x30e   : > { %6914 = vmatpush.bf16.msrb.mxu1 %v21188_v45  ;;  %v5815_v12 = vadd.f32 %v11996_v46, %v5814_v34  ;;  %v5867_v20 = vand.u32 2147483648, %v17592_v53  ;;  %12005 = vrcp.f32 %v17663_v52  ;;  %v5859_v28 = vmul.f32 %v17611_v44, %v5858_v40 }
 0x30f   : > { %7059 = vmatpush.bf16.msra.mxu2 %v21188_v45  ;;  %v17665_v35 = vpack.c.bf16 %v6242_v8, %v6241_v63  ;;  %v17670_v24 = vpack.c.bf16 %v6262_v9, %v6261_v43  ;;  %v5647_v22 = vrot.slane %v5280_v47, 1  ;;  %v5650_v38 = vrot.slane %v5358_v31, 1  ;;  %v21205_v9 = vld [vmem:[#allocation4_spill] sm:$0xff] }
 0x310   : > { %v5819_v23 = vsel %vm5818_vm3, %v11996_v46, %v5815_v12  ;;  %7090 = vmatpush.bf16.msra.mxu0 %v21188_v45  ;;  %v5868_v27 = vor.u32 1.1754944e-38, %v5867_v20  ;;  %v5860_v33 = vadd.f32 %v17611_v44, %v5859_v28  ;;  %v21206_v14 = vunpack.c.l.bf16 %v21205_v9  ;;  %v21210_v28 = vld [vmem:[#allocation5_spill] sm:$0xff] }
 0x311   : > { %6888 = vmatpush.bf16.msrb.mxu3 %v21188_v45  ;;  %v5824_v41 = vsel %vm5821_vm4, %v5823_v13, %v5819_v23  ;;  %21201 = vst [vmem:[#allocation44_spill] sm:$0xff] %v17665_v35  ;;  %v6561_v34 = vunpack.c.l.b16 %v17665_v35  ;;  %v6581_v17 = vunpack.c.l.b16 %v17670_v24  ;;  %v5687_v30 = vadd.f32 %v5647_v22, %v5280_v47  ;;  %v5281_v51 = vpop.f32.mrf.mxu3 }
 0x312   : > { %6915 = vmatpush.bf16.msrb.mxu1 %v21188_v45  ;;  %v6082_v46 = vpack.c.bf16 %v5839_v55, %v5824_v41  ;;  %21202 = vst [vmem:[#allocation47_spill] sm:$0xff] %v17670_v24  ;;  %v12004_v49 = vpop.eup %12003  ;;  %v5690_v8 = vadd.f32 %v5650_v38, %v5358_v31  ;;  %v5346_v11 = vpop.f32.mrf.mxu2  ;;  %v6281_v55 = vmul.f32 %v17613_v7, %v21206_v14  ;;  %v21207_v13 = vunpack.c.h.bf16 %v21205_v9 }
 0x313   : > { %7060 = vmatpush.bf16.msra.mxu2 %v21188_v45  ;;  %v5842_v36 = vmul.f32 %v12004_v49, %v17647_v57  ;;  %v6721_v12 = vpack.c.b16 %v6581_v17, %v6561_v34  ;;  %v11295_v39 = vmul.f32 -1.442695, %v5687_v30  ;;  %vm5847_vm8 = vweird.f32 %v12004_v49  ;;  %v5331_v47 = vpop.f32.mrf.mxu1 }
 0x314   : > { %7091 = vmatpush.bf16.msra.mxu0 %v21188_v45  ;;  %v6103_v37 = vunpack.c.l.b16 %v6082_v46  ;;  %v6104_v63 = vunpack.c.h.b16 %v6082_v46  ;;  %v17690_v25 = vpop.eup %12005  ;;  %v6282_v54 = vmul.f32 %v17615_v62, %v21207_v13  ;;  %v5850_v40 = vand.u32 2147483647, %v17647_v57 }
 0x315   : > { %6997 = vmatpush.bf16.msra.mxu3 %v21188_v45  ;;  %v5843_v43 = vsub.f32 1.0, %v5842_v36  ;;  %v5852_v26 = vand.u32 2147483648, %v17647_v57  ;;  %v5887_v42 = vmul.f32 %v17690_v25, %v17663_v52  ;;  %12007 = vpow2.f32 %v11295_v39  ;;  %v17714_v20 = vpop.f32.mrf.mxu0 }
 0x316   : > { %6916 = vmatpush.bf16.msrb.mxu1 %v21188_v45  ;;  %v6123_v23 = vpack.c.b16 %v6103_v37, %v6103_v37  ;;  %6889 = vmatmul.bf16.vlgmr.msrb.gmra.mxu3 %v6721_v12  ;;  %v11298_v46 = vmul.f32 -1.442695, %v5690_v8  ;;  %v6124_v31 = vpack.c.b16 %v6104_v63, %v6104_v63  ;;  %v5864_v48 = vsel %vm17705_vm9, %v17611_v44, %v5860_v33 }
 0x317   : > { %7061 = vmatpush.bf16.msra.mxu2 %v21188_v45  ;;  %v5844_v10 = vmul.f32 %v12004_v49, %v5843_v43  ;;  %v21211_v53 = vunpack.c.l.bf16 %v21210_v28  ;;  %v21212_v38 = vunpack.c.h.bf16 %v21210_v28  ;;  %vm5846_vm10 = vweird.f32 %v17647_v57 }
 0x318   : > { %12009 = vpow2.f32 %v11298_v46  ;;  %v6562_v17 = vunpack.c.h.b16 %v17665_v35  ;;  %vm5848_vm11 = vmor %vm5846_vm10, %vm5847_vm8  ;;  %vm5851_vm12 = vcmp.eq.f32.partialorder %v5850_v40, 8.507059e+37  ;;  %v5853_v44 = vor.u32 1.1754944e-38, %v5852_v26 }
 0x319   : > { %6998 = vmatpush.bf16.msra.mxu3 %v21188_v45  ;;  %v6301_v22 = vmul.f32 %v17613_v7, %v21211_v53  ;;  %v6302_v34 = vmul.f32 %v17615_v62, %v21212_v38  ;;  %v5845_v37 = vadd.f32 %v12004_v49, %v5844_v10  ;;  %v6582_v36 = vunpack.c.h.b16 %v17670_v24 }
 0x31a   : > { %6917 = vmatpush.bf16.msrb.mxu1 %v21188_v45  ;;  %v17728_v30 = vpack.c.bf16 %v6282_v54, %v6281_v55  ;;  %v6150_v51 = vpack.i.b16 %v6123_v23, %v6123_v23  ;;  %v5869_v63 = vsel %vm17681_vm6, %v5868_v27, %v5864_v48  ;;  %v5888_v8 = vsub.f32 1.0, %v5887_v42  ;;  %v5409_v14 = vpop.f32.mrf.mxu2 }
 0x31b   : > { %7062 = vmatpush.bf16.msra.mxu2 %v21188_v45  ;;  %v5849_v33 = vsel %vm5848_vm11, %v12004_v49, %v5845_v37  ;;  %v6154_v57 = vpack.i.b16 %v6124_v31, %v6124_v31  ;;  %v6722_v11 = vpack.c.b16 %v6582_v36, %v6562_v17  ;;  %v17732_v43 = vpack.c.bf16 %v6302_v34, %v6301_v22  ;;  %v12008_v39 = vpop.eup %12007  ;;  %v5333_v40 = vpop.f32.mrf.mxu1 }
 0x31c   : > { %21213 = vst [vmem:[#allocation2_spill] sm:$0xff] %v17728_v30  ;;  %v5854_v12 = vsel %vm5851_vm12, %v5853_v44, %v5849_v33  ;;  %v17738_v55 = vadd.f32 1.0, %v12008_v39  ;;  %v5410_v18 = vadd.f32 %v5409_v14, %v17623_v2  ;;  %v6152_v13 = vperm.slane %v6150_v51, 0 }
 0x31d   : > { %6999 = vmatpush.bf16.msra.mxu3 %v21188_v45  ;;  %21214 = vst [vmem:[#allocation3_spill] sm:$0xff] %v17732_v43  ;;  %v17735_v9 = vpack.c.bf16 %v5869_v63, %v5854_v12  ;;  %6918 = vmatmul.bf16.vlgmr.msrb.gmra.mxu1 %v6722_v11  ;;  %v5889_v54 = vmul.f32 %v17690_v25, %v5888_v8  ;;  %v6156_v26 = vperm.slane %v6154_v57, 0  ;;  %v5463_v41 = vpop.f32.mrf.mxu0  ;;  %v6601_v10 = vunpack.c.l.b16 %v17728_v30 }
 0x31e   : > { %7026 = vmatpush.bf16.msra.mxu1 %v21188_v45  ;;  %v12010_v27 = vpop.eup %12009  ;;  %12011 = vrcp.f32 %v17738_v55  ;;  %v6621_v42 = vunpack.c.l.b16 %v17732_v43  ;;  %v5895_v46 = vand.u32 2147483647, %v17663_v52  ;;  %v5652_v31 = vrot.slane %v5410_v18, 1  ;;  %v21222_v41 = vld [vmem:[#allocation8_spill] sm:$0xff] }
 0x31f   : > { %v5318_v49 = vpop.f32.mrf.mxu3  ;;  %v17747_v2 = vadd.f32 1.0, %v12010_v27  ;;  %v17752_v28 = vunpack.c.l.bf16 %v6152_v13  ;;  %v5890_v53 = vadd.f32 %v17690_v25, %v5889_v54  ;;  %vm5892_vm13 = vweird.f32 %v17690_v25 }
 0x320   : > { %v5332_v23 = vadd.f32 %v5331_v47, %v5318_v49  ;;  %v5897_v47 = vand.u32 2147483648, %v17663_v52  ;;  %v17757_v22 = vunpack.c.l.bf16 %v6156_v26  ;;  %v5692_v38 = vadd.f32 %v5652_v31, %v5410_v18  ;;  %v21219_v49 = vld [vmem:[#allocation7_spill] sm:$0xff] }
 0x321   : > { %7000 = vmatpush.bf16.msra.mxu3 %v21188_v45  ;;  %12013 = vrcp.f32 %v17747_v2  ;;  %v6741_v37 = vpack.c.b16 %v6621_v42, %v6601_v10  ;;  %vm5891_vm14 = vweird.f32 %v17663_v52  ;;  %vm17761_vm15 = vcmp.eq.f32.partialorder %v5895_v46, 8.507059e+37 }
 0x322   : > { %7027 = vmatpush.bf16.msra.mxu1 %v21188_v45  ;;  %v5649_v48 = vrot.slane %v5332_v23, 1  ;;  %v5411_v44 = vpop.f32.mrf.mxu2  ;;  %vm17765_vm2 = vmor %vm5891_vm14, %vm5892_vm13  ;;  %v5898_v63 = vor.u32 1.1754944e-38, %v5897_v47  ;;  %v11300_v8 = vmul.f32 -1.442695, %v5692_v38  ;;  %v6602_v14 = vunpack.c.h.b16 %v17728_v30 }
 0x323   : > { %v5894_v52 = vsel %vm17765_vm2, %v17690_v25, %v5890_v53  ;;  %v6622_v18 = vunpack.c.h.b16 %v17732_v43  ;;  %v21220_v27 = vunpack.c.l.bf16 %v21219_v49  ;;  %v21221_v54 = vunpack.c.h.bf16 %v21219_v49 }
 0x324   : > { %v5689_v34 = vadd.f32 %v5649_v48, %v5332_v23  ;;  %v12012_v36 = vpop.eup %12011  ;;  %12015 = vpow2.f32 %v11300_v8  ;;  %v21223_v10 = vunpack.c.l.bf16 %v21222_v41  ;;  %v21224_v46 = vunpack.c.h.bf16 %v21222_v41 }
 0x325   : > { %7001 = vmatpush.bf16.msra.mxu3 %v21188_v45  ;;  %v5872_v11 = vmul.f32 %v12012_v36, %v17738_v55  ;;  %v6243_v13 = vmul.f32 %v17752_v28, %v21220_v27  ;;  %v6244_v23 = vmul.f32 %v17757_v22, %v21221_v54  ;;  %v6105_v47 = vunpack.c.l.b16 %v17735_v9 }
 0x326   : > { %7028 = vmatpush.bf16.msra.mxu1 %v21188_v45  ;;  %v11297_v57 = vmul.f32 -1.442695, %v5689_v34  ;;  %6894 = vmatmul.bf16.gmra.mxu3 %v6741_v37  ;;  %v6263_v42 = vmul.f32 %v17752_v28, %v21223_v10  ;;  %v6264_v31 = vmul.f32 %v17757_v22, %v21224_v46  ;;  %v5882_v48 = vand.u32 2147483648, %v17738_v55 }
 0x327   : > { %v5320_v12 = vpop.f32.mrf.mxu3  ;;  %v17787_v40 = vpop.eup %12013  ;;  %v5873_v26 = vsub.f32 1.0, %v5872_v11  ;;  %v17800_v38 = vpack.c.bf16 %v6244_v23, %v6243_v13  ;;  %vm5877_vm3 = vweird.f32 %v12012_v36  ;;  %v5880_v44 = vand.u32 2147483647, %v17738_v55 }
 0x328   : > { %12017 = vpow2.f32 %v11297_v57  ;;  %v5917_v53 = vmul.f32 %v17787_v40, %v17747_v2  ;;  %v17805_v51 = vpack.c.bf16 %v6264_v31, %v6263_v42  ;;  %v6106_v8 = vunpack.c.h.b16 %v17735_v9 }
 0x329   : > { %7002 = vmatpush.bf16.msra.mxu3 %v21188_v45  ;;  %21225 = vst [vmem:[#allocation4_spill] sm:$0xff] %v17800_v38  ;;  %v5874_v37 = vmul.f32 %v12012_v36, %v5873_v26  ;;  %v6742_v12 = vpack.c.b16 %v6622_v18, %v6602_v14  ;;  %v6563_v11 = vunpack.c.l.b16 %v17800_v38  ;;  %vm5876_vm4 = vweird.f32 %v17738_v55 }
 0x32a   : > { %7029 = vmatpush.bf16.msra.mxu1 %v21188_v45  ;;  %v17784_v25 = vpop.f32.mrf.mxu1  ;;  %21226 = vst [vmem:[#allocation5_spill] sm:$0xff] %v17805_v51  ;;  %v5918_v57 = vsub.f32 1.0, %v5917_v53  ;;  %v20701_v27 = vunpack.c.l.bf16 %v17670_v24  ;;  %v6583_v13 = vunpack.c.l.b16 %v17805_v51  ;;  %v12016_v54 = vpop.eup %12015  ;;  %v6125_v23 = vpack.c.b16 %v6105_v47, %v6105_v47  ;;  %vm5878_vm5 = vmor %vm5876_vm4, %vm5877_vm3 }
 0x32b   : > { %v5875_v49 = vadd.f32 %v12012_v36, %v5874_v37  ;;  %v5899_v26 = vsel %vm17761_vm15, %v5898_v63, %v5894_v52  ;;  %v5883_v9 = vor.u32 1.1754944e-38, %v5882_v48  ;;  %v20700_v14 = vunpack.c.h.bf16 %v17670_v24 }
 0x32c   : > { %vm5881_vm6 = vcmp.eq.f32.partialorder %v5880_v44, 8.507059e+37  ;;  %v17818_v55 = vadd.f32 1.0, %v12016_v54  ;;  %v6723_v10 = vpack.c.b16 %v6583_v13, %v6563_v11  ;;  %v6126_v31 = vpack.c.b16 %v6106_v8, %v6106_v8 }
 0x32d   : > { %7003 = vmatpush.bf16.msra.mxu3 %v21188_v45  ;;  %v17802_v34 = vpop.f32.mrf.mxu0  ;;  %6923 = vmatmul.bf16.gmra.mxu1 %v6742_v12  ;;  %v5879_v41 = vsel %vm5878_vm5, %v12012_v36, %v5875_v49  ;;  %v5919_v17 = vmul.f32 %v17787_v40, %v5918_v57  ;;  %v6564_v36 = vunpack.c.h.b16 %v17800_v38  ;;  %v6584_v53 = vunpack.c.h.b16 %v17805_v51  ;;  %v21228_v49 = vld [vmem:[#allocation6_spill] sm:$0xff]  ;;  %v21301_v38 = vld [vmem:[#allocation20_spill] sm:$0xff] }
 0x32e   : > { %7030 = vmatpush.bf16.msra.mxu1 %v21188_v45  ;;  %v12018_v18 = vpop.eup %12017  ;;  %v5884_v47 = vsel %vm5881_vm6, %v5883_v9, %v5879_v41  ;;  %12019 = vrcp.f32 %v17818_v55  ;;  %6947 = vmatmul.bf16.vlgmr.msrb.gmra.mxu2 %v6723_v10  ;;  %v17834_v37 = vmax.f32 %v20701_v27, %v20700_v14  ;;  %v20703_v44 = vunpack.c.l.bf16 %v17728_v30 }
 0x32f   : > { %v5383_v42 = vpop.f32.mrf.mxu3  ;;  %v17822_v63 = vadd.f32 1.0, %v12018_v18  ;;  %v17824_v48 = vpack.c.bf16 %v5899_v26, %v5884_v47  ;;  %v20702_v8 = vunpack.c.h.bf16 %v17728_v30  ;;  %7171 = vmatpush.bf16.msrb.mxu2 %v21188_v45  ;;  %v6158_v12 = vpack.i.b16 %v6125_v23, %v6125_v23  ;;  %v21231_v47 = vld [vmem:[#allocation9_spill] sm:$0xff] }
 0x330   : > { %21227 = vst [vmem:[#allocation7_spill] sm:$0xff] %v17834_v37  ;;  %v20705_v11 = vunpack.c.l.bf16 %v17732_v43  ;;  %v21229_v13 = vunpack.c.l.bf16 %v21228_v49  ;;  %v21230_v26 = vunpack.c.h.bf16 %v21228_v49  ;;  %v6162_v18 = vpack.i.b16 %v6126_v31, %v6126_v31 }
 0x331   : > { %7004 = vmatpush.bf16.msra.mxu3 %v21188_v45  ;;  %v5448_v46 = vpop.f32.mrf.mxu2  ;;  %12021 = vrcp.f32 %v17822_v63  ;;  %v5925_v41 = vand.u32 2147483647, %v17747_v2  ;;  %v5927_v10 = vand.u32 2147483648, %v17747_v2  ;;  %vm5922_vm7 = vweird.f32 %v17787_v40 }
 0x332   : > { %7031 = vmatpush.bf16.msra.mxu1 %v21188_v45  ;;  %v5372_v52 = vpop.f32.mrf.mxu1  ;;  %v6321_v54 = vmul.f32 %v17613_v7, %v21229_v13  ;;  %v6322_v9 = vmul.f32 %v17615_v62, %v21230_v26  ;;  %v6724_v13 = vpack.c.b16 %v6584_v53, %v6564_v36  ;;  %v5384_v49 = vadd.f32 %v5383_v42, %v17784_v25 }
 0x333   : > { %v21232_v52 = vunpack.c.l.bf16 %v21231_v47  ;;  %v20704_v26 = vunpack.c.h.bf16 %v17732_v43  ;;  %v17862_v31 = vmax.f32 %v20703_v44, %v20702_v8  ;;  %v5462_v14 = vadd.f32 %v17714_v20, %v5448_v46  ;;  %7172 = vmatpush.bf16.msrb.mxu2 %v21188_v45 }
 0x334   : > { %v17869_v36 = vpop.eup %12019  ;;  %v17871_v25 = vperm.slane %v6158_v12, 0  ;;  %vm5921_vm8 = vweird.f32 %v17747_v2  ;;  %6976 = vmatmul.bf16.vlgmr.msrb.gmra.mxu0 %v6724_v13  ;;  %v5651_v42 = vrot.slane %v5384_v49, 1  ;;  %v17874_v53 = vpack.c.bf16 %v6322_v9, %v6321_v54 }
 0x335   : > { %7113 = vmatpush.bf16.msrb.mxu3 %v21188_v45  ;;  %v5502_v57 = vpop.f32.mrf.mxu0  ;;  %v6341_v23 = vmul.f32 %v17613_v7, %v21232_v52  ;;  %v21233_v52 = vunpack.c.h.bf16 %v21231_v47  ;;  %v17877_v46 = vperm.slane %v6162_v18, 0  ;;  %vm17881_vm9 = vmor %vm5921_vm8, %vm5922_vm7  ;;  %v5947_v2 = vmul.f32 %v17869_v36, %v17818_v55  ;;  %7200 = vmatpush.bf16.msrb.mxu0 %v21188_v45 }
 0x336   : > { %7032 = vmatpush.bf16.msra.mxu1 %v21188_v45  ;;  %v5920_v57 = vadd.f32 %v17787_v40, %v5919_v17  ;;  %21234 = vst [vmem:[#allocation8_spill] sm:$0xff] %v17874_v53  ;;  %v5654_v12 = vrot.slane %v5462_v14, 1  ;;  %vm17893_vm10 = vcmp.eq.f32.partialorder %v5925_v41, 8.507059e+37  ;;  %v5928_v54 = vor.u32 1.1754944e-38, %v5927_v10 }
 0x337   : > { %v6342_v17 = vmul.f32 %v17615_v62, %v21233_v52  ;;  %v5385_v27 = vpop.f32.mrf.mxu3  ;;  %v12022_v20 = vpop.eup %12021  ;;  %v6107_v18 = vunpack.c.l.b16 %v17824_v48  ;;  %v5691_v52 = vadd.f32 %v5651_v42, %v5384_v49  ;;  %7173 = vmatpush.bf16.msrb.mxu2 %v21188_v45  ;;  %v6108_v47 = vunpack.c.h.b16 %v17824_v48 }
 0x338   : > { %v5924_v27 = vsel %vm17881_vm9, %v17787_v40, %v5920_v57  ;;  %v5902_v9 = vmul.f32 %v12022_v20, %v17822_v63  ;;  %vm5906_vm11 = vweird.f32 %v17822_v63  ;;  %v5948_v10 = vsub.f32 1.0, %v5947_v2 }
 0x339   : > { %7114 = vmatpush.bf16.msrb.mxu3 %v21188_v45  ;;  %v5450_v8 = vpop.f32.mrf.mxu2  ;;  %v17887_v13 = vpack.c.bf16 %v6342_v17, %v6341_v23  ;;  %v5694_v23 = vadd.f32 %v5654_v12, %v5462_v14  ;;  %v6641_v17 = vunpack.c.l.b16 %v17874_v53  ;;  %v5912_v57 = vand.u32 2147483648, %v17822_v63  ;;  %7201 = vmatpush.bf16.msrb.mxu0 %v21188_v45 }
 0x33a   : > { %7033 = vmatpush.bf16.msra.mxu1 %v21188_v45  ;;  %v5903_v40 = vsub.f32 1.0, %v5902_v9  ;;  %v11299_v44 = vmul.f32 -1.442695, %v5691_v52  ;;  %vm5907_vm12 = vweird.f32 %v12022_v20  ;;  %v5910_v49 = vand.u32 2147483647, %v17822_v63  ;;  %v21240_v8 = vld [vmem:[#allocation12_spill] sm:$0xff] }
 0x33b   : > { %21237 = vst [vmem:[#allocation6_spill] sm:$0xff] %v17887_v13  ;;  %v6661_v41 = vunpack.c.l.b16 %v17887_v13  ;;  %v11302_v33 = vmul.f32 -1.442695, %v5694_v23  ;;  %v6127_v48 = vpack.c.b16 %v6107_v18, %v6107_v18  ;;  %v5929_v12 = vsel %vm17893_vm10, %v5928_v54, %v5924_v27  ;;  %7174 = vmatpush.bf16.msrb.mxu2 %v21188_v45  ;;  %vm5908_vm13 = vmor %vm5906_vm11, %vm5907_vm12 }
 0x33c   : > { %v5904_v14 = vmul.f32 %v12022_v20, %v5903_v40  ;;  %12023 = vpow2.f32 %v11299_v44  ;;  %v6642_v2 = vunpack.c.h.b16 %v17874_v53  ;;  %v6128_v9 = vpack.c.b16 %v6108_v47, %v6108_v47 }
 0x33d   : > { %7115 = vmatpush.bf16.msrb.mxu3 %v21188_v45  ;;  %v6761_v42 = vpack.c.b16 %v6661_v41, %v6641_v17  ;;  %12025 = vpow2.f32 %v11302_v33  ;;  %v6662_v23 = vunpack.c.h.b16 %v17887_v13  ;;  %v5949_v40 = vmul.f32 %v17869_v36, %v5948_v10  ;;  %7202 = vmatpush.bf16.msrb.mxu0 %v21188_v45  ;;  %v21243_v41 = vld [vmem:[#allocation13_spill] sm:$0xff]  ;;  %v17937_v39 = vpop.f32.mrf.mxu0 }
 0x33e   : > { %7142 = vmatpush.bf16.msrb.mxu1 %v21188_v45  ;;  %v5905_v52 = vadd.f32 %v12022_v20, %v5904_v14  ;;  %v5913_v18 = vor.u32 1.1754944e-38, %v5912_v57  ;;  %v21241_v27 = vunpack.c.l.bf16 %v21240_v8  ;;  %v21242_v54 = vunpack.c.h.bf16 %v21240_v8 }
 0x33f   : > { %6899 = vmatmul.bf16.gmra.mxu3 %v6761_v42  ;;  %vm5911_vm14 = vcmp.eq.f32.partialorder %v5910_v49, 8.507059e+37  ;;  %v6762_v47 = vpack.c.b16 %v6662_v23, %v6642_v2  ;;  %v21244_v10 = vunpack.c.l.bf16 %v21243_v41  ;;  %v6166_v63 = vpack.i.b16 %v6127_v48, %v6127_v48  ;;  %7175 = vmatpush.bf16.msrb.mxu2 %v21188_v45 }
 0x340   : > { %v6283_v44 = vmul.f32 %v17752_v28, %v21241_v27  ;;  %v6284_v17 = vmul.f32 %v17757_v22, %v21242_v54  ;;  %v5909_v33 = vsel %vm5908_vm13, %v12022_v20, %v5905_v52  ;;  %v21245_v42 = vunpack.c.h.bf16 %v21243_v41  ;;  %v17935_v54 = vpop.f32.mrf.mxu1 }
 0x341   : > { %7116 = vmatpush.bf16.msrb.mxu3 %v21188_v45  ;;  %v6303_v14 = vmul.f32 %v17752_v28, %v21244_v10  ;;  %v5914_v57 = vsel %vm5911_vm14, %v5913_v18, %v5909_v33  ;;  %v17941_v20 = vunpack.c.l.bf16 %v17871_v25  ;;  %v6170_v49 = vpack.i.b16 %v6128_v9, %v6128_v9  ;;  %6928 = vmatmul.bf16.gmra.mxu1 %v6762_v47  ;;  %v5513_v52 = vpop.f32.mrf.mxu2 }
 0x342   : > { %7143 = vmatpush.bf16.msrb.mxu1 %v21188_v45  ;;  %v6304_v27 = vmul.f32 %v17757_v22, %v21245_v42  ;;  %v17933_v8 = vpack.c.bf16 %v6284_v17, %v6283_v44  ;;  %v6085_v2 = vpack.c.bf16 %v5929_v12, %v5914_v57  ;;  %v17947_v48 = vmax.f32 %v20705_v11, %v20704_v26  ;;  %v12024_v23 = vpop.eup %12023  ;;  %v21250_v42 = vld [vmem:[#allocation10_spill] sm:$0xff] }
 0x343   : > { %v17950_v18 = vunpack.c.l.bf16 %v17877_v46  ;;  %v5950_v44 = vadd.f32 %v17869_v36, %v5949_v40  ;;  %vm5952_vm15 = vweird.f32 %v17869_v36  ;;  %7203 = vmatpush.bf16.msrb.mxu0 %v21188_v45  ;;  %v12026_v12 = vpop.eup %12025  ;;  %vm5951_vm2 = vweird.f32 %v17818_v55  ;;  %7176 = vmatpush.bf16.msrb.mxu2 %v21188_v45 }
 0x344   : > { %21246 = vst [vmem:[#allocation9_spill] sm:$0xff] %v17933_v8  ;;  %v17954_v25 = vpack.c.bf16 %v6304_v27, %v6303_v14  ;;  %v5955_v9 = vand.u32 2147483647, %v17818_v55  ;;  %v5957_v17 = vand.u32 2147483648, %v17818_v55  ;;  %v17961_v33 = vadd.f32 1.0, %v12024_v23  ;;  %vm17970_vm3 = vmor %vm5951_vm2, %vm5952_vm15 }
 0x345   : > { %7117 = vmatpush.bf16.msrb.mxu3 %v21188_v45  ;;  %v6168_v46 = vperm.slane %v6166_v63, 0  ;;  %v17964_v40 = vadd.f32 1.0, %v12026_v12  ;;  %v6603_v47 = vunpack.c.l.b16 %v17933_v8  ;;  %v6172_v10 = vperm.slane %v6170_v49, 0  ;;  %v5567_v55 = vpop.f32.mrf.mxu0 }
 0x346   : > { %7144 = vmatpush.bf16.msrb.mxu1 %v21188_v45  ;;  %21247 = vst [vmem:[#allocation12_spill] sm:$0xff] %v17954_v25  ;;  %v6623_v41 = vunpack.c.l.b16 %v17954_v25  ;;  %12027 = vrcp.f32 %v17961_v33  ;;  %v5954_v63 = vsel %vm17970_vm3, %v17869_v36, %v5950_v44  ;;  %v21251_v27 = vunpack.c.l.bf16 %v21250_v42 }
 0x347   : > { %12029 = vrcp.f32 %v17964_v40  ;;  %v21252_v23 = vunpack.c.h.bf16 %v21250_v42  ;;  %7204 = vmatpush.bf16.msrb.mxu0 %v21188_v45  ;;  %v6109_v26 = vunpack.c.l.b16 %v6085_v2  ;;  %v6110_v11 = vunpack.c.h.b16 %v6085_v2  ;;  %7177 = vmatpush.bf16.msrb.mxu2 %v21188_v45 }
 0x348   : > { %v6361_v49 = vmul.f32 %v17613_v7, %v21251_v27  ;;  %v6381_v36 = vmul.f32 %v17613_v7, %v21254_v61  ;;  %v21255_v44 = vunpack.c.h.bf16 %v21253_v29  ;;  %vm5956_vm4 = vcmp.eq.f32.partialorder %v5955_v9, 8.507059e+37 }
 0x349   : > { %7118 = vmatpush.bf16.msrb.mxu3 %v21188_v45  ;;  %v6362_v12 = vmul.f32 %v17615_v62, %v21252_v23  ;;  %v5958_v27 = vor.u32 1.1754944e-38, %v5957_v17  ;;  %v6743_v15 = vpack.c.b16 %v6623_v41, %v6603_v47  ;;  %v6604_v42 = vunpack.c.h.b16 %v17933_v8  ;;  %v5437_v23 = vpop.f32.mrf.mxu1  ;;  %v5515_v61 = vpop.f32.mrf.mxu2 }
 0x34a   : > { %7145 = vmatpush.bf16.msrb.mxu1 %v21188_v45  ;;  %v6382_v14 = vmul.f32 %v17615_v62, %v21255_v44  ;;  %v17996_v57 = vunpack.c.l.bf16 %v6168_v46  ;;  %v17998_v24 = vunpack.c.l.bf16 %v6172_v10  ;;  %v21256_v29 = vunpack.c.h.bf16 %v17874_v53 }
 0x34b   : > { %v5959_v7 = vsel %vm5956_vm4, %v5958_v27, %v5954_v63  ;;  %v21257_v62 = vunpack.c.l.bf16 %v17874_v53  ;;  %6952 = vmatmul.bf16.gmra.mxu2 %v6743_v15  ;;  %v6624_v17 = vunpack.c.h.b16 %v17954_v25  ;;  %v5514_v46 = vadd.f32 %v5513_v52, %v17802_v34  ;;  %7205 = vmatpush.bf16.msrb.mxu0 %v21188_v45  ;;  %v5422_v27 = vpop.f32.mrf.mxu3 }
 0x34c   : > { %v12028_v47 = vpop.eup %12027  ;;  %v18011_v41 = vpack.c.b16 %v6109_v26, %v6109_v26  ;;  %v18013_v10 = vpack.c.b16 %v6110_v11, %v6110_v11  ;;  %v18015_v55 = vpack.c.bf16 %v6362_v12, %v6361_v49  ;;  %v18017_v63 = vpack.c.bf16 %v6382_v14, %v6381_v36  ;;  %7178 = vmatpush.bf16.msrb.mxu2 %v21188_v45 }
 0x34d   : > { %7119 = vmatpush.bf16.msrb.mxu3 %v21188_v45  ;;  %v18006_v9 = vmax.f32 %v21257_v62, %v21256_v29  ;;  %v18020_v44 = vpop.eup %12029  ;;  %v5932_v15 = vmul.f32 %v12028_v47, %v17961_v33  ;;  %vm5936_vm5 = vweird.f32 %v17961_v33  ;;  %v6744_v52 = vpack.c.b16 %v6624_v17, %v6604_v42 }
 0x34e   : > { %7146 = vmatpush.bf16.msrb.mxu1 %v21188_v45  ;;  %21258 = vst [vmem:[#allocation13_spill] sm:$0xff] %v18015_v55  ;;  %v5940_v26 = vand.u32 2147483647, %v17961_v33  ;;  %v5942_v11 = vand.u32 2147483648, %v17961_v33  ;;  %v5656_v49 = vrot.slane %v5514_v46, 1  ;;  %v5436_v12 = vadd.f32 %v17935_v54, %v5422_v27 }
 0x34f   : > { %21259 = vst [vmem:[#allocation10_spill] sm:$0xff] %v18017_v63  ;;  %v5933_v36 = vsub.f32 1.0, %v5932_v15  ;;  %v5977_v14 = vmul.f32 %v18020_v44, %v17964_v40  ;;  %6981 = vmatmul.bf16.gmra.mxu0 %v6744_v52  ;;  %v6681_v23 = vunpack.c.l.b16 %v18015_v55  ;;  %v6701_v61 = vunpack.c.l.b16 %v18017_v63 }
 0x350   : > { %v6174_v42 = vpack.i.b16 %v18011_v41, %v18011_v41  ;;  %v6178_v29 = vpack.i.b16 %v18013_v10, %v18013_v10  ;;  %v5696_v62 = vadd.f32 %v5656_v49, %v5514_v46  ;;  %v5653_v17 = vrot.slane %v5436_v12, 1  ;;  %7206 = vmatpush.bf16.msrb.mxu0 %v21188_v45 }
 0x351   : > { %7120 = vmatpush.bf16.msrb.mxu3 %v21188_v45  ;;  %v5934_v54 = vmul.f32 %v12028_v47, %v5933_v36  ;;  %vm5937_vm6 = vweird.f32 %v12028_v47  ;;  %v5985_v15 = vand.u32 2147483647, %v17964_v40  ;;  %v6781_v52 = vpack.c.b16 %v6701_v61, %v6681_v23  ;;  %v21262_v23 = vld [vmem:[#allocation14_spill] sm:$0xff] }
 0x352   : > { %7147 = vmatpush.bf16.msrb.mxu1 %v21188_v45  ;;  %vm18039_vm7 = vcmp.eq.f32.partialorder %v5940_v26, 8.507059e+37  ;;  %v5987_v41 = vand.u32 2147483648, %v17964_v40  ;;  %v11304_v2 = vmul.f32 -1.442695, %v5696_v62  ;;  %v5693_v43 = vadd.f32 %v5653_v17, %v5436_v12  ;;  %vm5938_vm8 = vmor %vm5936_vm5, %vm5937_vm6 }
 0x353   : > { %v5935_v10 = vadd.f32 %v12028_v47, %v5934_v54  ;;  %v5978_v46 = vsub.f32 1.0, %v5977_v14  ;;  %6904 = vmatmul.bf16.gmra.mxu3 %v6781_v52  ;;  %v6682_v49 = vunpack.c.h.b16 %v18015_v55  ;;  %v6702_v34 = vunpack.c.h.b16 %v18017_v63  ;;  %v21265_v54 = vld [vmem:[#allocation15_spill] sm:$0xff]  ;;  %v5424_v53 = vpop.f32.mrf.mxu3 }
 0x354   : > { %v5943_v36 = vor.u32 1.1754944e-38, %v5942_v11  ;;  %12031 = vpow2.f32 %v11304_v2  ;;  %v11301_v26 = vmul.f32 -1.442695, %v5693_v43  ;;  %v21263_v61 = vunpack.c.l.bf16 %v21262_v23  ;;  %7207 = vmatpush.bf16.msrb.mxu0 %v21188_v45 }
 0x355   : > { %v5939_v12 = vsel %vm5938_vm8, %v12028_v47, %v5935_v10  ;;  %v6782_v62 = vpack.c.b16 %v6702_v34, %v6682_v49  ;;  %v21264_v14 = vunpack.c.h.bf16 %v21262_v23  ;;  %v21266_v52 = vunpack.c.l.bf16 %v21265_v54 }
 0x356   : > { %7148 = vmatpush.bf16.msrb.mxu1 %v21188_v45  ;;  %v6323_v30 = vmul.f32 %v17752_v28, %v21263_v61  ;;  %v5944_v43 = vsel %vm18039_vm7, %v5943_v36, %v5939_v12  ;;  %v21267_v2 = vunpack.c.l.bf16 %v17933_v8  ;;  %12033 = vpow2.f32 %v11301_v26 }
 0x357   : > { %v6324_v17 = vmul.f32 %v17757_v22, %v21264_v14  ;;  %v6343_v33 = vmul.f32 %v17752_v28, %v21266_v52  ;;  %v21268_v47 = vunpack.c.h.bf16 %v21265_v54  ;;  %v6086_v10 = vpack.c.bf16 %v5959_v7, %v5944_v43  ;;  %6933 = vmatmul.bf16.gmra.mxu1 %v6782_v62 }
 0x358   : > { %v7672_v11 = vmax.f32 %v17862_v31, %v21267_v2  ;;  %v5979_v49 = vmul.f32 %v18020_v44, %v5978_v46  ;;  %v21269_v23 = vunpack.c.h.bf16 %v17887_v13  ;;  %v21270_v61 = vunpack.c.l.bf16 %v17887_v13  ;;  %v5474_v2 = vpop.f32.mrf.mxu1 }
 0x359   : > { %v6344_v34 = vmul.f32 %v17757_v22, %v21268_v47  ;;  %v18073_v27 = vpack.c.bf16 %v6324_v17, %v6323_v30  ;;  %v20717_v36 = vunpack.c.h.bf16 %v17933_v8  ;;  %v20718_v31 = vunpack.c.l.bf16 %v17954_v25  ;;  %v18095_v47 = vpop.f32.mrf.mxu0 }
 0x35a   : > { %7149 = vmatpush.bf16.msrb.mxu1 %v21188_v45  ;;  %v18071_v53 = vmax.f32 %v21270_v61, %v21269_v23  ;;  %v6176_v7 = vperm.slane %v6174_v42, 0  ;;  %v6180_v14 = vperm.slane %v6178_v29, 0  ;;  %vm5981_vm9 = vweird.f32 %v17964_v40  ;;  %v12032_v54 = vpop.eup %12031  ;;  %v21277_v61 = vld [vmem:[#allocation16_spill] sm:$0xff] }
 0x35b   : > { %21271 = vst [vmem:[#allocation11_spill] sm:$0xff] %v18073_v27  ;;  %v18078_v12 = vpack.c.bf16 %v6344_v34, %v6343_v33  ;;  %v6643_v46 = vunpack.c.l.b16 %v18073_v27  ;;  %v6111_v52 = vunpack.c.l.b16 %v6086_v10  ;;  %vm18082_vm10 = vcmp.eq.f32.partialorder %v5985_v15, 8.507059e+37 }
 0x35c   : > { %v5988_v30 = vor.u32 1.1754944e-38, %v5987_v41  ;;  %v18088_v17 = vmax.f32 %v7672_v11, %v20717_v36  ;;  %v6112_v43 = vunpack.c.h.b16 %v6086_v10  ;;  %v5980_v42 = vadd.f32 %v18020_v44, %v5979_v49  ;;  %v12034_v15 = vpop.eup %12033 }
 0x35d   : > { %21272 = vst [vmem:[#allocation14_spill] sm:$0xff] %v18078_v12  ;;  %v6663_v33 = vunpack.c.l.b16 %v18078_v12  ;;  %vm5982_vm11 = vweird.f32 %v18020_v44  ;;  %v18093_v29 = vadd.f32 1.0, %v12032_v54  ;;  %v7693_v41 = vmax.f32 %v17947_v48, %v20718_v31  ;;  %v5487_v54 = vpop.f32.mrf.mxu3 }
 0x35e   : > { %v6644_v11 = vunpack.c.h.b16 %v18073_v27  ;;  %v6664_v23 = vunpack.c.h.b16 %v18078_v12  ;;  %v18102_v10 = vunpack.c.l.bf16 %v6176_v7  ;;  %v6131_v36 = vpack.c.b16 %v6111_v52, %v6111_v52  ;;  %vm18111_vm12 = vmor %vm5981_vm9, %vm5982_vm11  ;;  %v21280_v7 = vld [vmem:[#allocation19_spill] sm:$0xff] }
 0x35f   : > { %v6763_v34 = vpack.c.b16 %v6663_v33, %v6643_v46  ;;  %12035 = vrcp.f32 %v18093_v29  ;;  %v18115_v46 = vadd.f32 1.0, %v12034_v15  ;;  %v20723_v33 = vunpack.c.h.bf16 %v18017_v63 }
 0x360   : > { %v6132_v31 = vpack.c.b16 %v6112_v43, %v6112_v43  ;;  %v5984_v52 = vsel %vm18111_vm12, %v18020_v44, %v5980_v42  ;;  %v6764_v49 = vpack.c.b16 %v6664_v23, %v6644_v11  ;;  %v21278_v26 = vunpack.c.l.bf16 %v21277_v61 }
 0x361   : > { %6957 = vmatmul.bf16.gmra.mxu2 %v6763_v34  ;;  %12037 = vrcp.f32 %v18115_v46  ;;  %v21279_v15 = vunpack.c.h.bf16 %v21277_v61  ;;  %v21281_v13 = vunpack.c.l.bf16 %v21280_v7  ;;  %v21282_v43 = vunpack.c.h.bf16 %v21280_v7 }
 0x362   : > { %v6363_v40 = vmul.f32 %v17752_v28, %v21278_v26  ;;  %v18135_v44 = vunpack.c.l.bf16 %v6180_v14  ;;  %v21283_v42 = vunpack.c.h.bf16 %v17954_v25  ;;  %6986 = vmatmul.bf16.gmra.mxu0 %v6764_v49  ;;  %v6182_v61 = vpack.i.b16 %v6131_v36, %v6131_v36 }
 0x363   : > { %v6364_v8 = vmul.f32 %v17757_v22, %v21279_v15  ;;  %v6383_v34 = vmul.f32 %v17752_v28, %v21281_v13  ;;  %v6384_v48 = vmul.f32 %v17757_v22, %v21282_v43  ;;  %v21284_v15 = vunpack.c.h.bf16 %v18015_v55 }
 0x364   : > { %v18139_v11 = vmax.f32 %v7693_v41, %v21283_v42  ;;  %v21285_v28 = vunpack.c.l.bf16 %v18015_v55  ;;  %v21286_v22 = vunpack.c.l.bf16 %v18017_v63  ;;  %v5488_v41 = vadd.f32 %v5487_v54, %v5474_v2 }
 0x365   : > { %v18155_v7 = vpop.eup %12035  ;;  %v6186_v43 = vpack.i.b16 %v6132_v31, %v6132_v31  ;;  %v18159_v49 = vsel %vm18082_vm10, %v5988_v30, %v5984_v52  ;;  %v18167_v2 = vpack.c.bf16 %v6384_v48, %v6383_v34  ;;  %v21289_v31 = vunpack.c.l.bf16 %v18073_v27  ;;  %v21291_v52 = vld [vmem:[#allocation17_spill] sm:$0xff] }
 0x366   : > { %v18147_v13 = vmax.f32 %v21285_v28, %v21284_v15  ;;  %v18153_v14 = vmax.f32 %v21286_v22, %v20723_v33  ;;  %v5476_v15 = vpop.f32.mrf.mxu1  ;;  %v5606_v28 = vpop.f32.mrf.mxu0  ;;  %v6007_v23 = vmul.f32 %v18155_v7, %v18093_v29  ;;  %v5655_v26 = vrot.slane %v5488_v41, 1 }
 0x367   : > { %v18165_v22 = vpack.c.bf16 %v6364_v8, %v6363_v40  ;;  %21288 = vst [vmem:[#allocation16_spill] sm:$0xff] %v18167_v2  ;;  %v7714_v62 = vmax.f32 %v18006_v9, %v21289_v31  ;;  %v21290_v30 = vunpack.c.l.bf16 %v18078_v12  ;;  %v21292_v15 = vunpack.c.l.bf16 %v21291_v52  ;;  %v5489_v40 = vpop.f32.mrf.mxu3  ;;  %v12038_v34 = vpop.eup %12037 }
 0x368   : > { %v21293_v33 = vunpack.c.h.bf16 %v21291_v52  ;;  %v18183_v48 = vperm.slane %v6182_v61, 0  ;;  %v6015_v42 = vand.u32 2147483647, %v18093_v29  ;;  %v5695_v31 = vadd.f32 %v5655_v26, %v5488_v41 }
 0x369   : > { %21287 = vst [vmem:[#allocation15_spill] sm:$0xff] %v18165_v22  ;;  %v18175_v54 = vmax.f32 %v18071_v53, %v21290_v30  ;;  %v6245_v28 = vmul.f32 %v17941_v20, %v21292_v15  ;;  %v18187_v36 = vperm.slane %v6186_v43, 0  ;;  %v5962_v53 = vmul.f32 %v12038_v34, %v18115_v46  ;;  %v21294_v15 = vld [vmem:[#allocation18_spill] sm:$0xff] }
 0x36a   : > { %v6246_v8 = vmul.f32 %v17950_v18, %v21293_v33  ;;  %v5970_v30 = vand.u32 2147483647, %v18115_v46  ;;  %v21295_v25 = vunpack.c.l.bf16 %v21294_v15  ;;  %v6008_v33 = vsub.f32 1.0, %v6007_v23 }
 0x36b   : > { %v11303_v40 = vmul.f32 -1.442695, %v5695_v31  ;;  %v6683_v61 = vunpack.c.l.b16 %v18165_v22  ;;  %v6703_v63 = vunpack.c.l.b16 %v18167_v2  ;;  %v5963_v55 = vsub.f32 1.0, %v5962_v53 }
 0x36c   : > { %v6265_v52 = vmul.f32 %v17941_v20, %v21295_v25  ;;  %v5972_v9 = vand.u32 2147483648, %v18115_v46  ;;  %v21296_v26 = vunpack.c.h.bf16 %v21294_v15  ;;  %v18200_v43 = vpack.c.bf16 %v6246_v8, %v6245_v28 }
 0x36d   : > { %vm5966_vm13 = vweird.f32 %v18115_v46  ;;  %12039 = vpow2.f32 %v11303_v40  ;;  %v6684_v25 = vunpack.c.h.b16 %v18165_v22  ;;  %v6704_v23 = vunpack.c.h.b16 %v18167_v2 }
 0x36e   : > { %v6266_v41 = vmul.f32 %v17950_v18, %v21296_v26  ;;  %21297 = vst [vmem:[#allocation19_spill] sm:$0xff] %v18200_v43  ;;  %v5964_v31 = vmul.f32 %v12038_v34, %v5963_v55  ;;  %vm5967_vm14 = vweird.f32 %v12038_v34  ;;  %v6565_v53 = vunpack.c.l.b16 %v18200_v43 }
 0x36f   : > { %v6009_v37 = vmul.f32 %v18155_v7, %v6008_v33  ;;  %vm18209_vm15 = vcmp.eq.f32.partialorder %v5970_v30, 8.507059e+37  ;;  %v6783_v28 = vpack.c.b16 %v6703_v63, %v6683_v61  ;;  %v6566_v8 = vunpack.c.h.b16 %v18200_v43  ;;  %vm5968_vm3 = vmor %vm5966_vm13, %vm5967_vm14  ;;  %v21304_v33 = vld [vmem:[#allocation21_spill] sm:$0xff] }
 0x370   : > { %v18205_v35 = vpack.c.bf16 %v6266_v41, %v6265_v52  ;;  %vm6012_vm2 = vweird.f32 %v18155_v7  ;;  %v5965_v40 = vadd.f32 %v12038_v34, %v5964_v31  ;;  %v5973_v26 = vor.u32 1.1754944e-38, %v5972_v9  ;;  %v5552_v52 = vpop.f32.mrf.mxu2 }
 0x371   : > { %6962 = vmatmul.bf16.gmra.mxu2 %v6783_v28  ;;  %v6784_v30 = vpack.c.b16 %v6704_v23, %v6684_v25  ;;  %v21302_v63 = vunpack.c.l.bf16 %v21301_v38  ;;  %v5566_v31 = vadd.f32 %v17937_v39, %v5552_v52  ;;  %v21303_v6 = vunpack.c.h.bf16 %v21301_v38  ;;  %v18236_v38 = vpop.f32.mrf.mxu1 }
 0x372   : > { %21298 = vst [vmem:[#allocation17_spill] sm:$0xff] %v18205_v35  ;;  %v6585_v55 = vunpack.c.l.b16 %v18205_v35  ;;  %v6586_v41 = vunpack.c.h.b16 %v18205_v35  ;;  %v5969_v43 = vsel %vm5968_vm3, %v12038_v34, %v5965_v40  ;;  %v6010_v28 = vadd.f32 %v18155_v7, %v6009_v37 }
 0x373   : > { %v6285_v61 = vmul.f32 %v17941_v20, %v21302_v63  ;;  %v6286_v46 = vmul.f32 %v17950_v18, %v21303_v6  ;;  %v12040_v51 = vpop.eup %12039  ;;  %v5974_v25 = vsel %vm18209_vm15, %v5973_v26, %v5969_v43  ;;  %v21305_v35 = vunpack.c.l.bf16 %v21304_v33  ;;  %6991 = vmatmul.bf16.gmra.mxu0 %v6784_v30 }
 0x374   : > { %v6725_v9 = vpack.c.b16 %v6585_v55, %v6565_v53  ;;  %v6726_v23 = vpack.c.b16 %v6586_v41, %v6566_v8  ;;  %v6087_v34 = vpack.c.bf16 %v18159_v49, %v5974_v25  ;;  %v18234_v40 = vadd.f32 1.0, %v12040_v51 }
 0x375   : > { %v6305_v59 = vmul.f32 %v17941_v20, %v21305_v35  ;;  %v5658_v39 = vrot.slane %v5566_v31, 1  ;;  %v21306_v6 = vunpack.c.h.bf16 %v21304_v33  ;;  %vm6011_vm4 = vweird.f32 %v18093_v29 }
 0x376   : > { %7005 = vmatmul.bf16.vlgmr.msra.gmra.mxu3 %v6725_v9  ;;  %v21307_v43 = vunpack.c.h.bf16 %v18073_v27  ;;  %v20744_v35 = vunpack.c.l.bf16 %v18167_v2  ;;  %v21308_v51 = vunpack.c.l.bf16 %v18165_v22  ;;  %7034 = vmatmul.bf16.vlgmr.msra.gmra.mxu1 %v6726_v23  ;;  %vm18253_vm5 = vmor %vm6011_vm4, %vm6012_vm2  ;;  %vm18257_vm6 = vcmp.eq.f32.partialorder %v6015_v42, 8.507059e+37 }
 0x377   : > { %v6306_v37 = vmul.f32 %v17950_v18, %v21306_v6  ;;  %7229 = vmatpush.bf16.msra.mxu3 %v21188_v45  ;;  %12041 = vrcp.f32 %v18234_v40  ;;  %7258 = vmatpush.bf16.msra.mxu1 %v21188_v45  ;;  %v6014_v55 = vsel %vm18253_vm5, %v18155_v7, %v6010_v28  ;;  %v21315_v42 = vand.u32 2147483648, %v18093_v29  ;;  %v21317_v28 = vld [vmem:[#allocation26_spill] sm:$0xff] }
 0x378   : > { %v18244_v53 = vmax.f32 %v7714_v62, %v21307_v43  ;;  %v7756_v49 = vmax.f32 %v18147_v13, %v21308_v51  ;;  %v21313_v62 = vunpack.c.h.bf16 %v18078_v12  ;;  %v18267_v13 = vpack.c.bf16 %v6286_v46, %v6285_v61 }
 0x379   : > { %v6018_v52 = vor.u32 1.1754944e-38, %v21315_v42  ;;  %v5698_v33 = vadd.f32 %v5658_v39, %v5566_v31  ;;  %v20745_v30 = vunpack.c.h.bf16 %v18165_v22  ;;  %v18277_v41 = vunpack.c.l.bf16 %v18183_v48  ;;  %v5554_v48 = vpop.f32.mrf.mxu2  ;;  %v5541_v15 = vpop.f32.mrf.mxu1 }
 0x37a   : > { %v18264_v26 = vmax.f32 %v18175_v54, %v21313_v62  ;;  %21314 = vst [vmem:[#allocation18_spill] sm:$0xff] %v18267_v13  ;;  %v18280_v54 = vunpack.c.l.bf16 %v18187_v36  ;;  %v6113_v63 = vunpack.c.l.b16 %v6087_v34  ;;  %v18282_v61 = vpack.c.bf16 %v6306_v37, %v6305_v59  ;;  %v21320_v37 = vld [vmem:[#allocation27_spill] sm:$0xff] }
 0x37b   : > { %v11306_v9 = vmul.f32 -1.442695, %v5698_v33  ;;  %v18287_v7 = vmax.f32 %v7756_v49, %v20745_v30  ;;  %v18292_v29 = vmax.f32 %v18153_v14, %v20744_v35  ;;  %7230 = vmatpush.bf16.msra.mxu3 %v21188_v45  ;;  %v18297_v36 = vsel %vm18257_vm6, %v6018_v52, %v6014_v55  ;;  %7259 = vmatpush.bf16.msra.mxu1 %v21188_v45 }
 0x37c   : > { %21316 = vst [vmem:[#allocation20_spill] sm:$0xff] %v18282_v61  ;;  %v6114_v59 = vunpack.c.h.b16 %v6087_v34  ;;  %v6605_v31 = vunpack.c.l.b16 %v18267_v13  ;;  %v21318_v25 = vunpack.c.l.bf16 %v21317_v28  ;;  %v6002_v39 = vand.u32 2147483648, %v18234_v40 }
 0x37d   : > { %12043 = vpow2.f32 %v11306_v9  ;;  %v21319_v14 = vunpack.c.h.bf16 %v21317_v28  ;;  %v21321_v43 = vunpack.c.l.bf16 %v21320_v37  ;;  %v12042_v34 = vpop.eup %12041  ;;  %v6133_v49 = vpack.c.b16 %v6113_v63, %v6113_v63 }
 0x37e   : > { %v6247_v23 = vmul.f32 %v17996_v57, %v21318_v25  ;;  %v6625_v8 = vunpack.c.l.b16 %v18282_v61  ;;  %v5992_v42 = vmul.f32 %v12042_v34, %v18234_v40  ;;  %vm5996_vm7 = vweird.f32 %v18234_v40 }
 0x37f   : > { %v6248_v6 = vmul.f32 %v17998_v24, %v21319_v14  ;;  %v6267_v51 = vmul.f32 %v17996_v57, %v21321_v43  ;;  %v6606_v52 = vunpack.c.h.b16 %v18267_v13  ;;  %v21322_v33 = vunpack.c.h.bf16 %v21320_v37  ;;  %7231 = vmatpush.bf16.msra.mxu3 %v21188_v45  ;;  %7260 = vmatpush.bf16.msra.mxu1 %v21188_v45 }
 0x380   : > { %v6134_v63 = vpack.c.b16 %v6114_v59, %v6114_v59  ;;  %v6000_v48 = vand.u32 2147483647, %v18234_v40  ;;  %v6626_v28 = vunpack.c.h.b16 %v18282_v61  ;;  %v5993_v14 = vsub.f32 1.0, %v5992_v42 }
 0x381   : > { %v6268_v9 = vmul.f32 %v17998_v24, %v21322_v33  ;;  %v18323_v25 = vpack.c.bf16 %v6248_v6, %v6247_v23  ;;  %v6003_v43 = vor.u32 1.1754944e-38, %v6002_v39  ;;  %v6190_v37 = vpack.i.b16 %v6133_v49, %v6133_v49  ;;  %v5617_v62 = vpop.f32.mrf.mxu2 }
 0x382   : > { %v6745_v30 = vpack.c.b16 %v6625_v8, %v6605_v31  ;;  %v5994_v46 = vmul.f32 %v12042_v34, %v5993_v14  ;;  %vm5997_vm8 = vweird.f32 %v12042_v34  ;;  %v6194_v39 = vpack.i.b16 %v6134_v63, %v6134_v63 }
 0x383   : > { %21323 = vst [vmem:[#allocation21_spill] sm:$0xff] %v18323_v25  ;;  %v18327_v35 = vpack.c.bf16 %v6268_v9, %v6267_v51  ;;  %v6567_v33 = vunpack.c.l.b16 %v18323_v25  ;;  %v6568_v59 = vunpack.c.h.b16 %v18323_v25  ;;  %v12044_v55 = vpop.eup %12043  ;;  %7232 = vmatpush.bf16.msra.mxu3 %v21188_v45  ;;  %v5618_v51 = vadd.f32 %v5617_v62, %v18095_v47  ;;  %7261 = vmatpush.bf16.msra.mxu1 %v21188_v45  ;;  %v21325_v9 = vld [vmem:[#allocation22_spill] sm:$0xff]  ;;  %vm5998_vm9 = vmor %vm5996_vm7, %vm5997_vm8  ;;  %v21328_v62 = vld [vmem:[#allocation23_spill] sm:$0xff] }
 0x384   : > { %v18334_v42 = vadd.f32 1.0, %v12044_v55  ;;  %v6746_v31 = vpack.c.b16 %v6626_v28, %v6606_v52  ;;  %v5995_v49 = vadd.f32 %v12042_v34, %v5994_v46  ;;  %v21326_v14 = vunpack.c.l.bf16 %v21325_v9 }
 0x385   : > { %21324 = vst [vmem:[#allocation26_spill] sm:$0xff] %v18327_v35  ;;  %v6587_v23 = vunpack.c.l.b16 %v18327_v35  ;;  %v6588_v6 = vunpack.c.h.b16 %v18327_v35  ;;  %v21327_v22 = vunpack.c.h.bf16 %v21325_v9  ;;  %v21329_v55 = vunpack.c.l.bf16 %v21328_v62 }
 0x386   : > { %v6325_v15 = vmul.f32 %v17941_v20, %v21326_v14  ;;  %12045 = vrcp.f32 %v18334_v42  ;;  %7010 = vmatmul.bf16.gmra.mxu3 %v6745_v30  ;;  %v21330_v52 = vunpack.c.h.bf16 %v21328_v62  ;;  %v5999_v28 = vsel %vm5998_vm9, %v12042_v34, %v5995_v49  ;;  %7039 = vmatmul.bf16.gmra.mxu1 %v6746_v31 }
 0x387   : > { %v6727_v8 = vpack.c.b16 %v6587_v23, %v6567_v33  ;;  %v6326_v12 = vmul.f32 %v17950_v18, %v21327_v22  ;;  %v6728_v47 = vpack.c.b16 %v6588_v6, %v6568_v59  ;;  %v6345_v46 = vmul.f32 %v17941_v20, %v21329_v55  ;;  %v5526_v23 = vpop.f32.mrf.mxu3  ;;  %7233 = vmatpush.bf16.msra.mxu3 %v21188_v45  ;;  %v21337_v55 = vld [vmem:[#allocation28_spill] sm:$0xff] }
 0x388   : > { %v6346_v63 = vmul.f32 %v17950_v18, %v21330_v52  ;;  %vm6001_vm10 = vcmp.eq.f32.partialorder %v6000_v48, 8.507059e+37  ;;  %v5660_v33 = vrot.slane %v5618_v51, 1  ;;  %v21331_v22 = vunpack.c.l.bf16 %v18267_v13  ;;  %7262 = vmatpush.bf16.msra.mxu1 %v21188_v45 }
 0x389   : > { %7063 = vmatmul.bf16.vlgmr.msra.gmra.mxu2 %v6727_v8  ;;  %v6192_v30 = vperm.slane %v6190_v37, 0  ;;  %v6004_v59 = vsel %vm6001_vm10, %v6003_v43, %v5999_v28  ;;  %v5540_v6 = vadd.f32 %v18236_v38, %v5526_v23  ;;  %v21332_v9 = vunpack.c.l.bf16 %v18282_v61  ;;  %7092 = vmatmul.bf16.vlgmr.msra.gmra.mxu0 %v6728_v47  ;;  %v5619_v31 = vpop.f32.mrf.mxu2 }
 0x38a   : > { %v7674_v40 = vmax.f32 %v18088_v17, %v21331_v22  ;;  %v6196_v34 = vperm.slane %v6194_v39, 0  ;;  %v6088_v48 = vpack.c.bf16 %v18297_v36, %v6004_v59  ;;  %v5700_v49 = vadd.f32 %v5660_v33, %v5618_v51  ;;  %7287 = vmatpush.bf16.msra.mxu2 %v21188_v45  ;;  %7316 = vmatpush.bf16.msra.mxu0 %v21188_v45 }
 0x38b   : > { %v7695_v14 = vmax.f32 %v18139_v11, %v21332_v9  ;;  %v18362_v62 = vpack.c.bf16 %v6326_v12, %v6325_v15  ;;  %v21334_v17 = vunpack.c.h.bf16 %v18167_v2  ;;  %v5657_v43 = vrot.slane %v5540_v6, 1  ;;  %7234 = vmatpush.bf16.msra.mxu3 %v21188_v45  ;;  %v21348_v2 = vld [vmem:[#allocation25_spill] sm:$0xff] }
 0x38c   : > { %v20750_v11 = vunpack.c.h.bf16 %v18282_v61  ;;  %v18372_v37 = vpack.c.bf16 %v6346_v63, %v6345_v46  ;;  %v6115_v36 = vunpack.c.l.b16 %v6088_v48  ;;  %v6116_v39 = vunpack.c.h.b16 %v6088_v48  ;;  %v18379_v8 = vpop.eup %12045  ;;  %7263 = vmatpush.bf16.msra.mxu1 %v21188_v45 }
 0x38d   : > { %21333 = vst [vmem:[#allocation27_spill] sm:$0xff] %v18362_v62  ;;  %v18369_v38 = vmax.f32 %v18292_v29, %v21334_v17  ;;  %v11308_v12 = vmul.f32 -1.442695, %v5700_v49  ;;  %v21336_v15 = vunpack.c.h.bf16 %v18267_v13  ;;  %v5697_v47 = vadd.f32 %v5657_v43, %v5540_v6  ;;  %v21340_v49 = vld [vmem:[#allocation29_spill] sm:$0xff] }
 0x38e   : > { %21335 = vst [vmem:[#allocation22_spill] sm:$0xff] %v18372_v37  ;;  %v18383_v29 = vmax.f32 %v7695_v14, %v20750_v11  ;;  %v21338_v46 = vunpack.c.l.bf16 %v21337_v55  ;;  %v21339_v63 = vunpack.c.h.bf16 %v21337_v55  ;;  %v18392_v33 = vunpack.c.l.bf16 %v6192_v30  ;;  %7288 = vmatpush.bf16.msra.mxu2 %v21188_v45  ;;  %7317 = vmatpush.bf16.msra.mxu0 %v21188_v45 }
 0x38f   : > { %v18377_v51 = vmax.f32 %v7674_v40, %v21336_v15  ;;  %v18394_v23 = vunpack.c.l.bf16 %v6196_v34  ;;  %v6037_v22 = vmul.f32 %v18379_v8, %v18334_v42  ;;  %v6645_v40 = vunpack.c.l.b16 %v18362_v62  ;;  %v5528_v34 = vpop.f32.mrf.mxu3  ;;  %7235 = vmatpush.bf16.msra.mxu3 %v21188_v45 }
 0x390   : > { %v6287_v52 = vmul.f32 %v17996_v57, %v21338_v46  ;;  %v6288_v28 = vmul.f32 %v17998_v24, %v21339_v63  ;;  %v6135_v59 = vpack.c.b16 %v6115_v36, %v6115_v36  ;;  %12047 = vpow2.f32 %v11308_v12  ;;  %7264 = vmatpush.bf16.msra.mxu1 %v21188_v45 }
 0x391   : > { %v11305_v6 = vmul.f32 -1.442695, %v5697_v47  ;;  %v6665_v9 = vunpack.c.l.b16 %v18372_v37  ;;  %v6136_v30 = vpack.c.b16 %v6116_v39, %v6116_v39  ;;  %v6038_v14 = vsub.f32 1.0, %v6037_v22 }
 0x392   : > { %v20752_v48 = vunpack.c.l.bf16 %v18362_v62  ;;  %v21341_v17 = vunpack.c.l.bf16 %v21340_v49  ;;  %v20751_v15 = vunpack.c.l.bf16 %v18372_v37  ;;  %v21342_v36 = vunpack.c.h.bf16 %v21340_v49  ;;  %7289 = vmatpush.bf16.msra.mxu2 %v21188_v45  ;;  %7318 = vmatpush.bf16.msra.mxu0 %v21188_v45 }
 0x393   : > { %12049 = vpow2.f32 %v11305_v6  ;;  %v18411_v31 = vpack.c.bf16 %v6288_v28, %v6287_v52  ;;  %vm6041_vm11 = vweird.f32 %v18334_v42  ;;  %v6045_v39 = vand.u32 2147483647, %v18334_v42  ;;  %7236 = vmatpush.bf16.msra.mxu3 %v21188_v45 }
 0x394   : > { %v6307_v43 = vmul.f32 %v17996_v57, %v21341_v17  ;;  %v6308_v12 = vmul.f32 %v17998_v24, %v21342_v36  ;;  %v6646_v47 = vunpack.c.h.b16 %v18362_v62  ;;  %v6666_v55 = vunpack.c.h.b16 %v18372_v37  ;;  %7265 = vmatpush.bf16.msra.mxu1 %v21188_v45 }
 0x395   : > { %21343 = vst [vmem:[#allocation23_spill] sm:$0xff] %v18411_v31  ;;  %v6198_v46 = vpack.i.b16 %v6135_v59, %v6135_v59  ;;  %v6039_v63 = vmul.f32 %v18379_v8, %v6038_v14  ;;  %v6607_v52 = vunpack.c.l.b16 %v18411_v31  ;;  %v6202_v28 = vpack.i.b16 %v6136_v30, %v6136_v30 }
 0x396   : > { %v18421_v22 = vpack.c.bf16 %v6308_v12, %v6307_v43  ;;  %v6047_v6 = vand.u32 2147483648, %v18334_v42  ;;  %v6765_v34 = vpack.c.b16 %v6665_v9, %v6645_v40  ;;  %v7716_v49 = vmax.f32 %v18244_v53, %v20752_v48  ;;  %v12048_v17 = vpop.eup %12047  ;;  %v5578_v40 = vpop.f32.mrf.mxu1  ;;  %7290 = vmatpush.bf16.msra.mxu2 %v21188_v45  ;;  %v21345_v48 = vld [vmem:[#allocation24_spill] sm:$0xff]  ;;  %7319 = vmatpush.bf16.msra.mxu0 %v21188_v45 }
 0x397   : > { %vm6042_vm12 = vweird.f32 %v18379_v8  ;;  %v7737_v59 = vmax.f32 %v18264_v26, %v20751_v15  ;;  %v6608_v43 = vunpack.c.h.b16 %v18411_v31  ;;  %v18436_v30 = vadd.f32 1.0, %v12048_v17 }
 0x398   : > { %21344 = vst [vmem:[#allocation28_spill] sm:$0xff] %v18421_v22  ;;  %v6627_v14 = vunpack.c.l.b16 %v18421_v22  ;;  %v6766_v9 = vpack.c.b16 %v6666_v55, %v6646_v47  ;;  %v6628_v53 = vunpack.c.h.b16 %v18421_v22  ;;  %v6200_v26 = vperm.slane %v6198_v46, 0  ;;  %7015 = vmatmul.bf16.gmra.mxu3 %v6765_v34  ;;  %v5591_v47 = vpop.f32.mrf.mxu3  ;;  %vm18463_vm13 = vmor %vm6041_vm11, %vm6042_vm12 }
 0x399   : > { %v12050_v12 = vpop.eup %12049  ;;  %v6040_v11 = vadd.f32 %v18379_v8, %v6039_v63  ;;  %v21346_v61 = vunpack.c.l.bf16 %v21345_v48  ;;  %v6204_v13 = vperm.slane %v6202_v28, 0  ;;  %12051 = vrcp.f32 %v18436_v30 }
 0x39a   : > { %v6747_v15 = vpack.c.b16 %v6627_v14, %v6607_v52  ;;  %7044 = vmatmul.bf16.gmra.mxu1 %v6766_v9  ;;  %v21347_v55 = vunpack.c.h.bf16 %v21345_v48  ;;  %v21349_v27 = vunpack.c.l.bf16 %v21348_v2  ;;  %v18454_v63 = vadd.f32 1.0, %v12050_v12  ;;  %7291 = vmatpush.bf16.msra.mxu2 %v21188_v45 }
 0x39b   : > { %v6365_v17 = vmul.f32 %v17941_v20, %v21346_v61  ;;  %v5592_v52 = vadd.f32 %v5591_v47, %v5578_v40  ;;  %v6748_v61 = vpack.c.b16 %v6628_v53, %v6608_v43  ;;  %v21350_v28 = vunpack.c.h.bf16 %v21348_v2  ;;  %7320 = vmatpush.bf16.msra.mxu0 %v21188_v45 }
 0x39c   : > { %v6366_v36 = vmul.f32 %v17950_v18, %v21347_v55  ;;  %v6385_v46 = vmul.f32 %v17941_v20, %v21349_v27  ;;  %7068 = vmatmul.bf16.gmra.mxu2 %v6747_v15  ;;  %vm18467_vm14 = vcmp.eq.f32.partialorder %v6045_v39, 8.507059e+37  ;;  %v20763_v27 = vunpack.c.h.bf16 %v18362_v62 }
 0x39d   : > { %v6386_v34 = vmul.f32 %v17950_v18, %v21350_v28  ;;  %v20762_v15 = vunpack.c.h.bf16 %v18372_v37  ;;  %v21355_v2 = vunpack.c.l.bf16 %v18411_v31  ;;  %v6044_v42 = vsel %vm18463_vm13, %v18379_v8, %v6040_v11  ;;  %7097 = vmatmul.bf16.gmra.mxu0 %v6748_v61 }
 0x39e   : > { %v6048_v14 = vor.u32 1.1754944e-38, %v6047_v6  ;;  %12053 = vrcp.f32 %v18454_v63  ;;  %v20761_v39 = vunpack.c.l.bf16 %v18421_v22  ;;  %v5659_v43 = vrot.slane %v5592_v52, 1  ;;  %v5580_v47 = vpop.f32.mrf.mxu1  ;;  %7292 = vmatpush.bf16.msra.mxu2 %v21188_v45 }
 0x39f   : > { %v7676_v18 = vmax.f32 %v18377_v51, %v21355_v2  ;;  %v18484_v40 = vmax.f32 %v7716_v49, %v20763_v27  ;;  %v18488_v51 = vmax.f32 %v7737_v59, %v20762_v15  ;;  %v20764_v9 = vunpack.c.h.bf16 %v18411_v31  ;;  %v18500_v12 = vpop.eup %12051  ;;  %7321 = vmatpush.bf16.msra.mxu0 %v21188_v45  ;;  %v21361_v47 = vld [vmem:[#allocation31_spill] sm:$0xff] }
 0x3a0   : > { %v18492_v11 = vunpack.c.l.bf16 %v6200_v26  ;;  %v18494_v8 = vunpack.c.l.bf16 %v6204_v13  ;;  %v18496_v6 = vpack.c.bf16 %v6366_v36, %v6365_v17  ;;  %v18498_v53 = vpack.c.bf16 %v6386_v34, %v6385_v46  ;;  %v21358_v46 = vld [vmem:[#allocation30_spill] sm:$0xff]  ;;  %v5593_v20 = vpop.f32.mrf.mxu3 }
 0x3a1   : > { %v18504_v49 = vsel %vm18467_vm14, %v6048_v14, %v6044_v42  ;;  %v5699_v59 = vadd.f32 %v5659_v43, %v5592_v52  ;;  %v18509_v26 = vmax.f32 %v7676_v18, %v20764_v9  ;;  %v6067_v13 = vmul.f32 %v18500_v12, %v18436_v30 }
 0x3a2   : > { %21356 = vst [vmem:[#allocation29_spill] sm:$0xff] %v18496_v6  ;;  %v18518_v17 = vmax.f32 %v18383_v29, %v20761_v39  ;;  %v21359_v52 = vunpack.c.l.bf16 %v21358_v46  ;;  %v6030_v34 = vand.u32 2147483647, %v18454_v63  ;;  %v21360_v2 = vunpack.c.h.bf16 %v21358_v46  ;;  %7293 = vmatpush.bf16.msra.mxu2 %v21188_v45 }
 0x3a3   : > { %21357 = vst [vmem:[#allocation24_spill] sm:$0xff] %v18498_v53  ;;  %v11307_v48 = vmul.f32 -1.442695, %v5699_v59  ;;  %v6068_v14 = vsub.f32 1.0, %v6067_v13  ;;  %v6685_v29 = vunpack.c.l.b16 %v18496_v6  ;;  %v6705_v43 = vunpack.c.l.b16 %v18498_v53  ;;  %7322 = vmatpush.bf16.msra.mxu0 %v21188_v45 }
 0x3a4   : > { %v6327_v61 = vmul.f32 %v17996_v57, %v21359_v52  ;;  %v6328_v18 = vmul.f32 %v17998_v24, %v21360_v2  ;;  %v12054_v42 = vpop.eup %12053  ;;  %v21362_v52 = vunpack.c.l.bf16 %v21361_v47  ;;  %vm6071_vm15 = vweird.f32 %v18436_v30 }
 0x3a5   : > { %v6022_v59 = vmul.f32 %v12054_v42, %v18454_v63  ;;  %12055 = vpow2.f32 %v11307_v48  ;;  %v6686_v46 = vunpack.c.h.b16 %v18496_v6  ;;  %v6706_v20 = vunpack.c.h.b16 %v18498_v53 }
 0x3a6   : > { %v6347_v39 = vmul.f32 %v17996_v57, %v21362_v52  ;;  %vm6026_vm2 = vweird.f32 %v18454_v63  ;;  %v6032_v13 = vand.u32 2147483648, %v18454_v63  ;;  %v21363_v2 = vunpack.c.h.bf16 %v21361_v47  ;;  %7294 = vmatpush.bf16.msra.mxu2 %v21188_v45 }
 0x3a7   : > { %v18544_v52 = vpack.c.bf16 %v6328_v18, %v6327_v61  ;;  %v6069_v27 = vmul.f32 %v18500_v12, %v6068_v14  ;;  %v6023_v9 = vsub.f32 1.0, %v6022_v59  ;;  %vm18547_vm3 = vcmp.eq.f32.partialorder %v6030_v34, 8.507059e+37  ;;  %7323 = vmatpush.bf16.msra.mxu0 %v21188_v45 }
 0x3a8   : > { %v6348_v15 = vmul.f32 %v17998_v24, %v21363_v2  ;;  %v6785_v28 = vpack.c.b16 %v6705_v43, %v6685_v29  ;;  %vm6027_vm4 = vweird.f32 %v12054_v42  ;;  %v6786_v18 = vpack.c.b16 %v6706_v20, %v6686_v46  ;;  %v6919_v46 = vpop.f32.mrf.mxu1  ;;  %v21368_v20 = vld [vmem:[#allocation32_spill] sm:$0xff]  ;;  %v6890_v55 = vpop.f32.mrf.mxu3 }
 0x3a9   : > { %21364 = vst [vmem:[#allocation25_spill] sm:$0xff] %v18544_v52  ;;  %v6647_v47 = vunpack.c.l.b16 %v18544_v52  ;;  %v6024_v61 = vmul.f32 %v12054_v42, %v6023_v9  ;;  %v6648_v14 = vunpack.c.h.b16 %v18544_v52  ;;  %vm6072_vm5 = vweird.f32 %v18500_v12  ;;  %vm6028_vm6 = vmor %vm6026_vm2, %vm6027_vm4 }
 0x3aa   : > { %v18554_v37 = vpack.c.bf16 %v6348_v15, %v6347_v39  ;;  %v6033_v34 = vor.u32 1.1754944e-38, %v6032_v13  ;;  %7020 = vmatmul.bf16.gmra.mxu3 %v6785_v28  ;;  %v6070_v15 = vadd.f32 %v18500_v12, %v6069_v27  ;;  %7049 = vmatmul.bf16.gmra.mxu1 %v6786_v18  ;;  %v21369_v2 = vunpack.c.l.bf16 %v21368_v20  ;;  %vm18587_vm7 = vmor %vm6071_vm15, %vm6072_vm5 }
 0x3ab   : > { %v12056_v43 = vpop.eup %12055  ;;  %v6025_v39 = vadd.f32 %v12054_v42, %v6024_v61  ;;  %v20774_v27 = vunpack.c.l.bf16 %v18544_v52  ;;  %v21370_v61 = vunpack.c.h.bf16 %v21368_v20  ;;  %v21371_v62 = vunpack.c.l.bf16 %v18496_v6 }
 0x3ac   : > { %21367 = vst [vmem:[#allocation30_spill] sm:$0xff] %v18554_v37  ;;  %v6667_v29 = vunpack.c.l.b16 %v18554_v37  ;;  %v6668_v9 = vunpack.c.h.b16 %v18554_v37  ;;  %v6367_v36 = vmul.f32 %v17996_v57, %v21369_v2  ;;  %v18571_v28 = vadd.f32 1.0, %v12056_v43 }
 0x3ad   : > { %v6368_v18 = vmul.f32 %v17998_v24, %v21370_v61  ;;  %v6029_v59 = vsel %vm6028_vm6, %v12054_v42, %v6025_v39  ;;  %v7758_v2 = vmax.f32 %v18287_v7, %v21371_v62  ;;  %v21372_v31 = vunpack.c.l.bf16 %v18498_v53 }
 0x3ae   : > { %v6767_v13 = vpack.c.b16 %v6667_v29, %v6647_v47  ;;  %v6768_v63 = vpack.c.b16 %v6668_v9, %v6648_v14  ;;  %v6034_v42 = vsel %vm18547_vm3, %v6033_v34, %v6029_v59  ;;  %12057 = vrcp.f32 %v18571_v28  ;;  %v21375_v14 = vld [vmem:[#allocation33_spill] sm:$0xff] }
 0x3af   : > { %v7779_v25 = vmax.f32 %v18369_v38, %v21372_v31  ;;  %v20775_v7 = vunpack.c.h.bf16 %v18498_v53  ;;  %v20773_v62 = vunpack.c.l.bf16 %v18554_v37  ;;  %v6074_v38 = vsel %vm18587_vm7, %v18500_v12, %v6070_v15  ;;  %v21394_v53 = vld [vmem:[#allocation36_spill] sm:$0xff] }
 0x3b0   : > { %7073 = vmatmul.bf16.gmra.mxu2 %v6767_v13  ;;  %v6089_v31 = vpack.c.bf16 %v18504_v49, %v6034_v42  ;;  %7102 = vmatmul.bf16.gmra.mxu0 %v6768_v63  ;;  %v21376_v29 = vunpack.c.l.bf16 %v21375_v14  ;;  %v21377_v48 = vunpack.c.h.bf16 %v21375_v14  ;;  %v21378_v59 = vand.u32 2147483647, %v18436_v30 }
 0x3b1   : > { %v21379_v39 = vand.u32 2147483648, %v18436_v30  ;;  %v7718_v12 = vmax.f32 %v18484_v40, %v20774_v27  ;;  %v18613_v49 = vpack.c.bf16 %v6368_v18, %v6367_v36  ;;  %v21381_v20 = vunpack.c.h.bf16 %v18496_v6 }
 0x3b2   : > { %v6387_v43 = vmul.f32 %v17996_v57, %v21376_v29  ;;  %v6388_v34 = vmul.f32 %v17998_v24, %v21377_v48  ;;  %vm6076_vm8 = vcmp.eq.f32.partialorder %v21378_v59, 8.507059e+37  ;;  %v6117_v15 = vunpack.c.l.b16 %v6089_v31  ;;  %v21387_v48 = vld [vmem:[#allocation35_spill] sm:$0xff] }
 0x3b3   : > { %v6078_v9 = vor.u32 1.1754944e-38, %v21379_v39  ;;  %21380 = vst [vmem:[#allocation31_spill] sm:$0xff] %v18613_v49  ;;  %v7759_v57 = vmax.f32 %v7758_v2, %v21381_v20  ;;  %v18619_v13 = vmax.f32 %v7779_v25, %v20775_v7  ;;  %v20776_v24 = vunpack.c.h.bf16 %v18544_v52  ;;  %v21383_v2 = vld [vmem:[#allocation34_spill] sm:$0xff] }
 0x3b4   : > { %v6118_v30 = vunpack.c.h.b16 %v6089_v31  ;;  %v18628_v40 = vmax.f32 %v18488_v51, %v20773_v62  ;;  %v6060_v36 = vand.u32 2147483647, %v18571_v28  ;;  %v18631_v18 = vpack.c.bf16 %v6388_v34, %v6387_v43  ;;  %v18639_v31 = vpop.f32.mrf.mxu3  ;;  %v12058_v14 = vpop.eup %12057 }
 0x3b5   : > { %v18622_v61 = vsel %vm6076_vm8, %v6078_v9, %v6074_v38  ;;  %v21384_v47 = vunpack.c.l.bf16 %v21383_v2  ;;  %v21385_v42 = vunpack.c.h.bf16 %v21383_v2  ;;  %21386 = vst [vmem:[#allocation33_spill] sm:$0xff] %v18639_v31  ;;  %v18643_v29 = vmax.f32 %v7718_v12, %v20776_v24 }
 0x3b6   : > { %21382 = vst [vmem:[#allocation32_spill] sm:$0xff] %v18631_v18  ;;  %v6687_v51 = vunpack.c.l.b16 %v18613_v49  ;;  %v21388_v43 = vunpack.c.l.bf16 %v21387_v48  ;;  %v21389_v59 = vunpack.c.h.bf16 %v21387_v48  ;;  %v6137_v9 = vpack.c.b16 %v6117_v15, %v6117_v15 }
 0x3b7   : > { %v6249_v25 = vmul.f32 %v18102_v10, %v21384_v47  ;;  %v6250_v38 = vmul.f32 %v18135_v44, %v21385_v42  ;;  %v6052_v20 = vmul.f32 %v12058_v14, %v18571_v28  ;;  %vm6056_vm9 = vweird.f32 %v18571_v28  ;;  %v18655_v47 = vpop.f32.mrf.mxu1 }
 0x3b8   : > { %v6269_v34 = vmul.f32 %v18102_v10, %v21388_v43  ;;  %v6270_v39 = vmul.f32 %v18135_v44, %v21389_v59  ;;  %v6062_v2 = vand.u32 2147483648, %v18571_v28  ;;  %21390 = vst [vmem:[#allocation34_spill] sm:$0xff] %v18655_v47  ;;  %v6138_v12 = vpack.c.b16 %v6118_v30, %v6118_v30 }
 0x3b9   : > { %v18657_v42 = vpack.c.bf16 %v6250_v38, %v6249_v25  ;;  %v6920_v27 = vadd.f32 %v6919_v46, %v6890_v55  ;;  %v6053_v43 = vsub.f32 1.0, %v6052_v20  ;;  %vm18661_vm10 = vcmp.eq.f32.partialorder %v6060_v36, 8.507059e+37 }
 0x3ba   : > { %v18659_v62 = vpack.c.bf16 %v6270_v39, %v6269_v34  ;;  %v6707_v15 = vunpack.c.l.b16 %v18631_v18  ;;  %vm6057_vm11 = vweird.f32 %v12058_v14  ;;  %v6688_v55 = vunpack.c.h.b16 %v18613_v49 }
 0x3bb   : > { %v6569_v7 = vunpack.c.l.b16 %v18657_v42  ;;  %v6570_v30 = vunpack.c.h.b16 %v18657_v42  ;;  %v6054_v38 = vmul.f32 %v12058_v14, %v6053_v43  ;;  %v6708_v46 = vunpack.c.h.b16 %v18631_v18  ;;  %vm18679_vm12 = vmor %vm6056_vm9, %vm6057_vm11 }
 0x3bc   : > { %21391 = vst [vmem:[#allocation35_spill] sm:$0xff] %v18659_v62  ;;  %v6589_v24 = vunpack.c.l.b16 %v18659_v62  ;;  %v6590_v25 = vunpack.c.h.b16 %v18659_v62  ;;  %v6206_v36 = vpack.i.b16 %v6137_v9, %v6137_v9  ;;  %v6210_v34 = vpack.i.b16 %v6138_v12, %v6138_v12 }
 0x3bd   : > { %v6055_v63 = vadd.f32 %v12058_v14, %v6054_v38  ;;  %v6787_v59 = vpack.c.b16 %v6707_v15, %v6687_v51  ;;  %v20784_v6 = vunpack.c.h.bf16 %v18613_v49  ;;  %v21395_v52 = vunpack.c.l.bf16 %v21394_v53  ;;  %v6948_v38 = vpop.f32.mrf.mxu2 }
 0x3be   : > { %v6729_v39 = vpack.c.b16 %v6589_v24, %v6569_v7  ;;  %v6730_v20 = vpack.c.b16 %v6590_v25, %v6570_v30  ;;  %v6063_v31 = vor.u32 1.1754944e-38, %v6062_v2  ;;  %v21398_v7 = vunpack.c.h.bf16 %v21394_v53  ;;  %v6895_v53 = vpop.f32.mrf.mxu3 }
 0x3bf   : > { %v6289_v47 = vmul.f32 %v18102_v10, %v21395_v52  ;;  %v21399_v51 = vunpack.c.l.bf16 %v13498_v60  ;;  %v21400_v12 = vunpack.c.h.bf16 %v13498_v60  ;;  %v6059_v28 = vsel %vm18679_vm12, %v12058_v14, %v6055_v63 }
 0x3c0   : > { %7121 = vmatmul.bf16.vlgmr.msrb.gmra.mxu3 %v6729_v39  ;;  %7150 = vmatmul.bf16.vlgmr.msrb.gmra.mxu1 %v6730_v20  ;;  %v6290_v24 = vmul.f32 %v18135_v44, %v21398_v7  ;;  %v20783_v15 = vunpack.c.l.bf16 %v18631_v18  ;;  %v21401_v2 = vunpack.c.l.bf16 %v18613_v49  ;;  %v6788_v25 = vpack.c.b16 %v6708_v46, %v6688_v55 }
 0x3c1   : > { %v6309_v9 = vmul.f32 %v18102_v10, %v21399_v51  ;;  %v6310_v52 = vmul.f32 %v18135_v44, %v21400_v12  ;;  %7345 = vmatpush.bf16.msrb.mxu3 %v21188_v45  ;;  %7374 = vmatpush.bf16.msrb.mxu1 %v21188_v45  ;;  %v6208_v39 = vperm.slane %v6206_v36, 0  ;;  %v6212_v20 = vperm.slane %v6210_v34, 0 }
 0x3c2   : > { %v7760_v30 = vmax.f32 %v7759_v57, %v21401_v2  ;;  %v6064_v60 = vsel %vm18661_vm10, %v6063_v31, %v6059_v28  ;;  %7078 = vmatmul.bf16.gmra.mxu2 %v6787_v59  ;;  %v21402_v63 = vunpack.c.l.bf16 %v13684_v3  ;;  %7107 = vmatmul.bf16.gmra.mxu0 %v6788_v25  ;;  %v6924_v57 = vpop.f32.mrf.mxu1  ;;  %v21403_v55 = vunpack.c.h.bf16 %v13684_v3 }
 0x3c3   : > { %v6090_v43 = vpack.c.bf16 %v18622_v61, %v6064_v60  ;;  %v21404_v7 = vunpack.c.l.bf16 %v13687_v50  ;;  %v21405_v48 = vunpack.c.h.bf16 %v13687_v50  ;;  %v18714_v59 = vpack.c.bf16 %v6290_v24, %v6289_v47 }
 0x3c4   : > { %v6251_v14 = vmul.f32 %v18277_v41, %v21402_v63  ;;  %v6252_v46 = vmul.f32 %v18280_v54, %v21403_v55  ;;  %v18716_v34 = vpack.c.bf16 %v6310_v52, %v6309_v9  ;;  %v18718_v51 = vadd.f32 %v6924_v57, %v6895_v53 }
 0x3c5   : > { %v6271_v36 = vmul.f32 %v18277_v41, %v21404_v7  ;;  %v6272_v31 = vmul.f32 %v18280_v54, %v21405_v48  ;;  %21406 = vst [vmem:[#allocation36_spill] sm:$0xff] %v18714_v59  ;;  %v18720_v61 = vadd.f32 %v6948_v38, %v6920_v27  ;;  %v6119_v12 = vunpack.c.l.b16 %v6090_v43  ;;  %7346 = vmatpush.bf16.msrb.mxu3 %v21188_v45 }
 0x3c6   : > { %21407 = vst [vmem:[#allocation71_spill] sm:$0xff] %v18716_v34  ;;  %v6120_v3 = vunpack.c.h.b16 %v6090_v43  ;;  %v20787_v28 = vunpack.c.h.bf16 %v18631_v18  ;;  %v7781_v2 = vmax.f32 %v18619_v13, %v20783_v15  ;;  %7375 = vmatpush.bf16.msrb.mxu1 %v21188_v45  ;;  %v18728_v50 = vunpack.c.l.bf16 %v6208_v39 }
 0x3c7   : > { %v18732_v47 = vmax.f32 %v7760_v30, %v20784_v6  ;;  %v21408_v27 = vunpack.c.l.bf16 %v13607_v1  ;;  %v21409_v9 = vunpack.c.h.bf16 %v13607_v1  ;;  %v6139_v25 = vpack.c.b16 %v6119_v12, %v6119_v12 }
 0x3c8   : > { %v6140_v13 = vpack.c.b16 %v6120_v3, %v6120_v3  ;;  %v18740_v53 = vpack.c.bf16 %v6252_v46, %v6251_v14  ;;  %v18742_v38 = vpack.c.bf16 %v6272_v31, %v6271_v36  ;;  %v18744_v39 = vunpack.c.l.bf16 %v6212_v20 }
 0x3c9   : > { %v6389_v24 = vmul.f32 %v18102_v10, %v21408_v27  ;;  %v6390_v52 = vmul.f32 %v18135_v44, %v21409_v9  ;;  %v6609_v60 = vunpack.c.l.b16 %v18714_v59  ;;  %v6629_v30 = vunpack.c.l.b16 %v18716_v34  ;;  %7347 = vmatpush.bf16.msrb.mxu3 %v21188_v45 }
 0x3ca   : > { %21410 = vst [vmem:[#allocation72_spill] sm:$0xff] %v18740_v53  ;;  %v6610_v63 = vunpack.c.h.b16 %v18714_v59  ;;  %v6214_v43 = vpack.i.b16 %v6139_v25, %v6139_v25  ;;  %v6218_v57 = vpack.i.b16 %v6140_v13, %v6140_v13  ;;  %v21412_v1 = vunpack.c.l.bf16 %v13877_v16  ;;  %7376 = vmatpush.bf16.msrb.mxu1 %v21188_v45 }
 0x3cb   : > { %21411 = vst [vmem:[#allocation73_spill] sm:$0xff] %v18742_v38  ;;  %v21413_v7 = vunpack.c.h.bf16 %v13877_v16  ;;  %v6630_v20 = vunpack.c.h.b16 %v18716_v34  ;;  %v21414_v46 = vunpack.c.l.bf16 %v14327_v58  ;;  %v21415_v48 = vunpack.c.h.bf16 %v14327_v58 }
 0x3cc   : > { %v6391_v55 = vmul.f32 %v18277_v41, %v21412_v1  ;;  %v18763_v12 = vpack.c.bf16 %v6390_v52, %v6389_v24  ;;  %v6571_v16 = vunpack.c.l.b16 %v18740_v53  ;;  %v6591_v3 = vunpack.c.l.b16 %v18742_v38  ;;  %v21439_v24 = vld [vmem:[#allocation65_spill] sm:$0xff] }
 0x3cd   : > { %v6392_v14 = vmul.f32 %v18280_v54, %v21413_v7  ;;  %v6393_v36 = vmul.f32 %v18392_v33, %v21414_v46  ;;  %v6394_v31 = vmul.f32 %v18394_v23, %v21415_v48  ;;  %v21417_v27 = vunpack.c.l.bf16 %v14507_v56  ;;  %7348 = vmatpush.bf16.msrb.mxu3 %v21188_v45 }
 0x3ce   : > { %21416 = vst [vmem:[#allocation74_spill] sm:$0xff] %v18763_v12  ;;  %v21418_v25 = vunpack.c.h.bf16 %v14507_v56  ;;  %v6216_v1 = vperm.slane %v6214_v43, 0  ;;  %v6220_v58 = vperm.slane %v6218_v57, 0  ;;  %v6749_v7 = vpack.c.b16 %v6629_v30, %v6609_v60  ;;  %7377 = vmatpush.bf16.msrb.mxu1 %v21188_v45 }
 0x3cf   : > { %v6395_v9 = vmul.f32 %v18492_v11, %v21417_v27  ;;  %v6572_v52 = vunpack.c.h.b16 %v18740_v53  ;;  %v6592_v46 = vunpack.c.h.b16 %v18742_v38  ;;  %v18777_v48 = vpack.c.bf16 %v6392_v14, %v6391_v55 }
 0x3d0   : > { %v6396_v13 = vmul.f32 %v18494_v8, %v21418_v25  ;;  %v20785_v15 = vunpack.c.l.bf16 %v18763_v12  ;;  %v6750_v27 = vpack.c.b16 %v6630_v20, %v6610_v63  ;;  %v21420_v56 = vunpack.c.l.bf16 %v14936_v19  ;;  %7126 = vmatmul.bf16.gmra.mxu3 %v6749_v7 }
 0x3d1   : > { %21419 = vst [vmem:[#allocation75_spill] sm:$0xff] %v18777_v48  ;;  %v21421_v43 = vunpack.c.h.bf16 %v14936_v19  ;;  %v18787_v30 = vpack.c.bf16 %v6394_v31, %v6393_v36  ;;  %v6731_v55 = vpack.c.b16 %v6591_v3, %v6571_v16  ;;  %v7782_v63 = vmax.f32 %v7781_v2, %v20787_v28  ;;  %v21424_v19 = vld [vmem:[#allocation40_spill] sm:$0xff]  ;;  %7349 = vmatpush.bf16.msrb.mxu3 %v21188_v45 }
 0x3d2   : > { %v6397_v25 = vmul.f32 %v18728_v50, %v21420_v56  ;;  %v18791_v14 = vpack.c.bf16 %v6396_v13, %v6395_v9  ;;  %v18795_v20 = vunpack.c.l.bf16 %v6216_v1  ;;  %v18797_v6 = vunpack.c.l.bf16 %v6220_v58  ;;  %7155 = vmatmul.bf16.gmra.mxu1 %v6750_v27  ;;  %v21428_v27 = vld [vmem:[#allocation51_spill] sm:$0xff] }
 0x3d3   : > { %v6398_v60 = vmul.f32 %v18744_v39, %v21421_v43  ;;  %21422 = vst [vmem:[#allocation76_spill] sm:$0xff] %v18787_v30  ;;  %v21425_v56 = vunpack.c.l.bf16 %v21424_v19  ;;  %v21426_v31 = vunpack.c.h.bf16 %v21424_v19  ;;  %v6732_v16 = vpack.c.b16 %v6592_v46, %v6572_v52  ;;  %7179 = vmatmul.bf16.vlgmr.msrb.gmra.mxu2 %v6731_v55  ;;  %7378 = vmatpush.bf16.msrb.mxu1 %v21188_v45 }
 0x3d4   : > { %21423 = vst [vmem:[#allocation77_spill] sm:$0xff] %v18791_v14  ;;  %v20786_v3 = vunpack.c.h.bf16 %v18763_v12  ;;  %v20788_v9 = vunpack.c.l.bf16 %v18777_v48  ;;  %v7783_v2 = vmax.f32 %v7782_v63, %v20785_v15  ;;  %v20789_v58 = vunpack.c.h.bf16 %v18777_v48  ;;  %7403 = vmatpush.bf16.msrb.mxu2 %v21188_v45 }
 0x3d5   : > { %v6349_v36 = vmul.f32 %v18102_v10, %v21425_v56  ;;  %v6350_v43 = vmul.f32 %v18135_v44, %v21426_v31  ;;  %v18811_v1 = vpack.c.bf16 %v6398_v60, %v6397_v25  ;;  %v20790_v7 = vunpack.c.l.bf16 %v18787_v30  ;;  %7208 = vmatmul.bf16.vlgmr.msrb.gmra.mxu0 %v6732_v16  ;;  %7350 = vmatpush.bf16.msrb.mxu3 %v21188_v45 }
 0x3d6   : > { %v20792_v52 = vunpack.c.h.bf16 %v18787_v30  ;;  %v7784_v46 = vmax.f32 %v7783_v2, %v20786_v3  ;;  %v21429_v19 = vunpack.c.l.bf16 %v21428_v27  ;;  %v21430_v56 = vunpack.c.h.bf16 %v21428_v27  ;;  %7432 = vmatpush.bf16.msrb.mxu0 %v21188_v45 }
 0x3d7   : > { %21427 = vst [vmem:[#allocation40_spill] sm:$0xff] %v18811_v1  ;;  %v21431_v25 = vunpack.c.l.bf16 %v15091_v4  ;;  %v21432_v31 = vunpack.c.h.bf16 %v15091_v4  ;;  %v20793_v2 = vunpack.c.l.bf16 %v18791_v14  ;;  %v18832_v15 = vpack.c.bf16 %v6350_v43, %v6349_v36  ;;  %7379 = vmatpush.bf16.msrb.mxu1 %v21188_v45 }
 0x3d8   : > { %v6351_v63 = vmul.f32 %v18277_v41, %v21429_v19  ;;  %v6352_v55 = vmul.f32 %v18280_v54, %v21430_v56  ;;  %v7785_v19 = vmax.f32 %v7784_v46, %v20788_v9  ;;  %v21434_v56 = vunpack.c.l.bf16 %v14256_v21  ;;  %7404 = vmatpush.bf16.msrb.mxu2 %v21188_v45 }
 0x3d9   : > { %v6399_v60 = vmul.f32 %v18795_v20, %v21431_v25  ;;  %v6400_v16 = vmul.f32 %v18797_v6, %v21432_v31  ;;  %21433 = vst [vmem:[#allocation51_spill] sm:$0xff] %v18832_v15  ;;  %v21435_v25 = vunpack.c.h.bf16 %v14256_v21  ;;  %v21436_v31 = vld [vmem:[#allocation58_spill] sm:$0xff]  ;;  %v21440_v46 = vunpack.c.l.bf16 %v21439_v24  ;;  %7351 = vmatpush.bf16.msrb.mxu3 %v21188_v45 }
 0x3da   : > { %v6353_v3 = vmul.f32 %v18392_v33, %v21434_v56  ;;  %v21437_v36 = vunpack.c.l.bf16 %v21436_v31  ;;  %v21438_v28 = vunpack.c.h.bf16 %v21436_v31  ;;  %v21441_v56 = vunpack.c.h.bf16 %v21439_v24  ;;  %7433 = vmatpush.bf16.msrb.mxu0 %v21188_v45 }
 0x3db   : > { %v6354_v4 = vmul.f32 %v18394_v23, %v21435_v25  ;;  %v6357_v9 = vmul.f32 %v18728_v50, %v21440_v46  ;;  %v7786_v13 = vmax.f32 %v7785_v19, %v20789_v58  ;;  %v20791_v31 = vunpack.c.l.bf16 %v18832_v15  ;;  %7380 = vmatpush.bf16.msrb.mxu1 %v21188_v45 }
 0x3dc   : > { %v6355_v43 = vmul.f32 %v18492_v11, %v21437_v36  ;;  %v6356_v57 = vmul.f32 %v18494_v8, %v21438_v28  ;;  %v6358_v21 = vmul.f32 %v18744_v39, %v21441_v56  ;;  %v18861_v36 = vpack.c.bf16 %v6352_v55, %v6351_v63  ;;  %7405 = vmatpush.bf16.msrb.mxu2 %v21188_v45 }
 0x3dd   : > { %v18865_v28 = vpack.c.bf16 %v6400_v16, %v6399_v60  ;;  %v21444_v24 = vunpack.c.l.bf16 %v15065_v32  ;;  %v21445_v27 = vunpack.c.h.bf16 %v15065_v32  ;;  %v7787_v63 = vmax.f32 %v7786_v13, %v20790_v7  ;;  %7352 = vmatpush.bf16.msrb.mxu3 %v21188_v45 }
 0x3de   : > { %21442 = vst [vmem:[#allocation58_spill] sm:$0xff] %v18861_v36  ;;  %v18877_v55 = vpack.c.bf16 %v6354_v4, %v6353_v3  ;;  %v21447_v60 = vunpack.c.h.bf16 %v18554_v37  ;;  %v18886_v32 = vpack.c.bf16 %v6358_v21, %v6357_v9  ;;  %v20794_v4 = vunpack.c.h.bf16 %v18832_v15  ;;  %7434 = vmatpush.bf16.msrb.mxu0 %v21188_v45 }
 0x3df   : > { %21443 = vst [vmem:[#allocation65_spill] sm:$0xff] %v18865_v28  ;;  %v6359_v56 = vmul.f32 %v18795_v20, %v21444_v24  ;;  %v6360_v25 = vmul.f32 %v18797_v6, %v21445_v27  ;;  %v18884_v24 = vpack.c.bf16 %v6356_v57, %v6355_v43  ;;  %v21450_v27 = vld [vmem:[#allocation49_spill] sm:$0xff]  ;;  %v20795_v57 = vunpack.c.l.bf16 %v18861_v36  ;;  %7381 = vmatpush.bf16.msrb.mxu1 %v21188_v45 }
 0x3e0   : > { %21446 = vst [vmem:[#allocation78_spill] sm:$0xff] %v18877_v55  ;;  %v7740_v16 = vmax.f32 %v18628_v40, %v21447_v60  ;;  %v21451_v58 = vunpack.c.l.bf16 %v21450_v27  ;;  %v21452_v13 = vunpack.c.h.bf16 %v21450_v27  ;;  %v7788_v40 = vmax.f32 %v7787_v63, %v20792_v52  ;;  %7406 = vmatpush.bf16.msrb.mxu2 %v21188_v45 }
 0x3e1   : > { %21448 = vst [vmem:[#allocation79_spill] sm:$0xff] %v18884_v24  ;;  %v18904_v21 = vpack.c.bf16 %v6360_v25, %v6359_v56  ;;  %v20796_v60 = vunpack.c.h.bf16 %v18861_v36  ;;  %v20799_v27 = vunpack.c.l.bf16 %v18877_v55  ;;  %v21454_v25 = vld [vmem:[#allocation43_spill] sm:$0xff] }
 0x3e2   : > { %21449 = vst [vmem:[#allocation80_spill] sm:$0xff] %v18886_v32  ;;  %v6311_v46 = vmul.f32 %v18277_v41, %v21451_v58  ;;  %v6312_v3 = vmul.f32 %v18280_v54, %v21452_v13  ;;  %v7741_v9 = vmax.f32 %v7740_v16, %v20791_v31  ;;  %v7789_v63 = vmax.f32 %v7788_v40, %v20793_v2 }
 0x3e3   : > { %21453 = vst [vmem:[#allocation49_spill] sm:$0xff] %v18904_v21  ;;  %v21455_v56 = vunpack.c.l.bf16 %v21454_v25  ;;  %v21456_v52 = vunpack.c.h.bf16 %v21454_v25  ;;  %v21458_v2 = vunpack.c.h.bf16 %v18791_v14  ;;  %7435 = vmatpush.bf16.msrb.mxu0 %v21188_v45  ;;  %v19175_v14 = vpop.f32.mrf.mxu1 }
 0x3e4   : > { %v7742_v16 = vmax.f32 %v7741_v9, %v20794_v4  ;;  %v18922_v40 = vpack.c.bf16 %v6312_v3, %v6311_v46  ;;  %v21464_v4 = vld [vmem:[#allocation63_spill] sm:$0xff]  ;;  %7407 = vmatpush.bf16.msrb.mxu2 %v21188_v45 }
 0x3e5   : > { %v6313_v31 = vmul.f32 %v18392_v33, %v21455_v56  ;;  %v6314_v43 = vmul.f32 %v18394_v23, %v21456_v52  ;;  %v7790_v13 = vmax.f32 %v7789_v63, %v21458_v2  ;;  %v21459_v56 = vld [vmem:[#allocation56_spill] sm:$0xff]  ;;  %v21462_v2 = vunpack.c.h.bf16 %v18421_v22 }
 0x3e6   : > { %21457 = vst [vmem:[#allocation43_spill] sm:$0xff] %v18922_v40  ;;  %v7743_v7 = vmax.f32 %v7742_v16, %v20795_v57  ;;  %v21460_v52 = vunpack.c.l.bf16 %v21459_v56  ;;  %v21461_v3 = vunpack.c.h.bf16 %v21459_v56  ;;  %v21463_v16 = vunpack.c.l.bf16 %v18811_v1 }
 0x3e7   : > { %v7698_v63 = vmax.f32 %v18518_v17, %v21462_v2  ;;  %v21465_v9 = vunpack.c.l.bf16 %v21464_v4  ;;  %v21466_v56 = vunpack.c.h.bf16 %v21464_v4  ;;  %v18955_v2 = vpack.c.bf16 %v6314_v43, %v6313_v31  ;;  %7436 = vmatpush.bf16.msrb.mxu0 %v21188_v45 }
 0x3e8   : > { %v6315_v46 = vmul.f32 %v18492_v11, %v21460_v52  ;;  %v6316_v58 = vmul.f32 %v18494_v8, %v21461_v3  ;;  %v7791_v57 = vmax.f32 %v7790_v13, %v21463_v16  ;;  %v7744_v25 = vmax.f32 %v7743_v7, %v20796_v60  ;;  %7408 = vmatpush.bf16.msrb.mxu2 %v21188_v45 }
 0x3e9   : > { %v6317_v52 = vmul.f32 %v18728_v50, %v21465_v9  ;;  %v6318_v3 = vmul.f32 %v18744_v39, %v21466_v56  ;;  %21467 = vst [vmem:[#allocation56_spill] sm:$0xff] %v18955_v2  ;;  %v21468_v13 = vunpack.c.l.bf16 %v18716_v34  ;;  %v21469_v7 = vunpack.c.h.bf16 %v18811_v1 }
 0x3ea   : > { %v7745_v9 = vmax.f32 %v7744_v25, %v20799_v27  ;;  %v21470_v4 = vunpack.c.l.bf16 %v15019_v0  ;;  %v21471_v22 = vunpack.c.h.bf16 %v15019_v0  ;;  %v18970_v43 = vpack.c.bf16 %v6316_v58, %v6315_v46 }
 0x3eb   : > { %v7699_v16 = vmax.f32 %v7698_v63, %v21468_v13  ;;  %v7792_v60 = vmax.f32 %v7791_v57, %v21469_v7  ;;  %v21473_v17 = vunpack.c.h.bf16 %v18716_v34  ;;  %v21474_v63 = vld [vmem:[#allocation42_spill] sm:$0xff]  ;;  %v18985_v46 = vpack.c.bf16 %v6318_v3, %v6317_v52  ;;  %7437 = vmatpush.bf16.msrb.mxu0 %v21188_v45 }
 0x3ec   : > { %v6319_v56 = vmul.f32 %v18795_v20, %v21470_v4  ;;  %v6320_v31 = vmul.f32 %v18797_v6, %v21471_v22  ;;  %21472 = vst [vmem:[#allocation63_spill] sm:$0xff] %v18970_v43  ;;  %v21475_v13 = vunpack.c.l.bf16 %v21474_v63  ;;  %v21476_v7 = vunpack.c.h.bf16 %v21474_v63  ;;  %7409 = vmatpush.bf16.msrb.mxu2 %v21188_v45 }
 0x3ed   : > { %v7700_v19 = vmax.f32 %v7699_v16, %v21473_v17  ;;  %v21477_v4 = vunpack.c.l.bf16 %v18865_v28  ;;  %v21478_v22 = vunpack.c.h.bf16 %v18877_v55  ;;  %21479 = vst [vmem:[#allocation42_spill] sm:$0xff] %v18985_v46  ;;  %v21480_v63 = vunpack.c.l.bf16 %v18922_v40 }
 0x3ee   : > { %v6369_v57 = vmul.f32 %v18102_v10, %v21475_v13  ;;  %v6370_v25 = vmul.f32 %v18135_v44, %v21476_v7  ;;  %v21481_v7 = vld [vmem:[#allocation52_spill] sm:$0xff]  ;;  %v21484_v52 = vunpack.c.h.bf16 %v18865_v28  ;;  %v19003_v16 = vpack.c.bf16 %v6320_v31, %v6319_v56 }
 0x3ef   : > { %v7793_v0 = vmax.f32 %v7792_v60, %v21477_v4  ;;  %v7746_v58 = vmax.f32 %v7745_v9, %v21478_v22  ;;  %v7701_v13 = vmax.f32 %v7700_v19, %v21480_v63  ;;  %v21482_v27 = vunpack.c.l.bf16 %v21481_v7  ;;  %7438 = vmatpush.bf16.msrb.mxu0 %v21188_v45 }
 0x3f0   : > { %v21483_v60 = vunpack.c.h.bf16 %v21481_v7  ;;  %v21485_v22 = vunpack.c.l.bf16 %v18884_v24  ;;  %21486 = vst [vmem:[#allocation52_spill] sm:$0xff] %v19003_v16  ;;  %v20804_v19 = vunpack.c.h.bf16 %v18955_v2  ;;  %v19009_v7 = vpack.c.bf16 %v6370_v25, %v6369_v57  ;;  %7410 = vmatpush.bf16.msrb.mxu2 %v21188_v45 }
 0x3f1   : > { %v6371_v34 = vmul.f32 %v18277_v41, %v21482_v27  ;;  %v7794_v3 = vmax.f32 %v7793_v0, %v21484_v52  ;;  %v21487_v27 = vunpack.c.h.bf16 %v18922_v40  ;;  %v21488_v0 = vunpack.c.h.bf16 %v18884_v24  ;;  %v21495_v52 = vld [vmem:[#allocation59_spill] sm:$0xff] }
 0x3f2   : > { %v6372_v4 = vmul.f32 %v18280_v54, %v21483_v60  ;;  %v7747_v17 = vmax.f32 %v7746_v58, %v21485_v22  ;;  %v21489_v58 = vld [vmem:[#allocation45_spill] sm:$0xff]  ;;  %v21492_v57 = vunpack.c.l.bf16 %v18955_v2  ;;  %v21506_v49 = vunpack.c.l.bf16 %v19009_v7 }
 0x3f3   : > { %v7702_v18 = vmax.f32 %v7701_v13, %v21487_v27  ;;  %7795 = vmax.xlane.f32.xlu0 %v7794_v3  ;;  %v21490_v56 = vunpack.c.l.bf16 %v21489_v58  ;;  %v21491_v22 = vunpack.c.h.bf16 %v21489_v58  ;;  %v21496_v58 = vunpack.c.l.bf16 %v21495_v52  ;;  %7439 = vmatpush.bf16.msrb.mxu0 %v21188_v45 }
 0x3f4   : > { %v7748_v60 = vmax.f32 %v7747_v17, %v21488_v0  ;;  %v19024_v27 = vpack.c.bf16 %v6372_v4, %v6371_v34  ;;  %v21494_v17 = vunpack.c.l.bf16 %v18886_v32  ;;  %v21497_v13 = vunpack.c.h.bf16 %v21495_v52  ;;  %v21498_v4 = vld [vmem:[#allocation66_spill] sm:$0xff] }
 0x3f5   : > { %v6373_v31 = vmul.f32 %v18392_v33, %v21490_v56  ;;  %v6374_v9 = vmul.f32 %v18394_v23, %v21491_v22  ;;  %v7703_v25 = vmax.f32 %v7702_v18, %v21492_v57  ;;  %v6375_v22 = vmul.f32 %v18492_v11, %v21496_v58 }
 0x3f6   : > { %21493 = vst [vmem:[#allocation45_spill] sm:$0xff] %v19024_v27  ;;  %v7749_v0 = vmax.f32 %v7748_v60, %v21494_v17  ;;  %v6376_v63 = vmul.f32 %v18494_v8, %v21497_v13  ;;  %v21499_v57 = vunpack.c.l.bf16 %v21498_v4  ;;  %v21500_v60 = vunpack.c.h.bf16 %v21498_v4 }
 0x3f7   : > { %v7704_v34 = vmax.f32 %v7703_v25, %v20804_v19  ;;  %v21501_v58 = vunpack.c.h.bf16 %v18886_v32  ;;  %v21502_v13 = vunpack.c.l.bf16 %v15076_v5  ;;  %v21503_v56 = vunpack.c.h.bf16 %v15076_v5  ;;  %v21542_v32 = vld [vmem:[#allocation48_spill] sm:$0xff] }
 0x3f8   : > { %v6377_v3 = vmul.f32 %v18728_v50, %v21499_v57  ;;  %v6378_v17 = vmul.f32 %v18744_v39, %v21500_v60  ;;  %v19055_v19 = vpack.c.bf16 %v6374_v9, %v6373_v31  ;;  %v21505_v57 = vunpack.c.l.bf16 %v18970_v43  ;;  %v21509_v9 = vld [vmem:[#allocation39_spill] sm:$0xff] }
 0x3f9   : > { %v7750_v52 = vmax.f32 %v7749_v0, %v21501_v58  ;;  %v6379_v18 = vmul.f32 %v18795_v20, %v21502_v13  ;;  %v6380_v25 = vmul.f32 %v18797_v6, %v21503_v56  ;;  %v7762_v0 = vmax.f32 %v18732_v47, %v21506_v49 }
 0x3fa   : > { %21504 = vst [vmem:[#allocation59_spill] sm:$0xff] %v19055_v19  ;;  %v7705_v4 = vmax.f32 %v7704_v34, %v21505_v57  ;;  %v21507_v58 = vunpack.c.l.bf16 %v18904_v21  ;;  %v19067_v13 = vpack.c.bf16 %v6376_v63, %v6375_v22  ;;  %v21510_v31 = vunpack.c.l.bf16 %v21509_v9  ;;  %v19083_v63 = vpop.f32.mrf.mxu0 }
 0x3fb   : > { %v21511_v34 = vunpack.c.h.bf16 %v21509_v9  ;;  %v21512_v60 = vunpack.c.h.bf16 %v18970_v43  ;;  %v19078_v47 = vpack.c.bf16 %v6378_v17, %v6377_v3  ;;  %v21514_v28 = vunpack.c.h.bf16 %v19009_v7 }
 0x3fc   : > { %v7751_v5 = vmax.f32 %v7750_v52, %v21507_v58  ;;  %21508 = vst [vmem:[#allocation66_spill] sm:$0xff] %v19067_v13  ;;  %v6329_v56 = vmul.f32 %v18102_v10, %v21510_v31  ;;  %v21515_v10 = vunpack.c.h.bf16 %v18904_v21  ;;  %v19087_v58 = vpack.c.bf16 %v6380_v25, %v6379_v18  ;;  %v21532_v18 = vld [vmem:[#allocation64_spill] sm:$0xff] }
 0x3fd   : > { %v6330_v57 = vmul.f32 %v18135_v44, %v21511_v34  ;;  %v7706_v49 = vmax.f32 %v7705_v4, %v21512_v60  ;;  %21513 = vst [vmem:[#allocation39_spill] sm:$0xff] %v19078_v47  ;;  %v7763_v52 = vmax.f32 %v7762_v0, %v21514_v28  ;;  %v21517_v44 = vld [vmem:[#allocation50_spill] sm:$0xff]  ;;  %v21520_v17 = vunpack.c.l.bf16 %v18985_v46 }
 0x3fe   : > { %v7752_v22 = vmax.f32 %v7751_v5, %v21515_v10  ;;  %21516 = vst [vmem:[#allocation81_spill] sm:$0xff] %v19087_v58  ;;  %v21518_v9 = vunpack.c.l.bf16 %v21517_v44  ;;  %v21519_v4 = vunpack.c.h.bf16 %v21517_v44  ;;  %v20811_v60 = vunpack.c.h.bf16 %v19024_v27 }
 0x3ff   : > { %v7707_v28 = vmax.f32 %v7706_v49, %v21520_v17  ;;  %v20812_v0 = vunpack.c.l.bf16 %v19055_v19  ;;  %v21521_v34 = vunpack.c.l.bf16 %v19024_v27  ;;  %v19105_v44 = vpack.c.bf16 %v6330_v57, %v6329_v56  ;;  %v21524_v17 = vld [vmem:[#allocation46_spill] sm:$0xff] }
 0x400   : > { %v6331_v31 = vmul.f32 %v18277_v41, %v21518_v9  ;;  %v6332_v3 = vmul.f32 %v18280_v54, %v21519_v4  ;;  %7753 = vmax.xlane.f32.xlu1 %v7752_v22  ;;  %v21523_v49 = vunpack.c.h.bf16 %v18985_v46  ;;  %v21525_v37 = vunpack.c.l.bf16 %v21524_v17 }
 0x401   : > { %v7764_v5 = vmax.f32 %v7763_v52, %v21521_v34  ;;  %21522 = vst [vmem:[#allocation50_spill] sm:$0xff] %v19105_v44  ;;  %v21526_v22 = vunpack.c.h.bf16 %v21524_v17  ;;  %v21533_v10 = vunpack.c.l.bf16 %v21532_v18 }
 0x402   : > { %v7708_v9 = vmax.f32 %v7707_v28, %v21523_v49  ;;  %v6333_v52 = vmul.f32 %v18392_v33, %v21525_v37  ;;  %v19119_v56 = vpack.c.bf16 %v6332_v3, %v6331_v31  ;;  %v21528_v28 = vunpack.c.l.bf16 %v19003_v16 }
 0x403   : > { %v7765_v4 = vmax.f32 %v7764_v5, %v20811_v60  ;;  %v6334_v34 = vmul.f32 %v18394_v23, %v21526_v22  ;;  %v21529_v60 = vld [vmem:[#allocation57_spill] sm:$0xff]  ;;  %v6337_v31 = vmul.f32 %v18728_v50, %v21533_v10  ;;  %v21534_v3 = vunpack.c.h.bf16 %v21532_v18  ;;  %v19151_v10 = vpop.f32.mrf.mxu3 }
 0x404   : > { %21527 = vst [vmem:[#allocation46_spill] sm:$0xff] %v19119_v56  ;;  %v7709_v49 = vmax.f32 %v7708_v9, %v21528_v28  ;;  %v21530_v37 = vunpack.c.l.bf16 %v21529_v60  ;;  %v21531_v22 = vunpack.c.h.bf16 %v21529_v60  ;;  %v21535_v9 = vld [vmem:[#allocation70_spill] sm:$0xff]  ;;  %v21538_v60 = vunpack.c.h.bf16 %v19003_v16  ;;  %v21547_v18 = vld [vmem:[#allocation41_spill] sm:$0xff] }
 0x405   : > { %v7766_v5 = vmax.f32 %v7765_v4, %v20812_v0  ;;  %v6338_v57 = vmul.f32 %v18744_v39, %v21534_v3  ;;  %v21536_v28 = vunpack.c.l.bf16 %v21535_v9  ;;  %v21537_v0 = vunpack.c.h.bf16 %v21535_v9  ;;  %v19153_v3 = vpop.f32.mrf.mxu2 }
 0x406   : > { %v6335_v17 = vmul.f32 %v18492_v11, %v21530_v37  ;;  %v6336_v25 = vmul.f32 %v18494_v8, %v21531_v22  ;;  %v7710_v45 = vmax.f32 %v7709_v49, %v21538_v60  ;;  %v21539_v22 = vunpack.c.h.bf16 %v19055_v19  ;;  %v21573_v19 = vld [vmem:[#allocation5_spill] sm:$0xff] }
 0x407   : > { %v6339_v4 = vmul.f32 %v18795_v20, %v21536_v28  ;;  %v6340_v37 = vmul.f32 %v18797_v6, %v21537_v0  ;;  %v19148_v1 = vpack.c.bf16 %v6334_v34, %v6333_v52  ;;  %v21541_v9 = vunpack.c.l.bf16 %v19105_v44 }
 0x408   : > { %v7767_v21 = vmax.f32 %v7766_v5, %v21539_v22  ;;  %v21543_v16 = vunpack.c.l.bf16 %v21542_v32  ;;  %v21544_v5 = vunpack.c.h.bf16 %v21542_v32  ;;  %7711 = vmax.xlane.f32.xlu2 %v7710_v45  ;;  %v21545_v34 = vunpack.c.l.bf16 %v19067_v13 }
 0x409   : > { %21540 = vst [vmem:[#allocation57_spill] sm:$0xff] %v19148_v1  ;;  %v7720_v0 = vmax.f32 %v18643_v29, %v21541_v9  ;;  %v19167_v22 = vpack.c.bf16 %v6336_v25, %v6335_v17  ;;  %v21548_v28 = vunpack.c.l.bf16 %v21547_v18  ;;  %v21549_v29 = vunpack.c.h.bf16 %v21547_v18 }
 0x40a   : > { %v6291_v49 = vmul.f32 %v18277_v41, %v21543_v16  ;;  %v6292_v52 = vmul.f32 %v18280_v54, %v21544_v5  ;;  %v7768_v60 = vmax.f32 %v7767_v21, %v21545_v34  ;;  %v19177_v41 = vpop.f32.mrf.mxu0  ;;  %v19181_v32 = vpack.c.bf16 %v6338_v57, %v6337_v31  ;;  %v21561_v57 = vld [vmem:[#allocation62_spill] sm:$0xff] }
 0x40b   : > { %21546 = vst [vmem:[#allocation64_spill] sm:$0xff] %v19167_v22  ;;  %v6293_v46 = vmul.f32 %v18392_v33, %v21548_v28  ;;  %v6294_v9 = vmul.f32 %v18394_v23, %v21549_v29  ;;  %v21551_v21 = vunpack.c.h.bf16 %v19105_v44  ;;  %v21552_v25 = vunpack.c.h.bf16 %v19067_v13  ;;  %v21553_v28 = vld [vmem:[#allocation55_spill] sm:$0xff]  ;;  %v6929_v13 = vpop.f32.mrf.mxu1 }
 0x40c   : > { %21550 = vst [vmem:[#allocation70_spill] sm:$0xff] %v19181_v32  ;;  %v21554_v18 = vunpack.c.l.bf16 %v21553_v28  ;;  %v21555_v34 = vunpack.c.h.bf16 %v21553_v28  ;;  %v19193_v24 = vpack.c.bf16 %v6292_v52, %v6291_v49  ;;  %v20828_v45 = vunpack.c.h.bf16 %v19119_v56 }
 0x40d   : > { %v7721_v16 = vmax.f32 %v7720_v0, %v21551_v21  ;;  %v7769_v17 = vmax.f32 %v7768_v60, %v21552_v25  ;;  %v21557_v31 = vunpack.c.l.bf16 %v19119_v56  ;;  %v19199_v21 = vpack.c.bf16 %v6294_v9, %v6293_v46 }
 0x40e   : > { %v6295_v5 = vmul.f32 %v18492_v11, %v21554_v18  ;;  %v6296_v29 = vmul.f32 %v18494_v8, %v21555_v34  ;;  %21556 = vst [vmem:[#allocation48_spill] sm:$0xff] %v19193_v24  ;;  %v21559_v60 = vunpack.c.l.bf16 %v19078_v47  ;;  %v19203_v54 = vpack.c.bf16 %v6340_v37, %v6339_v4 }
 0x40f   : > { %v7722_v0 = vmax.f32 %v7721_v16, %v21557_v31  ;;  %21558 = vst [vmem:[#allocation41_spill] sm:$0xff] %v19199_v21  ;;  %v20837_v28 = vunpack.c.h.bf16 %v19148_v1  ;;  %v21562_v16 = vunpack.c.l.bf16 %v21561_v57  ;;  %v21563_v9 = vunpack.c.h.bf16 %v19078_v47 }
 0x410   : > { %v7770_v25 = vmax.f32 %v7769_v17, %v21559_v60  ;;  %21560 = vst [vmem:[#allocation55_spill] sm:$0xff] %v19203_v54  ;;  %v21564_v4 = vunpack.c.h.bf16 %v21561_v57  ;;  %v19219_v31 = vpack.c.bf16 %v6296_v29, %v6295_v5  ;;  %v21566_v52 = vunpack.c.l.bf16 %v19148_v1 }
 0x411   : > { %v7723_v34 = vmax.f32 %v7722_v0, %v20828_v45  ;;  %v6297_v46 = vmul.f32 %v18728_v50, %v21562_v16  ;;  %v21567_v16 = vunpack.c.l.bf16 %v18714_v59  ;;  %v6669_v5 = vunpack.c.l.b16 %v18832_v15 }
 0x412   : > { %v7771_v17 = vmax.f32 %v7770_v25, %v21563_v9  ;;  %v6298_v37 = vmul.f32 %v18744_v39, %v21564_v4  ;;  %21565 = vst [vmem:[#allocation62_spill] sm:$0xff] %v19219_v31  ;;  %v21568_v25 = vunpack.c.l.bf16 %v19087_v58  ;;  %v6649_v9 = vunpack.c.l.b16 %v19105_v44  ;;  %v19244_v30 = vpop.f32.mrf.mxu0 }
 0x413   : > { %v7724_v49 = vmax.f32 %v7723_v34, %v21566_v52  ;;  %v7678_v18 = vmax.f32 %v18509_v26, %v21567_v16  ;;  %v6650_v29 = vunpack.c.h.b16 %v19105_v44  ;;  %v21569_v34 = vunpack.c.h.bf16 %v18714_v59  ;;  %v6900_v26 = vpop.f32.mrf.mxu3  ;;  %v6953_v16 = vpop.f32.mrf.mxu2 }
 0x414   : > { %v7772_v57 = vmax.f32 %v7771_v17, %v21568_v25  ;;  %v6670_v45 = vunpack.c.h.b16 %v18832_v15  ;;  %v6611_v0 = vunpack.c.l.b16 %v19193_v24  ;;  %v21570_v17 = vunpack.c.h.bf16 %v19087_v58 }
 0x415   : > { %v7725_v52 = vmax.f32 %v7724_v49, %v20837_v28  ;;  %v7679_v4 = vmax.f32 %v7678_v18, %v21569_v34  ;;  %v6769_v60 = vpack.c.b16 %v6669_v5, %v6649_v9  ;;  %v6631_v47 = vunpack.c.l.b16 %v18922_v40 }
 0x416   : > { %v7773_v25 = vmax.f32 %v7772_v57, %v21570_v17  ;;  %v6612_v44 = vunpack.c.h.b16 %v19193_v24  ;;  %v21571_v49 = vunpack.c.l.bf16 %v19167_v22  ;;  %v21572_v34 = vunpack.c.l.bf16 %v19193_v24 }
 0x417   : > { %v6770_v59 = vpack.c.b16 %v6670_v45, %v6650_v29  ;;  %v6632_v15 = vunpack.c.h.b16 %v18922_v40  ;;  %v20846_v58 = vunpack.c.l.bf16 %v21573_v19  ;;  %7131 = vmatmul.bf16.gmra.mxu3 %v6769_v60  ;;  %v6751_v57 = vpack.c.b16 %v6631_v47, %v6611_v0  ;;  %v21599_v40 = vld [vmem:[#allocation19_spill] sm:$0xff] }
 0x418   : > { %v7726_v18 = vmax.f32 %v7725_v52, %v21571_v49  ;;  %v7680_v28 = vmax.f32 %v7679_v4, %v21572_v34  ;;  %7774 = vmax.xlane.f32.xlu0 %v7773_v25  ;;  %v19252_v9 = vadd.f32 %v6929_v13, %v6900_v26  ;;  %v19255_v5 = vadd.f32 %v6953_v16, %v18718_v51  ;;  %v21576_v25 = vld [vmem:[#allocation69_spill] sm:$0xff] }
 0x419   : > { %v20847_v17 = vunpack.c.h.bf16 %v19181_v32  ;;  %v21574_v52 = vunpack.c.h.bf16 %v19167_v22  ;;  %v21575_v4 = vunpack.c.h.bf16 %v19193_v24  ;;  %7160 = vmatmul.bf16.gmra.mxu1 %v6770_v59  ;;  %v6752_v29 = vpack.c.b16 %v6632_v15, %v6612_v44  ;;  %7184 = vmatmul.bf16.gmra.mxu2 %v6751_v57 }
 0x41a   : > { %v20849_v34 = vunpack.c.l.bf16 %v19203_v54  ;;  %v21577_v60 = vunpack.c.l.bf16 %v21576_v25  ;;  %v21578_v47 = vunpack.c.h.bf16 %v21576_v25  ;;  %v19269_v0 = vpack.c.bf16 %v6298_v37, %v6297_v46  ;;  %v21584_v46 = vld [vmem:[#allocation44_spill] sm:$0xff] }
 0x41b   : > { %v7727_v49 = vmax.f32 %v7726_v18, %v21574_v52  ;;  %v7681_v45 = vmax.f32 %v7680_v28, %v21575_v4  ;;  %v21580_v26 = vunpack.c.l.bf16 %v19181_v32  ;;  %v20848_v28 = vunpack.c.h.bf16 %v19199_v21  ;;  %7213 = vmatmul.bf16.gmra.mxu0 %v6752_v29  ;;  %v21582_v18 = vld [vmem:[#allocation4_spill] sm:$0xff]  ;;  %v21583_v4 = vld [vmem:[#allocation7_spill] sm:$0xff]  ;;  %v21587_v29 = vld [vmem:[#allocation17_spill] sm:$0xff] }
 0x41c   : > { %v6299_v13 = vmul.f32 %v18795_v20, %v21577_v60  ;;  %v6300_v51 = vmul.f32 %v18797_v6, %v21578_v47  ;;  %21579 = vst [vmem:[#allocation69_spill] sm:$0xff] %v19269_v0  ;;  %v20850_v15 = vunpack.c.l.bf16 %v19219_v31  ;;  %v21581_v59 = vunpack.c.l.bf16 %v19199_v21 }
 0x41d   : > { %v7728_v16 = vmax.f32 %v7727_v49, %v21580_v26  ;;  %v7651_v25 = vmax.f32 %v21583_v4, %v20846_v58  ;;  %v21585_v37 = vunpack.c.h.bf16 %v21584_v46  ;;  %v21586_v57 = vunpack.c.l.bf16 %v21584_v46 }
 0x41e   : > { %v7682_v44 = vmax.f32 %v7681_v45, %v21581_v59  ;;  %v20853_v45 = vunpack.c.h.bf16 %v21573_v19  ;;  %v20851_v59 = vunpack.c.h.bf16 %v19203_v54  ;;  %v19292_v52 = vpack.c.bf16 %v6300_v51, %v6299_v13 }
 0x41f   : > { %v7629_v60 = vmax.f32 %v21586_v57, %v21585_v37  ;;  %v7729_v49 = vmax.f32 %v7728_v16, %v20847_v17  ;;  %v20852_v58 = vunpack.c.h.bf16 %v19219_v31  ;;  %v21589_v57 = vunpack.c.l.bf16 %v21582_v18  ;;  %v21590_v37 = vld [vmem:[#allocation37_spill] sm:$0xff] }
 0x420   : > { %v7683_v47 = vmax.f32 %v7682_v44, %v20848_v28  ;;  %21588 = vst [vmem:[#allocation7_spill] sm:$0xff] %v19292_v52  ;;  %v7652_v28 = vmax.f32 %v7651_v25, %v20853_v45  ;;  %v21591_v26 = vunpack.c.l.bf16 %v21590_v37  ;;  %v21594_v45 = vunpack.c.l.bf16 %v19269_v0 }
 0x421   : > { %v7730_v4 = vmax.f32 %v7729_v49, %v20849_v34  ;;  %v7630_v17 = vmax.f32 %v7629_v60, %v21589_v57  ;;  %v6931_v49 = vpop.f32.mrf.mxu1  ;;  %v19309_v34 = vpop.f32.mrf.mxu0  ;;  %v21598_v25 = vunpack.c.h.bf16 %v21582_v18  ;;  %v21614_v18 = vld [vmem:[#allocation38_spill] sm:$0xff]  ;;  %v21617_v24 = vunpack.c.l.bf16 %v18659_v62 }
 0x422   : > { %v7684_v16 = vmax.f32 %v7683_v47, %v20850_v15  ;;  %v6273_v47 = vmul.f32 %v18392_v33, %v21591_v26  ;;  %v21592_v15 = vunpack.c.h.bf16 %v21590_v37  ;;  %v21595_v26 = vld [vmem:[#allocation54_spill] sm:$0xff]  ;;  %v6652_v54 = vunpack.c.h.b16 %v19119_v56 }
 0x423   : > { %v7731_v13 = vmax.f32 %v7730_v4, %v20851_v59  ;;  %v21593_v59 = vunpack.c.l.bf16 %v21587_v29  ;;  %v21596_v19 = vunpack.c.l.bf16 %v21595_v26  ;;  %v7631_v4 = vmax.f32 %v7630_v17, %v21598_v25 }
 0x424   : > { %v7685_v51 = vmax.f32 %v7684_v16, %v20852_v58  ;;  %v6274_v60 = vmul.f32 %v18394_v23, %v21592_v15  ;;  %v21597_v15 = vunpack.c.h.bf16 %v21595_v26 }
 0x425   : > { %v7653_v16 = vmax.f32 %v7652_v28, %v21593_v59  ;;  %7732 = vmax.xlane.f32.xlu1 %v7731_v13  ;;  %v6275_v37 = vmul.f32 %v18492_v11, %v21596_v19  ;;  %v21600_v59 = vunpack.c.h.bf16 %v21587_v29  ;;  %v21602_v19 = vld [vmem:[#allocation61_spill] sm:$0xff] }
 0x426   : > { %v7686_v44 = vmax.f32 %v7685_v51, %v21594_v45  ;;  %v6276_v57 = vmul.f32 %v18494_v8, %v21597_v15  ;;  %v21601_v51 = vunpack.c.h.bf16 %v19269_v0  ;;  %v21603_v46 = vunpack.c.l.bf16 %v21602_v19  ;;  %v21618_v28 = vld [vmem:[#allocation21_spill] sm:$0xff] }
 0x427   : > { %v7654_v13 = vmax.f32 %v7653_v16, %v21600_v59  ;;  %v19343_v15 = vpack.c.bf16 %v6274_v60, %v6273_v47  ;;  %v21605_v17 = vunpack.c.h.bf16 %v21602_v19  ;;  %v21606_v16 = vunpack.c.l.bf16 %v18327_v35 }
 0x428   : > { %v7687_v58 = vmax.f32 %v7686_v44, %v21601_v51  ;;  %v6277_v26 = vmul.f32 %v18728_v50, %v21603_v46  ;;  %v21607_v45 = vunpack.c.l.bf16 %v19292_v52  ;;  %v21608_v51 = vld [vmem:[#allocation68_spill] sm:$0xff]  ;;  %v19360_v19 = vpack.c.bf16 %v6276_v57, %v6275_v37 }
 0x429   : > { %21604 = vst [vmem:[#allocation37_spill] sm:$0xff] %v19343_v15  ;;  %v6278_v25 = vmul.f32 %v18744_v39, %v21605_v17  ;;  %v7655_v59 = vmax.f32 %v7654_v13, %v21606_v16  ;;  %v21609_v29 = vunpack.c.l.bf16 %v21608_v51  ;;  %v21610_v47 = vunpack.c.h.bf16 %v21608_v51 }
 0x42a   : > { %v7688_v44 = vmax.f32 %v7687_v58, %v21607_v45  ;;  %21611 = vst [vmem:[#allocation54_spill] sm:$0xff] %v19360_v19  ;;  %v21612_v13 = vunpack.c.h.bf16 %v18327_v35  ;;  %v21613_v58 = vunpack.c.h.bf16 %v19292_v52  ;;  %v21615_v51 = vunpack.c.l.bf16 %v21614_v18 }
 0x42b   : > { %v6279_v46 = vmul.f32 %v18795_v20, %v21609_v29  ;;  %v6280_v60 = vmul.f32 %v18797_v6, %v21610_v47  ;;  %v21616_v57 = vunpack.c.h.bf16 %v21614_v18  ;;  %v6955_v29 = vpop.f32.mrf.mxu2  ;;  %v6934_v18 = vpop.f32.mrf.mxu1  ;;  %v21622_v52 = vunpack.c.l.bf16 %v18742_v38 }
 0x42c   : > { %v7656_v16 = vmax.f32 %v7655_v59, %v21612_v13  ;;  %v7689_v45 = vmax.f32 %v7688_v44, %v21613_v58  ;;  %v6253_v47 = vmul.f32 %v18392_v33, %v21615_v51  ;;  %v21619_v13 = vunpack.c.l.bf16 %v21599_v40  ;;  %v6902_v58 = vpop.f32.mrf.mxu3  ;;  %v19385_v51 = vpop.f32.mrf.mxu0 }
 0x42d   : > { %v6254_v37 = vmul.f32 %v18394_v23, %v21616_v57  ;;  %v19383_v33 = vadd.f32 %v6931_v49, %v6902_v58  ;;  %v6689_v23 = vunpack.c.l.b16 %v19009_v7  ;;  %v21621_v59 = vunpack.c.h.bf16 %v21599_v40 }
 0x42e   : > { %v7657_v17 = vmax.f32 %v7656_v16, %v21617_v24  ;;  %v7632_v44 = vmax.f32 %v7631_v4, %v21619_v13  ;;  %7690 = vmax.xlane.f32.xlu2 %v7689_v45  ;;  %v6709_v24 = vunpack.c.l.b16 %v18763_v12  ;;  %v21620_v16 = vunpack.c.h.bf16 %v18659_v62 }
 0x42f   : > { %v6690_v13 = vunpack.c.h.b16 %v19009_v7  ;;  %v6710_v45 = vunpack.c.h.b16 %v18763_v12  ;;  %v6651_v49 = vunpack.c.l.b16 %v19119_v56  ;;  %v6671_v58 = vunpack.c.l.b16 %v18861_v36 }
 0x430   : > { %v7658_v57 = vmax.f32 %v7657_v17, %v21620_v16  ;;  %v7633_v4 = vmax.f32 %v7632_v44, %v21621_v59  ;;  %v6789_v35 = vpack.c.b16 %v6709_v24, %v6689_v23  ;;  %v21623_v62 = vunpack.c.l.bf16 %v21618_v28 }
 0x431   : > { %v6790_v16 = vpack.c.b16 %v6710_v45, %v6690_v13  ;;  %v6672_v59 = vunpack.c.h.b16 %v18861_v36  ;;  %v6927_v44 = vadd.f32 %v19175_v14, %v19151_v10  ;;  %v19405_v40 = vpack.c.bf16 %v6278_v25, %v6277_v26  ;;  %v21628_v45 = vld [vmem:[#allocation53_spill] sm:$0xff] }
 0x432   : > { %v7659_v32 = vmax.f32 %v7658_v57, %v21622_v52  ;;  %v7634_v17 = vmax.f32 %v7633_v4, %v21623_v62  ;;  %v19407_v23 = vpack.c.bf16 %v6280_v60, %v6279_v46  ;;  %7136 = vmatmul.bf16.gmra.mxu3 %v6789_v35  ;;  %v6771_v24 = vpack.c.b16 %v6671_v58, %v6651_v49 }
 0x433   : > { %21624 = vst [vmem:[#allocation61_spill] sm:$0xff] %v19405_v40  ;;  %v20883_v56 = vunpack.c.h.bf16 %v19343_v15  ;;  %v21626_v12 = vunpack.c.h.bf16 %v18742_v38  ;;  %v21627_v57 = vunpack.c.h.bf16 %v21618_v28  ;;  %7165 = vmatmul.bf16.gmra.mxu1 %v6790_v16  ;;  %v6772_v4 = vpack.c.b16 %v6672_v59, %v6652_v54 }
 0x434   : > { %21625 = vst [vmem:[#allocation68_spill] sm:$0xff] %v19407_v23  ;;  %v20877_v13 = vunpack.c.l.bf16 %v19360_v19  ;;  %v21629_v14 = vunpack.c.l.bf16 %v21628_v45  ;;  %v21630_v26 = vunpack.c.h.bf16 %v21628_v45  ;;  %v19421_v25 = vpack.c.bf16 %v6254_v37, %v6253_v47  ;;  %7189 = vmatmul.bf16.gmra.mxu2 %v6771_v24  ;;  %v6905_v58 = vpop.f32.mrf.mxu3 }
 0x435   : > { %v7660_v52 = vmax.f32 %v7659_v32, %v21626_v12  ;;  %v7635_v62 = vmax.f32 %v7634_v17, %v21627_v57  ;;  %v21632_v12 = vunpack.c.l.bf16 %v19343_v15  ;;  %v20894_v46 = vunpack.c.h.bf16 %v18657_v42  ;;  %7218 = vmatmul.bf16.gmra.mxu0 %v6772_v4  ;;  %v21634_v17 = vld [vmem:[#allocation60_spill] sm:$0xff]  ;;  %v19440_v57 = vpop.f32.mrf.mxu0 }
 0x436   : > { %v6255_v10 = vmul.f32 %v18492_v11, %v21629_v14  ;;  %v6256_v35 = vmul.f32 %v18494_v8, %v21630_v26  ;;  %21631 = vst [vmem:[#allocation38_spill] sm:$0xff] %v19421_v25  ;;  %v20880_v54 = vunpack.c.l.bf16 %v18740_v53  ;;  %v21633_v60 = vunpack.c.l.bf16 %v18657_v42  ;;  %v6958_v11 = vpop.f32.mrf.mxu2 }
 0x437   : > { %v7661_v32 = vmax.f32 %v7660_v52, %v21632_v12  ;;  %v21635_v16 = vunpack.c.l.bf16 %v21634_v17  ;;  %v21636_v47 = vunpack.c.h.bf16 %v21634_v17  ;;  %v19435_v59 = vadd.f32 %v6934_v18, %v6905_v58  ;;  %v6936_v52 = vpop.f32.mrf.mxu1 }
 0x438   : > { %v7636_v49 = vmax.f32 %v7635_v62, %v21633_v60  ;;  %v19438_v24 = vadd.f32 %v6958_v11, %v19252_v9  ;;  %v20881_v62 = vunpack.c.h.bf16 %v19360_v19  ;;  %v20878_v45 = vunpack.c.l.bf16 %v19405_v40 }
 0x439   : > { %v6257_v8 = vmul.f32 %v18728_v50, %v21635_v16  ;;  %v6258_v37 = vmul.f32 %v18744_v39, %v21636_v47  ;;  %v7662_v4 = vmax.f32 %v7661_v32, %v20883_v56  ;;  %v20882_v39 = vunpack.c.h.bf16 %v19405_v40 }
 0x43a   : > { %v7637_v50 = vmax.f32 %v7636_v49, %v20894_v46  ;;  %v19449_v18 = vpack.c.bf16 %v6256_v35, %v6255_v10  ;;  %v6956_v14 = vadd.f32 %v6955_v29, %v6927_v44  ;;  %v20893_v26 = vunpack.c.h.bf16 %v18740_v53  ;;  %v21638_v49 = vld [vmem:[#allocation67_spill] sm:$0xff] }
 0x43b   : > { %v7663_v9 = vmax.f32 %v7662_v4, %v20877_v13  ;;  %v20879_v12 = vunpack.c.l.bf16 %v19421_v25  ;;  %v20884_v60 = vunpack.c.l.bf16 %v19407_v23  ;;  %v21639_v58 = vunpack.c.l.bf16 %v21638_v49 }
 0x43c   : > { %21637 = vst [vmem:[#allocation21_spill] sm:$0xff] %v19449_v18  ;;  %v7638_v32 = vmax.f32 %v7637_v50, %v20880_v54  ;;  %v21640_v10 = vunpack.c.h.bf16 %v21638_v49  ;;  %v19464_v44 = vpack.c.bf16 %v6258_v37, %v6257_v8  ;;  %v20892_v17 = vunpack.c.h.bf16 %v19421_v25 }
 0x43d   : > { %v6259_v11 = vmul.f32 %v18795_v20, %v21639_v58  ;;  %v7664_v35 = vmax.f32 %v7663_v9, %v20881_v62  ;;  %v19473_v47 = vadd.f32 %v19244_v30, %v19255_v5  ;;  %v20887_v20 = vunpack.c.l.bf16 %v19449_v18  ;;  %v6907_v9 = vpop.f32.mrf.mxu3 }
 0x43e   : > { %v6260_v29 = vmul.f32 %v18797_v6, %v21640_v10  ;;  %21641 = vst [vmem:[#allocation53_spill] sm:$0xff] %v19464_v44  ;;  %v7639_v16 = vmax.f32 %v7638_v32, %v20893_v26  ;;  %v6573_v4 = vunpack.c.l.b16 %v19421_v25  ;;  %v6593_v6 = vunpack.c.l.b16 %v19343_v15  ;;  %v6960_v32 = vpop.f32.mrf.mxu2  ;;  %v19488_v10 = vpop.f32.mrf.mxu0  ;;  %v21650_v26 = vld [vmem:[#allocation42_spill] sm:$0xff] }
 0x43f   : > { %v19479_v8 = vadd.f32 %v19309_v34, %v6956_v14  ;;  %v7665_v37 = vmax.f32 %v7664_v35, %v20878_v45  ;;  %v6574_v30 = vunpack.c.h.b16 %v19421_v25  ;;  %v6594_v5 = vunpack.c.h.b16 %v19343_v15  ;;  %v7035_v13 = vpop.f32.mrf.mxu1 }
 0x440   : > { %v7640_v50 = vmax.f32 %v7639_v16, %v20879_v12  ;;  %v6937_v49 = vadd.f32 %v6936_v52, %v6907_v9  ;;  %v6961_v58 = vadd.f32 %v6960_v32, %v19383_v33  ;;  %v6691_v34 = vunpack.c.l.b16 %v19024_v27 }
 0x441   : > { %v6711_v14 = vunpack.c.l.b16 %v18777_v48  ;;  %v7666_v35 = vmax.f32 %v7665_v37, %v20882_v39  ;;  %v6692_v45 = vunpack.c.h.b16 %v19024_v27  ;;  %v6712_v12 = vunpack.c.h.b16 %v18777_v48 }
 0x442   : > { %v7641_v16 = vmax.f32 %v7640_v50, %v20892_v17  ;;  %v20888_v52 = vunpack.c.h.bf16 %v19407_v23  ;;  %v19499_v33 = vpack.c.bf16 %v6260_v29, %v6259_v11  ;;  %v20891_v9 = vunpack.c.h.bf16 %v19449_v18 }
 0x443   : > { %v6733_v32 = vpack.c.b16 %v6593_v6, %v6573_v4  ;;  %v7667_v54 = vmax.f32 %v7666_v35, %v20884_v60  ;;  %v20886_v62 = vunpack.c.l.bf16 %v19464_v44  ;;  %v6734_v50 = vpack.c.b16 %v6594_v5, %v6574_v30 }
 0x444   : > { %21642 = vst [vmem:[#allocation60_spill] sm:$0xff] %v19499_v33  ;;  %v7642_v37 = vmax.f32 %v7641_v16, %v20887_v20  ;;  %v6791_v39 = vpack.c.b16 %v6711_v14, %v6691_v34  ;;  %v6792_v29 = vpack.c.b16 %v6712_v12, %v6692_v45  ;;  %v6978_v4 = vadd.f32 %v19083_v63, %v18720_v61  ;;  %v21643_v45 = vld [vmem:[#allocation33_spill] sm:$0xff] }
 0x445   : > { %7237 = vmatmul.bf16.vlgmr.msra.gmra.mxu3 %v6733_v32  ;;  %v7668_v56 = vmax.f32 %v7667_v54, %v20888_v52  ;;  %7266 = vmatmul.bf16.vlgmr.msra.gmra.mxu1 %v6734_v50  ;;  %v20890_v6 = vunpack.c.h.bf16 %v19464_v44  ;;  %v20885_v35 = vunpack.c.l.bf16 %v19499_v33  ;;  %v7006_v54 = vpop.f32.mrf.mxu3  ;;  %v19519_v34 = vadd.f32 %v19385_v51, %v19438_v24 }
 0x446   : > { %v7643_v11 = vmax.f32 %v7642_v37, %v20891_v9  ;;  %7194 = vmatmul.bf16.gmra.mxu2 %v6791_v39  ;;  %7223 = vmatmul.bf16.gmra.mxu0 %v6792_v29  ;;  %v6963_v5 = vpop.f32.mrf.mxu2  ;;  %v21644_v39 = vld [vmem:[#allocation34_spill] sm:$0xff]  ;;  %v7007_v63 = vadd.f32 %v7006_v54, %v6978_v4  ;;  %v19528_v50 = vadd.f32 %v19440_v57, %v6961_v58  ;;  %v20889_v51 = vunpack.c.h.bf16 %v19499_v33 }
 0x447   : > { %7669 = vmax.xlane.f32.xlu0 %v7668_v56  ;;  %v6922_v12 = vadd.f32 %v21644_v39, %v21643_v45  ;;  %v6964_v61 = vadd.f32 %v6963_v5, %v19435_v59  ;;  %v6994_v56 = vpop.f32.mrf.mxu0  ;;  %v7037_v14 = vpop.f32.mrf.mxu1  ;;  %v6613_v29 = vunpack.c.l.b16 %v19199_v21  ;;  %v6633_v4 = vunpack.c.l.b16 %v18955_v2 }
 0x448   : > { %v7644_v30 = vmax.f32 %v7643_v11, %v20886_v62  ;;  %v7036_v37 = vadd.f32 %v7035_v13, %v7007_v63  ;;  %v6614_v57 = vunpack.c.h.b16 %v19199_v21  ;;  %v6634_v58 = vunpack.c.h.b16 %v18955_v2 }
 0x449   : > { %v6951_v32 = vadd.f32 %v19153_v3, %v6922_v12  ;;  %v6575_v39 = vunpack.c.l.b16 %v19449_v18  ;;  %v6595_v12 = vunpack.c.l.b16 %v19360_v19  ;;  %v6596_v63 = vunpack.c.h.b16 %v19360_v19 }
 0x44a   : > { %v7645_v16 = vmax.f32 %v7644_v30, %v20890_v6  ;;  %v6617_v17 = vunpack.c.l.b16 %v19269_v0 }
 0x44b   : > { %v6980_v11 = vadd.f32 %v19177_v41, %v6951_v32  ;;  %v6576_v41 = vunpack.c.h.b16 %v19449_v18 }
 0x44c   : > { %v7646_v24 = vmax.f32 %v7645_v16, %v20885_v35  ;;  %v6753_v16 = vpack.c.b16 %v6633_v4, %v6613_v29  ;;  %v6653_v4 = vunpack.c.l.b16 %v19148_v1 }
 0x44d   : > { %v7008_v13 = vpop.f32.mrf.mxu3  ;;  %v6736_v60 = vpack.c.b16 %v6596_v63, %v6576_v41 }
 0x44e   : > { %v7647_v59 = vmax.f32 %v7646_v24, %v20889_v51  ;;  %v6965_v3 = vpop.f32.mrf.mxu2  ;;  %v7009_v5 = vadd.f32 %v7008_v13, %v6980_v11  ;;  %v6754_v24 = vpack.c.b16 %v6634_v58, %v6614_v57  ;;  %v6673_v57 = vunpack.c.l.b16 %v18877_v55 }
 0x44f   : > { %v6966_v30 = vadd.f32 %v6965_v3, %v6937_v49  ;;  %v7040_v54 = vpop.f32.mrf.mxu1  ;;  %v7093_v45 = vpop.f32.mrf.mxu0  ;;  %v19545_v3 = vadd.f32 %v19488_v10, %v6964_v61  ;;  %v6674_v10 = vunpack.c.h.b16 %v18877_v55 }
 0x450   : > { %7648 = vmax.xlane.f32.xlu1 %v7647_v59  ;;  %v7038_v32 = vadd.f32 %v7037_v14, %v7009_v5  ;;  %v6735_v59 = vpack.c.b16 %v6595_v12, %v6575_v39  ;;  %v6654_v5 = vunpack.c.h.b16 %v19148_v1 }
 0x451   : > { %v19550_v29 = vadd.f32 %v6994_v56, %v6966_v30  ;;  %v6635_v56 = vunpack.c.l.b16 %v18970_v43  ;;  %v6616_v30 = vunpack.c.h.b16 %v19219_v31 }
 0x452   : > { %v6774_v41 = vpack.c.b16 %v6674_v10, %v6654_v5 }
 0x455   : > { %7242 = vmatmul.bf16.gmra.mxu3 %v6753_v16  ;;  %7271 = vmatmul.bf16.gmra.mxu1 %v6754_v24  ;;  %v7011_v49 = vpop.f32.mrf.mxu3 }
 0x456   : > { %7295 = vmatmul.bf16.vlgmr.msra.gmra.mxu2 %v6735_v59  ;;  %7324 = vmatmul.bf16.vlgmr.msra.gmra.mxu0 %v6736_v60  ;;  %v7064_v11 = vpop.f32.mrf.mxu2  ;;  %v7012_v13 = vadd.f32 %v7011_v49, %v19473_v47 }
 0x457   : > { %v7065_v35 = vadd.f32 %v7064_v11, %v7036_v37  ;;  %v7042_v62 = vpop.f32.mrf.mxu1  ;;  %v7095_v20 = vpop.f32.mrf.mxu0 }
 0x458   : > { %v7041_v14 = vadd.f32 %v7040_v54, %v7012_v13  ;;  %v6636_v54 = vunpack.c.h.b16 %v18970_v43 }
 0x459   : > { %v19548_v52 = vadd.f32 %v7093_v45, %v7065_v35  ;;  %v6615_v35 = vunpack.c.l.b16 %v19219_v31  ;;  %v6773_v45 = vpack.c.b16 %v6673_v57, %v6653_v4  ;;  %v21645_v4 = vld [vmem:[#allocation59_spill] sm:$0xff]  ;;  %v21646_v57 = vld [vmem:[#allocation76_spill] sm:$0xff] }
 0x45a   : > { %v6756_v16 = vpack.c.b16 %v6636_v54, %v6616_v30  ;;  %v21647_v54 = vld [vmem:[#allocation79_spill] sm:$0xff] }
 0x45b   : > { %v6755_v63 = vpack.c.b16 %v6635_v56, %v6615_v35  ;;  %v6714_v35 = vunpack.c.h.b16 %v21646_v57  ;;  %v6655_v56 = vunpack.c.l.b16 %v19167_v22 }
 0x45d   : > { %v7013_v60 = vpop.f32.mrf.mxu3 }
 0x45e   : > { %v7066_v58 = vpop.f32.mrf.mxu2  ;;  %v7014_v47 = vadd.f32 %v7013_v60, %v19479_v8 }
 0x45f   : > { %v7067_v61 = vadd.f32 %v7066_v58, %v7038_v32  ;;  %v7045_v37 = vpop.f32.mrf.mxu1  ;;  %v7098_v39 = vpop.f32.mrf.mxu0  ;;  %v6713_v58 = vunpack.c.l.b16 %v21646_v57 }
 0x460   : > { %v7043_v12 = vadd.f32 %v7042_v62, %v7014_v47  ;;  %v6693_v62 = vunpack.c.l.b16 %v21645_v4  ;;  %v6694_v47 = vunpack.c.h.b16 %v21645_v4 }
 0x465   : > { %7247 = vmatmul.bf16.gmra.mxu3 %v6773_v45  ;;  %7276 = vmatmul.bf16.gmra.mxu1 %v6774_v41  ;;  %v7016_v8 = vpop.f32.mrf.mxu3  ;;  %v19575_v45 = vadd.f32 %v7095_v20, %v7067_v61  ;;  %v6656_v41 = vunpack.c.h.b16 %v19167_v22 }
 0x466   : > { %7300 = vmatmul.bf16.gmra.mxu2 %v6755_v63  ;;  %7329 = vmatmul.bf16.gmra.mxu0 %v6756_v16  ;;  %v7069_v32 = vpop.f32.mrf.mxu2  ;;  %v7017_v24 = vadd.f32 %v7016_v8, %v19519_v34  ;;  %v6676_v63 = vunpack.c.h.b16 %v21647_v54  ;;  %v6793_v16 = vpack.c.b16 %v6713_v58, %v6693_v62  ;;  %v6577_v62 = vunpack.c.l.b16 %v19464_v44 }
 0x467   : > { %v7070_v59 = vadd.f32 %v7069_v32, %v7041_v14  ;;  %v7047_v49 = vpop.f32.mrf.mxu1  ;;  %v19562_v11 = vpop.f32.mrf.mxu0  ;;  %v6794_v32 = vpack.c.b16 %v6714_v35, %v6694_v47  ;;  %v6597_v58 = vunpack.c.l.b16 %v19405_v40 }
 0x468   : > { %v7046_v60 = vadd.f32 %v7045_v37, %v7017_v24  ;;  %v6675_v37 = vunpack.c.l.b16 %v21647_v54  ;;  %v7796_v24 = vpop.xlane.xlu0 %7795 }
 0x469   : > { %v19564_v13 = vadd.f32 %v7098_v39, %v7070_v59  ;;  %7862 = vmatpush.msra.mxu3 %v7796_v24 }
 0x46a   : > { %v6775_v59 = vpack.c.b16 %v6675_v37, %v6655_v56  ;;  %v6578_v56 = vunpack.c.h.b16 %v19464_v44 }
 0x46d   : > { %v7018_v5 = vpop.f32.mrf.mxu3 }
 0x46e   : > { %v7071_v10 = vpop.f32.mrf.mxu2  ;;  %v7019_v34 = vadd.f32 %v7018_v5, %v19528_v50  ;;  %v6776_v50 = vpack.c.b16 %v6676_v63, %v6656_v41  ;;  %v21648_v63 = vld [vmem:[#allocation66_spill] sm:$0xff] }
 0x46f   : > { %v19572_v14 = vadd.f32 %v7071_v10, %v7043_v12  ;;  %v7050_v30 = vpop.f32.mrf.mxu1  ;;  %v7103_v39 = vpop.f32.mrf.mxu0 }
 0x470   : > { %v7048_v8 = vadd.f32 %v7047_v49, %v7019_v34  ;;  %v6598_v34 = vunpack.c.h.b16 %v19405_v40 }
 0x475   : > { %7252 = vmatmul.bf16.gmra.mxu3 %v6793_v16  ;;  %7281 = vmatmul.bf16.gmra.mxu1 %v6794_v32  ;;  %v7021_v12 = vpop.f32.mrf.mxu3  ;;  %v21649_v16 = vld [vmem:[#allocation77_spill] sm:$0xff]  ;;  %v6696_v32 = vunpack.c.h.b16 %v21648_v63 }
 0x476   : > { %7305 = vmatmul.bf16.gmra.mxu2 %v6775_v59  ;;  %7334 = vmatmul.bf16.gmra.mxu0 %v6776_v50  ;;  %v7074_v5 = vpop.f32.mrf.mxu2  ;;  %v7022_v20 = vadd.f32 %v7021_v12, %v19545_v3  ;;  %v6716_v24 = vunpack.c.h.b16 %v21649_v16  ;;  %v6737_v59 = vpack.c.b16 %v6597_v58, %v6577_v62  ;;  %v6738_v12 = vpack.c.b16 %v6598_v34, %v6578_v56 }
 0x477   : > { %v7075_v61 = vadd.f32 %v7074_v5, %v7046_v60  ;;  %v7052_v10 = vpop.f32.mrf.mxu1  ;;  %v19580_v51 = vpop.f32.mrf.mxu0  ;;  %v6637_v62 = vunpack.c.l.b16 %v21650_v26  ;;  %v6618_v56 = vunpack.c.h.b16 %v19269_v0  ;;  %v6638_v34 = vunpack.c.h.b16 %v21650_v26 }
 0x478   : > { %v7051_v49 = vadd.f32 %v7050_v30, %v7022_v20  ;;  %v6715_v30 = vunpack.c.l.b16 %v21649_v16  ;;  %v6796_v20 = vpack.c.b16 %v6716_v24, %v6696_v32  ;;  %v6599_v32 = vunpack.c.l.b16 %v19407_v23 }
 0x479   : > { %v19582_v6 = vadd.f32 %v7103_v39, %v7075_v61  ;;  %v6695_v39 = vunpack.c.l.b16 %v21648_v63  ;;  %v6580_v24 = vunpack.c.h.b16 %v19499_v33 }
 0x47b   : > { %v6795_v5 = vpack.c.b16 %v6715_v30, %v6695_v39 }
 0x47d   : > { %v7023_v47 = vpop.f32.mrf.mxu3 }
 0x47e   : > { %v7076_v35 = vpop.f32.mrf.mxu2  ;;  %v7024_v37 = vadd.f32 %v7023_v47, %v19550_v29 }
 0x47f   : > { %v19589_v3 = vadd.f32 %v7076_v35, %v7048_v8  ;;  %v7108_v60 = vpop.f32.mrf.mxu0  ;;  %v7151_v41 = vpop.f32.mrf.mxu1 }
 0x480   : > { %v7053_v50 = vadd.f32 %v7052_v10, %v7024_v37 }
 0x485   : > { %7353 = vmatmul.bf16.vlgmr.msrb.gmra.mxu3 %v6737_v59  ;;  %7382 = vmatmul.bf16.vlgmr.msrb.gmra.mxu1 %v6738_v12  ;;  %v7122_v8 = vpop.f32.mrf.mxu3  ;;  %v6600_v59 = vunpack.c.h.b16 %v19407_v23 }
 0x486   : > { %7310 = vmatmul.bf16.gmra.mxu2 %v6795_v5  ;;  %7339 = vmatmul.bf16.gmra.mxu0 %v6796_v20  ;;  %v7079_v29 = vpop.f32.mrf.mxu2  ;;  %v7123_v5 = vadd.f32 %v7122_v8, %v19548_v52  ;;  %v6757_v20 = vpack.c.b16 %v6637_v62, %v6617_v17  ;;  %v21651_v17 = vld [vmem:[#allocation70_spill] sm:$0xff]  ;;  %v21652_v62 = vld [vmem:[#allocation80_spill] sm:$0xff] }
 0x487   : > { %v7080_v61 = vadd.f32 %v7079_v29, %v7051_v49  ;;  %v7110_v47 = vpop.f32.mrf.mxu0  ;;  %v19595_v35 = vpop.f32.mrf.mxu1  ;;  %v6579_v49 = vunpack.c.l.b16 %v19499_v33  ;;  %v6758_v29 = vpack.c.b16 %v6638_v34, %v6618_v56  ;;  %v6657_v8 = vunpack.c.l.b16 %v21651_v17 }
 0x488   : > { %v7712_v33 = vpop.xlane.xlu2 %7711  ;;  %v6677_v56 = vunpack.c.l.b16 %v21652_v62  ;;  %v6658_v34 = vunpack.c.h.b16 %v21651_v17 }
 0x489   : > { %v19597_v9 = vadd.f32 %v7108_v60, %v7080_v61  ;;  %v7754_v60 = vpop.xlane.xlu1 %7753  ;;  %v6739_v61 = vpack.c.b16 %v6599_v32, %v6579_v49  ;;  %v21653_v49 = vld [vmem:[#allocation7_spill] sm:$0xff] }
 0x48a   : > { %v6619_v32 = vunpack.c.l.b16 %v21653_v49 }
 0x48b   : > { %v7775_v12 = vpop.xlane.xlu0 %7774 }
 0x48c   : > { %7863 = vmatpush.msra.mxu3 %v7775_v12  ;;  %v19624_v12 = vadd.f32 %v19562_v11, %v19572_v14 }
 0x48d   : > { %v19601_v58 = vpop.f32.mrf.mxu3 }
 0x48e   : > { %v7081_v10 = vpop.f32.mrf.mxu2  ;;  %7864 = vmatpush.msra.mxu3 %v7754_v60  ;;  %v21654_v60 = vld [vmem:[#allocation52_spill] sm:$0xff] }
 0x48f   : > { %v7082_v37 = vadd.f32 %v7081_v10, %v7053_v50  ;;  %v7156_v39 = vpop.f32.mrf.mxu1  ;;  %v7209_v30 = vpop.f32.mrf.mxu0  ;;  %v6740_v50 = vpack.c.b16 %v6600_v59, %v6580_v24  ;;  %v7152_v10 = vadd.f32 %v7151_v41, %v7123_v5  ;;  %v6678_v41 = vunpack.c.h.b16 %v21652_v62 }
 0x490   : > { %v6620_v24 = vunpack.c.h.b16 %v21653_v49  ;;  %v6640_v59 = vunpack.c.h.b16 %v21654_v60 }
 0x492   : > { %v6760_v14 = vpack.c.b16 %v6640_v59, %v6620_v24  ;;  %v21658_v24 = vld [vmem:[#allocation49_spill] sm:$0xff] }
 0x495   : > { %7358 = vmatmul.bf16.gmra.mxu3 %v6757_v20  ;;  %7387 = vmatmul.bf16.gmra.mxu1 %v6758_v29  ;;  %v7127_v40 = vpop.f32.mrf.mxu3 }
 0x496   : > { %7411 = vmatmul.bf16.vlgmr.msrb.gmra.mxu2 %v6739_v61  ;;  %7440 = vmatmul.bf16.vlgmr.msrb.gmra.mxu0 %v6740_v50  ;;  %v7180_v46 = vpop.f32.mrf.mxu2  ;;  %v6777_v61 = vpack.c.b16 %v6677_v56, %v6657_v8  ;;  %v6778_v50 = vpack.c.b16 %v6678_v41, %v6658_v34  ;;  %v7128_v11 = vadd.f32 %v7127_v40, %v19564_v13  ;;  %v21656_v41 = vld [vmem:[#allocation40_spill] sm:$0xff] }
 0x497   : > { %v7181_v44 = vadd.f32 %v7180_v46, %v7152_v10  ;;  %v19610_v19 = vpop.f32.mrf.mxu1  ;;  %v19612_v23 = vpop.f32.mrf.mxu0  ;;  %v6639_v46 = vunpack.c.l.b16 %v21654_v60  ;;  %v19632_v10 = vadd.f32 %v19580_v51, %v19589_v3  ;;  %v6718_v13 = vunpack.c.h.b16 %v21656_v41 }
 0x498   : > { %v7733_v52 = vpop.xlane.xlu1 %7732  ;;  %v7157_v18 = vadd.f32 %v7156_v39, %v7128_v11  ;;  %v6679_v39 = vunpack.c.l.b16 %v21658_v24 }
 0x499   : > { %7865 = vmatpush.msra.mxu3 %v7733_v52  ;;  %v19634_v52 = vadd.f32 %v7110_v47, %v7082_v37  ;;  %v6759_v49 = vpack.c.b16 %v6639_v46, %v6619_v32  ;;  %v7210_v3 = vadd.f32 %v7209_v30, %v7181_v44  ;;  %v21655_v47 = vld [vmem:[#allocation39_spill] sm:$0xff]  ;;  %v6717_v32 = vunpack.c.l.b16 %v21656_v41 }
 0x49a   : > { %v6697_v37 = vunpack.c.l.b16 %v21655_v47  ;;  %v6698_v40 = vunpack.c.h.b16 %v21655_v47  ;;  %v21657_v46 = vld [vmem:[#allocation55_spill] sm:$0xff] }
 0x49b   : > { %7866 = vmatpush.msra.mxu3 %v7712_v33  ;;  %v6660_v59 = vunpack.c.h.b16 %v21657_v46 }
 0x49c   : > { %v6797_v30 = vpack.c.b16 %v6717_v32, %v6697_v37  ;;  %v21659_v32 = vld [vmem:[#allocation81_spill] sm:$0xff] }
 0x49d   : > { %v19626_v33 = vpop.f32.mrf.mxu3 }
 0x49e   : > { %v19628_v5 = vpop.f32.mrf.mxu2 }
 0x49f   : > { %v7161_v29 = vpop.f32.mrf.mxu1  ;;  %v7214_v60 = vpop.f32.mrf.mxu0 }
 0x4a1   : > { %v7691_v20 = vpop.xlane.xlu2 %7690 }
 0x4a2   : > { %7867 = vmatpush.msra.mxu3 %v7691_v20 }
 0x4a5   : > { %7363 = vmatmul.bf16.gmra.mxu3 %v6777_v61  ;;  %7392 = vmatmul.bf16.gmra.mxu1 %v6778_v50  ;;  %v7132_v26 = vpop.f32.mrf.mxu3  ;;  %v6798_v50 = vpack.c.b16 %v6718_v13, %v6698_v40  ;;  %v6699_v40 = vunpack.c.l.b16 %v21659_v32  ;;  %v6700_v13 = vunpack.c.h.b16 %v21659_v32 }
 0x4a6   : > { %7416 = vmatmul.bf16.gmra.mxu2 %v6759_v49  ;;  %7445 = vmatmul.bf16.gmra.mxu0 %v6760_v14  ;;  %v7185_v8 = vpop.f32.mrf.mxu2  ;;  %v6659_v49 = vunpack.c.l.b16 %v21657_v46  ;;  %v7133_v43 = vadd.f32 %v7132_v26, %v19582_v6 }
 0x4a7   : > { %v7186_v56 = vadd.f32 %v7185_v8, %v7157_v18  ;;  %v19637_v34 = vpop.f32.mrf.mxu1  ;;  %v19639_v51 = vpop.f32.mrf.mxu0  ;;  %v6680_v18 = vunpack.c.h.b16 %v21658_v24 }
 0x4a8   : > { %v6779_v14 = vpack.c.b16 %v6679_v39, %v6659_v49  ;;  %v7162_v24 = vadd.f32 %v7161_v29, %v7133_v43 }
 0x4a9   : > { %v7215_v8 = vadd.f32 %v7214_v60, %v7186_v56  ;;  %v6780_v0 = vpack.c.b16 %v6680_v18, %v6660_v59  ;;  %v21660_v60 = vld [vmem:[#allocation65_spill] sm:$0xff] }
 0x4aa   : > { %v6719_v56 = vunpack.c.l.b16 %v21660_v60  ;;  %v6720_v26 = vunpack.c.h.b16 %v21660_v60 }
 0x4ac   : > { %v6799_v49 = vpack.c.b16 %v6719_v56, %v6699_v40 }
 0x4ad   : > { %v19649_v20 = vpop.f32.mrf.mxu3 }
 0x4ae   : > { %v19651_v61 = vpop.f32.mrf.mxu2  ;;  %v7135_v41 = vadd.f32 %v19649_v20, %v19632_v10 }
 0x4b0   : > { %v7166_v44 = vpop.f32.mrf.mxu1 }
 0x4b2   : > { %v7219_v11 = vpop.f32.mrf.mxu0 }
 0x4b5   : > { %7368 = vmatmul.bf16.gmra.mxu3 %v6797_v30  ;;  %7397 = vmatmul.bf16.gmra.mxu1 %v6798_v50  ;;  %v7137_v31 = vpop.f32.mrf.mxu3 }
 0x4b6   : > { %7421 = vmatmul.bf16.gmra.mxu2 %v6779_v14  ;;  %7450 = vmatmul.bf16.gmra.mxu0 %v6780_v0 }
 0x4b7   : > { %v7190_v62 = vpop.f32.mrf.mxu2 }
 0x4b8   : > { %v19654_v17 = vpop.f32.mrf.mxu1  ;;  %v7191_v54 = vadd.f32 %v7190_v62, %v7162_v24  ;;  %v6800_v62 = vpack.c.b16 %v6720_v26, %v6700_v13  ;;  %v7138_v24 = vadd.f32 %v7137_v31, %v19597_v9 }
 0x4ba   : > { %v7670_v46 = vpop.xlane.xlu0 %7669  ;;  %v19656_v37 = vpop.f32.mrf.mxu0  ;;  %v7220_v39 = vadd.f32 %v7219_v11, %v7191_v54  ;;  %v7167_v59 = vadd.f32 %v7166_v44, %v7138_v24 }
 0x4bb   : > { %7868 = vmatpush.msra.mxu3 %v7670_v46 }
 0x4bd   : > { %v19662_v0 = vpop.f32.mrf.mxu3 }
 0x4bf   : > { %v7192_v43 = vpop.f32.mrf.mxu2 }
 0x4c2   : > { %v7267_v29 = vpop.f32.mrf.mxu1 }
 0x4c3   : > { %v7649_v6 = vpop.xlane.xlu1 %7648  ;;  %v7224_v46 = vpop.f32.mrf.mxu0 }
 0x4c4   : > { %7869 = vmatpush.msra.mxu3 %v7649_v6 }
 0x4c6   : > { %7426 = vmatmul.bf16.gmra.mxu2 %v6799_v49  ;;  %7455 = vmatmul.bf16.gmra.mxu0 %v6800_v62 }
 0x4c8   : > { %v7238_v18 = vpop.f32.mrf.mxu3 }
 0x4c9   : > { %v7195_v30 = vpop.f32.mrf.mxu2  ;;  %v7239_v50 = vadd.f32 %v7238_v18, %v7210_v3 }
 0x4ca   : > { %v19665_v14 = vpop.f32.mrf.mxu1  ;;  %v7196_v32 = vadd.f32 %v7195_v30, %v7167_v59 }
 0x4cb   : > { %v19667_v60 = vpop.f32.mrf.mxu0  ;;  %v7268_v6 = vadd.f32 %v7267_v29, %v7239_v50 }
 0x4cc   : > { %v7225_v40 = vadd.f32 %v7224_v46, %v7196_v32 }
 0x4d0   : > { %v19669_v22 = vpop.f32.mrf.mxu3 }
 0x4d1   : > { %v19671_v47 = vpop.f32.mrf.mxu2 }
 0x4d2   : > { %v7272_v54 = vpop.f32.mrf.mxu1 }
 0x4d3   : > { %v7325_v11 = vpop.f32.mrf.mxu0 }
 0x4d8   : > { %v7243_v31 = vpop.f32.mrf.mxu3 }
 0x4d9   : > { %v7244_v9 = vadd.f32 %v7243_v31, %v7215_v8  ;;  %v7296_v56 = vpop.f32.mrf.mxu2 }
 0x4da   : > { %v19673_v44 = vpop.f32.mrf.mxu1  ;;  %v7297_v13 = vadd.f32 %v7296_v56, %v7268_v6 }
 0x4db   : > { %v19675_v3 = vpop.f32.mrf.mxu0  ;;  %v7273_v26 = vadd.f32 %v7272_v54, %v7244_v9 }
 0x4dc   : > { %v7326_v8 = vadd.f32 %v7325_v11, %v7297_v13  ;;  %v7164_v11 = vadd.f32 %v19637_v34, %v7135_v41 }
 0x4de   : > { %v7193_v13 = vadd.f32 %v7192_v43, %v7164_v11 }
 0x4e0   : > { %v19677_v49 = vpop.f32.mrf.mxu3  ;;  %v7222_v38 = vadd.f32 %v19656_v37, %v7193_v13 }
 0x4e1   : > { %v19679_v62 = vpop.f32.mrf.mxu2 }
 0x4e2   : > { %v7277_v29 = vpop.f32.mrf.mxu1 }
 0x4e3   : > { %v7330_v24 = vpop.f32.mrf.mxu0 }
 0x4e8   : > { %v7248_v59 = vpop.f32.mrf.mxu3 }
 0x4e9   : > { %v7249_v18 = vadd.f32 %v7248_v59, %v7220_v39  ;;  %v7301_v30 = vpop.f32.mrf.mxu2 }
 0x4ea   : > { %v7302_v50 = vadd.f32 %v7301_v30, %v7273_v26  ;;  %v7279_v46 = vpop.f32.mrf.mxu1 }
 0x4eb   : > { %v19681_v32 = vpop.f32.mrf.mxu0  ;;  %v7278_v31 = vadd.f32 %v7277_v29, %v7249_v18 }
 0x4ec   : > { %v19685_v54 = vadd.f32 %v7330_v24, %v7302_v50 }
 0x4f0   : > { %v7250_v63 = vpop.f32.mrf.mxu3 }
 0x4f1   : > { %v19683_v6 = vpop.f32.mrf.mxu2  ;;  %v7251_v50 = vadd.f32 %v7250_v63, %v7222_v38 }
 0x4f2   : > { %v7282_v9 = vpop.f32.mrf.mxu1 }
 0x4f3   : > { %v7335_v56 = vpop.f32.mrf.mxu0  ;;  %v7280_v2 = vadd.f32 %v7279_v46, %v7251_v50 }
 0x4f8   : > { %v7253_v16 = vpop.f32.mrf.mxu3 }
 0x4f9   : > { %v7254_v15 = vadd.f32 %v7253_v16, %v7225_v40  ;;  %v7306_v39 = vpop.f32.mrf.mxu2 }
 0x4fa   : > { %v7307_v59 = vadd.f32 %v7306_v39, %v7278_v31  ;;  %v7284_v29 = vpop.f32.mrf.mxu1 }
 0x4fb   : > { %v7337_v26 = vpop.f32.mrf.mxu0  ;;  %v7283_v30 = vadd.f32 %v7282_v9, %v7254_v15 }
 0x4fc   : > { %v19691_v53 = vadd.f32 %v7335_v56, %v7307_v59 }
 0x500   : > { %v7255_v18 = vpop.f32.mrf.mxu3 }
 0x501   : > { %v7308_v25 = vpop.f32.mrf.mxu2 }
 0x502   : > { %v7383_v20 = vpop.f32.mrf.mxu1  ;;  %v7309_v31 = vadd.f32 %v7308_v25, %v7280_v2 }
 0x503   : > { %v7340_v24 = vpop.f32.mrf.mxu0 }
 0x504   : > { %v7338_v34 = vadd.f32 %v7337_v26, %v7309_v31 }
 0x508   : > { %v7354_v10 = vpop.f32.mrf.mxu3 }
 0x509   : > { %v7311_v16 = vpop.f32.mrf.mxu2  ;;  %v7355_v40 = vadd.f32 %v7354_v10, %v7326_v8 }
 0x50a   : > { %v7312_v39 = vadd.f32 %v7311_v16, %v7283_v30  ;;  %v19695_v21 = vpop.f32.mrf.mxu1  ;;  %v7140_v16 = vadd.f32 %v19662_v0, %v19634_v52 }
 0x50b   : > { %v7342_v15 = vpop.f32.mrf.mxu0  ;;  %v7384_v9 = vadd.f32 %v7383_v20, %v7355_v40 }
 0x50c   : > { %v7341_v37 = vadd.f32 %v7340_v24, %v7312_v39  ;;  %v7130_v39 = vadd.f32 %v19626_v33, %v19624_v12 }
 0x50e   : > { %v7159_v1 = vadd.f32 %v19610_v19, %v7130_v39 }
 0x510   : > { %v19693_v41 = vpop.f32.mrf.mxu3  ;;  %v7188_v57 = vadd.f32 %v19651_v61, %v7159_v1 }
 0x511   : > { %v7313_v43 = vpop.f32.mrf.mxu2 }
 0x512   : > { %v19703_v2 = vpop.f32.mrf.mxu1  ;;  %v7217_v19 = vadd.f32 %v19639_v51, %v7188_v57 }
 0x513   : > { %v7441_v11 = vpop.f32.mrf.mxu0 }
 0x514   : > { %v7246_v1 = vadd.f32 %v19677_v49, %v7217_v19 }
 0x518   : > { %v19697_v38 = vpop.f32.mrf.mxu3 }
 0x519   : > { %v7412_v63 = vpop.f32.mrf.mxu2 }
 0x51a   : > { %v7413_v46 = vadd.f32 %v7412_v63, %v7384_v9  ;;  %v19709_v30 = vpop.f32.mrf.mxu1  ;;  %v7169_v9 = vadd.f32 %v19654_v17, %v7140_v16  ;;  %v11309_v17 = vld [vmem:[%s20488_s3 + $0x40] sm:$0xff] }
 0x51b   : > { %v19699_v56 = vpop.f32.mrf.mxu0  ;;  %11317 = vmatmul.msk.f32.vlgmr.msra.gmra.mxu3 %vm678_vm0, %v11309_v17 }
 0x51c   : > { %v19701_v59 = vadd.f32 %v7441_v11, %v7413_v46  ;;  %v7198_v63 = vadd.f32 %v19671_v47, %v7169_v9  ;;  %v7125_v46 = vadd.f32 %v19601_v58, %v19575_v45 }
 0x51e   : > { %v7227_v52 = vadd.f32 %v19667_v60, %v7198_v63  ;;  %v7154_v48 = vadd.f32 %v19595_v35, %v7125_v46 }
 0x520   : > { %v7361_v25 = vpop.f32.mrf.mxu3  ;;  %v7256_v12 = vadd.f32 %v7255_v18, %v7227_v52  ;;  %v7183_v33 = vadd.f32 %v19628_v5, %v7154_v48  ;;  %v11310_v18 = vld [vmem:[%s20488_s3 + $0x48] sm:$0xff]  ;;  %v7275_v48 = vadd.f32 %v19673_v44, %v7246_v1  ;;  %v11311_v52 = vld [vmem:[%s20488_s3 + $0x50] sm:$0xff] }
 0x521   : > { %v19705_v8 = vpop.f32.mrf.mxu2 }
 0x522   : > { %v7393_v10 = vpop.f32.mrf.mxu1  ;;  %v7285_v45 = vadd.f32 %v7284_v29, %v7256_v12  ;;  %v7212_v58 = vadd.f32 %v19612_v23, %v7183_v33  ;;  %v7304_v57 = vadd.f32 %v19683_v6, %v7275_v48  ;;  %v7817_v48 = vld [vmem:[%s20488_s3 + $0x20] sm:$0xff] }
 0x523   : > { %v19707_v26 = vpop.f32.mrf.mxu0  ;;  %11318 = vmatmul.msk.f32.gmra.mxu3 %vm678_vm0, %v11310_v18  ;;  %v7816_v18 = vld [vmem:[%s20488_s3 + $0x18] sm:$0xff] }
 0x524   : > { %v7314_v35 = vadd.f32 %v7313_v43, %v7285_v45  ;;  %v7241_v60 = vadd.f32 %v19669_v22, %v7212_v58  ;;  %v7333_v9 = vadd.f32 %v19681_v32, %v7304_v57 }
 0x526   : > { %v7343_v49 = vadd.f32 %v7342_v15, %v7314_v35  ;;  %v7270_v23 = vadd.f32 %v19665_v14, %v7241_v60  ;;  %v7362_v12 = vadd.f32 %v7361_v25, %v7333_v9  ;;  %v7815_v35 = vld [vmem:[%s20488_s3 + $0x10] sm:$0xff]  ;;  %v11316_v60 = vld [vmem:[%s20488_s3 + $0x78] sm:$0xff] }
 0x528   : > { %v7364_v24 = vpop.f32.mrf.mxu3  ;;  %v7299_v22 = vadd.f32 %v19679_v62, %v7270_v23  ;;  %v7360_v62 = vadd.f32 %v19697_v38, %v19685_v54  ;;  %v7391_v17 = vadd.f32 %v19709_v30, %v7362_v12  ;;  %v11312_v54 = vld [vmem:[%s20488_s3 + $0x58] sm:$0xff] }
 0x529   : > { %v19711_v13 = vpop.f32.mrf.mxu2  ;;  %v7365_v63 = vadd.f32 %v7364_v24, %v19691_v53 }
 0x52a   : > { %v7395_v55 = vpop.f32.mrf.mxu1  ;;  %v7328_v14 = vadd.f32 %v19675_v3, %v7299_v22  ;;  %v7389_v19 = vadd.f32 %v19703_v2, %v7360_v62 }
 0x52b   : > { %v19713_v50 = vpop.f32.mrf.mxu0  ;;  %11319 = vmatmul.msk.f32.gmra.mxu3 %vm678_vm0, %v11311_v52  ;;  %v7394_v32 = vadd.f32 %v7393_v10, %v7365_v63 }
 0x530   : > { %v7366_v40 = vpop.f32.mrf.mxu3 }
 0x531   : > { %v19715_v20 = vpop.f32.mrf.mxu2  ;;  %v7367_v29 = vadd.f32 %v7366_v40, %v7338_v34  ;;  %v7357_v40 = vadd.f32 %v19693_v41, %v7328_v14  ;;  %v7418_v41 = vadd.f32 %v19711_v13, %v7389_v19  ;;  %v11313_v13 = vld [vmem:[%s20488_s3 + $0x60] sm:$0xff] }
 0x532   : > { %v7398_v61 = vpop.f32.mrf.mxu1  ;;  %v7420_v3 = vadd.f32 %v19715_v20, %v7391_v17 }
 0x533   : > { %v19719_v31 = vpop.f32.mrf.mxu0  ;;  %v7396_v6 = vadd.f32 %v7395_v55, %v7367_v29  ;;  %v7386_v38 = vadd.f32 %v19695_v21, %v7357_v40  ;;  %11320 = vmatmul.msk.f32.gmra.mxu3 %vm678_vm0, %v11312_v54 }
 0x534   : > { %v7449_v20 = vadd.f32 %v19713_v50, %v7420_v3  ;;  %v7461_v50 = vmul.f32 0.000390625, %v19701_v59  ;;  %v11315_v59 = vld [vmem:[%s20488_s3 + $0x70] sm:$0xff] }
 0x535   : > { %v7415_v2 = vadd.f32 %v19705_v8, %v7386_v38 }
 0x536   : > { %v7464_v58 = vmul.f32 0.000390625, %v7449_v20 }
 0x537   : > { %v7444_v21 = vadd.f32 %v19699_v56, %v7415_v2  ;;  %v11314_v56 = vld [vmem:[%s20488_s3 + $0x68] sm:$0xff] }
 0x538   : > { %v7369_v0 = vpop.f32.mrf.mxu3 }
 0x539   : > { %v7422_v11 = vpop.f32.mrf.mxu2  ;;  %v7370_v51 = vadd.f32 %v7369_v0, %v7341_v37  ;;  %v7462_v8 = vmul.f32 0.000390625, %v7444_v21 }
 0x53a   : > { %v7400_v46 = vpop.f32.mrf.mxu1  ;;  %v7423_v25 = vadd.f32 %v7422_v11, %v7394_v32  ;;  %v7447_v11 = vadd.f32 %v19707_v26, %v7418_v41  ;;  %v7813_v26 = vld [vmem:[%s20488_s3] sm:$0xff] }
 0x53b   : > { %v7453_v36 = vpop.f32.mrf.mxu0  ;;  %v7399_v44 = vadd.f32 %v7398_v61, %v7370_v51  ;;  %11321 = vmatmul.msk.f32.gmra.mxu3 %vm678_vm0, %v11313_v13  ;;  %v7814_v61 = vld [vmem:[%s20488_s3 + $0x8] sm:$0xff] }
 0x53c   : > { %v7452_v10 = vadd.f32 %v19719_v31, %v7423_v25  ;;  %v7463_v31 = vmul.f32 0.000390625, %v7447_v11 }
 0x540   : > { %v7371_v5 = vpop.f32.mrf.mxu3 }
 0x541   : > { %v7424_v47 = vpop.f32.mrf.mxu2  ;;  %v7372_v43 = vadd.f32 %v7371_v5, %v7343_v49  ;;  %v7818_v5 = vld [vmem:[%s20488_s3 + $0x28] sm:$0xff] }
 0x542   : > { %v7425_v53 = vadd.f32 %v7424_v47, %v7396_v6  ;;  %v7465_v47 = vmul.f32 0.000390625, %v7452_v10 }
 0x543   : > { %v7456_v16 = vpop.f32.mrf.mxu0  ;;  %v7401_v15 = vadd.f32 %v7400_v46, %v7372_v43  ;;  %11322 = vmatmul.msk.f32.gmra.mxu3 %vm678_vm0, %v11314_v56 }
 0x544   : > { %v7454_v1 = vadd.f32 %v7453_v36, %v7425_v53  ;;  %v12100_v53 = vmov 0  }
 0x545   : > { %11978 = vset.pattern.permute.xlu1 %v12100_v53  ;;  %11976 = vset.pattern.permute.xlu2 %v12100_v53 }
 0x546   : > { %v7466_v36 = vmul.f32 0.000390625, %v7454_v1  ;;  %11977 = vset.pattern.permute.xlu0 %v12100_v53 }
 0x549   : > { %v7427_v39 = vpop.f32.mrf.mxu2 }
 0x54a   : > { %v7428_v37 = vadd.f32 %v7427_v39, %v7399_v44  ;;  %v7820_v39 = vld [vmem:[%s20488_s3 + $0x38] sm:$0xff] }
 0x54b   : > { %v7458_v0 = vpop.f32.mrf.mxu0  ;;  %11323 = vmatmul.msk.f32.gmra.mxu3 %vm678_vm0, %v11315_v59 }
 0x54c   : > { %v7457_v55 = vadd.f32 %v7456_v16, %v7428_v37  ;;  %v7819_v16 = vld [vmem:[%s20488_s3 + $0x30] sm:$0xff] }
 0x54e   : > { %v7467_v30 = vmul.f32 0.000390625, %v7457_v55 }
 0x551   : > { %v7429_v34 = vpop.f32.mrf.mxu2 }
 0x552   : > { %v7430_v24 = vadd.f32 %v7429_v34, %v7401_v15 }
 0x553   : > { %11324 = vmatmul.msk.f32.gmra.mxu3 %vm678_vm0, %v11316_v60 }
 0x554   : > { %v7459_v33 = vadd.f32 %v7458_v0, %v7430_v24 }
 0x556   : > { %v7468_v45 = vmul.f32 0.000390625, %v7459_v33 }
 0x558   : > { %7927 = vmatpush.msra.mxu1 %v7468_v45 }
 0x55a   : > { %7928 = vmatpush.msra.mxu1 %v7467_v30 }
 0x55c   : > { %7929 = vmatpush.msra.mxu1 %v7466_v36 }
 0x55e   : > { %7930 = vmatpush.msra.mxu1 %v7465_v47 }
 0x560   : > { %7931 = vmatpush.msra.mxu1 %v7464_v58 }
 0x562   : > { %7932 = vmatpush.msra.mxu1 %v7463_v31 }
 0x564   : > { %7933 = vmatpush.msra.mxu1 %v7462_v8 }
 0x566   : > { %7934 = vmatpush.msra.mxu1 %v7461_v50 }
 0x567   : > { %11325 = vmatmul.msk.f32.vlgmr.msra.gmra.mxu1 %vm678_vm0, %v7813_v26 }
 0x56f   : > { %11326 = vmatmul.msk.f32.gmra.mxu1 %vm678_vm0, %v7814_v61 }
 0x577   : > { %11327 = vmatmul.msk.f32.gmra.mxu1 %vm678_vm0, %v7815_v35 }
 0x57f   : > { %11328 = vmatmul.msk.f32.gmra.mxu1 %vm678_vm0, %v7816_v18 }
 0x587   : > { %11329 = vmatmul.msk.f32.gmra.mxu1 %vm678_vm0, %v7817_v48 }
 0x58f   : > { %11330 = vmatmul.msk.f32.gmra.mxu1 %vm678_vm0, %v7818_v5 }
 0x597   : > { %11331 = vmatmul.msk.f32.gmra.mxu1 %vm678_vm0, %v7819_v16 }
 0x59e   : > { %v7871_v57 = vpop.f32.mrf.mxu3 }
 0x59f   : > { %11332 = vmatmul.msk.f32.gmra.mxu1 %vm678_vm0, %v7820_v39 }
 0x5a6   : > { %v7874_v51 = vpop.f32.mrf.mxu3 }
 0x5ae   : > { %v7877_v29 = vpop.f32.mrf.mxu3 }
 0x5b6   : > { %v7880_v22 = vpop.f32.mrf.mxu3 }
 0x5be   : > { %v7883_v44 = vpop.f32.mrf.mxu3 }
 0x5c6   : > { %v7886_v14 = vpop.f32.mrf.mxu3 }
 0x5ce   : > { %v7889_v3 = vpop.f32.mrf.mxu3 }
 0x5d6   : > { %v7892_v58 = vpop.f32.mrf.mxu3 }
 0x5e4   : > { %v7936_v49 = vpop.f32.mrf.mxu1 }
 0x5e5   : > { %v7937_v23 = vadd.f32 %v7936_v49, %v7871_v57 }
 0x5e7   : > { %v11333_v21 = vmul.f32 -1.442695, %v7937_v23 }
 0x5ec   : > { %v7939_v43 = vpop.f32.mrf.mxu1 }
 0x5ed   : > { %v7940_v52 = vadd.f32 %v7939_v43, %v7874_v51 }
 0x5ef   : > { %v11334_v6 = vmul.f32 -1.442695, %v7940_v52 }
 0x5f4   : > { %v7942_v9 = vpop.f32.mrf.mxu1 }
 0x5f5   : > { %v7943_v17 = vadd.f32 %v7942_v9, %v7877_v29 }
 0x5f7   : > { %v11335_v45 = vmul.f32 -1.442695, %v7943_v17 }
 0x5fc   : > { %v7945_v63 = vpop.f32.mrf.mxu1 }
 0x5fd   : > { %v7946_v46 = vadd.f32 %v7945_v63, %v7880_v22 }
 0x5ff   : > { %v11336_v12 = vmul.f32 -1.442695, %v7946_v46 }
 0x601   : > { %12059 = vpow2.f32 %v11336_v12 }
 0x602   : > { %12061 = vpow2.f32 %v11334_v6 }
 0x604   : > { %v7948_v37 = vpop.f32.mrf.mxu1 }
 0x605   : > { %v7949_v15 = vadd.f32 %v7948_v37, %v7883_v44 }
 0x607   : > { %v12060_v34 = vpop.eup %12059  ;;  %v11337_v62 = vmul.f32 -1.442695, %v7949_v15 }
 0x608   : > { %v19821_v32 = vadd.f32 1.0, %v12060_v34  ;;  %v12062_v24 = vpop.eup %12061 }
 0x609   : > { %12063 = vpow2.f32 %v11337_v62  ;;  %v19824_v55 = vadd.f32 1.0, %v12062_v24 }
 0x60a   : > { %12065 = vrcp.f32 %v19821_v32  ;;  %v8048_v43 = vand.u32 2147483648, %v19821_v32  ;;  %vm8042_vm4 = vweird.f32 %v19821_v32  ;;  %v8046_v9 = vand.u32 2147483647, %v19821_v32 }
 0x60b   : > { %vm8012_vm8 = vweird.f32 %v19824_v55 }
 0x60c   : > { %v7951_v40 = vpop.f32.mrf.mxu1  ;;  %v8049_v12 = vor.u32 1.1754944e-38, %v8048_v43  ;;  %vm8047_vm6 = vcmp.eq.f32.partialorder %v8046_v9, 8.507059e+37 }
 0x60d   : > { %v7952_v0 = vadd.f32 %v7951_v40, %v7886_v14  ;;  %v8018_v40 = vand.u32 2147483648, %v19824_v55 }
 0x60f   : > { %v12064_v25 = vpop.eup %12063  ;;  %v11338_v33 = vmul.f32 -1.442695, %v7952_v0 }
 0x610   : > { %v7988_v19 = vadd.f32 1.0, %v12064_v25  ;;  %v19826_v1 = vpop.eup %12065  ;;  %v12101_v25 = vmov 839922192  }
 0x611   : > { %12067 = vpow2.f32 %v11338_v33  ;;  %v8038_v41 = vmul.f32 %v19826_v1, %v19821_v32  ;;  %vm8043_vm2 = vweird.f32 %v19826_v1  ;;  %v8016_v33 = vand.u32 2147483647, %v19824_v55 }
 0x612   : > { %12069 = vrcp.f32 %v7988_v19  ;;  %v8061_v50 = vand.u32 2147483647, %v7988_v19  ;;  %v8063_v26 = vand.u32 2147483648, %v7988_v19  ;;  %vm8057_vm14 = vweird.f32 %v7988_v19  ;;  %vm8044_vm5 = vmor %vm8042_vm4, %vm8043_vm2 }
 0x613   : > { %12071 = vrcp.f32 %v19824_v55  ;;  %v8039_v47 = vsub.f32 1.0, %v8038_v41  ;;  %v8019_v41 = vor.u32 1.1754944e-38, %v8018_v40  ;;  %vm8017_vm12 = vcmp.eq.f32.partialorder %v8016_v33, 8.507059e+37 }
 0x614   : > { %v7954_v54 = vpop.f32.mrf.mxu1  ;;  %12073 = vpow2.f32 %v11335_v45  ;;  %v8064_v39 = vor.u32 1.1754944e-38, %v8063_v26  ;;  %vm8062_vm3 = vcmp.eq.f32.partialorder %v8061_v50, 8.507059e+37  ;;  %v8126_v33 = vunpack.c.l.s4 %v12101_v25 }
 0x615   : > { %v7955_v38 = vadd.f32 %v7954_v54, %v7889_v3  ;;  %v8040_v35 = vmul.f32 %v19826_v1, %v8039_v47 }
 0x617   : > { %v12068_v10 = vpop.eup %12067  ;;  %v11339_v30 = vmul.f32 -1.442695, %v7955_v38  ;;  %v8041_v49 = vadd.f32 %v19826_v1, %v8040_v35 }
 0x618   : > { %v12070_v2 = vpop.eup %12069  ;;  %v19831_v20 = vadd.f32 1.0, %v12068_v10 }
 0x619   : > { %v19833_v36 = vpop.eup %12071  ;;  %12075 = vpow2.f32 %v11339_v30  ;;  %v8053_v11 = vmul.f32 %v12070_v2, %v7988_v19  ;;  %vm8058_vm13 = vweird.f32 %v12070_v2  ;;  %v8045_v46 = vsel %vm8044_vm5, %v19826_v1, %v8041_v49 }
 0x61a   : > { %v12074_v31 = vpop.eup %12073  ;;  %12077 = vrcp.f32 %v19831_v20  ;;  %v8008_v56 = vmul.f32 %v19833_v36, %v19824_v55  ;;  %vm8059_vm15 = vmor %vm8057_vm14, %vm8058_vm13  ;;  %v8050_v34 = vsel %vm8047_vm6, %v8049_v12, %v8045_v46  ;;  %vm8013_vm7 = vweird.f32 %v19833_v36 }
 0x61b   : > { %v8054_v13 = vsub.f32 1.0, %v8053_v11  ;;  %12079 = vpow2.f32 %v11333_v21  ;;  %v19839_v18 = vadd.f32 1.0, %v12074_v31  ;;  %v8115_v0 = vpack.c.bf16 %v8050_v34, %v8050_v34  ;;  %vm19871_vm9 = vmor %vm8012_vm8, %vm8013_vm7 }
 0x61c   : > { %v7957_v8 = vpop.f32.mrf.mxu1  ;;  %v8009_v57 = vsub.f32 1.0, %v8008_v56  ;;  %vm8072_vm2 = vweird.f32 %v19831_v20  ;;  %v8078_v31 = vand.u32 2147483648, %v19831_v20  ;;  %v8076_v56 = vand.u32 2147483647, %v19831_v20 }
 0x61d   : > { %v7958_v61 = vadd.f32 %v7957_v8, %v7892_v58  ;;  %v8055_v59 = vmul.f32 %v12070_v2, %v8054_v13  ;;  %v8033_v9 = vand.u32 2147483648, %v19839_v18 }
 0x61e   : > { %v8010_v44 = vmul.f32 %v19833_v36, %v8009_v57  ;;  %vm8077_vm6 = vcmp.eq.f32.partialorder %v8076_v56, 8.507059e+37 }
 0x61f   : > { %v12076_v60 = vpop.eup %12075  ;;  %v11340_v48 = vmul.f32 -1.442695, %v7958_v61  ;;  %v8056_v5 = vadd.f32 %v12070_v2, %v8055_v59  ;;  %v8034_v12 = vor.u32 1.1754944e-38, %v8033_v9  ;;  %v21677_v9 = vld [vmem:[#allocation25_spill] sm:$0xff] }
 0x620   : > { %v19841_v16 = vadd.f32 1.0, %v12076_v60  ;;  %v19845_v23 = vpop.eup %12077  ;;  %v8011_v62 = vadd.f32 %v19833_v36, %v8010_v44  ;;  %v8031_v44 = vand.u32 2147483647, %v19839_v18 }
 0x621   : > { %12081 = vpow2.f32 %v11340_v48  ;;  %v8060_v51 = vsel %vm8059_vm15, %v12070_v2, %v8056_v5  ;;  %v12080_v63 = vpop.eup %12079  ;;  %v8068_v52 = vmul.f32 %v19845_v23, %v19831_v20  ;;  %vm8073_vm14 = vweird.f32 %v19845_v23 }
 0x622   : > { %12083 = vrcp.f32 %v19841_v16  ;;  %v8065_v29 = vsel %vm8062_vm3, %v8064_v39, %v8060_v51  ;;  %v19858_v37 = vadd.f32 1.0, %v12080_v63  ;;  %v8093_v19 = vand.u32 2147483648, %v19841_v16  ;;  %vm19894_vm3 = vmor %vm8072_vm2, %vm8073_vm14 }
 0x623   : > { %12085 = vrcp.f32 %v19839_v18  ;;  %v8116_v22 = vpack.c.bf16 %v8065_v29, %v8065_v29  ;;  %v8069_v24 = vsub.f32 1.0, %v8068_v52  ;;  %v8015_v3 = vsel %vm19871_vm9, %v19833_v36, %v8011_v62 }
 0x624   : > { %v8091_v54 = vand.u32 2147483647, %v19841_v16  ;;  %vm8087_vm11 = vweird.f32 %v19841_v16  ;;  %v8094_v30 = vor.u32 1.1754944e-38, %v8093_v19  ;;  %v8020_v2 = vsel %vm8017_vm12, %v8019_v41, %v8015_v3 }
 0x625   : > { %8158 = vperm.xlu1 %11978, %v8116_v22   ;;  %v8070_v38 = vmul.f32 %v19845_v23, %v8069_v24  ;;  %v8113_v50 = vpack.c.bf16 %v8020_v2, %v8020_v2  ;;  %vm8032_vm12 = vcmp.eq.f32.partialorder %v8031_v44, 8.507059e+37  ;;  %vm7997_vm14 = vweird.f32 %v19858_v37  ;;  %v21679_v44 = vld [vmem:[#allocation30_spill] sm:$0xff] }
 0x626   : > { %vm8092_vm15 = vcmp.eq.f32.partialorder %v8091_v54, 8.507059e+37  ;;  %v8001_v62 = vand.u32 2147483647, %v19858_v37  ;;  %v8127_v19 = vunpack.c.0.s8 %v8126_v33 }
 0x627   : > { %v12082_v6 = vpop.eup %12081  ;;  %v8071_v58 = vadd.f32 %v19845_v23, %v8070_v38 }
 0x628   : > { %v12084_v15 = vpop.eup %12083  ;;  %v19860_v14 = vadd.f32 1.0, %v12082_v6  ;;  %vm8002_vm2 = vcmp.eq.f32.partialorder %v8001_v62, 8.507059e+37 }
 0x629   : > { %v19864_v32 = vpop.eup %12085  ;;  %v8083_v53 = vmul.f32 %v12084_v15, %v19841_v16  ;;  %vm8088_vm10 = vweird.f32 %v12084_v15  ;;  %v8075_v20 = vsel %vm19894_vm3, %v19845_v23, %v8071_v58  ;;  %v8079_v16 = vor.u32 1.1754944e-38, %v8078_v31 }
 0x62a   : > { %12087 = vrcp.f32 %v19860_v14  ;;  %v8023_v1 = vmul.f32 %v19864_v32, %v19839_v18  ;;  %vm8089_vm13 = vmor %vm8087_vm11, %vm8088_vm10  ;;  %v8108_v61 = vand.u32 2147483648, %v19860_v14  ;;  %v8106_v5 = vand.u32 2147483647, %v19860_v14 }
 0x62b   : > { %12089 = vrcp.f32 %v19858_v37  ;;  %v8084_v17 = vsub.f32 1.0, %v8083_v53  ;;  %vm8102_vm5 = vweird.f32 %v19860_v14  ;;  %v8080_v51 = vsel %vm8077_vm6, %v8079_v16, %v8075_v20 }
 0x62c   : > { %v8024_v36 = vsub.f32 1.0, %v8023_v1  ;;  %v8109_v57 = vor.u32 1.1754944e-38, %v8108_v61  ;;  %vm8028_vm8 = vweird.f32 %v19864_v32  ;;  %vm8107_vm9 = vcmp.eq.f32.partialorder %v8106_v5, 8.507059e+37  ;;  %v21673_v5 = vld [vmem:[#allocation6_spill] sm:$0xff] }
 0x62d   : > { %8149 = vperm.xlu1 %11978, %v8115_v0   ;;  %v8085_v45 = vmul.f32 %v12084_v15, %v8084_v17  ;;  %v8117_v23 = vpack.c.bf16 %v8080_v51, %v8080_v51  ;;  %vm8027_vm10 = vweird.f32 %v19839_v18  ;;  %v21670_v61 = vunpack.c.h.bf16 %v19009_v7 }
 0x62e   : > { %v8025_v35 = vmul.f32 %v19864_v32, %v8024_v36  ;;  %vm8029_vm11 = vmor %vm8027_vm10, %vm8028_vm8  ;;  %v21674_v20 = vunpack.c.l.bf16 %v21673_v5  ;;  %vm8762_vm3 = vcmask 1044484   ;;  %vm8766_vm6 = vcmask 1045508  }
 0x62f   : > { %v8086_v10 = vadd.f32 %v12084_v15, %v8085_v45 }
 0x630   : > { %v12088_v55 = vpop.eup %12087  ;;  %v8026_v29 = vadd.f32 %v19864_v32, %v8025_v35  ;;  %v21671_v35 = vld [vmem:[#allocation8_spill] sm:$0xff] }
 0x631   : > { %v12090_v11 = vpop.eup %12089  ;;  %v8090_v47 = vsel %vm8089_vm13, %v12084_v15, %v8086_v10  ;;  %v8098_v21 = vmul.f32 %v12088_v55, %v19860_v14  ;;  %vm8103_vm4 = vweird.f32 %v12088_v55  ;;  %v8003_v14 = vand.u32 2147483648, %v19858_v37 }
 0x632   : > { %v8095_v13 = vsel %vm8092_vm15, %v8094_v30, %v8090_v47  ;;  %v7993_v60 = vmul.f32 %v12090_v11, %v19858_v37  ;;  %vm8104_vm7 = vmor %vm8102_vm5, %vm8103_vm4  ;;  %v8030_v46 = vsel %vm8029_vm11, %v19864_v32, %v8026_v29  ;;  %vm7998_vm13 = vweird.f32 %v12090_v11 }
 0x633   : > { %v8118_v8 = vpack.c.bf16 %v8095_v13, %v8095_v13  ;;  %v8099_v26 = vsub.f32 1.0, %v8098_v21  ;;  %v8035_v6 = vsel %vm8032_vm12, %v8034_v12, %v8030_v46  ;;  %vm7999_vm15 = vmor %vm7997_vm14, %vm7998_vm13  ;;  %v8004_v53 = vor.u32 1.1754944e-38, %v8003_v14  ;;  %v21665_v21 = vld [vmem:[#allocation13_spill] sm:$0xff]  ;;  %v21681_v12 = vld [vmem:[#allocation50_spill] sm:$0xff] }
 0x634   : > { %v7994_v43 = vsub.f32 1.0, %v7993_v60  ;;  %v8114_v34 = vpack.c.bf16 %v8035_v6, %v8035_v6  ;;  %v21666_v58 = vunpack.c.l.bf16 %v21665_v21  ;;  %v21667_v31 = vunpack.c.h.bf16 %v21665_v21  ;;  %v21683_v14 = vld [vmem:[#allocation51_spill] sm:$0xff] }
 0x635   : > { %8176 = vperm.xlu2 %11976, %v8118_v8   ;;  %8131 = vperm.xlu1 %11978, %v8113_v50   ;;  %v8100_v48 = vmul.f32 %v12088_v55, %v8099_v26  ;;  %v21668_v50 = vld [vmem:[#allocation31_spill] sm:$0xff]  ;;  %v21672_v60 = vunpack.c.l.bf16 %v21671_v35  ;;  %v21680_v46 = vunpack.c.h.bf16 %v21679_v44  ;;  %v21682_v6 = vunpack.c.h.bf16 %v21681_v12 }
 0x636   : > { %v7995_v52 = vmul.f32 %v12090_v11, %v7994_v43  ;;  %v21669_v26 = vunpack.c.h.bf16 %v21668_v50  ;;  %v21676_v43 = vunpack.c.h.bf16 %v21673_v5  ;;  %vm8764_vm4 = vcmask 1046534  }
 0x637   : > { %v8101_v39 = vadd.f32 %v12088_v55, %v8100_v48  ;;  %vm8760_vm5 = vcmask 1041408  }
 0x638   : > { %v7996_v15 = vadd.f32 %v12090_v11, %v7995_v52 }
 0x639   : > { %v8105_v49 = vsel %vm8104_vm7, %v12088_v55, %v8101_v39  ;;  %v21675_v39 = vunpack.c.h.bf16 %v21671_v35  ;;  %vm8768_vm7 = vcmask 1043456  }
 0x63a   : > { %v8110_v22 = vsel %vm8107_vm9, %v8109_v57, %v8105_v49  ;;  %v8000_v18 = vsel %vm7999_vm15, %v12090_v11, %v7996_v15 }
 0x63b   : > { %v8119_v63 = vpack.c.bf16 %v8110_v22, %v8110_v22  ;;  %v8005_v24 = vsel %vm8002_vm2, %v8004_v53, %v8000_v18  ;;  %v21685_v18 = vld [vmem:[#allocation2_spill] sm:$0xff] }
 0x63c   : > { %v8112_v32 = vpack.c.bf16 %v8005_v24, %v8005_v24  ;;  %v21686_v53 = vunpack.c.l.bf16 %v21685_v18 }
 0x63d   : > { %8185 = vperm.xlu0 %11977, %v8119_v63   ;;  %8167 = vperm.xlu2 %11976, %v8117_v23   ;;  %v21678_v63 = vunpack.c.h.bf16 %v21677_v9 }
 0x645   : > { %8140 = vperm.xlu2 %11976, %v8114_v34   ;;  %v21684_v34 = vunpack.c.h.bf16 %v21683_v14 }
 0x64d   : > { %8122 = vperm.xlu2 %11976, %v8112_v32   ;;  %v21687_v32 = vld [vmem:[#allocation3_spill] sm:$0xff] }
 0x68f   : > { %v8177_v40 = vpop.permute.xlu2 %8176 }
 0x690   : > { %v8182_v3 = vperm.slane %v8177_v40, %v8127_v19  ;;  %v21688_v40 = vunpack.c.l.bf16 %v21687_v32 }
 0x692   : > { %v19914_v10 = vunpack.c.l.bf16 %v8182_v3 }
 0x694   : > { %v8320_v13 = vmul.f32 %v19914_v10, %v21666_v58  ;;  %v8321_v8 = vmul.f32 %v19914_v10, %v21667_v31  ;;  %v8327_v56 = vmul.f32 %v19914_v10, %v21669_v26  ;;  %v8329_v59 = vmul.f32 %v19914_v10, %v21670_v61 }
 0x695   : > { %v21696_v58 = vunpack.c.h.bf16 %v21685_v18  ;;  %v21697_v26 = vunpack.c.h.bf16 %v21687_v32  ;;  %v21704_v18 = vld [vmem:[#allocation71_spill] sm:$0xff] }
 0x697   : > { %v8168_v0 = vpop.permute.xlu2 %8167  ;;  %v8159_v17 = vpop.permute.xlu1 %8158 }
 0x698   : > { %v8173_v54 = vperm.slane %v8168_v0, %v8127_v19  ;;  %v8164_v38 = vperm.slane %v8159_v17, %v8127_v19  ;;  %v21689_v17 = vld [vmem:[#allocation10_spill] sm:$0xff] }
 0x699   : > { %v21690_v25 = vunpack.c.l.bf16 %v21689_v17  ;;  %v21691_v3 = vunpack.c.h.bf16 %v21689_v17 }
 0x69a   : > { %v19916_v55 = vunpack.c.l.bf16 %v8173_v54  ;;  %v19918_v30 = vunpack.c.l.bf16 %v8164_v38 }
 0x69c   : > { %v8280_v48 = vmul.f32 %v19918_v30, %v21672_v60  ;;  %v8300_v16 = vmul.f32 %v19916_v55, %v21674_v20  ;;  %v8281_v57 = vmul.f32 %v19918_v30, %v21675_v39  ;;  %v8301_v22 = vmul.f32 %v19916_v55, %v21676_v43  ;;  %v21698_v39 = vld [vmem:[#allocation23_spill] sm:$0xff] }
 0x69d   : > { %v8287_v23 = vmul.f32 %v19918_v30, %v21678_v63  ;;  %v8307_v52 = vmul.f32 %v19916_v55, %v21680_v46  ;;  %v8289_v15 = vmul.f32 %v19918_v30, %v21682_v6  ;;  %v8309_v62 = vmul.f32 %v19916_v55, %v21684_v34  ;;  %v21700_v46 = vld [vmem:[#allocation28_spill] sm:$0xff] }
 0x69e   : > { %v21699_v43 = vunpack.c.h.bf16 %v21698_v39  ;;  %v21701_v6 = vunpack.c.h.bf16 %v21700_v46 }
 0x69f   : > { %v8150_v1 = vpop.permute.xlu1 %8149  ;;  %v8141_v45 = vpop.permute.xlu2 %8140 }
 0x6a0   : > { %v8155_v37 = vperm.slane %v8150_v1, %v8127_v19  ;;  %v8146_v41 = vperm.slane %v8141_v45, %v8127_v19  ;;  %v21692_v45 = vld [vmem:[#allocation32_spill] sm:$0xff] }
 0x6a1   : > { %v21693_v54 = vunpack.c.h.bf16 %v21692_v45 }
 0x6a2   : > { %v19920_v2 = vunpack.c.l.bf16 %v8155_v37  ;;  %v19922_v36 = vunpack.c.l.bf16 %v8146_v41  ;;  %v21694_v37 = vld [vmem:[#allocation74_spill] sm:$0xff] }
 0x6a3   : > { %v21695_v41 = vunpack.c.h.bf16 %v21694_v37 }
 0x6a4   : > { %v8240_v24 = vmul.f32 %v19922_v36, %v21686_v53  ;;  %v8260_v0 = vmul.f32 %v19920_v2, %v21688_v40  ;;  %v8241_v31 = vmul.f32 %v19922_v36, %v21696_v58  ;;  %v8261_v61 = vmul.f32 %v19920_v2, %v21697_v26  ;;  %v21708_v40 = vld [vmem:[#allocation14_spill] sm:$0xff]  ;;  %v21710_v58 = vld [vmem:[#allocation15_spill] sm:$0xff] }
 0x6a5   : > { %v8247_v63 = vmul.f32 %v19922_v36, %v21699_v43  ;;  %v21705_v53 = vunpack.c.h.bf16 %v21704_v18  ;;  %v21709_v17 = vunpack.c.l.bf16 %v21708_v40  ;;  %v21711_v26 = vunpack.c.l.bf16 %v21710_v58 }
 0x6a7   : > { %v8132_v51 = vpop.permute.xlu1 %8131  ;;  %v8123_v49 = vpop.permute.xlu2 %8122  ;;  %v8269_v32 = vmul.f32 %v19920_v2, %v21705_v53 }
 0x6a8   : > { %v8128_v21 = vperm.slane %v8123_v49, %v8127_v19 }
 0x6af   : > { %v8186_v11 = vpop.permute.xlu0 %8185 }
 0x6b0   : > { %v8191_v47 = vperm.slane %v8186_v11, %v8127_v19 }
 0x6b2   : > { %v19945_v29 = vunpack.c.l.bf16 %v8191_v47  ;;  %v8137_v47 = vperm.slane %v8132_v51, %v8127_v19  ;;  %v8267_v19 = vmul.f32 %v19920_v2, %v21701_v6  ;;  %v21702_v51 = vld [vmem:[#allocation36_spill] sm:$0xff]  ;;  %v21721_v6 = vld [vmem:[#allocation47_spill] sm:$0xff] }
 0x6b3   : > { %v21703_v49 = vunpack.c.h.bf16 %v21702_v51 }
 0x6b4   : > { %v8340_v33 = vmul.f32 %v19945_v29, %v21690_v25  ;;  %v8341_v1 = vmul.f32 %v19945_v29, %v21691_v3  ;;  %v8347_v38 = vmul.f32 %v19945_v29, %v21693_v54  ;;  %v8349_v11 = vmul.f32 %v19945_v29, %v21695_v41 }
 0x6b5   : > { %v8249_v34 = vmul.f32 %v19922_v36, %v21703_v49  ;;  %v20006_v25 = vmul.f32 %v19916_v55, %v21709_v17  ;;  %v8407_v3 = vpack.c.bf16 %v8307_v52, %v8287_v23  ;;  %v20008_v54 = vunpack.c.l.bf16 %v8137_v47 }
 0x6b6   : > { %v8420_v35 = vpack.c.bf16 %v8340_v33, %v8320_v13  ;;  %v8421_v60 = vpack.c.bf16 %v8341_v1, %v8321_v8  ;;  %v8427_v5 = vpack.c.bf16 %v8347_v38, %v8327_v56  ;;  %v8429_v20 = vpack.c.bf16 %v8349_v11, %v8329_v59  ;;  %v21706_v8 = vld [vmem:[#allocation11_spill] sm:$0xff] }
 0x6b7   : > { %v8400_v13 = vpack.c.bf16 %v8300_v16, %v8280_v48  ;;  %v21707_v56 = vunpack.c.l.bf16 %v21706_v8  ;;  %v8401_v33 = vpack.c.bf16 %v8301_v22, %v8281_v57  ;;  %v8409_v1 = vpack.c.bf16 %v8309_v62, %v8289_v15 }
 0x6b8   : > { %8444 = vmatpush.bf16.msra.mxu2 %v8420_v35  ;;  %8457 = vmatpush.bf16.msra.mxu0 %v8421_v60  ;;  %v20010_v38 = vunpack.c.l.bf16 %v8128_v21  ;;  %v8380_v48 = vpack.c.bf16 %v8260_v0, %v8240_v24  ;;  %v8381_v16 = vpack.c.bf16 %v8261_v61, %v8241_v31  ;;  %v8387_v41 = vpack.c.bf16 %v8267_v19, %v8247_v63  ;;  %v21717_v21 = vld [vmem:[#allocation46_spill] sm:$0xff] }
 0x6b9   : > { %v20001_v59 = vmul.f32 %v19918_v30, %v21707_v56  ;;  %8535 = vmatpush.bf16.msrb.mxu3 %v8427_v5  ;;  %8561 = vmatpush.bf16.msrb.mxu1 %v8429_v20  ;;  %v8389_v11 = vpack.c.bf16 %v8269_v32, %v8249_v34  ;;  %v8322_v35 = vmul.f32 %v19914_v10, %v21711_v26  ;;  %v21712_v60 = vunpack.c.h.bf16 %v21710_v58  ;;  %v21719_v20 = vld [vmem:[#allocation44_spill] sm:$0xff] }
 0x6ba   : > { %v21713_v57 = vunpack.c.h.bf16 %v19024_v27  ;;  %v21714_v23 = vunpack.c.h.bf16 %v21645_v4  ;;  %v21715_v62 = vunpack.c.h.bf16 %v21706_v8  ;;  %v21716_v0 = vunpack.c.h.bf16 %v21708_v40  ;;  %v21731_v26 = vld [vmem:[#allocation16_spill] sm:$0xff] }
 0x6bb   : > { %v8323_v5 = vmul.f32 %v19914_v10, %v21712_v60  ;;  %v8402_v15 = vpack.c.bf16 %v20006_v25, %v20001_v59  ;;  %v21718_v31 = vunpack.c.h.bf16 %v21717_v21  ;;  %v21720_v43 = vunpack.c.l.bf16 %v21719_v20  ;;  %v21726_v59 = vld [vmem:[#allocation26_spill] sm:$0xff]  ;;  %v21746_v4 = vld [vmem:[#allocation12_spill] sm:$0xff] }
 0x6bc   : > { %8445 = vmatpush.bf16.msra.mxu2 %v8400_v13  ;;  %8458 = vmatpush.bf16.msra.mxu0 %v8401_v33  ;;  %v8331_v22 = vmul.f32 %v19914_v10, %v21713_v57  ;;  %v8333_v52 = vmul.f32 %v19914_v10, %v21714_v23  ;;  %v8283_v24 = vmul.f32 %v19918_v30, %v21715_v62  ;;  %v21722_v19 = vunpack.c.l.bf16 %v21721_v6 }
 0x6bd   : > { %8536 = vmatpush.bf16.msrb.mxu3 %v8407_v3  ;;  %8562 = vmatpush.bf16.msrb.mxu1 %v8409_v1  ;;  %v8303_v47 = vmul.f32 %v19916_v55, %v21716_v0  ;;  %v8291_v61 = vmul.f32 %v19918_v30, %v21718_v31  ;;  %v8200_v63 = vmul.f32 %v20010_v38, %v21720_v43  ;;  %v21723_v34 = vunpack.c.h.bf16 %v21719_v20  ;;  %v21729_v3 = vld [vmem:[#allocation35_spill] sm:$0xff]  ;;  %v21734_v0 = vld [vmem:[#allocation58_spill] sm:$0xff] }
 0x6be   : > { %v8220_v49 = vmul.f32 %v20008_v54, %v21722_v19  ;;  %v21724_v32 = vunpack.c.h.bf16 %v21721_v6  ;;  %v21725_v8 = vunpack.c.h.bf16 %v21618_v28  ;;  %v21727_v40 = vunpack.c.h.bf16 %v21726_v59  ;;  %v21736_v43 = vld [vmem:[#allocation75_spill] sm:$0xff] }
 0x6bf   : > { %v8201_v53 = vmul.f32 %v20010_v38, %v21723_v34  ;;  %v21728_v25 = vunpack.c.h.bf16 %v18657_v42  ;;  %v21730_v1 = vunpack.c.h.bf16 %v21729_v3  ;;  %v21732_v60 = vunpack.c.l.bf16 %v21731_v26 }
 0x6c0   : > { %v8221_v13 = vmul.f32 %v20008_v54, %v21724_v32  ;;  %v8207_v56 = vmul.f32 %v20010_v38, %v21725_v8  ;;  %v8227_v17 = vmul.f32 %v20008_v54, %v21727_v40  ;;  %8446 = vmatpush.bf16.msra.mxu2 %v8380_v48  ;;  %8459 = vmatpush.bf16.msra.mxu0 %v8381_v16  ;;  %v21733_v23 = vunpack.c.h.bf16 %v21731_v26  ;;  %v21738_v48 = vld [vmem:[#allocation76_spill] sm:$0xff]  ;;  %v21740_v32 = vld [vmem:[#allocation57_spill] sm:$0xff] }
 0x6c1   : > { %v8209_v33 = vmul.f32 %v20010_v38, %v21728_v25  ;;  %v8229_v58 = vmul.f32 %v20008_v54, %v21730_v1  ;;  %v8342_v57 = vmul.f32 %v19945_v29, %v21732_v60  ;;  %v21735_v31 = vunpack.c.h.bf16 %v21734_v0  ;;  %8537 = vmatpush.bf16.msrb.mxu3 %v8387_v41  ;;  %8563 = vmatpush.bf16.msrb.mxu1 %v8389_v11  ;;  %v21742_v60 = vld [vmem:[#allocation78_spill] sm:$0xff]  ;;  %v21744_v0 = vld [vmem:[#allocation9_spill] sm:$0xff] }
 0x6c2   : > { %v8343_v62 = vmul.f32 %v19945_v29, %v21733_v23  ;;  %v21737_v6 = vunpack.c.h.bf16 %v21736_v43  ;;  %v21739_v16 = vunpack.c.h.bf16 %v21738_v48  ;;  %v21741_v8 = vunpack.c.h.bf16 %v21740_v32 }
 0x6c3   : > { %v8311_v20 = vmul.f32 %v19916_v55, %v21735_v31  ;;  %v8360_v25 = vpack.c.bf16 %v8220_v49, %v8200_v63  ;;  %v8361_v1 = vpack.c.bf16 %v8221_v13, %v8201_v53  ;;  %v8403_v26 = vpack.c.bf16 %v8303_v47, %v8283_v24 }
 0x6c4   : > { %v8351_v19 = vmul.f32 %v19945_v29, %v21737_v6  ;;  %v8353_v34 = vmul.f32 %v19945_v29, %v21739_v16  ;;  %v8293_v40 = vmul.f32 %v19918_v30, %v21741_v8  ;;  %v21743_v23 = vunpack.c.h.bf16 %v21742_v60 }
 0x6c5   : > { %v8367_v11 = vpack.c.bf16 %v8227_v17, %v8207_v56  ;;  %v8369_v31 = vpack.c.bf16 %v8229_v58, %v8209_v33  ;;  %v21745_v21 = vunpack.c.l.bf16 %v21744_v0  ;;  %v21747_v27 = vunpack.c.l.bf16 %v21746_v4  ;;  %8447 = vmatpush.bf16.msra.mxu2 %v8360_v25  ;;  %8460 = vmatpush.bf16.msra.mxu0 %v8361_v1  ;;  %v21750_v17 = vld [vmem:[#allocation48_spill] sm:$0xff]  ;;  %v21754_v58 = vld [vmem:[#allocation41_spill] sm:$0xff] }
 0x6c6   : > { %v8313_v41 = vmul.f32 %v19916_v55, %v21743_v23  ;;  %v8422_v8 = vpack.c.bf16 %v8342_v57, %v8322_v35  ;;  %v8423_v63 = vpack.c.bf16 %v8343_v62, %v8323_v5  ;;  %v8411_v49 = vpack.c.bf16 %v8311_v20, %v8291_v61  ;;  %v21761_v1 = vld [vmem:[#allocation5_spill] sm:$0xff] }
 0x6c7   : > { %v8242_v6 = vmul.f32 %v19922_v36, %v21745_v21  ;;  %v8262_v16 = vmul.f32 %v19920_v2, %v21747_v27  ;;  %8538 = vmatpush.bf16.msrb.mxu3 %v8367_v11  ;;  %8564 = vmatpush.bf16.msrb.mxu1 %v8369_v31  ;;  %v8431_v24 = vpack.c.bf16 %v8351_v19, %v8331_v22  ;;  %v21748_v53 = vunpack.c.h.bf16 %v21744_v0  ;;  %v21752_v22 = vld [vmem:[#allocation43_spill] sm:$0xff] }
 0x6c8   : > { %v8433_v47 = vpack.c.bf16 %v8353_v34, %v8333_v52  ;;  %v8413_v21 = vpack.c.bf16 %v8313_v41, %v8293_v40  ;;  %v21749_v56 = vunpack.c.h.bf16 %v21746_v4  ;;  %v21751_v33 = vunpack.c.h.bf16 %v21750_v17  ;;  %v21757_v4 = vld [vmem:[#allocation56_spill] sm:$0xff] }
 0x6c9   : > { %v8243_v13 = vmul.f32 %v19922_v36, %v21748_v53  ;;  %8470 = vmatpush.bf16.msrb.mxu2 %v8422_v8  ;;  %8483 = vmatpush.bf16.msrb.mxu0 %v8423_v63  ;;  %v8382_v5 = vpack.c.bf16 %v8262_v16, %v8242_v6  ;;  %v21753_v52 = vunpack.c.h.bf16 %v21752_v22  ;;  %v21755_v57 = vunpack.c.h.bf16 %v21754_v58  ;;  %v21759_v34 = vld [vmem:[#allocation4_spill] sm:$0xff] }
 0x6ca   : > { %v8263_v27 = vmul.f32 %v19920_v2, %v21749_v56  ;;  %v8251_v35 = vmul.f32 %v19922_v36, %v21751_v33  ;;  %v21756_v0 = vmov 1065369472   ;;  %v21758_v20 = vunpack.c.h.bf16 %v21757_v4  ;;  %v21765_v8 = vld [vmem:[#allocation72_spill] sm:$0xff]  ;;  %v21769_v33 = vld [vmem:[#allocation38_spill] sm:$0xff] }
 0x6cb   : > { %8587 = vmatpush.bf16.msra.mxu3 %v8431_v24  ;;  %8613 = vmatpush.bf16.msra.mxu1 %v8433_v47  ;;  %v8271_v61 = vmul.f32 %v19920_v2, %v21753_v52  ;;  %v8253_v62 = vmul.f32 %v19922_v36, %v21755_v57  ;;  %v21760_v40 = vunpack.c.l.bf16 %v21759_v34  ;;  %v21762_v23 = vunpack.c.l.bf16 %v21761_v1  ;;  %v21767_v47 = vld [vmem:[#allocation73_spill] sm:$0xff] }
 0x6cc   : > { %11341 = vmatmul.msk.bf16.vlgmr.msra.gmra.mxu2 %vm678_vm0, %v21756_v0  ;;  %11342 = vmatmul.msk.bf16.vlgmr.msra.gmra.mxu0 %vm678_vm0, %v21756_v0  ;;  %v8273_v19 = vmul.f32 %v19920_v2, %v21758_v20  ;;  %v21763_v11 = vunpack.c.h.bf16 %v21759_v34  ;;  %v21764_v6 = vunpack.c.h.bf16 %v21761_v1  ;;  %v21766_v63 = vunpack.c.h.bf16 %v21765_v8  ;;  %v21771_v20 = vld [vmem:[#allocation37_spill] sm:$0xff] }
 0x6cd   : > { %v8202_v25 = vmul.f32 %v20010_v38, %v21760_v40  ;;  %v8222_v41 = vmul.f32 %v20008_v54, %v21762_v23  ;;  %11348 = vmatmul.msk.bf16.vlgmr.msrb.gmra.mxu3 %vm678_vm0, %v21756_v0  ;;  %11350 = vmatmul.msk.bf16.vlgmr.msrb.gmra.mxu1 %vm678_vm0, %v21756_v0  ;;  %v21768_v53 = vunpack.c.h.bf16 %v21767_v47  ;;  %v21770_v52 = vunpack.c.h.bf16 %v21769_v33  ;;  %v21773_v23 = vld [vmem:[#allocation24_spill] sm:$0xff]  ;;  %v21776_v47 = vld [vmem:[#allocation77_spill] sm:$0xff] }
 0x6ce   : > { %v8203_v31 = vmul.f32 %v20010_v38, %v21763_v11  ;;  %v8223_v16 = vmul.f32 %v20008_v54, %v21764_v6  ;;  %v8211_v24 = vmul.f32 %v20010_v38, %v21766_v63  ;;  %8471 = vmatpush.bf16.msrb.mxu2 %v8402_v15  ;;  %8484 = vmatpush.bf16.msrb.mxu0 %v8403_v26  ;;  %v21772_v34 = vunpack.c.h.bf16 %v21771_v20 }
 0x6cf   : > { %v8231_v56 = vmul.f32 %v20008_v54, %v21768_v53  ;;  %v8213_v57 = vmul.f32 %v20010_v38, %v21770_v52  ;;  %8588 = vmatpush.bf16.msra.mxu3 %v8411_v49  ;;  %8614 = vmatpush.bf16.msra.mxu1 %v8413_v21  ;;  %v8383_v1 = vpack.c.bf16 %v8263_v27, %v8243_v13  ;;  %v21774_v11 = vunpack.c.l.bf16 %v21773_v23 }
 0x6d0   : > { %v8233_v40 = vmul.f32 %v20008_v54, %v21772_v34  ;;  %v21775_v26 = vunpack.c.h.bf16 %v21773_v23  ;;  %v8391_v63 = vpack.c.bf16 %v8271_v61, %v8251_v35  ;;  %v8393_v53 = vpack.c.bf16 %v8273_v19, %v8253_v62  ;;  %v21778_v34 = vld [vmem:[#allocation29_spill] sm:$0xff]  ;;  %v21783_v62 = vld [vmem:[#allocation66_spill] sm:$0xff] }
 0x6d1   : > { %v8344_v15 = vmul.f32 %v19945_v29, %v21774_v11  ;;  %v8362_v33 = vpack.c.bf16 %v8222_v41, %v8202_v25  ;;  %v21777_v52 = vunpack.c.h.bf16 %v21776_v47  ;;  %v8363_v8 = vpack.c.bf16 %v8223_v16, %v8203_v31  ;;  %v21781_v11 = vld [vmem:[#allocation40_spill] sm:$0xff]  ;;  %v21785_v16 = vld [vmem:[#allocation39_spill] sm:$0xff] }
 0x6d2   : > { %v8345_v6 = vmul.f32 %v19945_v29, %v21775_v26  ;;  %v21779_v49 = vunpack.c.l.bf16 %v21778_v34  ;;  %v21780_v21 = vunpack.c.h.bf16 %v21778_v34  ;;  %v21782_v23 = vunpack.c.h.bf16 %v21781_v11  ;;  %8472 = vmatpush.bf16.msrb.mxu2 %v8382_v5  ;;  %8485 = vmatpush.bf16.msrb.mxu0 %v8383_v1  ;;  %v21789_v1 = vld [vmem:[#allocation22_spill] sm:$0xff] }
 0x6d3   : > { %v8355_v20 = vmul.f32 %v19945_v29, %v21777_v52  ;;  %v8371_v35 = vpack.c.bf16 %v8231_v56, %v8211_v24  ;;  %v8373_v61 = vpack.c.bf16 %v8233_v40, %v8213_v57  ;;  %v21784_v19 = vunpack.c.h.bf16 %v21783_v62  ;;  %8589 = vmatpush.bf16.msra.mxu3 %v8391_v63  ;;  %8615 = vmatpush.bf16.msra.mxu1 %v8393_v53  ;;  %v21793_v53 = vld [vmem:[#allocation64_spill] sm:$0xff]  ;;  %v21811_v62 = vld [vmem:[#allocation69_spill] sm:$0xff] }
 0x6d4   : > { %v8324_v13 = vmul.f32 %v19914_v10, %v21779_v49  ;;  %v8325_v27 = vmul.f32 %v19914_v10, %v21780_v21  ;;  %v8357_v26 = vmul.f32 %v19945_v29, %v21782_v23  ;;  %v21786_v52 = vunpack.c.h.bf16 %v21785_v16  ;;  %v21787_v21 = vld [vmem:[#allocation27_spill] sm:$0xff] }
 0x6d5   : > { %v8335_v25 = vmul.f32 %v19914_v10, %v21784_v19  ;;  %v21788_v11 = vunpack.c.l.bf16 %v21787_v21  ;;  %v21790_v24 = vunpack.c.l.bf16 %v21789_v1  ;;  %v21791_v57 = vunpack.c.h.bf16 %v21787_v21  ;;  %v21797_v19 = vld [vmem:[#allocation70_spill] sm:$0xff]  ;;  %v21799_v21 = vld [vmem:[#allocation80_spill] sm:$0xff] }
 0x6d6   : > { %v8424_v41 = vpack.c.bf16 %v8344_v15, %v8324_v13  ;;  %v8425_v31 = vpack.c.bf16 %v8345_v6, %v8325_v27  ;;  %v8337_v34 = vmul.f32 %v19914_v10, %v21786_v52  ;;  %v21792_v15 = vunpack.c.h.bf16 %v21789_v1  ;;  %v21795_v27 = vld [vmem:[#allocation79_spill] sm:$0xff]  ;;  %8473 = vmatpush.bf16.msrb.mxu2 %v8362_v33  ;;  %8486 = vmatpush.bf16.msrb.mxu0 %v8363_v8  ;;  %v21801_v1 = vld [vmem:[#allocation18_spill] sm:$0xff] }
 0x6d7   : > { %v8435_v49 = vpack.c.bf16 %v8355_v20, %v8335_v25  ;;  %v8284_v5 = vmul.f32 %v19918_v30, %v21788_v11  ;;  %v8304_v56 = vmul.f32 %v19916_v55, %v21790_v24  ;;  %v8285_v40 = vmul.f32 %v19918_v30, %v21791_v57  ;;  %8590 = vmatpush.bf16.msra.mxu3 %v8371_v35  ;;  %v21809_v35 = vld [vmem:[#allocation63_spill] sm:$0xff] }
 0x6d8   : > { %v8437_v63 = vpack.c.bf16 %v8357_v26, %v8337_v34  ;;  %v8305_v6 = vmul.f32 %v19916_v55, %v21792_v15  ;;  %v21794_v13 = vunpack.c.h.bf16 %v21793_v53  ;;  %v21796_v23 = vunpack.c.h.bf16 %v21795_v27  ;;  %8616 = vmatpush.bf16.msra.mxu1 %v8373_v61  ;;  %v21803_v15 = vld [vmem:[#allocation20_spill] sm:$0xff] }
 0x6d9   : > { %v21798_v25 = vunpack.c.h.bf16 %v21797_v19  ;;  %v21800_v26 = vunpack.c.h.bf16 %v21799_v21  ;;  %v21802_v24 = vunpack.c.l.bf16 %v21801_v1  ;;  %v21805_v8 = vunpack.c.h.bf16 %v21801_v1 }
 0x6da   : > { %v8295_v20 = vmul.f32 %v19918_v30, %v21794_v13  ;;  %v8315_v11 = vmul.f32 %v19916_v55, %v21796_v23  ;;  %v21804_v13 = vunpack.c.l.bf16 %v21803_v15  ;;  %8496 = vmatpush.bf16.msra.mxu2 %v8424_v41  ;;  %8509 = vmatpush.bf16.msra.mxu0 %v8425_v31  ;;  %v21810_v61 = vunpack.c.h.bf16 %v21809_v35  ;;  %v21813_v31 = vld [vmem:[#allocation42_spill] sm:$0xff] }
 0x6db   : > { %v8297_v52 = vmul.f32 %v19918_v30, %v21798_v25  ;;  %v8317_v34 = vmul.f32 %v19916_v55, %v21800_v26  ;;  %v8244_v57 = vmul.f32 %v19922_v36, %v21802_v24  ;;  %v8245_v33 = vmul.f32 %v19922_v36, %v21805_v8  ;;  %v21807_v26 = vld [vmem:[#allocation62_spill] sm:$0xff]  ;;  %8639 = vmatpush.bf16.msrb.mxu3 %v8435_v49 }
 0x6dc   : > { %v8264_v23 = vmul.f32 %v19920_v2, %v21804_v13  ;;  %v21806_v25 = vunpack.c.h.bf16 %v21803_v15  ;;  %v21808_v19 = vunpack.c.h.bf16 %v21807_v26  ;;  %v8275_v27 = vmul.f32 %v19920_v2, %v21810_v61  ;;  %8665 = vmatpush.bf16.msrb.mxu1 %v8437_v63  ;;  %v21815_v61 = vld [vmem:[#allocation19_spill] sm:$0xff]  ;;  %11343 = vmatmul.msk.bf16.vlgmr.msrb.gmra.mxu2 %vm678_vm0, %v21756_v0 }
 0x6dd   : > { %v8404_v13 = vpack.c.bf16 %v8304_v56, %v8284_v5  ;;  %v8405_v1 = vpack.c.bf16 %v8305_v6, %v8285_v40  ;;  %v8415_v53 = vpack.c.bf16 %v8315_v11, %v8295_v20  ;;  %v8417_v8 = vpack.c.bf16 %v8317_v34, %v8297_v52  ;;  %v21817_v56 = vld [vmem:[#allocation17_spill] sm:$0xff]  ;;  %11344 = vmatmul.msk.bf16.vlgmr.msrb.gmra.mxu0 %vm678_vm0, %v21756_v0 }
 0x6de   : > { %v8265_v21 = vmul.f32 %v19920_v2, %v21806_v25  ;;  %v8255_v24 = vmul.f32 %v19922_v36, %v21808_v19  ;;  %v8384_v16 = vpack.c.bf16 %v8264_v23, %v8244_v57  ;;  %v21812_v25 = vunpack.c.h.bf16 %v21811_v62  ;;  %11352 = vmatmul.msk.bf16.vlgmr.msra.gmra.mxu3 %vm678_vm0, %v21756_v0  ;;  %11354 = vmatmul.msk.bf16.vlgmr.msra.gmra.mxu1 %vm678_vm0, %v21756_v0 }
 0x6df   : > { %v21814_v26 = vunpack.c.h.bf16 %v21813_v31  ;;  %8497 = vmatpush.bf16.msra.mxu2 %v8404_v13  ;;  %8510 = vmatpush.bf16.msra.mxu0 %v8405_v1  ;;  %v21816_v49 = vunpack.c.l.bf16 %v21815_v61  ;;  %v21818_v40 = vunpack.c.l.bf16 %v21817_v56  ;;  %v21819_v6 = vunpack.c.h.bf16 %v21815_v61  ;;  %v21827_v13 = vld [vmem:[#allocation61_spill] sm:$0xff] }
 0x6e0   : > { %v8385_v15 = vpack.c.bf16 %v8265_v21, %v8245_v33  ;;  %v8257_v41 = vmul.f32 %v19922_v36, %v21812_v25  ;;  %v8395_v35 = vpack.c.bf16 %v8275_v27, %v8255_v24  ;;  %8640 = vmatpush.bf16.msrb.mxu3 %v8415_v53  ;;  %8666 = vmatpush.bf16.msrb.mxu1 %v8417_v8  ;;  %v21820_v11 = vunpack.c.h.bf16 %v21817_v56  ;;  %v21821_v21 = vld [vmem:[#allocation21_spill] sm:$0xff]  ;;  %v21823_v53 = vld [vmem:[#allocation54_spill] sm:$0xff] }
 0x6e1   : > { %v8277_v19 = vmul.f32 %v19920_v2, %v21814_v26  ;;  %v8204_v5 = vmul.f32 %v20010_v38, %v21816_v49  ;;  %v8224_v63 = vmul.f32 %v20008_v54, %v21818_v40  ;;  %v8205_v20 = vmul.f32 %v20010_v38, %v21819_v6  ;;  %v21825_v33 = vld [vmem:[#allocation53_spill] sm:$0xff] }
 0x6e2   : > { %v8225_v52 = vmul.f32 %v20008_v54, %v21820_v11  ;;  %v21822_v27 = vunpack.c.h.bf16 %v21821_v21  ;;  %v21824_v57 = vunpack.c.h.bf16 %v21823_v53  ;;  %v21826_v26 = vunpack.c.h.bf16 %v21825_v33  ;;  %v21833_v6 = vld [vmem:[#allocation65_spill] sm:$0xff] }
 0x6e3   : > { %v21828_v1 = vunpack.c.h.bf16 %v21827_v13  ;;  %v8397_v25 = vpack.c.bf16 %v8277_v19, %v8257_v41  ;;  %v21829_v61 = vunpack.c.l.bf16 %v21692_v45  ;;  %v21830_v56 = vunpack.c.l.bf16 %v21694_v37  ;;  %8498 = vmatpush.bf16.msra.mxu2 %v8384_v16  ;;  %8511 = vmatpush.bf16.msra.mxu0 %v8385_v15 }
 0x6e4   : > { %v8215_v34 = vmul.f32 %v20010_v38, %v21822_v27  ;;  %v8235_v23 = vmul.f32 %v20008_v54, %v21824_v57  ;;  %v8217_v24 = vmul.f32 %v20010_v38, %v21826_v26  ;;  %8641 = vmatpush.bf16.msrb.mxu3 %v8395_v35  ;;  %v21831_v41 = vunpack.c.l.bf16 %v21668_v50  ;;  %v21835_v35 = vld [vmem:[#allocation81_spill] sm:$0xff] }
 0x6e5   : > { %v8237_v8 = vmul.f32 %v20008_v54, %v21828_v1  ;;  %v8346_v49 = vmul.f32 %v19945_v29, %v21829_v61  ;;  %v8348_v40 = vmul.f32 %v19945_v29, %v21830_v56  ;;  %8667 = vmatpush.bf16.msrb.mxu1 %v8397_v25  ;;  %v21832_v19 = vunpack.c.l.bf16 %v19009_v7 }
 0x6e6   : > { %v8326_v45 = vmul.f32 %v19914_v10, %v21831_v41  ;;  %v21834_v11 = vunpack.c.h.bf16 %v21833_v6  ;;  %v8364_v57 = vpack.c.bf16 %v8224_v63, %v8204_v5  ;;  %v8365_v26 = vpack.c.bf16 %v8225_v52, %v8205_v20 }
 0x6e7   : > { %v8328_v37 = vmul.f32 %v19914_v10, %v21832_v19  ;;  %v8375_v1 = vpack.c.bf16 %v8235_v23, %v8215_v34  ;;  %v8377_v61 = vpack.c.bf16 %v8237_v8, %v8217_v24  ;;  %v21836_v25 = vunpack.c.h.bf16 %v21835_v35  ;;  %v21843_v8 = vld [vmem:[#allocation49_spill] sm:$0xff] }
 0x6e8   : > { %v8359_v27 = vmul.f32 %v19945_v29, %v21834_v11  ;;  %v8426_v16 = vpack.c.bf16 %v8346_v49, %v8326_v45  ;;  %v21837_v56 = vunpack.c.l.bf16 %v21677_v9  ;;  %8499 = vmatpush.bf16.msra.mxu2 %v8364_v57  ;;  %8512 = vmatpush.bf16.msra.mxu0 %v8365_v26  ;;  %v21838_v41 = vunpack.c.l.bf16 %v21679_v44  ;;  %v21841_v9 = vld [vmem:[#allocation55_spill] sm:$0xff] }
 0x6e9   : > { %v8428_v15 = vpack.c.bf16 %v8348_v40, %v8328_v37  ;;  %v8339_v50 = vmul.f32 %v19914_v10, %v21836_v25  ;;  %v21839_v5 = vunpack.c.l.bf16 %v21681_v12  ;;  %v21840_v20 = vunpack.c.l.bf16 %v21683_v14  ;;  %8642 = vmatpush.bf16.msrb.mxu3 %v8375_v1  ;;  %8668 = vmatpush.bf16.msrb.mxu1 %v8377_v61  ;;  %v21851_v25 = vld [vmem:[#allocation52_spill] sm:$0xff] }
 0x6ea   : > { %v8286_v7 = vmul.f32 %v19918_v30, %v21837_v56  ;;  %v8306_v19 = vmul.f32 %v19916_v55, %v21838_v41  ;;  %v21842_v23 = vunpack.c.h.bf16 %v21841_v9  ;;  %v21844_v49 = vunpack.c.h.bf16 %v21843_v8 }
 0x6eb   : > { %v8288_v63 = vmul.f32 %v19918_v30, %v21839_v5  ;;  %v8308_v52 = vmul.f32 %v19916_v55, %v21840_v20  ;;  %v8439_v34 = vpack.c.bf16 %v8359_v27, %v8339_v50  ;;  %v21845_v12 = vunpack.c.l.bf16 %v21698_v39 }
 0x6ec   : > { %v8299_v24 = vmul.f32 %v19918_v30, %v21842_v23  ;;  %v8319_v44 = vmul.f32 %v19916_v55, %v21844_v49  ;;  %8522 = vmatpush.bf16.msrb.mxu2 %v8426_v16  ;;  %8548 = vmatpush.bf16.msrb.mxu0 %v8428_v15  ;;  %v21846_v40 = vunpack.c.l.bf16 %v21700_v46  ;;  %v8406_v37 = vpack.c.bf16 %v8306_v19, %v8286_v7  ;;  %v21849_v16 = vld [vmem:[#allocation7_spill] sm:$0xff]  ;;  %v21857_v23 = vld [vmem:[#allocation60_spill] sm:$0xff] }
 0x6ed   : > { %8691 = vmatpush.bf16.msra.mxu3 %v8439_v34  ;;  %v8246_v14 = vmul.f32 %v19922_v36, %v21845_v12  ;;  %v8408_v11 = vpack.c.bf16 %v8308_v52, %v8288_v63  ;;  %v21847_v27 = vunpack.c.l.bf16 %v21702_v51  ;;  %v21848_v26 = vunpack.c.l.bf16 %v21704_v18  ;;  %11345 = vmatmul.msk.bf16.vlgmr.msra.gmra.mxu2 %vm678_vm0, %v21756_v0 }
 0x6ee   : > { %v8266_v45 = vmul.f32 %v19920_v2, %v21846_v40  ;;  %v8419_v61 = vpack.c.bf16 %v8319_v44, %v8299_v24  ;;  %v21850_v15 = vunpack.c.h.bf16 %v21849_v16  ;;  %v21852_v50 = vunpack.c.h.bf16 %v21851_v25  ;;  %11346 = vmatmul.msk.bf16.vlgmr.msra.gmra.mxu0 %vm678_vm0, %v21756_v0  ;;  %11356 = vmatmul.msk.bf16.vlgmr.msrb.gmra.mxu3 %vm678_vm0, %v21756_v0 }
 0x6ef   : > { %v8248_v57 = vmul.f32 %v19922_v36, %v21847_v27  ;;  %v8268_v1 = vmul.f32 %v19920_v2, %v21848_v26  ;;  %v21853_v7 = vunpack.c.l.bf16 %v21618_v28  ;;  %v21854_v41 = vunpack.c.l.bf16 %v18657_v42  ;;  %v21859_v28 = vld [vmem:[#allocation68_spill] sm:$0xff]  ;;  %v21865_v27 = vld [vmem:[#allocation59_spill] sm:$0xff]  ;;  %11358 = vmatmul.msk.bf16.vlgmr.msrb.gmra.mxu1 %vm678_vm0, %v21756_v0 }
 0x6f0   : > { %v8259_v39 = vmul.f32 %v19922_v36, %v21850_v15  ;;  %v8279_v46 = vmul.f32 %v19920_v2, %v21852_v50  ;;  %8523 = vmatpush.bf16.msrb.mxu2 %v8406_v37  ;;  %8549 = vmatpush.bf16.msrb.mxu0 %v8408_v11  ;;  %v8386_v56 = vpack.c.bf16 %v8266_v45, %v8246_v14  ;;  %v21855_v5 = vunpack.c.l.bf16 %v21729_v3  ;;  %v21863_v45 = vld [vmem:[#allocation45_spill] sm:$0xff] }
 0x6f1   : > { %8692 = vmatpush.bf16.msra.mxu3 %v8419_v61  ;;  %v8388_v51 = vpack.c.bf16 %v8268_v1, %v8248_v57  ;;  %v8206_v18 = vmul.f32 %v20010_v38, %v21853_v7  ;;  %v8208_v19 = vmul.f32 %v20010_v38, %v21854_v41  ;;  %v21856_v52 = vunpack.c.l.bf16 %v21726_v59  ;;  %v21867_v1 = vld [vmem:[#allocation46_spill] sm:$0xff] }
 0x6f2   : > { %v8228_v63 = vmul.f32 %v20008_v54, %v21855_v5  ;;  %v8399_v20 = vpack.c.bf16 %v8279_v46, %v8259_v39  ;;  %v21858_v24 = vunpack.c.h.bf16 %v21857_v23  ;;  %v21860_v44 = vunpack.c.h.bf16 %v21859_v28  ;;  %v21869_v39 = vld [vmem:[#allocation58_spill] sm:$0xff] }
 0x6f3   : > { %v8226_v34 = vmul.f32 %v20008_v54, %v21856_v52  ;;  %v21861_v42 = vunpack.c.l.bf16 %v21736_v43  ;;  %v21862_v59 = vunpack.c.l.bf16 %v21738_v48  ;;  %v21864_v37 = vunpack.c.l.bf16 %v21863_v45 }
 0x6f4   : > { %v8219_v49 = vmul.f32 %v20010_v38, %v21858_v24  ;;  %v8239_v12 = vmul.f32 %v20008_v54, %v21860_v44  ;;  %8550 = vmatpush.bf16.msrb.mxu0 %v8388_v51  ;;  %8524 = vmatpush.bf16.msrb.mxu2 %v8386_v56  ;;  %v8368_v40 = vpack.c.bf16 %v8228_v63, %v8208_v19  ;;  %v21866_v57 = vunpack.c.l.bf16 %v21865_v27 }
 0x6f5   : > { %v8350_v3 = vmul.f32 %v19945_v29, %v21861_v42  ;;  %v8352_v14 = vmul.f32 %v19945_v29, %v21862_v59  ;;  %8693 = vmatpush.bf16.msra.mxu3 %v8399_v20  ;;  %v8330_v11 = vmul.f32 %v19914_v10, %v21864_v37  ;;  %v8366_v48 = vpack.c.bf16 %v8226_v34, %v8206_v18  ;;  %v21877_v42 = vld [vmem:[#allocation72_spill] sm:$0xff]  ;;  %v21879_v59 = vld [vmem:[#allocation73_spill] sm:$0xff] }
 0x6f6   : > { %v8332_v43 = vmul.f32 %v19914_v10, %v21866_v57  ;;  %v8379_v26 = vpack.c.bf16 %v8239_v12, %v8219_v49  ;;  %v21868_v61 = vunpack.c.l.bf16 %v21867_v1  ;;  %v21870_v50 = vunpack.c.l.bf16 %v21869_v39  ;;  %v21883_v37 = vld [vmem:[#allocation37_spill] sm:$0xff] }
 0x6f7   : > { %v8430_v56 = vpack.c.bf16 %v8350_v3, %v8330_v11  ;;  %v21871_v7 = vunpack.c.l.bf16 %v21740_v32  ;;  %v21872_v18 = vunpack.c.l.bf16 %v21742_v60  ;;  %v21873_v5 = vunpack.c.l.bf16 %v21750_v17 }
 0x6f8   : > { %v8290_v15 = vmul.f32 %v19918_v30, %v21868_v61  ;;  %v8310_v46 = vmul.f32 %v19916_v55, %v21870_v50  ;;  %8551 = vmatpush.bf16.msrb.mxu0 %v8368_v40  ;;  %v8432_v51 = vpack.c.bf16 %v8352_v14, %v8332_v43  ;;  %8525 = vmatpush.bf16.msrb.mxu2 %v8366_v48  ;;  %v21874_v20 = vunpack.c.l.bf16 %v21752_v22  ;;  %v21881_v40 = vld [vmem:[#allocation38_spill] sm:$0xff]  ;;  %v21886_v48 = vld [vmem:[#allocation40_spill] sm:$0xff] }
 0x6f9   : > { %v8292_v41 = vmul.f32 %v19918_v30, %v21871_v7  ;;  %v8312_v19 = vmul.f32 %v19916_v55, %v21872_v18  ;;  %8694 = vmatpush.bf16.msra.mxu3 %v8379_v26  ;;  %v8250_v63 = vmul.f32 %v19922_v36, %v21873_v5  ;;  %v21875_v32 = vunpack.c.l.bf16 %v21754_v58  ;;  %v21888_v61 = vld [vmem:[#allocation66_spill] sm:$0xff]  ;;  %v21894_v5 = vld [vmem:[#allocation79_spill] sm:$0xff] }
 0x6fa   : > { %v8270_v52 = vmul.f32 %v19920_v2, %v21874_v20  ;;  %v21876_v60 = vunpack.c.l.bf16 %v21757_v4  ;;  %v8410_v49 = vpack.c.bf16 %v8310_v46, %v8290_v15  ;;  %v21878_v3 = vunpack.c.l.bf16 %v21877_v42 }
 0x6fb   : > { %v8252_v34 = vmul.f32 %v19922_v36, %v21875_v32  ;;  %v8412_v44 = vpack.c.bf16 %v8312_v19, %v8292_v41  ;;  %v21880_v14 = vunpack.c.l.bf16 %v21879_v59  ;;  %v21882_v45 = vunpack.c.l.bf16 %v21881_v40  ;;  %v21892_v41 = vld [vmem:[#allocation64_spill] sm:$0xff]  ;;  %v21896_v32 = vld [vmem:[#allocation70_spill] sm:$0xff] }
 0x6fc   : > { %8574 = vmatpush.bf16.msra.mxu2 %v8430_v56  ;;  %8600 = vmatpush.bf16.msra.mxu0 %v8432_v51  ;;  %v8272_v24 = vmul.f32 %v19920_v2, %v21876_v60  ;;  %v8390_v12 = vpack.c.bf16 %v8270_v52, %v8250_v63  ;;  %v8210_v22 = vmul.f32 %v20010_v38, %v21878_v3  ;;  %v21884_v11 = vunpack.c.l.bf16 %v21883_v37  ;;  %v21890_v56 = vld [vmem:[#allocation39_spill] sm:$0xff] }
 0x6fd   : > { %v8230_v58 = vmul.f32 %v20008_v54, %v21880_v14  ;;  %v8212_v4 = vmul.f32 %v20010_v38, %v21882_v45  ;;  %v21885_v57 = vunpack.c.l.bf16 %v21776_v47  ;;  %v21887_v26 = vunpack.c.l.bf16 %v21886_v48  ;;  %11347 = vmatmul.msk.bf16.vlgmr.msrb.gmra.mxu2 %vm678_vm0, %v21756_v0 }
 0x6fe   : > { %v8392_v17 = vpack.c.bf16 %v8272_v24, %v8252_v34  ;;  %v8232_v27 = vmul.f32 %v20008_v54, %v21884_v11  ;;  %v21889_v15 = vunpack.c.l.bf16 %v21888_v61  ;;  %v21891_v51 = vunpack.c.l.bf16 %v21890_v56  ;;  %v21898_v24 = vld [vmem:[#allocation80_spill] sm:$0xff]  ;;  %11349 = vmatmul.msk.bf16.vlgmr.msrb.gmra.mxu0 %vm678_vm0, %v21756_v0  ;;  %11360 = vmatmul.msk.bf16.vlgmr.msra.gmra.mxu3 %vm678_vm0, %v21756_v0 }
 0x6ff   : > { %v8354_v43 = vmul.f32 %v19945_v29, %v21885_v57  ;;  %v8356_v1 = vmul.f32 %v19945_v29, %v21887_v26  ;;  %v8370_v50 = vpack.c.bf16 %v8230_v58, %v8210_v22  ;;  %v21893_v18 = vunpack.c.l.bf16 %v21892_v41  ;;  %v21902_v22 = vld [vmem:[#allocation63_spill] sm:$0xff] }
 0x700   : > { %8575 = vmatpush.bf16.msra.mxu2 %v8410_v49  ;;  %8601 = vmatpush.bf16.msra.mxu0 %v8412_v44  ;;  %v8334_v39 = vmul.f32 %v19914_v10, %v21889_v15  ;;  %v8372_v46 = vpack.c.bf16 %v8232_v27, %v8212_v4  ;;  %v8336_v47 = vmul.f32 %v19914_v10, %v21891_v51  ;;  %v21895_v63 = vunpack.c.l.bf16 %v21894_v5 }
 0x701   : > { %v8294_v19 = vmul.f32 %v19918_v30, %v21893_v18  ;;  %v21897_v34 = vunpack.c.l.bf16 %v21896_v32  ;;  %v21899_v49 = vunpack.c.l.bf16 %v21898_v24  ;;  %v21903_v59 = vunpack.c.l.bf16 %v21902_v22 }
 0x702   : > { %v8434_v7 = vpack.c.bf16 %v8354_v43, %v8334_v39  ;;  %v8314_v20 = vmul.f32 %v19916_v55, %v21895_v63  ;;  %v8436_v52 = vpack.c.bf16 %v8356_v1, %v8336_v47  ;;  %v21904_v40 = vunpack.c.l.bf16 %v21811_v62 }
 0x703   : > { %v8296_v60 = vmul.f32 %v19918_v30, %v21897_v34  ;;  %v8316_v44 = vmul.f32 %v19916_v55, %v21899_v49  ;;  %v8274_v14 = vmul.f32 %v19920_v2, %v21903_v59  ;;  %v21905_v4 = vunpack.c.l.bf16 %v21813_v31 }
 0x704   : > { %8576 = vmatpush.bf16.msra.mxu2 %v8390_v12  ;;  %8602 = vmatpush.bf16.msra.mxu0 %v8392_v17  ;;  %v8414_v12 = vpack.c.bf16 %v8314_v20, %v8294_v19  ;;  %v21900_v17 = vld [vmem:[#allocation62_spill] sm:$0xff]  ;;  %v8256_v45 = vmul.f32 %v19922_v36, %v21904_v40  ;;  %v21906_v27 = vunpack.c.l.bf16 %v21821_v21  ;;  %v21907_v43 = vunpack.c.l.bf16 %v21823_v53 }
 0x705   : > { %v21901_v42 = vunpack.c.l.bf16 %v21900_v17  ;;  %v8416_v58 = vpack.c.bf16 %v8316_v44, %v8296_v60  ;;  %v8276_v37 = vmul.f32 %v19920_v2, %v21905_v4  ;;  %v21908_v62 = vunpack.c.l.bf16 %v21825_v33 }
 0x706   : > { %v8214_v57 = vmul.f32 %v20010_v38, %v21906_v27  ;;  %v8234_v48 = vmul.f32 %v20008_v54, %v21907_v43  ;;  %v21909_v31 = vunpack.c.l.bf16 %v21827_v13  ;;  %v21910_v15 = vunpack.c.l.bf16 %v21833_v6 }
 0x707   : > { %v8254_v3 = vmul.f32 %v19922_v36, %v21901_v42  ;;  %v8396_v26 = vpack.c.bf16 %v8276_v37, %v8256_v45  ;;  %v8216_v1 = vmul.f32 %v20010_v38, %v21908_v62  ;;  %v21911_v53 = vunpack.c.l.bf16 %v21835_v35 }
 0x708   : > { %8577 = vmatpush.bf16.msra.mxu2 %v8370_v50  ;;  %8603 = vmatpush.bf16.msra.mxu0 %v8372_v46  ;;  %v8236_v61 = vmul.f32 %v20008_v54, %v21909_v31  ;;  %v8358_v21 = vmul.f32 %v19945_v29, %v21910_v15  ;;  %v8374_v39 = vpack.c.bf16 %v8234_v48, %v8214_v57  ;;  %v21912_v56 = vunpack.c.l.bf16 %v21841_v9 }
 0x709   : > { %v8394_v11 = vpack.c.bf16 %v8274_v14, %v8254_v3  ;;  %v8338_v50 = vmul.f32 %v19914_v10, %v21911_v53  ;;  %v21913_v51 = vunpack.c.l.bf16 %v21843_v8  ;;  %v21914_v6 = vunpack.c.l.bf16 %v21849_v16 }
 0x70a   : > { %v8376_v46 = vpack.c.bf16 %v8236_v61, %v8216_v1  ;;  %v8298_v13 = vmul.f32 %v19918_v30, %v21912_v56  ;;  %v21915_v35 = vunpack.c.l.bf16 %v21851_v25 }
 0x70b   : > { %v8438_v33 = vpack.c.bf16 %v8358_v21, %v8338_v50  ;;  %v8318_v47 = vmul.f32 %v19916_v55, %v21913_v51  ;;  %v8258_v10 = vmul.f32 %v19922_v36, %v21914_v6  ;;  %v21916_v55 = vunpack.c.l.bf16 %v21857_v23 }
 0x70c   : > { %8626 = vmatpush.bf16.msrb.mxu2 %v8434_v7  ;;  %8652 = vmatpush.bf16.msrb.mxu0 %v8436_v52  ;;  %v8278_v9 = vmul.f32 %v19920_v2, %v21915_v35  ;;  %v21917_v7 = vunpack.c.l.bf16 %v21859_v28 }
 0x70d   : > { %11351 = vmatmul.msk.bf16.vlgmr.msra.gmra.mxu2 %vm678_vm0, %v21756_v0  ;;  %v8418_v29 = vpack.c.bf16 %v8318_v47, %v8298_v13  ;;  %v8218_v8 = vmul.f32 %v20010_v38, %v21916_v55 }
 0x70e   : > { %11353 = vmatmul.msk.bf16.vlgmr.msra.gmra.mxu0 %vm678_vm0, %v21756_v0  ;;  %v8398_v30 = vpack.c.bf16 %v8278_v9, %v8258_v10  ;;  %v8238_v41 = vmul.f32 %v20008_v54, %v21917_v7 }
 0x710   : > { %8627 = vmatpush.bf16.msrb.mxu2 %v8414_v12  ;;  %8653 = vmatpush.bf16.msrb.mxu0 %v8416_v58  ;;  %v8378_v16 = vpack.c.bf16 %v8238_v41, %v8218_v8 }
 0x714   : > { %8628 = vmatpush.bf16.msrb.mxu2 %v8394_v11  ;;  %8654 = vmatpush.bf16.msrb.mxu0 %v8396_v26 }
 0x718   : > { %8629 = vmatpush.bf16.msrb.mxu2 %v8374_v39  ;;  %8655 = vmatpush.bf16.msrb.mxu0 %v8376_v46 }
 0x71c   : > { %8678 = vmatpush.bf16.msra.mxu2 %v8438_v33 }
 0x71d   : > { %11355 = vmatmul.msk.bf16.vlgmr.msrb.gmra.mxu2 %vm678_vm0, %v21756_v0 }
 0x71e   : > { %11357 = vmatmul.msk.bf16.vlgmr.msrb.gmra.mxu0 %vm678_vm0, %v21756_v0 }
 0x720   : > { %8679 = vmatpush.bf16.msra.mxu2 %v8418_v29 }
 0x724   : > { %8680 = vmatpush.bf16.msra.mxu2 %v8398_v30 }
 0x728   : > { %8681 = vmatpush.bf16.msra.mxu2 %v8378_v16 }
 0x72d   : > { %11359 = vmatmul.msk.bf16.vlgmr.msra.gmra.mxu2 %vm678_vm0, %v21756_v0  ;;  %vm8758_vm0 = vcmask 1042434  }
 0x749   : > { %v8462_v2 = vpop.f32.mrf.mxu0 }
 0x74a   : > { %v8566_v5 = vpop.f32.mrf.mxu1  ;;  %v8701_v17 = vmul.f32 0.015625, %v8462_v2 }
 0x74b   : > { %v8709_v8 = vmul.f32 0.015625, %v8566_v5 }
 0x74c   : > { %v8740_v45 = vrot.slane %v8701_v17, 7  ;;  %v8785_v17 = vlaneseq }
 0x74e   : > { %vm8787_vm8 = vcmp.lt.s32.totalorder %v8785_v17, 512 }
 0x74f   : > { %v8449_v36 = vpop.f32.mrf.mxu2 }
 0x750   : > { %v8540_v54 = vpop.f32.mrf.mxu3  ;;  %v8700_v40 = vmul.f32 0.015625, %v8449_v36 }
 0x751   : > { %v8464_v25 = vpop.f32.mrf.mxu0  ;;  %v8707_v22 = vmul.f32 0.015625, %v8540_v54 }
 0x752   : > { %v8568_v32 = vpop.f32.mrf.mxu1  ;;  %v8757_v1 = vsel %vm1412_vm1, %v8700_v40, %v8740_v45 }
 0x753   : > { %v8746_v43 = vrot.slane %v8707_v22, 1 }
 0x757   : > { %v8451_v38 = vpop.f32.mrf.mxu2 }
 0x758   : > { %v8542_v63 = vpop.f32.mrf.mxu3 }
 0x75a   : > { %v8488_v23 = vpop.f32.mrf.mxu0 }
 0x75b   : > { %v8618_v49 = vpop.f32.mrf.mxu1  ;;  %v8703_v0 = vmul.f32 0.015625, %v8488_v23 }
 0x75c   : > { %v8713_v30 = vmul.f32 0.015625, %v8618_v49 }
 0x75d   : > { %v8742_v58 = vrot.slane %v8703_v0, 5 }
 0x75e   : > { %v8751_v25 = vrot.slane %v8713_v30, 3 }
 0x75f   : > { %v8475_v28 = vpop.f32.mrf.mxu2 }
 0x760   : > { %v8702_v44 = vmul.f32 0.015625, %v8475_v28  ;;  %v8747_v28 = vrot.slane %v8709_v8, 7 }
 0x761   : > { %v8592_v34 = vpop.f32.mrf.mxu3 }
 0x762   : > { %v8490_v18 = vpop.f32.mrf.mxu0  ;;  %v8741_v14 = vrot.slane %v8702_v44, 6  ;;  %v8711_v35 = vmul.f32 0.015625, %v8592_v34 }
 0x763   : > { %v8620_v37 = vpop.f32.mrf.mxu1 }
 0x764   : > { %v8759_v48 = vsel %vm8758_vm0, %v8741_v14, %v8742_v58  ;;  %v8749_v2 = vrot.slane %v8711_v35, 5 }
 0x765   : > { %v8761_v21 = vsel %vm8760_vm5, %v8757_v1, %v8759_v48 }
 0x767   : > { %v8477_v19 = vpop.f32.mrf.mxu2 }
 0x769   : > { %v8594_v12 = vpop.f32.mrf.mxu3 }
 0x76b   : > { %v8514_v20 = vpop.f32.mrf.mxu0 }
 0x76c   : > { %v8705_v3 = vmul.f32 0.015625, %v8514_v20  ;;  %v8670_v46 = vpop.f32.mrf.mxu1 }
 0x76d   : > { %v8717_v44 = vmul.f32 0.015625, %v8670_v46 }
 0x76e   : > { %v8744_v27 = vrot.slane %v8705_v3, 3 }
 0x76f   : > { %v8754_v3 = vrot.slane %v8717_v44, 7 }
 0x770   : > { %v8501_v52 = vpop.f32.mrf.mxu2 }
 0x771   : > { %v8704_v42 = vmul.f32 0.015625, %v8501_v52  ;;  %v8644_v62 = vpop.f32.mrf.mxu3 }
 0x772   : > { %v8715_v7 = vmul.f32 0.015625, %v8644_v62 }
 0x773   : > { %v8516_v60 = vpop.f32.mrf.mxu0  ;;  %v8743_v11 = vrot.slane %v8704_v42, 4 }
 0x774   : > { %v8672_v51 = vpop.f32.mrf.mxu1  ;;  %v8753_v54 = vrot.slane %v8715_v7, 1 }
 0x775   : > { %v8763_v31 = vsel %vm8762_vm3, %v8743_v11, %v8744_v27 }
 0x778   : > { %v8503_v24 = vpop.f32.mrf.mxu2 }
 0x779   : > { %v8646_v33 = vpop.f32.mrf.mxu3 }
 0x77b   : > { %v8553_v59 = vpop.f32.mrf.mxu0 }
 0x77c   : > { %v8708_v23 = vmul.f32 0.015625, %v8553_v59 }
 0x77e   : > { %v8770_v52 = vsel %vm1412_vm1, %v8708_v23, %v8747_v28 }
 0x780   : > { %v8527_v4 = vpop.f32.mrf.mxu2 }
 0x781   : > { %v8706_v57 = vmul.f32 0.015625, %v8527_v4  ;;  %v8696_v47 = vpop.f32.mrf.mxu3 }
 0x782   : > { %v8719_v0 = vmul.f32 0.015625, %v8696_v47 }
 0x783   : > { %v8745_v26 = vrot.slane %v8706_v57, 2  ;;  %v8555_v15 = vpop.f32.mrf.mxu0 }
 0x784   : > { %v8756_v59 = vrot.slane %v8719_v0, 5 }
 0x785   : > { %v8765_v61 = vsel %vm8764_vm4, %v8745_v26, %v8746_v43 }
 0x786   : > { %v8767_v39 = vsel %vm8766_vm6, %v8763_v31, %v8765_v61 }
 0x787   : > { %v8769_v53 = vsel %vm8768_vm7, %v8761_v21, %v8767_v39 }
 0x788   : > { %8783 = vst [vmem:[%s20463_s26] sm:$0xff] %v8769_v53  ;;  %v8529_v50 = vpop.f32.mrf.mxu2 }
 0x789   : > { %v8698_v55 = vpop.f32.mrf.mxu3 }
 0x78b   : > { %v8605_v56 = vpop.f32.mrf.mxu0 }
 0x78c   : > { %v8712_v9 = vmul.f32 0.015625, %v8605_v56 }
 0x78e   : > { %v8750_v36 = vrot.slane %v8712_v9, 4 }
 0x790   : > { %v8579_v13 = vpop.f32.mrf.mxu2  ;;  %v8773_v63 = vsel %vm8762_vm3, %v8750_v36, %v8751_v25 }
 0x791   : > { %v8710_v10 = vmul.f32 0.015625, %v8579_v13 }
 0x793   : > { %v8607_v29 = vpop.f32.mrf.mxu0  ;;  %v8748_v16 = vrot.slane %v8710_v10, 6 }
 0x795   : > { %v8771_v19 = vsel %vm8758_vm0, %v8748_v16, %v8749_v2 }
 0x796   : > { %v8772_v34 = vsel %vm8760_vm5, %v8770_v52, %v8771_v19 }
 0x798   : > { %v8581_v6 = vpop.f32.mrf.mxu2 }
 0x79b   : > { %v8657_v41 = vpop.f32.mrf.mxu0 }
 0x79c   : > { %v8716_v42 = vmul.f32 0.015625, %v8657_v41 }
 0x79e   : > { %v8777_v58 = vsel %vm1412_vm1, %v8716_v42, %v8754_v3 }
 0x7a0   : > { %v8631_v38 = vpop.f32.mrf.mxu2 }
 0x7a1   : > { %v8714_v18 = vmul.f32 0.015625, %v8631_v38 }
 0x7a3   : > { %v8752_v20 = vrot.slane %v8714_v18, 2  ;;  %v8659_v32 = vpop.f32.mrf.mxu0 }
 0x7a5   : > { %v8774_v5 = vsel %vm8764_vm4, %v8752_v20, %v8753_v54 }
 0x7a6   : > { %v8775_v60 = vsel %vm8766_vm6, %v8773_v63, %v8774_v5 }
 0x7a7   : > { %v8776_v24 = vsel %vm8768_vm7, %v8772_v34, %v8775_v60 }
 0x7a8   : > { %8784 = vst [vmem:[%s20463_s26 + $0x8] sm:$0xff] %v8776_v24  ;;  %v8633_v49 = vpop.f32.mrf.mxu2 }
 0x7b0   : > { %v8683_v12 = vpop.f32.mrf.mxu2 }
 0x7b1   : > { %v8718_v22 = vmul.f32 0.015625, %v8683_v12 }
 0x7b3   : > { %v8755_v14 = vrot.slane %v8718_v22, 6 }
 0x7b5   : > { %v8778_v40 = vsel %vm8758_vm0, %v8755_v14, %v8756_v59 }
 0x7b6   : > { %v8779_v45 = vsel %vm8760_vm5, %v8777_v58, %v8778_v40 }
 0x7b7   : > { %8789 = vst.msk [vmem:[%s20463_s26 + $0x10] sm:$0xf] %vm8787_vm8, %v8779_v45 }
 0x7b8   : > { %v8685_v4 = vpop.f32.mrf.mxu2 }
 0x7b9 PF: > { %s14_s15 = sadd.s32 1, %s12097_s15  }
 0x7ba   : > { %p11_p4 = scmp.ge.s32.totalorder %s14_s15, 4  }
 0x7bc   :  { %13 = sbr.rel (!%p11_p4) target bundleno = 1 (0x1), region = 67 }

</bundles_post_ra>
